<compile_context>
chip_gen: v5e
topology: v5e:2x2
jax: 0.10.0
libtpu: 0.0.40
codegen_flags: <defaults>
</compile_context>

<pallas_src>
import numpy as np
import jax
import jax.numpy as jnp
from jax.experimental import pallas as pl
from jax.experimental.pallas import tpu as pltpu


# ----------------------------------------------------------------------------
# Fused kernel
# ----------------------------------------------------------------------------
def _cnn_min_kernel(a1_ref, w1_ref, b1_ref, w2_ref, b2_ref,
                    w1p_ref, b1f_ref, w2f_ref, b2f_ref, w3f_ref, b3f_ref,
                    o_ref):
    bn = o_ref.shape[0]                       # samples in this batch block
    a1 = a1_ref[0]                            # (RB, 4) doubly-im2col'd pixels
    rb = a1.shape[0]

    # ---- conv1: one MXU dot covering all 4 pool-window slots -----------------
    c1 = jnp.dot(a1, w1_ref[...], preferred_element_type=jnp.float32)   # (RB,16)

    # ---- maxpool1 over the leading pool1-slot row blocks ----------------------
    # conv1 bias is identical in all 4 slots -> adding it after the max is exact.
    q = rb // 4
    p1 = jnp.maximum(jnp.maximum(c1[0 * q:1 * q], c1[1 * q:2 * q]),
                     jnp.maximum(c1[2 * q:3 * q], c1[3 * q:4 * q])) + b1_ref[...]

    # ---- conv2: sum over the 4 kernel taps, MXU contraction over cin=16 -------
    g = q // 4
    acc2 = jnp.zeros((g, 32), jnp.float32)
    for k in range(4):                        # tap (di2, dj2)
        acc2 = acc2 + jnp.dot(p1[k * g:(k + 1) * g, :],
                              w2_ref[k * 16:(k + 1) * 16, :],
                              preferred_element_type=jnp.float32)

    # ---- maxpool2 over the leading pool2-slot row blocks (bias after max) -----
    m2 = g // 4                               # = 36*bn rows, ordered (h*6+w, n)
    p2 = jnp.maximum(jnp.maximum(acc2[0 * m2:1 * m2], acc2[1 * m2:2 * m2]),
                     jnp.maximum(acc2[2 * m2:3 * m2], acc2[3 * m2:4 * m2])) + b2_ref[...]

    # ---- fc1: NCHW flatten is pre-folded into w1p's row order (h, w, cin). ----
    # Contract (spatial, cin) as 36 per-pixel (bn,32)@(32,256) bf16 matmuls to
    # avoid any lane-changing reshape; weight traffic equals one big dot.
    n_pix = p2.shape[0] // bn                 # 36
    h1 = jnp.zeros((bn, w1p_ref.shape[1]), jnp.float32)
    for s in range(n_pix):
        h1 = h1 + jnp.dot(p2[s * bn:(s + 1) * bn, :].astype(jnp.bfloat16),
                          w1p_ref[s * 32:(s + 1) * 32, :],
                          preferred_element_type=jnp.float32)
    h1 = jnp.maximum(h1 + b1f_ref[...], 0.0)  # (bn, 256); padded lanes stay 0
    # TODO(synk): nn.Dropout(0.2) is identity in eval mode; the training-mode
    # PRNG mask + 1/(1-p) scaling is not implemented.

    # ---- fc2 + relu ------------------------------------------------------------
    h2 = jnp.dot(h1.astype(jnp.bfloat16), w2f_ref[...],
                 preferred_element_type=jnp.float32) + b2f_ref[...]
    h2 = jnp.maximum(h2, 0.0)                 # (bn, 128); padded lanes stay 0

    # ---- logits + softmax (f32) ------------------------------------------------
    logits = jnp.dot(h2.astype(jnp.bfloat16), w3f_ref[...],
                     preferred_element_type=jnp.float32) + b3f_ref[...]
    m = jnp.max(logits, axis=-1, keepdims=True)
    e = jnp.exp(logits - m)
    o_ref[...] = e / jnp.sum(e, axis=-1, keepdims=True)


# ----------------------------------------------------------------------------
# Input im2col (the only XLA glue in the whole forward pass)
# ----------------------------------------------------------------------------
def _patch_indices():
    """Static flat-pixel indices for the fused double im2col.

    Row order (outer->inner): pool1 slot (a1,b1), conv2 tap (di2,dj2),
    pool2 slot (a2,b2), output pixel (h,w).  Lane order: conv1 tap (di1,dj1).
    """
    r2 = np.arange(2)
    a1, b1, di2, dj2, a2, b2, h, w, di1, dj1 = np.meshgrid(
        r2, r2, r2, r2, r2, r2, np.arange(6), np.arange(6), r2, r2,
        indexing="ij")
    row = 4 * h + 2 * a2 + 2 * di2 + a1 + di1
    col = 4 * w + 2 * b2 + 2 * dj2 + b1 + dj1
    return (row * 28 + col).reshape(4 * 4 * 4 * 36, 4).astype(np.int32)


_PATCH_IDX = _patch_indices()                 # (2304, 4), values in [0, 784)


def _im2col_input(x, block_n):
    """(N,1,28,28) f32 -> (N//block_n, 2304*block_n, 4)."""
    n = x.shape[0]
    nb = n // block_n
    flat = x.reshape(n, 28 * 28)
    patches = jnp.take(flat, jnp.asarray(_PATCH_IDX.reshape(-1)), axis=1)
    patches = patches.reshape(nb, block_n, 2304, 4)
    # within each batch block: rows = (slot1, tap2, slot2, pixel, n_local)
    return patches.transpose(0, 2, 1, 3).reshape(nb, 2304 * block_n, 4)


# ----------------------------------------------------------------------------
# Forward
# ----------------------------------------------------------------------------
def cnn_min_forward(x, params):
    n = x.shape[0]
    block_n = n if n <= 8 else 8
    assert n % block_n == 0, "batch must be <= 8 or a multiple of 8"
    nb = n // block_n
    rb = 2304 * block_n

    a1 = _im2col_input(x, block_n)

    return pl.pallas_call(
        _cnn_min_kernel,
        out_shape=jax.ShapeDtypeStruct((n, 10), jnp.float32),
        grid=(nb,),
        in_specs=[
            pl.BlockSpec((1, rb, 4), lambda b: (b, 0, 0)),     # im2col'd input
            pl.BlockSpec((4, 16), lambda b: (0, 0)),           # conv1 w
            pl.BlockSpec((1, 16), lambda b: (0, 0)),           # conv1 b
            pl.BlockSpec((64, 32), lambda b: (0, 0)),          # conv2 w
            pl.BlockSpec((1, 32), lambda b: (0, 0)),           # conv2 b
            pl.BlockSpec((1152, 256), lambda b: (0, 0)),       # fc1 w (perm+pad, bf16)
            pl.BlockSpec((1, 256), lambda b: (0, 0)),          # fc1 b
            pl.BlockSpec((256, 128), lambda b: (0, 0)),        # fc2 w (pad, bf16)
            pl.BlockSpec((1, 128), lambda b: (0, 0)),          # fc2 b
            pl.BlockSpec((128, 10), lambda b: (0, 0)),         # fc3 w (pad, bf16)
            pl.BlockSpec((1, 10), lambda b: (0, 0)),           # fc3 b
        ],
        out_specs=pl.BlockSpec((block_n, 10), lambda b: (b, 0)),
        compiler_params=pltpu.CompilerParams(
            dimension_semantics=("parallel",)),
    )(a1,
      params["conv1_w"], params["conv1_b"],
      params["conv2_w"], params["conv2_b"],
      params["fc1_w"], params["fc1_b"],
      params["fc2_w"], params["fc2_b"],
      params["fc3_w"], params["fc3_b"])


# ----------------------------------------------------------------------------
# Parameters: generate in PyTorch layouts, then convert once (host-side)
# ----------------------------------------------------------------------------
def pack_params(c1w, c1b, c2w, c2b, f1w, f1b, f2w, f2b, f3w, f3b):
    """Convert PyTorch-layout weights into the kernel layouts (one-time cost)."""
    bf16 = jnp.bfloat16
    # conv1 (16,1,2,2) -> rows (kh,kw) = (4, 16)
    conv1_w = c1w.reshape(16, 4).T
    conv1_b = c1b.reshape(1, 16)
    # conv2 (32,16,2,2) -> rows (kh,kw,cin) = (64, 32)
    conv2_w = c2w.transpose(2, 3, 1, 0).reshape(64, 32)
    conv2_b = c2b.reshape(1, 32)
    # fc1 (200,1152): fold NCHW flatten k = c*36 + (h*6+w) -> rows (h*6+w, c);
    # pad 200 -> 256 output lanes.
    w1p = f1w.reshape(200, 32, 36).transpose(2, 1, 0).reshape(1152, 200)
    w1p = jnp.pad(w1p, ((0, 0), (0, 56))).astype(bf16)
    b1p = jnp.pad(f1b, (0, 56)).reshape(1, 256)
    # fc2 (100,200) -> (in,out) padded to (256, 128)
    w2p = jnp.pad(f2w.T, ((0, 56), (0, 28))).astype(bf16)
    b2p = jnp.pad(f2b, (0, 28)).reshape(1, 128)
    # fc3 (10,100) -> (in,out), pad input rows to 128, keep 10 output lanes
    w3p = jnp.pad(f3w.T, ((0, 28), (0, 0))).astype(bf16)
    b3p = f3b.reshape(1, 10)
    return dict(conv1_w=conv1_w, conv1_b=conv1_b,
                conv2_w=conv2_w, conv2_b=conv2_b,
                fc1_w=w1p, fc1_b=b1p,
                fc2_w=w2p, fc2_b=b2p,
                fc3_w=w3p, fc3_b=b3p)


def init_params(key):
    ks = jax.random.split(key, 10)
    f32 = jnp.float32

    def rnd(k, fan_in, shape):
        return jax.random.normal(k, shape, f32) / jnp.sqrt(f32(fan_in))

    # PyTorch-layout parameters
    conv1_w_t = rnd(ks[0], 4, (16, 1, 2, 2))
    conv1_b_t = rnd(ks[1], 4, (16,))
    conv2_w_t = rnd(ks[2], 64, (32, 16, 2, 2))
    conv2_b_t = rnd(ks[3], 64, (32,))
    fc1_w_t = rnd(ks[4], 1152, (200, 1152))
    fc1_b_t = rnd(ks[5], 1152, (200,))
    fc2_w_t = rnd(ks[6], 200, (100, 200))
    fc2_b_t = rnd(ks[7], 200, (100,))
    fc3_w_t = rnd(ks[8], 100, (10, 100))
    fc3_b_t = rnd(ks[9], 100, (10,))
    return pack_params(conv1_w_t, conv1_b_t, conv2_w_t, conv2_b_t,
                       fc1_w_t, fc1_b_t, fc2_w_t, fc2_b_t, fc3_w_t, fc3_b_t)


if __name__ == "__main__":
    key = jax.random.PRNGKey(0)
    kx, kp = jax.random.split(key)
    # The architecture implies 28x28 inputs: 28 -conv-> 27 -pool-> 13
    # -conv-> 12 -pool-> 6, matching the 32*6*6 fc1 input.
    x = jax.random.normal(kx, (2, 1, 28, 28), jnp.float32)
    params = init_params(kp)

    fwd = jax.jit(cnn_min_forward)
    out = jax.block_until_ready(fwd(x, params))

    assert out.shape == (2, 10), out.shape
    row_sums = jnp.sum(out, axis=-1)
    assert bool(jnp.all(jnp.abs(row_sums - 1.0) < 1e-4)), row_sums
    print("KERNEL_OK")
</pallas_src>

<mosaic_0001>
module attributes {stable_mosaic.version = 11 : i64} {
  func.func @_cnn_min_kernel(%arg0: i32, %arg1: memref<1x4608x4xf32, #tpu.memory_space<vmem>>, %arg2: memref<4x16xf32, #tpu.memory_space<vmem>>, %arg3: memref<1x16xf32, #tpu.memory_space<vmem>>, %arg4: memref<64x32xf32, #tpu.memory_space<vmem>>, %arg5: memref<1x32xf32, #tpu.memory_space<vmem>>, %arg6: memref<1152x256xbf16, #tpu.memory_space<vmem>>, %arg7: memref<1x256xf32, #tpu.memory_space<vmem>>, %arg8: memref<256x128xbf16, #tpu.memory_space<vmem>>, %arg9: memref<1x128xf32, #tpu.memory_space<vmem>>, %arg10: memref<128x10xbf16, #tpu.memory_space<vmem>>, %arg11: memref<1x10xf32, #tpu.memory_space<vmem>>, %arg12: memref<2x10xf32, #tpu.memory_space<vmem>>) attributes {dimension_semantics = [#tpu.dimension_semantics<parallel>], iteration_bounds = array<i64: 1>, scalar_prefetch = 0 : i64, scratch_operands = 0 : i64, tpu.core_type = #tpu.core_type<tc>, window_params = [{transform_indices = @transform_0, window_bounds = array<i64: 1, 4608, 4>}, {pipeline_mode = #tpu.pipeline_mode<synchronous>, transform_indices = @transform_1, window_bounds = array<i64: 4, 16>}, {pipeline_mode = #tpu.pipeline_mode<synchronous>, transform_indices = @transform_2, window_bounds = array<i64: 1, 16>}, {pipeline_mode = #tpu.pipeline_mode<synchronous>, transform_indices = @transform_3, window_bounds = array<i64: 64, 32>}, {pipeline_mode = #tpu.pipeline_mode<synchronous>, transform_indices = @transform_4, window_bounds = array<i64: 1, 32>}, {pipeline_mode = #tpu.pipeline_mode<synchronous>, transform_indices = @transform_5, window_bounds = array<i64: 1152, 256>}, {pipeline_mode = #tpu.pipeline_mode<synchronous>, transform_indices = @transform_6, window_bounds = array<i64: 1, 256>}, {pipeline_mode = #tpu.pipeline_mode<synchronous>, transform_indices = @transform_7, window_bounds = array<i64: 256, 128>}, {pipeline_mode = #tpu.pipeline_mode<synchronous>, transform_indices = @transform_8, window_bounds = array<i64: 1, 128>}, {pipeline_mode = #tpu.pipeline_mode<synchronous>, transform_indices = @transform_9, window_bounds = array<i64: 128, 10>}, {pipeline_mode = #tpu.pipeline_mode<synchronous>, transform_indices = @transform_10, window_bounds = array<i64: 1, 10>}, {transform_indices = @transform_11, window_bounds = array<i64: 2, 10>}]} {
    %c0 = arith.constant 0 : index
    %c0_0 = arith.constant 0 : index
    %c0_1 = arith.constant 0 : index
    %0 = vector.load %arg1[%c0, %c0_0, %c0_1] : memref<1x4608x4xf32, #tpu.memory_space<vmem>>, vector<1x4608x4xf32>
    %1 = vector.shape_cast %0 : vector<1x4608x4xf32> to vector<4608x4xf32>
    %c0_2 = arith.constant 0 : index
    %c0_3 = arith.constant 0 : index
    %2 = vector.load %arg2[%c0_2, %c0_3] : memref<4x16xf32, #tpu.memory_space<vmem>>, vector<4x16xf32>
    %cst = arith.constant dense<0.000000e+00> : vector<4608x16xf32>
    %3 = tpu.matmul %1, %2, %cst {dimension_numbers = #tpu.dot_dimension_numbers<[1], [0], [0], [1], [0, 0, 1, 1], [], []>} : vector<4608x4xf32>, vector<4x16xf32>, vector<4608x16xf32> -> vector<4608x16xf32>
    %4 = vector.extract_strided_slice %3 {offsets = [0, 0], sizes = [1152, 16], strides = [1, 1]} : vector<4608x16xf32> to vector<1152x16xf32>
    %5 = vector.extract_strided_slice %3 {offsets = [1152, 0], sizes = [1152, 16], strides = [1, 1]} : vector<4608x16xf32> to vector<1152x16xf32>
    %6 = arith.maximumf %4, %5 : vector<1152x16xf32>
    %7 = vector.extract_strided_slice %3 {offsets = [2304, 0], sizes = [1152, 16], strides = [1, 1]} : vector<4608x16xf32> to vector<1152x16xf32>
    %8 = vector.extract_strided_slice %3 {offsets = [3456, 0], sizes = [1152, 16], strides = [1, 1]} : vector<4608x16xf32> to vector<1152x16xf32>
    %9 = arith.maximumf %7, %8 : vector<1152x16xf32>
    %10 = arith.maximumf %6, %9 : vector<1152x16xf32>
    %c0_4 = arith.constant 0 : index
    %c0_5 = arith.constant 0 : index
    %11 = vector.load %arg3[%c0_4, %c0_5] : memref<1x16xf32, #tpu.memory_space<vmem>>, vector<1x16xf32>
    %12 = vector.broadcast %11 : vector<1x16xf32> to vector<1152x16xf32>
    %13 = arith.addf %10, %12 : vector<1152x16xf32>
    %cst_6 = arith.constant 0.000000e+00 : f32
    %14 = vector.broadcast %cst_6 : f32 to vector<288x32xf32>
    %15 = vector.extract_strided_slice %13 {offsets = [0, 0], sizes = [288, 16], strides = [1, 1]} : vector<1152x16xf32> to vector<288x16xf32>
    %c0_7 = arith.constant 0 : index
    %c0_8 = arith.constant 0 : index
    %16 = vector.load %arg4[%c0_7, %c0_8] : memref<64x32xf32, #tpu.memory_space<vmem>>, vector<16x32xf32>
    %cst_9 = arith.constant dense<0.000000e+00> : vector<288x32xf32>
    %17 = tpu.matmul %15, %16, %cst_9 {dimension_numbers = #tpu.dot_dimension_numbers<[1], [0], [0], [1], [0, 0, 1, 1], [], []>} : vector<288x16xf32>, vector<16x32xf32>, vector<288x32xf32> -> vector<288x32xf32>
    %18 = arith.addf %14, %17 : vector<288x32xf32>
    %19 = vector.extract_strided_slice %13 {offsets = [288, 0], sizes = [288, 16], strides = [1, 1]} : vector<1152x16xf32> to vector<288x16xf32>
    %c16 = arith.constant 16 : index
    %c0_10 = arith.constant 0 : index
    %20 = vector.load %arg4[%c16, %c0_10] : memref<64x32xf32, #tpu.memory_space<vmem>>, vector<16x32xf32>
    %cst_11 = arith.constant dense<0.000000e+00> : vector<288x32xf32>
    %21 = tpu.matmul %19, %20, %cst_11 {dimension_numbers = #tpu.dot_dimension_numbers<[1], [0], [0], [1], [0, 0, 1, 1], [], []>} : vector<288x16xf32>, vector<16x32xf32>, vector<288x32xf32> -> vector<288x32xf32>
    %22 = arith.addf %18, %21 : vector<288x32xf32>
    %23 = vector.extract_strided_slice %13 {offsets = [576, 0], sizes = [288, 16], strides = [1, 1]} : vector<1152x16xf32> to vector<288x16xf32>
    %c32 = arith.constant 32 : index
    %c0_12 = arith.constant 0 : index
    %24 = vector.load %arg4[%c32, %c0_12] : memref<64x32xf32, #tpu.memory_space<vmem>>, vector<16x32xf32>
    %cst_13 = arith.constant dense<0.000000e+00> : vector<288x32xf32>
    %25 = tpu.matmul %23, %24, %cst_13 {dimension_numbers = #tpu.dot_dimension_numbers<[1], [0], [0], [1], [0, 0, 1, 1], [], []>} : vector<288x16xf32>, vector<16x32xf32>, vector<288x32xf32> -> vector<288x32xf32>
    %26 = arith.addf %22, %25 : vector<288x32xf32>
    %27 = vector.extract_strided_slice %13 {offsets = [864, 0], sizes = [288, 16], strides = [1, 1]} : vector<1152x16xf32> to vector<288x16xf32>
    %c48 = arith.constant 48 : index
    %c0_14 = arith.constant 0 : index
    %28 = vector.load %arg4[%c48, %c0_14] : memref<64x32xf32, #tpu.memory_space<vmem>>, vector<16x32xf32>
    %cst_15 = arith.constant dense<0.000000e+00> : vector<288x32xf32>
    %29 = tpu.matmul %27, %28, %cst_15 {dimension_numbers = #tpu.dot_dimension_numbers<[1], [0], [0], [1], [0, 0, 1, 1], [], []>} : vector<288x16xf32>, vector<16x32xf32>, vector<288x32xf32> -> vector<288x32xf32>
    %30 = arith.addf %26, %29 : vector<288x32xf32>
    %31 = vector.extract_strided_slice %30 {offsets = [0, 0], sizes = [72, 32], strides = [1, 1]} : vector<288x32xf32> to vector<72x32xf32>
    %32 = vector.extract_strided_slice %30 {offsets = [72, 0], sizes = [72, 32], strides = [1, 1]} : vector<288x32xf32> to vector<72x32xf32>
    %33 = arith.maximumf %31, %32 : vector<72x32xf32>
    %34 = vector.extract_strided_slice %30 {offsets = [144, 0], sizes = [72, 32], strides = [1, 1]} : vector<288x32xf32> to vector<72x32xf32>
    %35 = vector.extract_strided_slice %30 {offsets = [216, 0], sizes = [72, 32], strides = [1, 1]} : vector<288x32xf32> to vector<72x32xf32>
    %36 = arith.maximumf %34, %35 : vector<72x32xf32>
    %37 = arith.maximumf %33, %36 : vector<72x32xf32>
    %c0_16 = arith.constant 0 : index
    %c0_17 = arith.constant 0 : index
    %38 = vector.load %arg5[%c0_16, %c0_17] : memref<1x32xf32, #tpu.memory_space<vmem>>, vector<1x32xf32>
    %39 = vector.broadcast %38 : vector<1x32xf32> to vector<72x32xf32>
    %40 = arith.addf %37, %39 : vector<72x32xf32>
    %cst_18 = arith.constant 0.000000e+00 : f32
    %41 = vector.broadcast %cst_18 : f32 to vector<2x256xf32>
    %42 = vector.extract_strided_slice %40 {offsets = [0, 0], sizes = [2, 32], strides = [1, 1]} : vector<72x32xf32> to vector<2x32xf32>
    %43 = arith.truncf %42 : vector<2x32xf32> to vector<2x32xbf16>
    %c0_19 = arith.constant 0 : index
    %c0_20 = arith.constant 0 : index
    %44 = vector.load %arg6[%c0_19, %c0_20] : memref<1152x256xbf16, #tpu.memory_space<vmem>>, vector<32x256xbf16>
    %cst_21 = arith.constant dense<0.000000e+00> : vector<2x256xf32>
    %45 = tpu.matmul %43, %44, %cst_21 {dimension_numbers = #tpu.dot_dimension_numbers<[1], [0], [0], [1], [0, 0, 1, 1], [], []>} : vector<2x32xbf16>, vector<32x256xbf16>, vector<2x256xf32> -> vector<2x256xf32>
    %46 = arith.addf %41, %45 : vector<2x256xf32>
    %47 = vector.extract_strided_slice %40 {offsets = [2, 0], sizes = [2, 32], strides = [1, 1]} : vector<72x32xf32> to vector<2x32xf32>
    %48 = arith.truncf %47 : vector<2x32xf32> to vector<2x32xbf16>
    %c32_22 = arith.constant 32 : index
    %c0_23 = arith.constant 0 : index
    %49 = vector.load %arg6[%c32_22, %c0_23] : memref<1152x256xbf16, #tpu.memory_space<vmem>>, vector<32x256xbf16>
    %cst_24 = arith.constant dense<0.000000e+00> : vector<2x256xf32>
    %50 = tpu.matmul %48, %49, %cst_24 {dimension_numbers = #tpu.dot_dimension_numbers<[1], [0], [0], [1], [0, 0, 1, 1], [], []>} : vector<2x32xbf16>, vector<32x256xbf16>, vector<2x256xf32> -> vector<2x256xf32>
    %51 = arith.addf %46, %50 : vector<2x256xf32>
    %52 = vector.extract_strided_slice %40 {offsets = [4, 0], sizes = [2, 32], strides = [1, 1]} : vector<72x32xf32> to vector<2x32xf32>
    %53 = arith.truncf %52 : vector<2x32xf32> to vector<2x32xbf16>
    %c64 = arith.constant 64 : index
    %c0_25 = arith.constant 0 : index
    %54 = vector.load %arg6[%c64, %c0_25] : memref<1152x256xbf16, #tpu.memory_space<vmem>>, vector<32x256xbf16>
    %cst_26 = arith.constant dense<0.000000e+00> : vector<2x256xf32>
    %55 = tpu.matmul %53, %54, %cst_26 {dimension_numbers = #tpu.dot_dimension_numbers<[1], [0], [0], [1], [0, 0, 1, 1], [], []>} : vector<2x32xbf16>, vector<32x256xbf16>, vector<2x256xf32> -> vector<2x256xf32>
    %56 = arith.addf %51, %55 : vector<2x256xf32>
    %57 = vector.extract_strided_slice %40 {offsets = [6, 0], sizes = [2, 32], strides = [1, 1]} : vector<72x32xf32> to vector<2x32xf32>
    %58 = arith.truncf %57 : vector<2x32xf32> to vector<2x32xbf16>
    %c96 = arith.constant 96 : index
    %c0_27 = arith.constant 0 : index
    %59 = vector.load %arg6[%c96, %c0_27] : memref<1152x256xbf16, #tpu.memory_space<vmem>>, vector<32x256xbf16>
    %cst_28 = arith.constant dense<0.000000e+00> : vector<2x256xf32>
    %60 = tpu.matmul %58, %59, %cst_28 {dimension_numbers = #tpu.dot_dimension_numbers<[1], [0], [0], [1], [0, 0, 1, 1], [], []>} : vector<2x32xbf16>, vector<32x256xbf16>, vector<2x256xf32> -> vector<2x256xf32>
    %61 = arith.addf %56, %60 : vector<2x256xf32>
    %62 = vector.extract_strided_slice %40 {offsets = [8, 0], sizes = [2, 32], strides = [1, 1]} : vector<72x32xf32> to vector<2x32xf32>
    %63 = arith.truncf %62 : vector<2x32xf32> to vector<2x32xbf16>
    %c128 = arith.constant 128 : index
    %c0_29 = arith.constant 0 : index
    %64 = vector.load %arg6[%c128, %c0_29] : memref<1152x256xbf16, #tpu.memory_space<vmem>>, vector<32x256xbf16>
    %cst_30 = arith.constant dense<0.000000e+00> : vector<2x256xf32>
    %65 = tpu.matmul %63, %64, %cst_30 {dimension_numbers = #tpu.dot_dimension_numbers<[1], [0], [0], [1], [0, 0, 1, 1], [], []>} : vector<2x32xbf16>, vector<32x256xbf16>, vector<2x256xf32> -> vector<2x256xf32>
    %66 = arith.addf %61, %65 : vector<2x256xf32>
    %67 = vector.extract_strided_slice %40 {offsets = [10, 0], sizes = [2, 32], strides = [1, 1]} : vector<72x32xf32> to vector<2x32xf32>
    %68 = arith.truncf %67 : vector<2x32xf32> to vector<2x32xbf16>
    %c160 = arith.constant 160 : index
    %c0_31 = arith.constant 0 : index
    %69 = vector.load %arg6[%c160, %c0_31] : memref<1152x256xbf16, #tpu.memory_space<vmem>>, vector<32x256xbf16>
    %cst_32 = arith.constant dense<0.000000e+00> : vector<2x256xf32>
    %70 = tpu.matmul %68, %69, %cst_32 {dimension_numbers = #tpu.dot_dimension_numbers<[1], [0], [0], [1], [0, 0, 1, 1], [], []>} : vector<2x32xbf16>, vector<32x256xbf16>, vector<2x256xf32> -> vector<2x256xf32>
    %71 = arith.addf %66, %70 : vector<2x256xf32>
    %72 = vector.extract_strided_slice %40 {offsets = [12, 0], sizes = [2, 32], strides = [1, 1]} : vector<72x32xf32> to vector<2x32xf32>
    %73 = arith.truncf %72 : vector<2x32xf32> to vector<2x32xbf16>
    %c192 = arith.constant 192 : index
    %c0_33 = arith.constant 0 : index
    %74 = vector.load %arg6[%c192, %c0_33] : memref<1152x256xbf16, #tpu.memory_space<vmem>>, vector<32x256xbf16>
    %cst_34 = arith.constant dense<0.000000e+00> : vector<2x256xf32>
    %75 = tpu.matmul %73, %74, %cst_34 {dimension_numbers = #tpu.dot_dimension_numbers<[1], [0], [0], [1], [0, 0, 1, 1], [], []>} : vector<2x32xbf16>, vector<32x256xbf16>, vector<2x256xf32> -> vector<2x256xf32>
    %76 = arith.addf %71, %75 : vector<2x256xf32>
    %77 = vector.extract_strided_slice %40 {offsets = [14, 0], sizes = [2, 32], strides = [1, 1]} : vector<72x32xf32> to vector<2x32xf32>
    %78 = arith.truncf %77 : vector<2x32xf32> to vector<2x32xbf16>
    %c224 = arith.constant 224 : index
    %c0_35 = arith.constant 0 : index
    %79 = vector.load %arg6[%c224, %c0_35] : memref<1152x256xbf16, #tpu.memory_space<vmem>>, vector<32x256xbf16>
    %cst_36 = arith.constant dense<0.000000e+00> : vector<2x256xf32>
    %80 = tpu.matmul %78, %79, %cst_36 {dimension_numbers = #tpu.dot_dimension_numbers<[1], [0], [0], [1], [0, 0, 1, 1], [], []>} : vector<2x32xbf16>, vector<32x256xbf16>, vector<2x256xf32> -> vector<2x256xf32>
    %81 = arith.addf %76, %80 : vector<2x256xf32>
    %82 = vector.extract_strided_slice %40 {offsets = [16, 0], sizes = [2, 32], strides = [1, 1]} : vector<72x32xf32> to vector<2x32xf32>
    %83 = arith.truncf %82 : vector<2x32xf32> to vector<2x32xbf16>
    %c256 = arith.constant 256 : index
    %c0_37 = arith.constant 0 : index
    %84 = vector.load %arg6[%c256, %c0_37] : memref<1152x256xbf16, #tpu.memory_space<vmem>>, vector<32x256xbf16>
    %cst_38 = arith.constant dense<0.000000e+00> : vector<2x256xf32>
    %85 = tpu.matmul %83, %84, %cst_38 {dimension_numbers = #tpu.dot_dimension_numbers<[1], [0], [0], [1], [0, 0, 1, 1], [], []>} : vector<2x32xbf16>, vector<32x256xbf16>, vector<2x256xf32> -> vector<2x256xf32>
    %86 = arith.addf %81, %85 : vector<2x256xf32>
    %87 = vector.extract_strided_slice %40 {offsets = [18, 0], sizes = [2, 32], strides = [1, 1]} : vector<72x32xf32> to vector<2x32xf32>
    %88 = arith.truncf %87 : vector<2x32xf32> to vector<2x32xbf16>
    %c288 = arith.constant 288 : index
    %c0_39 = arith.constant 0 : index
    %89 = vector.load %arg6[%c288, %c0_39] : memref<1152x256xbf16, #tpu.memory_space<vmem>>, vector<32x256xbf16>
    %cst_40 = arith.constant dense<0.000000e+00> : vector<2x256xf32>
    %90 = tpu.matmul %88, %89, %cst_40 {dimension_numbers = #tpu.dot_dimension_numbers<[1], [0], [0], [1], [0, 0, 1, 1], [], []>} : vector<2x32xbf16>, vector<32x256xbf16>, vector<2x256xf32> -> vector<2x256xf32>
    %91 = arith.addf %86, %90 : vector<2x256xf32>
    %92 = vector.extract_strided_slice %40 {offsets = [20, 0], sizes = [2, 32], strides = [1, 1]} : vector<72x32xf32> to vector<2x32xf32>
    %93 = arith.truncf %92 : vector<2x32xf32> to vector<2x32xbf16>
    %c320 = arith.constant 320 : index
    %c0_41 = arith.constant 0 : index
    %94 = vector.load %arg6[%c320, %c0_41] : memref<1152x256xbf16, #tpu.memory_space<vmem>>, vector<32x256xbf16>
    %cst_42 = arith.constant dense<0.000000e+00> : vector<2x256xf32>
    %95 = tpu.matmul %93, %94, %cst_42 {dimension_numbers = #tpu.dot_dimension_numbers<[1], [0], [0], [1], [0, 0, 1, 1], [], []>} : vector<2x32xbf16>, vector<32x256xbf16>, vector<2x256xf32> -> vector<2x256xf32>
    %96 = arith.addf %91, %95 : vector<2x256xf32>
    %97 = vector.extract_strided_slice %40 {offsets = [22, 0], sizes = [2, 32], strides = [1, 1]} : vector<72x32xf32> to vector<2x32xf32>
    %98 = arith.truncf %97 : vector<2x32xf32> to vector<2x32xbf16>
    %c352 = arith.constant 352 : index
    %c0_43 = arith.constant 0 : index
    %99 = vector.load %arg6[%c352, %c0_43] : memref<1152x256xbf16, #tpu.memory_space<vmem>>, vector<32x256xbf16>
    %cst_44 = arith.constant dense<0.000000e+00> : vector<2x256xf32>
    %100 = tpu.matmul %98, %99, %cst_44 {dimension_numbers = #tpu.dot_dimension_numbers<[1], [0], [0], [1], [0, 0, 1, 1], [], []>} : vector<2x32xbf16>, vector<32x256xbf16>, vector<2x256xf32> -> vector<2x256xf32>
    %101 = arith.addf %96, %100 : vector<2x256xf32>
    %102 = vector.extract_strided_slice %40 {offsets = [24, 0], sizes = [2, 32], strides = [1, 1]} : vector<72x32xf32> to vector<2x32xf32>
    %103 = arith.truncf %102 : vector<2x32xf32> to vector<2x32xbf16>
    %c384 = arith.constant 384 : index
    %c0_45 = arith.constant 0 : index
    %104 = vector.load %arg6[%c384, %c0_45] : memref<1152x256xbf16, #tpu.memory_space<vmem>>, vector<32x256xbf16>
    %cst_46 = arith.constant dense<0.000000e+00> : vector<2x256xf32>
    %105 = tpu.matmul %103, %104, %cst_46 {dimension_numbers = #tpu.dot_dimension_numbers<[1], [0], [0], [1], [0, 0, 1, 1], [], []>} : vector<2x32xbf16>, vector<32x256xbf16>, vector<2x256xf32> -> vector<2x256xf32>
    %106 = arith.addf %101, %105 : vector<2x256xf32>
    %107 = vector.extract_strided_slice %40 {offsets = [26, 0], sizes = [2, 32], strides = [1, 1]} : vector<72x32xf32> to vector<2x32xf32>
    %108 = arith.truncf %107 : vector<2x32xf32> to vector<2x32xbf16>
    %c416 = arith.constant 416 : index
    %c0_47 = arith.constant 0 : index
    %109 = vector.load %arg6[%c416, %c0_47] : memref<1152x256xbf16, #tpu.memory_space<vmem>>, vector<32x256xbf16>
    %cst_48 = arith.constant dense<0.000000e+00> : vector<2x256xf32>
    %110 = tpu.matmul %108, %109, %cst_48 {dimension_numbers = #tpu.dot_dimension_numbers<[1], [0], [0], [1], [0, 0, 1, 1], [], []>} : vector<2x32xbf16>, vector<32x256xbf16>, vector<2x256xf32> -> vector<2x256xf32>
    %111 = arith.addf %106, %110 : vector<2x256xf32>
    %112 = vector.extract_strided_slice %40 {offsets = [28, 0], sizes = [2, 32], strides = [1, 1]} : vector<72x32xf32> to vector<2x32xf32>
    %113 = arith.truncf %112 : vector<2x32xf32> to vector<2x32xbf16>
    %c448 = arith.constant 448 : index
    %c0_49 = arith.constant 0 : index
    %114 = vector.load %arg6[%c448, %c0_49] : memref<1152x256xbf16, #tpu.memory_space<vmem>>, vector<32x256xbf16>
    %cst_50 = arith.constant dense<0.000000e+00> : vector<2x256xf32>
    %115 = tpu.matmul %113, %114, %cst_50 {dimension_numbers = #tpu.dot_dimension_numbers<[1], [0], [0], [1], [0, 0, 1, 1], [], []>} : vector<2x32xbf16>, vector<32x256xbf16>, vector<2x256xf32> -> vector<2x256xf32>
    %116 = arith.addf %111, %115 : vector<2x256xf32>
    %117 = vector.extract_strided_slice %40 {offsets = [30, 0], sizes = [2, 32], strides = [1, 1]} : vector<72x32xf32> to vector<2x32xf32>
    %118 = arith.truncf %117 : vector<2x32xf32> to vector<2x32xbf16>
    %c480 = arith.constant 480 : index
    %c0_51 = arith.constant 0 : index
    %119 = vector.load %arg6[%c480, %c0_51] : memref<1152x256xbf16, #tpu.memory_space<vmem>>, vector<32x256xbf16>
    %cst_52 = arith.constant dense<0.000000e+00> : vector<2x256xf32>
    %120 = tpu.matmul %118, %119, %cst_52 {dimension_numbers = #tpu.dot_dimension_numbers<[1], [0], [0], [1], [0, 0, 1, 1], [], []>} : vector<2x32xbf16>, vector<32x256xbf16>, vector<2x256xf32> -> vector<2x256xf32>
    %121 = arith.addf %116, %120 : vector<2x256xf32>
    %122 = vector.extract_strided_slice %40 {offsets = [32, 0], sizes = [2, 32], strides = [1, 1]} : vector<72x32xf32> to vector<2x32xf32>
    %123 = arith.truncf %122 : vector<2x32xf32> to vector<2x32xbf16>
    %c512 = arith.constant 512 : index
    %c0_53 = arith.constant 0 : index
    %124 = vector.load %arg6[%c512, %c0_53] : memref<1152x256xbf16, #tpu.memory_space<vmem>>, vector<32x256xbf16>
    %cst_54 = arith.constant dense<0.000000e+00> : vector<2x256xf32>
    %125 = tpu.matmul %123, %124, %cst_54 {dimension_numbers = #tpu.dot_dimension_numbers<[1], [0], [0], [1], [0, 0, 1, 1], [], []>} : vector<2x32xbf16>, vector<32x256xbf16>, vector<2x256xf32> -> vector<2x256xf32>
    %126 = arith.addf %121, %125 : vector<2x256xf32>
    %127 = vector.extract_strided_slice %40 {offsets = [34, 0], sizes = [2, 32], strides = [1, 1]} : vector<72x32xf32> to vector<2x32xf32>
    %128 = arith.truncf %127 : vector<2x32xf32> to vector<2x32xbf16>
    %c544 = arith.constant 544 : index
    %c0_55 = arith.constant 0 : index
    %129 = vector.load %arg6[%c544, %c0_55] : memref<1152x256xbf16, #tpu.memory_space<vmem>>, vector<32x256xbf16>
    %cst_56 = arith.constant dense<0.000000e+00> : vector<2x256xf32>
    %130 = tpu.matmul %128, %129, %cst_56 {dimension_numbers = #tpu.dot_dimension_numbers<[1], [0], [0], [1], [0, 0, 1, 1], [], []>} : vector<2x32xbf16>, vector<32x256xbf16>, vector<2x256xf32> -> vector<2x256xf32>
    %131 = arith.addf %126, %130 : vector<2x256xf32>
    %132 = vector.extract_strided_slice %40 {offsets = [36, 0], sizes = [2, 32], strides = [1, 1]} : vector<72x32xf32> to vector<2x32xf32>
    %133 = arith.truncf %132 : vector<2x32xf32> to vector<2x32xbf16>
    %c576 = arith.constant 576 : index
    %c0_57 = arith.constant 0 : index
    %134 = vector.load %arg6[%c576, %c0_57] : memref<1152x256xbf16, #tpu.memory_space<vmem>>, vector<32x256xbf16>
    %cst_58 = arith.constant dense<0.000000e+00> : vector<2x256xf32>
    %135 = tpu.matmul %133, %134, %cst_58 {dimension_numbers = #tpu.dot_dimension_numbers<[1], [0], [0], [1], [0, 0, 1, 1], [], []>} : vector<2x32xbf16>, vector<32x256xbf16>, vector<2x256xf32> -> vector<2x256xf32>
    %136 = arith.addf %131, %135 : vector<2x256xf32>
    %137 = vector.extract_strided_slice %40 {offsets = [38, 0], sizes = [2, 32], strides = [1, 1]} : vector<72x32xf32> to vector<2x32xf32>
    %138 = arith.truncf %137 : vector<2x32xf32> to vector<2x32xbf16>
    %c608 = arith.constant 608 : index
    %c0_59 = arith.constant 0 : index
    %139 = vector.load %arg6[%c608, %c0_59] : memref<1152x256xbf16, #tpu.memory_space<vmem>>, vector<32x256xbf16>
    %cst_60 = arith.constant dense<0.000000e+00> : vector<2x256xf32>
    %140 = tpu.matmul %138, %139, %cst_60 {dimension_numbers = #tpu.dot_dimension_numbers<[1], [0], [0], [1], [0, 0, 1, 1], [], []>} : vector<2x32xbf16>, vector<32x256xbf16>, vector<2x256xf32> -> vector<2x256xf32>
    %141 = arith.addf %136, %140 : vector<2x256xf32>
    %142 = vector.extract_strided_slice %40 {offsets = [40, 0], sizes = [2, 32], strides = [1, 1]} : vector<72x32xf32> to vector<2x32xf32>
    %143 = arith.truncf %142 : vector<2x32xf32> to vector<2x32xbf16>
    %c640 = arith.constant 640 : index
    %c0_61 = arith.constant 0 : index
    %144 = vector.load %arg6[%c640, %c0_61] : memref<1152x256xbf16, #tpu.memory_space<vmem>>, vector<32x256xbf16>
    %cst_62 = arith.constant dense<0.000000e+00> : vector<2x256xf32>
    %145 = tpu.matmul %143, %144, %cst_62 {dimension_numbers = #tpu.dot_dimension_numbers<[1], [0], [0], [1], [0, 0, 1, 1], [], []>} : vector<2x32xbf16>, vector<32x256xbf16>, vector<2x256xf32> -> vector<2x256xf32>
    %146 = arith.addf %141, %145 : vector<2x256xf32>
    %147 = vector.extract_strided_slice %40 {offsets = [42, 0], sizes = [2, 32], strides = [1, 1]} : vector<72x32xf32> to vector<2x32xf32>
    %148 = arith.truncf %147 : vector<2x32xf32> to vector<2x32xbf16>
    %c672 = arith.constant 672 : index
    %c0_63 = arith.constant 0 : index
    %149 = vector.load %arg6[%c672, %c0_63] : memref<1152x256xbf16, #tpu.memory_space<vmem>>, vector<32x256xbf16>
    %cst_64 = arith.constant dense<0.000000e+00> : vector<2x256xf32>
    %150 = tpu.matmul %148, %149, %cst_64 {dimension_numbers = #tpu.dot_dimension_numbers<[1], [0], [0], [1], [0, 0, 1, 1], [], []>} : vector<2x32xbf16>, vector<32x256xbf16>, vector<2x256xf32> -> vector<2x256xf32>
    %151 = arith.addf %146, %150 : vector<2x256xf32>
    %152 = vector.extract_strided_slice %40 {offsets = [44, 0], sizes = [2, 32], strides = [1, 1]} : vector<72x32xf32> to vector<2x32xf32>
    %153 = arith.truncf %152 : vector<2x32xf32> to vector<2x32xbf16>
    %c704 = arith.constant 704 : index
    %c0_65 = arith.constant 0 : index
    %154 = vector.load %arg6[%c704, %c0_65] : memref<1152x256xbf16, #tpu.memory_space<vmem>>, vector<32x256xbf16>
    %cst_66 = arith.constant dense<0.000000e+00> : vector<2x256xf32>
    %155 = tpu.matmul %153, %154, %cst_66 {dimension_numbers = #tpu.dot_dimension_numbers<[1], [0], [0], [1], [0, 0, 1, 1], [], []>} : vector<2x32xbf16>, vector<32x256xbf16>, vector<2x256xf32> -> vector<2x256xf32>
    %156 = arith.addf %151, %155 : vector<2x256xf32>
    %157 = vector.extract_strided_slice %40 {offsets = [46, 0], sizes = [2, 32], strides = [1, 1]} : vector<72x32xf32> to vector<2x32xf32>
    %158 = arith.truncf %157 : vector<2x32xf32> to vector<2x32xbf16>
    %c736 = arith.constant 736 : index
    %c0_67 = arith.constant 0 : index
    %159 = vector.load %arg6[%c736, %c0_67] : memref<1152x256xbf16, #tpu.memory_space<vmem>>, vector<32x256xbf16>
    %cst_68 = arith.constant dense<0.000000e+00> : vector<2x256xf32>
    %160 = tpu.matmul %158, %159, %cst_68 {dimension_numbers = #tpu.dot_dimension_numbers<[1], [0], [0], [1], [0, 0, 1, 1], [], []>} : vector<2x32xbf16>, vector<32x256xbf16>, vector<2x256xf32> -> vector<2x256xf32>
    %161 = arith.addf %156, %160 : vector<2x256xf32>
    %162 = vector.extract_strided_slice %40 {offsets = [48, 0], sizes = [2, 32], strides = [1, 1]} : vector<72x32xf32> to vector<2x32xf32>
    %163 = arith.truncf %162 : vector<2x32xf32> to vector<2x32xbf16>
    %c768 = arith.constant 768 : index
    %c0_69 = arith.constant 0 : index
    %164 = vector.load %arg6[%c768, %c0_69] : memref<1152x256xbf16, #tpu.memory_space<vmem>>, vector<32x256xbf16>
    %cst_70 = arith.constant dense<0.000000e+00> : vector<2x256xf32>
    %165 = tpu.matmul %163, %164, %cst_70 {dimension_numbers = #tpu.dot_dimension_numbers<[1], [0], [0], [1], [0, 0, 1, 1], [], []>} : vector<2x32xbf16>, vector<32x256xbf16>, vector<2x256xf32> -> vector<2x256xf32>
    %166 = arith.addf %161, %165 : vector<2x256xf32>
    %167 = vector.extract_strided_slice %40 {offsets = [50, 0], sizes = [2, 32], strides = [1, 1]} : vector<72x32xf32> to vector<2x32xf32>
    %168 = arith.truncf %167 : vector<2x32xf32> to vector<2x32xbf16>
    %c800 = arith.constant 800 : index
    %c0_71 = arith.constant 0 : index
    %169 = vector.load %arg6[%c800, %c0_71] : memref<1152x256xbf16, #tpu.memory_space<vmem>>, vector<32x256xbf16>
    %cst_72 = arith.constant dense<0.000000e+00> : vector<2x256xf32>
    %170 = tpu.matmul %168, %169, %cst_72 {dimension_numbers = #tpu.dot_dimension_numbers<[1], [0], [0], [1], [0, 0, 1, 1], [], []>} : vector<2x32xbf16>, vector<32x256xbf16>, vector<2x256xf32> -> vector<2x256xf32>
    %171 = arith.addf %166, %170 : vector<2x256xf32>
    %172 = vector.extract_strided_slice %40 {offsets = [52, 0], sizes = [2, 32], strides = [1, 1]} : vector<72x32xf32> to vector<2x32xf32>
    %173 = arith.truncf %172 : vector<2x32xf32> to vector<2x32xbf16>
    %c832 = arith.constant 832 : index
    %c0_73 = arith.constant 0 : index
    %174 = vector.load %arg6[%c832, %c0_73] : memref<1152x256xbf16, #tpu.memory_space<vmem>>, vector<32x256xbf16>
    %cst_74 = arith.constant dense<0.000000e+00> : vector<2x256xf32>
    %175 = tpu.matmul %173, %174, %cst_74 {dimension_numbers = #tpu.dot_dimension_numbers<[1], [0], [0], [1], [0, 0, 1, 1], [], []>} : vector<2x32xbf16>, vector<32x256xbf16>, vector<2x256xf32> -> vector<2x256xf32>
    %176 = arith.addf %171, %175 : vector<2x256xf32>
    %177 = vector.extract_strided_slice %40 {offsets = [54, 0], sizes = [2, 32], strides = [1, 1]} : vector<72x32xf32> to vector<2x32xf32>
    %178 = arith.truncf %177 : vector<2x32xf32> to vector<2x32xbf16>
    %c864 = arith.constant 864 : index
    %c0_75 = arith.constant 0 : index
    %179 = vector.load %arg6[%c864, %c0_75] : memref<1152x256xbf16, #tpu.memory_space<vmem>>, vector<32x256xbf16>
    %cst_76 = arith.constant dense<0.000000e+00> : vector<2x256xf32>
    %180 = tpu.matmul %178, %179, %cst_76 {dimension_numbers = #tpu.dot_dimension_numbers<[1], [0], [0], [1], [0, 0, 1, 1], [], []>} : vector<2x32xbf16>, vector<32x256xbf16>, vector<2x256xf32> -> vector<2x256xf32>
    %181 = arith.addf %176, %180 : vector<2x256xf32>
    %182 = vector.extract_strided_slice %40 {offsets = [56, 0], sizes = [2, 32], strides = [1, 1]} : vector<72x32xf32> to vector<2x32xf32>
    %183 = arith.truncf %182 : vector<2x32xf32> to vector<2x32xbf16>
    %c896 = arith.constant 896 : index
    %c0_77 = arith.constant 0 : index
    %184 = vector.load %arg6[%c896, %c0_77] : memref<1152x256xbf16, #tpu.memory_space<vmem>>, vector<32x256xbf16>
    %cst_78 = arith.constant dense<0.000000e+00> : vector<2x256xf32>
    %185 = tpu.matmul %183, %184, %cst_78 {dimension_numbers = #tpu.dot_dimension_numbers<[1], [0], [0], [1], [0, 0, 1, 1], [], []>} : vector<2x32xbf16>, vector<32x256xbf16>, vector<2x256xf32> -> vector<2x256xf32>
    %186 = arith.addf %181, %185 : vector<2x256xf32>
    %187 = vector.extract_strided_slice %40 {offsets = [58, 0], sizes = [2, 32], strides = [1, 1]} : vector<72x32xf32> to vector<2x32xf32>
    %188 = arith.truncf %187 : vector<2x32xf32> to vector<2x32xbf16>
    %c928 = arith.constant 928 : index
    %c0_79 = arith.constant 0 : index
    %189 = vector.load %arg6[%c928, %c0_79] : memref<1152x256xbf16, #tpu.memory_space<vmem>>, vector<32x256xbf16>
    %cst_80 = arith.constant dense<0.000000e+00> : vector<2x256xf32>
    %190 = tpu.matmul %188, %189, %cst_80 {dimension_numbers = #tpu.dot_dimension_numbers<[1], [0], [0], [1], [0, 0, 1, 1], [], []>} : vector<2x32xbf16>, vector<32x256xbf16>, vector<2x256xf32> -> vector<2x256xf32>
    %191 = arith.addf %186, %190 : vector<2x256xf32>
    %192 = vector.extract_strided_slice %40 {offsets = [60, 0], sizes = [2, 32], strides = [1, 1]} : vector<72x32xf32> to vector<2x32xf32>
    %193 = arith.truncf %192 : vector<2x32xf32> to vector<2x32xbf16>
    %c960 = arith.constant 960 : index
    %c0_81 = arith.constant 0 : index
    %194 = vector.load %arg6[%c960, %c0_81] : memref<1152x256xbf16, #tpu.memory_space<vmem>>, vector<32x256xbf16>
    %cst_82 = arith.constant dense<0.000000e+00> : vector<2x256xf32>
    %195 = tpu.matmul %193, %194, %cst_82 {dimension_numbers = #tpu.dot_dimension_numbers<[1], [0], [0], [1], [0, 0, 1, 1], [], []>} : vector<2x32xbf16>, vector<32x256xbf16>, vector<2x256xf32> -> vector<2x256xf32>
    %196 = arith.addf %191, %195 : vector<2x256xf32>
    %197 = vector.extract_strided_slice %40 {offsets = [62, 0], sizes = [2, 32], strides = [1, 1]} : vector<72x32xf32> to vector<2x32xf32>
    %198 = arith.truncf %197 : vector<2x32xf32> to vector<2x32xbf16>
    %c992 = arith.constant 992 : index
    %c0_83 = arith.constant 0 : index
    %199 = vector.load %arg6[%c992, %c0_83] : memref<1152x256xbf16, #tpu.memory_space<vmem>>, vector<32x256xbf16>
    %cst_84 = arith.constant dense<0.000000e+00> : vector<2x256xf32>
    %200 = tpu.matmul %198, %199, %cst_84 {dimension_numbers = #tpu.dot_dimension_numbers<[1], [0], [0], [1], [0, 0, 1, 1], [], []>} : vector<2x32xbf16>, vector<32x256xbf16>, vector<2x256xf32> -> vector<2x256xf32>
    %201 = arith.addf %196, %200 : vector<2x256xf32>
    %202 = vector.extract_strided_slice %40 {offsets = [64, 0], sizes = [2, 32], strides = [1, 1]} : vector<72x32xf32> to vector<2x32xf32>
    %203 = arith.truncf %202 : vector<2x32xf32> to vector<2x32xbf16>
    %c1024 = arith.constant 1024 : index
    %c0_85 = arith.constant 0 : index
    %204 = vector.load %arg6[%c1024, %c0_85] : memref<1152x256xbf16, #tpu.memory_space<vmem>>, vector<32x256xbf16>
    %cst_86 = arith.constant dense<0.000000e+00> : vector<2x256xf32>
    %205 = tpu.matmul %203, %204, %cst_86 {dimension_numbers = #tpu.dot_dimension_numbers<[1], [0], [0], [1], [0, 0, 1, 1], [], []>} : vector<2x32xbf16>, vector<32x256xbf16>, vector<2x256xf32> -> vector<2x256xf32>
    %206 = arith.addf %201, %205 : vector<2x256xf32>
    %207 = vector.extract_strided_slice %40 {offsets = [66, 0], sizes = [2, 32], strides = [1, 1]} : vector<72x32xf32> to vector<2x32xf32>
    %208 = arith.truncf %207 : vector<2x32xf32> to vector<2x32xbf16>
    %c1056 = arith.constant 1056 : index
    %c0_87 = arith.constant 0 : index
    %209 = vector.load %arg6[%c1056, %c0_87] : memref<1152x256xbf16, #tpu.memory_space<vmem>>, vector<32x256xbf16>
    %cst_88 = arith.constant dense<0.000000e+00> : vector<2x256xf32>
    %210 = tpu.matmul %208, %209, %cst_88 {dimension_numbers = #tpu.dot_dimension_numbers<[1], [0], [0], [1], [0, 0, 1, 1], [], []>} : vector<2x32xbf16>, vector<32x256xbf16>, vector<2x256xf32> -> vector<2x256xf32>
    %211 = arith.addf %206, %210 : vector<2x256xf32>
    %212 = vector.extract_strided_slice %40 {offsets = [68, 0], sizes = [2, 32], strides = [1, 1]} : vector<72x32xf32> to vector<2x32xf32>
    %213 = arith.truncf %212 : vector<2x32xf32> to vector<2x32xbf16>
    %c1088 = arith.constant 1088 : index
    %c0_89 = arith.constant 0 : index
    %214 = vector.load %arg6[%c1088, %c0_89] : memref<1152x256xbf16, #tpu.memory_space<vmem>>, vector<32x256xbf16>
    %cst_90 = arith.constant dense<0.000000e+00> : vector<2x256xf32>
    %215 = tpu.matmul %213, %214, %cst_90 {dimension_numbers = #tpu.dot_dimension_numbers<[1], [0], [0], [1], [0, 0, 1, 1], [], []>} : vector<2x32xbf16>, vector<32x256xbf16>, vector<2x256xf32> -> vector<2x256xf32>
    %216 = arith.addf %211, %215 : vector<2x256xf32>
    %217 = vector.extract_strided_slice %40 {offsets = [70, 0], sizes = [2, 32], strides = [1, 1]} : vector<72x32xf32> to vector<2x32xf32>
    %218 = arith.truncf %217 : vector<2x32xf32> to vector<2x32xbf16>
    %c1120 = arith.constant 1120 : index
    %c0_91 = arith.constant 0 : index
    %219 = vector.load %arg6[%c1120, %c0_91] : memref<1152x256xbf16, #tpu.memory_space<vmem>>, vector<32x256xbf16>
    %cst_92 = arith.constant dense<0.000000e+00> : vector<2x256xf32>
    %220 = tpu.matmul %218, %219, %cst_92 {dimension_numbers = #tpu.dot_dimension_numbers<[1], [0], [0], [1], [0, 0, 1, 1], [], []>} : vector<2x32xbf16>, vector<32x256xbf16>, vector<2x256xf32> -> vector<2x256xf32>
    %221 = arith.addf %216, %220 : vector<2x256xf32>
    %c0_93 = arith.constant 0 : index
    %c0_94 = arith.constant 0 : index
    %222 = vector.load %arg7[%c0_93, %c0_94] : memref<1x256xf32, #tpu.memory_space<vmem>>, vector<1x256xf32>
    %223 = vector.broadcast %222 : vector<1x256xf32> to vector<2x256xf32>
    %224 = arith.addf %221, %223 : vector<2x256xf32>
    %cst_95 = arith.constant 0.000000e+00 : f32
    %225 = vector.broadcast %cst_95 : f32 to vector<2x256xf32>
    %226 = arith.maximumf %224, %225 : vector<2x256xf32>
    %227 = arith.truncf %226 : vector<2x256xf32> to vector<2x256xbf16>
    %c0_96 = arith.constant 0 : index
    %c0_97 = arith.constant 0 : index
    %228 = vector.load %arg8[%c0_96, %c0_97] : memref<256x128xbf16, #tpu.memory_space<vmem>>, vector<256x128xbf16>
    %cst_98 = arith.constant dense<0.000000e+00> : vector<2x128xf32>
    %229 = tpu.matmul %227, %228, %cst_98 {dimension_numbers = #tpu.dot_dimension_numbers<[1], [0], [0], [1], [0, 0, 1, 1], [], []>} : vector<2x256xbf16>, vector<256x128xbf16>, vector<2x128xf32> -> vector<2x128xf32>
    %c0_99 = arith.constant 0 : index
    %c0_100 = arith.constant 0 : index
    %230 = vector.load %arg9[%c0_99, %c0_100] : memref<1x128xf32, #tpu.memory_space<vmem>>, vector<1x128xf32>
    %231 = vector.broadcast %230 : vector<1x128xf32> to vector<2x128xf32>
    %232 = arith.addf %229, %231 : vector<2x128xf32>
    %cst_101 = arith.constant 0.000000e+00 : f32
    %233 = vector.broadcast %cst_101 : f32 to vector<2x128xf32>
    %234 = arith.maximumf %232, %233 : vector<2x128xf32>
    %235 = arith.truncf %234 : vector<2x128xf32> to vector<2x128xbf16>
    %c0_102 = arith.constant 0 : index
    %c0_103 = arith.constant 0 : index
    %236 = vector.load %arg10[%c0_102, %c0_103] : memref<128x10xbf16, #tpu.memory_space<vmem>>, vector<128x10xbf16>
    %cst_104 = arith.constant dense<0.000000e+00> : vector<2x10xf32>
    %237 = tpu.matmul %235, %236, %cst_104 {dimension_numbers = #tpu.dot_dimension_numbers<[1], [0], [0], [1], [0, 0, 1, 1], [], []>} : vector<2x128xbf16>, vector<128x10xbf16>, vector<2x10xf32> -> vector<2x10xf32>
    %c0_105 = arith.constant 0 : index
    %c0_106 = arith.constant 0 : index
    %238 = vector.load %arg11[%c0_105, %c0_106] : memref<1x10xf32, #tpu.memory_space<vmem>>, vector<1x10xf32>
    %239 = vector.broadcast %238 : vector<1x10xf32> to vector<2x10xf32>
    %240 = arith.addf %237, %239 : vector<2x10xf32>
    %cst_107 = arith.constant dense<0xFF800000> : vector<2xf32>
    %241 = vector.multi_reduction <maximumf>, %240, %cst_107 [1] : vector<2x10xf32> to vector<2xf32>
    %242 = vector.shape_cast %241 : vector<2xf32> to vector<2x1xf32>
    %243 = vector.broadcast %242 : vector<2x1xf32> to vector<2x10xf32>
    %244 = arith.subf %240, %243 : vector<2x10xf32>
    %245 = math.exp %244 : vector<2x10xf32>
    %cst_108 = arith.constant dense<0.000000e+00> : vector<2xf32>
    %246 = vector.multi_reduction <add>, %245, %cst_108 [1] : vector<2x10xf32> to vector<2xf32>
    %247 = vector.shape_cast %246 : vector<2xf32> to vector<2x1xf32>
    %248 = vector.broadcast %247 : vector<2x1xf32> to vector<2x10xf32>
    %249 = arith.divf %245, %248 : vector<2x10xf32>
    %c0_109 = arith.constant 0 : index
    %c0_110 = arith.constant 0 : index
    %250 = vector.load %arg12[%c0_109, %c0_110] : memref<2x10xf32, #tpu.memory_space<vmem>>, vector<2x10xf32>
    tpu.vector_store %arg12[%c0_109, %c0_110], %249 {strides = array<i32>} : memref<2x10xf32, #tpu.memory_space<vmem>>, vector<2x10xf32>,
    return
  }
  func.func @transform_0(%arg0: i32) -> (i32, i32, i32) {
    %c0_i32 = arith.constant 0 : i32
    %c0_i32_0 = arith.constant 0 : i32
    %c0_i32_1 = arith.constant 0 : i32
    return %arg0, %c0_i32, %c0_i32_0 : i32, i32, i32
  }
  func.func @transform_1(%arg0: i32) -> (i32, i32) {
    %c0_i32 = arith.constant 0 : i32
    %c0_i32_0 = arith.constant 0 : i32
    %c0_i32_1 = arith.constant 0 : i32
    return %c0_i32, %c0_i32_0 : i32, i32
  }
  func.func @transform_2(%arg0: i32) -> (i32, i32) {
    %c0_i32 = arith.constant 0 : i32
    %c0_i32_0 = arith.constant 0 : i32
    %c0_i32_1 = arith.constant 0 : i32
    return %c0_i32, %c0_i32_0 : i32, i32
  }
  func.func @transform_3(%arg0: i32) -> (i32, i32) {
    %c0_i32 = arith.constant 0 : i32
    %c0_i32_0 = arith.constant 0 : i32
    %c0_i32_1 = arith.constant 0 : i32
    return %c0_i32, %c0_i32_0 : i32, i32
  }
  func.func @transform_4(%arg0: i32) -> (i32, i32) {
    %c0_i32 = arith.constant 0 : i32
    %c0_i32_0 = arith.constant 0 : i32
    %c0_i32_1 = arith.constant 0 : i32
    return %c0_i32, %c0_i32_0 : i32, i32
  }
  func.func @transform_5(%arg0: i32) -> (i32, i32) {
    %c0_i32 = arith.constant 0 : i32
    %c0_i32_0 = arith.constant 0 : i32
    %c0_i32_1 = arith.constant 0 : i32
    return %c0_i32, %c0_i32_0 : i32, i32
  }
  func.func @transform_6(%arg0: i32) -> (i32, i32) {
    %c0_i32 = arith.constant 0 : i32
    %c0_i32_0 = arith.constant 0 : i32
    %c0_i32_1 = arith.constant 0 : i32
    return %c0_i32, %c0_i32_0 : i32, i32
  }
  func.func @transform_7(%arg0: i32) -> (i32, i32) {
    %c0_i32 = arith.constant 0 : i32
    %c0_i32_0 = arith.constant 0 : i32
    %c0_i32_1 = arith.constant 0 : i32
    return %c0_i32, %c0_i32_0 : i32, i32
  }
  func.func @transform_8(%arg0: i32) -> (i32, i32) {
    %c0_i32 = arith.constant 0 : i32
    %c0_i32_0 = arith.constant 0 : i32
    %c0_i32_1 = arith.constant 0 : i32
    return %c0_i32, %c0_i32_0 : i32, i32
  }
  func.func @transform_9(%arg0: i32) -> (i32, i32) {
    %c0_i32 = arith.constant 0 : i32
    %c0_i32_0 = arith.constant 0 : i32
    %c0_i32_1 = arith.constant 0 : i32
    return %c0_i32, %c0_i32_0 : i32, i32
  }
  func.func @transform_10(%arg0: i32) -> (i32, i32) {
    %c0_i32 = arith.constant 0 : i32
    %c0_i32_0 = arith.constant 0 : i32
    %c0_i32_1 = arith.constant 0 : i32
    return %c0_i32, %c0_i32_0 : i32, i32
  }
  func.func @transform_11(%arg0: i32) -> (i32, i32) {
    %c0_i32 = arith.constant 0 : i32
    %c0_i32_0 = arith.constant 0 : i32
    return %arg0, %c0_i32 : i32, i32
  }
}

</mosaic_0001>

<bundles_post_ra>
// kernel: cnn_min_forward.1
= control target key start
LH: loop header
LB: loop body
LE: loop exit
PB: predicated region body
PF: predicated region fallthrough
CT: control target
= control target key end

     0   :  { %vm2346_vm0 = vcmask 1043456   ;;  %vm617_vm1 = vcmask 31744   ;;  %s15488_s0 = inlined_call_operand.vmem [shape: f32[1,4608,4], index: 0, kind: input, shape index: {}]   ;;  %s15489_s1 = inlined_call_operand.vmem [shape: f32[4,16], index: 1, kind: input, shape index: {}]   ;;  %s15490_s2 = inlined_call_operand.vmem [shape: f32[1,16], index: 2, kind: input, shape index: {}]   ;;  %s15491_s3 = inlined_call_operand.vmem [shape: f32[64,32], index: 3, kind: input, shape index: {}]   ;;  %s15492_s4 = inlined_call_operand.vmem [shape: f32[1,32], index: 4, kind: input, shape index: {}]   ;;  %s15493_s5 = inlined_call_operand.vmem [shape: bf16[1152,256], index: 5, kind: input, shape index: {}]   ;;  %s15494_s6 = inlined_call_operand.vmem [shape: f32[1,256], index: 6, kind: input, shape index: {}]   ;;  %s15495_s7 = inlined_call_operand.vmem [shape: bf16[256,128], index: 7, kind: input, shape index: {}]   ;;  %s15496_s8 = inlined_call_operand.vmem [shape: f32[1,128], index: 8, kind: input, shape index: {}]   ;;  %s15497_s9 = inlined_call_operand.vmem [shape: bf16[128,10], index: 9, kind: input, shape index: {}]   ;;  %s15498_s10 = inlined_call_operand.vmem [shape: f32[1,10], index: 10, kind: input, shape index: {}]   ;;  %s15499_s11 = inlined_call_operand.hbm [shape: f32[2,10], index: 11, kind: output, shape index: {}]  }
   0x1   :  { %v616_v0 = vld [vmem:[%s15489_s1] sm:$0xf] }
   0x2   :  { %v40_v1 = vld [vmem:[%s15488_s0] sm:$0xff]  ;;  %8045 = vmatpush.msk.msra.mxu0 %vm2346_vm0, %v616_v0  ;;  %9678 = vmatpush.msk.msra.mxu1 %vm2346_vm0, %v616_v0 }
   0x3   :  { %8046 = vmatmul.msk.f32.vlgmr.msra.gmra.mxu0 %vm617_vm1, %v40_v1  ;;  %9680 = vmatpush.msk.msra.mxu3 %vm2346_vm0, %v616_v0 }
   0x4   :  { %9679 = vmatpush.msk.msra.mxu2 %vm2346_vm0, %v616_v0 }
   0x5   :  { %16 = vsyncpa [#allocation3], 0  ;;  %v41_v2 = vld [vmem:[%s15488_s0 + $0x8] sm:$0xff]  ;;  %v42_v3 = vld [vmem:[%s15488_s0 + $0x10] sm:$0xff]  ;;  %vm4679_vm2 = vcmask 130048   ;;  %vm5759_vm3 = vcmask 261120  }
   0x6   :  { %v43_v4 = vld [vmem:[%s15488_s0 + $0x18] sm:$0xff]  ;;  %v44_v5 = vld [vmem:[%s15488_s0 + $0x20] sm:$0xff]  ;;  %v45_v6 = vld [vmem:[%s15488_s0 + $0x28] sm:$0xff]  ;;  %vm8003_vm4 = vcmask 74752   ;;  %s8036_s16 = sshll.u32 %s15499_s11, 4  ;;  %s8037_s16 = int_to_ptr.hbm [resolvable:$true] %s8036_s16 }
   0x7   :  { %v46_v7 = vld [vmem:[%s15488_s0 + $0x30] sm:$0xff]  ;;  %v47_v8 = vld [vmem:[%s15488_s0 + $0x38] sm:$0xff]  ;;  %v48_v9 = vld [vmem:[%s15488_s0 + $0x40] sm:$0xff] }
   0x8   :  { %v49_v10 = vld [vmem:[%s15488_s0 + $0x48] sm:$0xff]  ;;  %v50_v11 = vld [vmem:[%s15488_s0 + $0x50] sm:$0xff]  ;;  %v51_v12 = vld [vmem:[%s15488_s0 + $0x58] sm:$0xff] }
   0x9   :  { %v52_v13 = vld [vmem:[%s15488_s0 + $0x60] sm:$0xff]  ;;  %v53_v14 = vld [vmem:[%s15488_s0 + $0x68] sm:$0xff]  ;;  %v54_v15 = vld [vmem:[%s15488_s0 + $0x70] sm:$0xff] }
   0xa   :  { %v55_v16 = vld [vmem:[%s15488_s0 + $0x78] sm:$0xff]  ;;  %v56_v18 = vld [vmem:[%s15488_s0 + $0x80] sm:$0xff]  ;;  %v57_v21 = vld [vmem:[%s15488_s0 + $0x88] sm:$0xff] }
   0xb   :  { %8047 = vmatmul.msk.f32.gmra.mxu0 %vm617_vm1, %v41_v2  ;;  %v259_v19 = vld [vmem:[%s15488_s0 + $0x6d8] sm:$0xff]  ;;  %v260_v22 = vld [vmem:[%s15488_s0 + $0x6e0] sm:$0xff]  ;;  %v58_v24 = vld [vmem:[%s15488_s0 + $0x90] sm:$0xff] }
   0xc   :  { %8265 = vmatmul.msk.f32.vlgmr.msra.gmra.mxu1 %vm617_vm1, %v259_v19  ;;  %v261_v25 = vld [vmem:[%s15488_s0 + $0x6e8] sm:$0xff]  ;;  %v59_v27 = vld [vmem:[%s15488_s0 + $0x98] sm:$0xff]  ;;  %v262_v28 = vld [vmem:[%s15488_s0 + $0x6f0] sm:$0xff] }
   0xd   :  { %v60_v30 = vld [vmem:[%s15488_s0 + $0xa0] sm:$0xff]  ;;  %v263_v31 = vld [vmem:[%s15488_s0 + $0x6f8] sm:$0xff]  ;;  %v497_v32 = vld [vmem:[%s15488_s0 + $0xe48] sm:$0xff] }
   0xe   :  { %8503 = vmatmul.msk.f32.vlgmr.msra.gmra.mxu3 %vm617_vm1, %v497_v32  ;;  %v61_v34 = vld [vmem:[%s15488_s0 + $0xa8] sm:$0xff]  ;;  %v264_v35 = vld [vmem:[%s15488_s0 + $0x700] sm:$0xff]  ;;  %v498_v36 = vld [vmem:[%s15488_s0 + $0xe50] sm:$0xff] }
   0xf   :  { %v62_v38 = vld [vmem:[%s15488_s0 + $0xb0] sm:$0xff]  ;;  %v265_v39 = vld [vmem:[%s15488_s0 + $0x708] sm:$0xff]  ;;  %v499_v40 = vld [vmem:[%s15488_s0 + $0xe58] sm:$0xff] }
  0x10   :  { %v63_v42 = vld [vmem:[%s15488_s0 + $0xb8] sm:$0xff]  ;;  %v266_v43 = vld [vmem:[%s15488_s0 + $0x710] sm:$0xff]  ;;  %v500_v44 = vld [vmem:[%s15488_s0 + $0xe60] sm:$0xff] }
  0x11   :  { %v64_v46 = vld [vmem:[%s15488_s0 + $0xc0] sm:$0xff]  ;;  %v267_v47 = vld [vmem:[%s15488_s0 + $0x718] sm:$0xff]  ;;  %v501_v48 = vld [vmem:[%s15488_s0 + $0xe68] sm:$0xff] }
  0x12   :  { %v65_v50 = vld [vmem:[%s15488_s0 + $0xc8] sm:$0xff]  ;;  %v268_v51 = vld [vmem:[%s15488_s0 + $0x720] sm:$0xff]  ;;  %v502_v52 = vld [vmem:[%s15488_s0 + $0xe70] sm:$0xff] }
  0x13   :  { %8048 = vmatmul.msk.f32.gmra.mxu0 %vm617_vm1, %v42_v3  ;;  %v66_v54 = vld [vmem:[%s15488_s0 + $0xd0] sm:$0xff]  ;;  %v269_v55 = vld [vmem:[%s15488_s0 + $0x728] sm:$0xff]  ;;  %v503_v56 = vld [vmem:[%s15488_s0 + $0xe78] sm:$0xff] }
  0x14   :  { %8266 = vmatmul.msk.f32.gmra.mxu1 %vm617_vm1, %v260_v22  ;;  %v67_v58 = vld [vmem:[%s15488_s0 + $0xd8] sm:$0xff]  ;;  %v270_v59 = vld [vmem:[%s15488_s0 + $0x730] sm:$0xff]  ;;  %v504_v60 = vld [vmem:[%s15488_s0 + $0xe80] sm:$0xff] }
  0x15   :  { %v68_v62 = vld [vmem:[%s15488_s0 + $0xe0] sm:$0xff]  ;;  %v271_v63 = vld [vmem:[%s15488_s0 + $0x738] sm:$0xff]  ;;  %v505_v0 = vld [vmem:[%s15488_s0 + $0xe88] sm:$0xff] }
  0x16   :  { %8504 = vmatmul.msk.f32.gmra.mxu3 %vm617_vm1, %v498_v36  ;;  %v69_v2 = vld [vmem:[%s15488_s0 + $0xe8] sm:$0xff]  ;;  %v272_v3 = vld [vmem:[%s15488_s0 + $0x740] sm:$0xff]  ;;  %v511_v32 = vld [vmem:[%s15488_s0 + $0xeb8] sm:$0xff] }
  0x1b   :  { %8049 = vmatmul.msk.f32.gmra.mxu0 %vm617_vm1, %v43_v4  ;;  %v506_v4 = vld [vmem:[%s15488_s0 + $0xe90] sm:$0xff] }
  0x1c   :  { %8267 = vmatmul.msk.f32.gmra.mxu1 %vm617_vm1, %v261_v25  ;;  %v510_v25 = vld [vmem:[%s15488_s0 + $0xeb0] sm:$0xff] }
  0x1e   :  { %8505 = vmatmul.msk.f32.gmra.mxu3 %vm617_vm1, %v499_v40 }
  0x23   :  { %8050 = vmatmul.msk.f32.gmra.mxu0 %vm617_vm1, %v44_v5 }
  0x24   :  { %8268 = vmatmul.msk.f32.gmra.mxu1 %vm617_vm1, %v262_v28  ;;  %v74_v28 = vld [vmem:[%s15488_s0 + $0x110] sm:$0xff] }
  0x26   :  { %8506 = vmatmul.msk.f32.gmra.mxu3 %vm617_vm1, %v500_v44  ;;  %v279_v44 = vld [vmem:[%s15488_s0 + $0x778] sm:$0xff] }
  0x2b   :  { %8051 = vmatmul.msk.f32.gmra.mxu0 %vm617_vm1, %v45_v6  ;;  %v70_v6 = vld [vmem:[%s15488_s0 + $0xf0] sm:$0xff] }
  0x2c   :  { %8269 = vmatmul.msk.f32.gmra.mxu1 %vm617_vm1, %v263_v31  ;;  %v277_v31 = vld [vmem:[%s15488_s0 + $0x768] sm:$0xff] }
  0x2e   :  { %8507 = vmatmul.msk.f32.gmra.mxu3 %vm617_vm1, %v501_v48  ;;  %v77_v48 = vld [vmem:[%s15488_s0 + $0x128] sm:$0xff] }
  0x33   :  { %8052 = vmatmul.msk.f32.gmra.mxu0 %vm617_vm1, %v46_v7  ;;  %v273_v7 = vld [vmem:[%s15488_s0 + $0x748] sm:$0xff] }
  0x34   :  { %8270 = vmatmul.msk.f32.gmra.mxu1 %vm617_vm1, %v264_v35  ;;  %v75_v35 = vld [vmem:[%s15488_s0 + $0x118] sm:$0xff] }
  0x36   :  { %8508 = vmatmul.msk.f32.gmra.mxu3 %vm617_vm1, %v502_v52  ;;  %v280_v52 = vld [vmem:[%s15488_s0 + $0x780] sm:$0xff] }
  0x3b   :  { %8053 = vmatmul.msk.f32.gmra.mxu0 %vm617_vm1, %v47_v8  ;;  %v507_v8 = vld [vmem:[%s15488_s0 + $0xe98] sm:$0xff] }
  0x3c   :  { %8271 = vmatmul.msk.f32.gmra.mxu1 %vm617_vm1, %v265_v39  ;;  %v512_v39 = vld [vmem:[%s15488_s0 + $0xec0] sm:$0xff] }
  0x3e   :  { %8509 = vmatmul.msk.f32.gmra.mxu3 %vm617_vm1, %v503_v56 }
  0x43   :  { %8054 = vmatmul.msk.f32.gmra.mxu0 %vm617_vm1, %v48_v9 }
  0x44   :  { %8272 = vmatmul.msk.f32.gmra.mxu1 %vm617_vm1, %v266_v43 }
  0x46   :  { %8510 = vmatmul.msk.f32.gmra.mxu3 %vm617_vm1, %v504_v60 }
  0x4b   :  { %8055 = vmatmul.msk.f32.gmra.mxu0 %vm617_vm1, %v49_v10  ;;  %v71_v10 = vld [vmem:[%s15488_s0 + $0xf8] sm:$0xff] }
  0x4c   :  { %8273 = vmatmul.msk.f32.gmra.mxu1 %vm617_vm1, %v267_v47 }
  0x4e   :  { %8511 = vmatmul.msk.f32.gmra.mxu3 %vm617_vm1, %v505_v0  ;;  %v379_v0 = vld [vmem:[%s15488_s0 + $0xa98] sm:$0xff] }
  0x53   :  { %8056 = vmatmul.msk.f32.gmra.mxu0 %vm617_vm1, %v50_v11  ;;  %v274_v11 = vld [vmem:[%s15488_s0 + $0x750] sm:$0xff] }
  0x54   :  { %8274 = vmatmul.msk.f32.gmra.mxu1 %vm617_vm1, %v268_v51 }
  0x56   :  { %8512 = vmatmul.msk.f32.gmra.mxu3 %vm617_vm1, %v506_v4 }
  0x5b   :  { %8057 = vmatmul.msk.f32.gmra.mxu0 %vm617_vm1, %v51_v12  ;;  %v508_v12 = vld [vmem:[%s15488_s0 + $0xea0] sm:$0xff] }
  0x5c   :  { %8275 = vmatmul.msk.f32.gmra.mxu1 %vm617_vm1, %v269_v55  ;;  %v378_v55 = vld [vmem:[%s15488_s0 + $0xa90] sm:$0xff] }
  0x5d   :  { %8384 = vmatmul.msk.f32.vlgmr.msra.gmra.mxu2 %vm617_vm1, %v378_v55  ;;  %v383_v55 = vld [vmem:[%s15488_s0 + $0xab8] sm:$0xff] }
  0x5e   :  { %8513 = vmatmul.msk.f32.gmra.mxu3 %vm617_vm1, %v507_v8  ;;  %v516_v8 = vld [vmem:[%s15488_s0 + $0xee0] sm:$0xff] }
  0x63   :  { %8058 = vmatmul.msk.f32.gmra.mxu0 %vm617_vm1, %v52_v13 }
  0x64   :  { %8276 = vmatmul.msk.f32.gmra.mxu1 %vm617_vm1, %v270_v59 }
  0x65   :  { %8385 = vmatmul.msk.f32.gmra.mxu2 %vm617_vm1, %v379_v0 }
  0x66   :  { %8514 = vmatmul.msk.f32.gmra.mxu3 %vm617_vm1, %v508_v12  ;;  %v80_v12 = vld [vmem:[%s15488_s0 + $0x140] sm:$0xff] }
  0x6b   :  { %8059 = vmatmul.msk.f32.gmra.mxu0 %vm617_vm1, %v53_v14  ;;  %v72_v14 = vld [vmem:[%s15488_s0 + $0x100] sm:$0xff] }
  0x6c   :  { %8277 = vmatmul.msk.f32.gmra.mxu1 %vm617_vm1, %v271_v63  ;;  %v515_v63 = vld [vmem:[%s15488_s0 + $0xed8] sm:$0xff] }
  0x73   :  { %8060 = vmatmul.msk.f32.gmra.mxu0 %vm617_vm1, %v54_v15 }
  0x74   :  { %8278 = vmatmul.msk.f32.gmra.mxu1 %vm617_vm1, %v272_v3  ;;  %v79_v3 = vld [vmem:[%s15488_s0 + $0x138] sm:$0xff] }
  0x7b   :  { %8061 = vmatmul.msk.f32.gmra.mxu0 %vm617_vm1, %v55_v16  ;;  %v275_v16 = vld [vmem:[%s15488_s0 + $0x758] sm:$0xff] }
  0x7c   :  { %8279 = vmatmul.msk.f32.gmra.mxu1 %vm617_vm1, %v273_v7  ;;  %v282_v7 = vld [vmem:[%s15488_s0 + $0x790] sm:$0xff] }
  0x80   :  { %v9846_v17 = vpop.f32.mrf.mxu0 }
  0x83   :  { %8062 = vmatmul.msk.f32.gmra.mxu0 %vm617_vm1, %v56_v18  ;;  %v509_v18 = vld [vmem:[%s15488_s0 + $0xea8] sm:$0xff] }
  0x84   :  { %8280 = vmatmul.msk.f32.gmra.mxu1 %vm617_vm1, %v274_v11  ;;  %8515 = vmatmul.msk.f32.gmra.mxu3 %vm617_vm1, %v509_v18  ;;  %v283_v18 = vld [vmem:[%s15488_s0 + $0x798] sm:$0xff] }
  0x88   :  { %v9856_v20 = vpop.f32.mrf.mxu0 }
  0x89   :  { %v10059_v15 = vpop.f32.mrf.mxu1 }
  0x8a   :  { %15640 = vst [vmem:[#allocation5_spill] sm:$0xff] %v10059_v15 }
  0x8b   :  { %8063 = vmatmul.msk.f32.gmra.mxu0 %vm617_vm1, %v57_v21  ;;  %v73_v21 = vld [vmem:[%s15488_s0 + $0x108] sm:$0xff] }
  0x8c   :  { %8281 = vmatmul.msk.f32.gmra.mxu1 %vm617_vm1, %v275_v16  ;;  %8516 = vmatmul.msk.f32.gmra.mxu3 %vm617_vm1, %v510_v25 }
  0x90   :  { %v9866_v23 = vpop.f32.mrf.mxu0 }
  0x91   :  { %v10075_v22 = vpop.f32.mrf.mxu1 }
  0x92   :  { %15641 = vst [vmem:[#allocation6_spill] sm:$0xff] %v10075_v22 }
  0x93   :  { %8064 = vmatmul.msk.f32.gmra.mxu0 %vm617_vm1, %v58_v24  ;;  %v276_v24 = vld [vmem:[%s15488_s0 + $0x760] sm:$0xff] }
  0x94   :  { %8282 = vmatmul.msk.f32.gmra.mxu1 %vm617_vm1, %v276_v24  ;;  %8517 = vmatmul.msk.f32.gmra.mxu3 %vm617_vm1, %v511_v32  ;;  %v381_v24 = vld [vmem:[%s15488_s0 + $0xaa8] sm:$0xff] }
  0x98   :  { %v9876_v26 = vpop.f32.mrf.mxu0 }
  0x9b   :  { %8065 = vmatmul.msk.f32.gmra.mxu0 %vm617_vm1, %v59_v27 }
  0x9c   :  { %8283 = vmatmul.msk.f32.gmra.mxu1 %vm617_vm1, %v277_v31  ;;  %8518 = vmatmul.msk.f32.gmra.mxu3 %vm617_vm1, %v512_v39  ;;  %v382_v39 = vld [vmem:[%s15488_s0 + $0xab0] sm:$0xff] }
  0xa0   :  { %v9886_v29 = vpop.f32.mrf.mxu0 }
  0xa3   :  { %8066 = vmatmul.msk.f32.gmra.mxu0 %vm617_vm1, %v60_v30  ;;  %v10091_v30 = vpop.f32.mrf.mxu1 }
  0xa4   :  { %15642 = vst [vmem:[#allocation7_spill] sm:$0xff] %v10091_v30 }
  0xa8   :  { %v9900_v33 = vpop.f32.mrf.mxu0 }
  0xab   :  { %8067 = vmatmul.msk.f32.gmra.mxu0 %vm617_vm1, %v61_v34  ;;  %v10107_v36 = vpop.f32.mrf.mxu1 }
  0xac   :  { %15643 = vst [vmem:[#allocation8_spill] sm:$0xff] %v10107_v36 }
  0xb0   :  { %v9914_v37 = vpop.f32.mrf.mxu0 }
  0xb3   :  { %8068 = vmatmul.msk.f32.gmra.mxu0 %vm617_vm1, %v62_v38  ;;  %v278_v38 = vld [vmem:[%s15488_s0 + $0x770] sm:$0xff]  ;;  %v10123_v43 = vpop.f32.mrf.mxu1 }
  0xb4   :  { %8284 = vmatmul.msk.f32.gmra.mxu1 %vm617_vm1, %v278_v38  ;;  %15644 = vst [vmem:[#allocation9_spill] sm:$0xff] %v10123_v43  ;;  %v518_v38 = vld [vmem:[%s15488_s0 + $0xef0] sm:$0xff] }
  0xb8   :  { %v9928_v41 = vpop.f32.mrf.mxu0 }
  0xbb   :  { %8069 = vmatmul.msk.f32.gmra.mxu0 %vm617_vm1, %v63_v42  ;;  %v76_v42 = vld [vmem:[%s15488_s0 + $0x120] sm:$0xff]  ;;  %v10141_v51 = vpop.f32.mrf.mxu1 }
  0xbc   :  { %8285 = vmatmul.msk.f32.gmra.mxu1 %vm617_vm1, %v279_v44  ;;  %15646 = vst [vmem:[#allocation11_spill] sm:$0xff] %v10141_v51  ;;  %v82_v44 = vld [vmem:[%s15488_s0 + $0x150] sm:$0xff] }
  0xc0   :  { %v9942_v45 = vpop.f32.mrf.mxu0 }
  0xc3   :  { %8070 = vmatmul.msk.f32.gmra.mxu0 %vm617_vm1, %v64_v46  ;;  %v513_v46 = vld [vmem:[%s15488_s0 + $0xec8] sm:$0xff]  ;;  %v10163_v60 = vpop.f32.mrf.mxu1 }
  0xc4   :  { %8519 = vmatmul.msk.f32.gmra.mxu3 %vm617_vm1, %v513_v46  ;;  %8286 = vmatmul.msk.f32.gmra.mxu1 %vm617_vm1, %v280_v52  ;;  %15648 = vst [vmem:[#allocation13_spill] sm:$0xff] %v10163_v60  ;;  %v285_v52 = vld [vmem:[%s15488_s0 + $0x7a8] sm:$0xff] }
  0xc8   :  { %v9956_v49 = vpop.f32.mrf.mxu0 }
  0xcb   :  { %8071 = vmatmul.msk.f32.gmra.mxu0 %vm617_vm1, %v65_v50  ;;  %v10139_v50 = vpop.f32.mrf.mxu3 }
  0xcc   :  { %15645 = vst [vmem:[#allocation10_spill] sm:$0xff] %v10139_v50  ;;  %v200_v50 = vld [vmem:[%s15488_s0 + $0x500] sm:$0xff] }
  0xd0   :  { %v9970_v53 = vpop.f32.mrf.mxu0 }
  0xd3   :  { %8072 = vmatmul.msk.f32.gmra.mxu0 %vm617_vm1, %v66_v54  ;;  %v514_v54 = vld [vmem:[%s15488_s0 + $0xed0] sm:$0xff]  ;;  %v10161_v59 = vpop.f32.mrf.mxu3 }
  0xd4   :  { %8520 = vmatmul.msk.f32.gmra.mxu3 %vm617_vm1, %v514_v54  ;;  %15647 = vst [vmem:[#allocation12_spill] sm:$0xff] %v10161_v59  ;;  %v519_v54 = vld [vmem:[%s15488_s0 + $0xef8] sm:$0xff]  ;;  %v197_v59 = vld [vmem:[%s15488_s0 + $0x4e8] sm:$0xff] }
  0xd8   :  { %v9984_v57 = vpop.f32.mrf.mxu0 }
  0xdb   :  { %8073 = vmatmul.msk.f32.gmra.mxu0 %vm617_vm1, %v67_v58  ;;  %v78_v58 = vld [vmem:[%s15488_s0 + $0x130] sm:$0xff]  ;;  %v10183_v4 = vpop.f32.mrf.mxu3 }
  0xdc   :  { %8521 = vmatmul.msk.f32.gmra.mxu3 %vm617_vm1, %v515_v63  ;;  %15650 = vst [vmem:[#allocation15_spill] sm:$0xff] %v10183_v4 }
  0xe0   :  { %v9998_v61 = vpop.f32.mrf.mxu0  ;;  %v10517_v22 = vpop.f32.mrf.mxu2 }
  0xe1   :  { %15697 = vst [vmem:[#allocation62_spill] sm:$0xff] %v10517_v22 }
  0xe3   :  { %8074 = vmatmul.msk.f32.gmra.mxu0 %vm617_vm1, %v68_v62  ;;  %v281_v62 = vld [vmem:[%s15488_s0 + $0x788] sm:$0xff] }
  0xe4   :  { %8287 = vmatmul.msk.f32.gmra.mxu1 %vm617_vm1, %v281_v62  ;;  %8522 = vmatmul.msk.f32.gmra.mxu3 %vm617_vm1, %v516_v8  ;;  %v83_v62 = vld [vmem:[%s15488_s0 + $0x158] sm:$0xff]  ;;  %v384_v8 = vld [vmem:[%s15488_s0 + $0xac0] sm:$0xff] }
  0xe8   :  { %v10012_v1 = vpop.f32.mrf.mxu0 }
  0xeb   :  { %8075 = vmatmul.msk.f32.gmra.mxu0 %vm617_vm1, %v69_v2 }
  0xec   :  { %8288 = vmatmul.msk.f32.gmra.mxu1 %vm617_vm1, %v282_v7  ;;  %v520_v7 = vld [vmem:[%s15488_s0 + $0xf00] sm:$0xff] }
  0xf0   :  { %v10026_v5 = vpop.f32.mrf.mxu0 }
  0xf3   :  { %8076 = vmatmul.msk.f32.gmra.mxu0 %vm617_vm1, %v70_v6  ;;  %v10185_v6 = vpop.f32.mrf.mxu1 }
  0xf4   :  { %15651 = vst [vmem:[#allocation16_spill] sm:$0xff] %v10185_v6  ;;  %8289 = vmatmul.msk.f32.gmra.mxu1 %vm617_vm1, %v283_v18 }
  0xf8   :  { %v10040_v9 = vpop.f32.mrf.mxu0 }
  0xfb   :  { %8077 = vmatmul.msk.f32.gmra.mxu0 %vm617_vm1, %v71_v10  ;;  %v380_v10 = vld [vmem:[%s15488_s0 + $0xaa0] sm:$0xff]  ;;  %v10207_v16 = vpop.f32.mrf.mxu1 }
  0xfc   :  { %8386 = vmatmul.msk.f32.gmra.mxu2 %vm617_vm1, %v380_v10  ;;  %15654 = vst [vmem:[#allocation19_spill] sm:$0xff] %v10207_v16 }
 0x100   :  { %v10054_v13 = vpop.f32.mrf.mxu0 }
 0x103   :  { %8078 = vmatmul.msk.f32.gmra.mxu0 %vm617_vm1, %v72_v14  ;;  %v10205_v14 = vpop.f32.mrf.mxu3  ;;  %v10229_v32 = vpop.f32.mrf.mxu1 }
 0x104   :  { %15653 = vst [vmem:[#allocation18_spill] sm:$0xff] %v10205_v14  ;;  %8387 = vmatmul.msk.f32.gmra.mxu2 %vm617_vm1, %v381_v24  ;;  %v287_v24 = vld [vmem:[%s15488_s0 + $0x7b8] sm:$0xff] }
 0x105   :  { %15657 = vst [vmem:[#allocation22_spill] sm:$0xff] %v10229_v32 }
 0x108   :  { %v10070_v19 = vpop.f32.mrf.mxu0 }
 0x10b   :  { %8079 = vmatmul.msk.f32.gmra.mxu0 %vm617_vm1, %v73_v21  ;;  %v517_v21 = vld [vmem:[%s15488_s0 + $0xee8] sm:$0xff]  ;;  %v10227_v31 = vpop.f32.mrf.mxu3 }
 0x10c   :  { %8523 = vmatmul.msk.f32.gmra.mxu3 %vm617_vm1, %v517_v21  ;;  %15656 = vst [vmem:[#allocation21_spill] sm:$0xff] %v10227_v31  ;;  %8388 = vmatmul.msk.f32.gmra.mxu2 %vm617_vm1, %v382_v39  ;;  %v85_v39 = vld [vmem:[%s15488_s0 + $0x168] sm:$0xff]  ;;  %v464_v31 = vld [vmem:[%s15488_s0 + $0xd40] sm:$0xff] }
 0x110   :  { %v10086_v27 = vpop.f32.mrf.mxu0 }
 0x113   :  { %8080 = vmatmul.msk.f32.gmra.mxu0 %vm617_vm1, %v74_v28  ;;  %v81_v28 = vld [vmem:[%s15488_s0 + $0x148] sm:$0xff]  ;;  %v10249_v46 = vpop.f32.mrf.mxu3 }
 0x114   :  { %8524 = vmatmul.msk.f32.gmra.mxu3 %vm617_vm1, %v518_v38  ;;  %15659 = vst [vmem:[#allocation24_spill] sm:$0xff] %v10249_v46  ;;  %8389 = vmatmul.msk.f32.gmra.mxu2 %vm617_vm1, %v383_v55  ;;  %v522_v55 = vld [vmem:[%s15488_s0 + $0xf10] sm:$0xff]  ;;  %v461_v46 = vld [vmem:[%s15488_s0 + $0xd28] sm:$0xff] }
 0x118   :  { %v10102_v34 = vpop.f32.mrf.mxu0 }
 0x11b   :  { %8081 = vmatmul.msk.f32.gmra.mxu0 %vm617_vm1, %v75_v35  ;;  %v284_v35 = vld [vmem:[%s15488_s0 + $0x7a0] sm:$0xff]  ;;  %v10271_v63 = vpop.f32.mrf.mxu3 }
 0x11c   :  { %8290 = vmatmul.msk.f32.gmra.mxu1 %vm617_vm1, %v284_v35  ;;  %8525 = vmatmul.msk.f32.gmra.mxu3 %vm617_vm1, %v519_v54  ;;  %15662 = vst [vmem:[#allocation27_spill] sm:$0xff] %v10271_v63  ;;  %v385_v35 = vld [vmem:[%s15488_s0 + $0xac8] sm:$0xff]  ;;  %v288_v54 = vld [vmem:[%s15488_s0 + $0x7c0] sm:$0xff]  ;;  %v459_v63 = vld [vmem:[%s15488_s0 + $0xd18] sm:$0xff] }
 0x11d   :  { %8390 = vmatmul.msk.f32.gmra.mxu2 %vm617_vm1, %v384_v8 }
 0x120   :  { %v10118_v40 = vpop.f32.mrf.mxu0 }
 0x123   :  { %8082 = vmatmul.msk.f32.gmra.mxu0 %vm617_vm1, %v76_v42  ;;  %v10293_v18 = vpop.f32.mrf.mxu3 }
 0x124   :  { %8291 = vmatmul.msk.f32.gmra.mxu1 %vm617_vm1, %v285_v52  ;;  %8526 = vmatmul.msk.f32.gmra.mxu3 %vm617_vm1, %v520_v7  ;;  %15665 = vst [vmem:[#allocation30_spill] sm:$0xff] %v10293_v18  ;;  %v86_v7 = vld [vmem:[%s15488_s0 + $0x170] sm:$0xff]  ;;  %v456_v18 = vld [vmem:[%s15488_s0 + $0xd00] sm:$0xff] }
 0x125   :  { %8391 = vmatmul.msk.f32.gmra.mxu2 %vm617_vm1, %v385_v35  ;;  %v387_v35 = vld [vmem:[%s15488_s0 + $0xad8] sm:$0xff] }
 0x128   :  { %v10134_v47 = vpop.f32.mrf.mxu0 }
 0x12b   :  { %8083 = vmatmul.msk.f32.gmra.mxu0 %vm617_vm1, %v77_v48  ;;  %v10251_v48 = vpop.f32.mrf.mxu1 }
 0x12c   :  { %15660 = vst [vmem:[#allocation25_spill] sm:$0xff] %v10251_v48 }
 0x130   :  { %v10156_v56 = vpop.f32.mrf.mxu0 }
 0x133   :  { %8084 = vmatmul.msk.f32.gmra.mxu0 %vm617_vm1, %v78_v58  ;;  %v10273_v0 = vpop.f32.mrf.mxu1 }
 0x134   :  { %15663 = vst [vmem:[#allocation28_spill] sm:$0xff] %v10273_v0 }
 0x138   :  { %v10178_v2 = vpop.f32.mrf.mxu0 }
 0x139   :  { %15649 = vst [vmem:[#allocation14_spill] sm:$0xff] %v10178_v2 }
 0x13b   :  { %8085 = vmatmul.msk.f32.gmra.mxu0 %vm617_vm1, %v79_v3  ;;  %v286_v3 = vld [vmem:[%s15488_s0 + $0x7b0] sm:$0xff]  ;;  %v10295_v21 = vpop.f32.mrf.mxu1 }
 0x13c   :  { %8292 = vmatmul.msk.f32.gmra.mxu1 %vm617_vm1, %v286_v3  ;;  %15666 = vst [vmem:[#allocation31_spill] sm:$0xff] %v10295_v21 }
 0x140   :  { %v10200_v11 = vpop.f32.mrf.mxu0 }
 0x141   :  { %15652 = vst [vmem:[#allocation17_spill] sm:$0xff] %v10200_v11 }
 0x143   :  { %8086 = vmatmul.msk.f32.gmra.mxu0 %vm617_vm1, %v80_v12  ;;  %v84_v12 = vld [vmem:[%s15488_s0 + $0x160] sm:$0xff]  ;;  %v10317_v52 = vpop.f32.mrf.mxu1 }
 0x144   :  { %8293 = vmatmul.msk.f32.gmra.mxu1 %vm617_vm1, %v287_v24  ;;  %15669 = vst [vmem:[#allocation34_spill] sm:$0xff] %v10317_v52  ;;  %v289_v24 = vld [vmem:[%s15488_s0 + $0x7c8] sm:$0xff] }
 0x148   :  { %v10222_v25 = vpop.f32.mrf.mxu0 }
 0x149   :  { %15655 = vst [vmem:[#allocation20_spill] sm:$0xff] %v10222_v25 }
 0x14b   :  { %8087 = vmatmul.msk.f32.gmra.mxu0 %vm617_vm1, %v81_v28  ;;  %v521_v28 = vld [vmem:[%s15488_s0 + $0xf08] sm:$0xff] }
 0x14c   :  { %8527 = vmatmul.msk.f32.gmra.mxu3 %vm617_vm1, %v521_v28  ;;  %8294 = vmatmul.msk.f32.gmra.mxu1 %vm617_vm1, %v288_v54  ;;  %v523_v28 = vld [vmem:[%s15488_s0 + $0xf18] sm:$0xff] }
 0x14d   :  { %v87_v54 = vld [vmem:[%s15488_s0 + $0x178] sm:$0xff] }
 0x150   :  { %v10244_v42 = vpop.f32.mrf.mxu0 }
 0x151   :  { %15658 = vst [vmem:[#allocation23_spill] sm:$0xff] %v10244_v42 }
 0x153   :  { %8088 = vmatmul.msk.f32.gmra.mxu0 %vm617_vm1, %v82_v44  ;;  %v10315_v44 = vpop.f32.mrf.mxu3 }
 0x154   :  { %15668 = vst [vmem:[#allocation33_spill] sm:$0xff] %v10315_v44  ;;  %8528 = vmatmul.msk.f32.gmra.mxu3 %vm617_vm1, %v522_v55  ;;  %8295 = vmatmul.msk.f32.gmra.mxu1 %vm617_vm1, %v289_v24  ;;  %v524_v24 = vld [vmem:[%s15488_s0 + $0xf20] sm:$0xff]  ;;  %v454_v44 = vld [vmem:[%s15488_s0 + $0xcf0] sm:$0xff] }
 0x158   :  { %v10266_v58 = vpop.f32.mrf.mxu0 }
 0x159   :  { %15661 = vst [vmem:[#allocation26_spill] sm:$0xff] %v10266_v58  ;;  %v494_v58 = vld [vmem:[%s15488_s0 + $0xe30] sm:$0xff] }
 0x15b   :  { %8089 = vmatmul.msk.f32.gmra.mxu0 %vm617_vm1, %v83_v62  ;;  %v386_v62 = vld [vmem:[%s15488_s0 + $0xad0] sm:$0xff]  ;;  %v10337_v8 = vpop.f32.mrf.mxu3 }
 0x15c   :  { %8392 = vmatmul.msk.f32.gmra.mxu2 %vm617_vm1, %v386_v62  ;;  %15671 = vst [vmem:[#allocation36_spill] sm:$0xff] %v10337_v8  ;;  %8529 = vmatmul.msk.f32.gmra.mxu3 %vm617_vm1, %v523_v28  ;;  %v388_v28 = vld [vmem:[%s15488_s0 + $0xae0] sm:$0xff] }
 0x160   :  { %v10288_v10 = vpop.f32.mrf.mxu0 }
 0x161   :  { %15664 = vst [vmem:[#allocation29_spill] sm:$0xff] %v10288_v10  ;;  %v465_v10 = vld [vmem:[%s15488_s0 + $0xd48] sm:$0xff] }
 0x163   :  { %8090 = vmatmul.msk.f32.gmra.mxu0 %vm617_vm1, %v84_v12  ;;  %v10339_v12 = vpop.f32.mrf.mxu1  ;;  %v10359_v55 = vpop.f32.mrf.mxu3 }
 0x164   :  { %15672 = vst [vmem:[#allocation37_spill] sm:$0xff] %v10339_v12  ;;  %8393 = vmatmul.msk.f32.gmra.mxu2 %vm617_vm1, %v387_v35  ;;  %8530 = vmatmul.msk.f32.gmra.mxu3 %vm617_vm1, %v524_v24  ;;  %v525_v24 = vld [vmem:[%s15488_s0 + $0xf28] sm:$0xff] }
 0x165   :  { %15674 = vst [vmem:[#allocation39_spill] sm:$0xff] %v10359_v55  ;;  %v449_v55 = vld [vmem:[%s15488_s0 + $0xcc8] sm:$0xff] }
 0x168   :  { %v10310_v38 = vpop.f32.mrf.mxu0 }
 0x169   :  { %15667 = vst [vmem:[#allocation32_spill] sm:$0xff] %v10310_v38  ;;  %v364_v38 = vld [vmem:[%s15488_s0 + $0xa20] sm:$0xff] }
 0x16b   :  { %8091 = vmatmul.msk.f32.gmra.mxu0 %vm617_vm1, %v85_v39  ;;  %v10361_v62 = vpop.f32.mrf.mxu1 }
 0x16c   :  { %15675 = vst [vmem:[#allocation40_spill] sm:$0xff] %v10361_v62  ;;  %8394 = vmatmul.msk.f32.gmra.mxu2 %vm617_vm1, %v388_v28  ;;  %v10381_v62 = vpop.f32.mrf.mxu3  ;;  %v389_v28 = vld [vmem:[%s15488_s0 + $0xae8] sm:$0xff]  ;;  %8531 = vmatmul.msk.f32.gmra.mxu3 %vm617_vm1, %v525_v24  ;;  %v526_v24 = vld [vmem:[%s15488_s0 + $0xf30] sm:$0xff] }
 0x16d   :  { %15677 = vst [vmem:[#allocation42_spill] sm:$0xff] %v10381_v62 }
 0x170   :  { %v10332_v3 = vpop.f32.mrf.mxu0 }
 0x171   :  { %15670 = vst [vmem:[#allocation35_spill] sm:$0xff] %v10332_v3  ;;  %v460_v3 = vld [vmem:[%s15488_s0 + $0xd20] sm:$0xff] }
 0x173   :  { %8092 = vmatmul.msk.f32.gmra.mxu0 %vm617_vm1, %v86_v7  ;;  %v290_v7 = vld [vmem:[%s15488_s0 + $0x7d0] sm:$0xff]  ;;  %v10383_v12 = vpop.f32.mrf.mxu1 }
 0x174   :  { %8296 = vmatmul.msk.f32.gmra.mxu1 %vm617_vm1, %v290_v7  ;;  %15678 = vst [vmem:[#allocation43_spill] sm:$0xff] %v10383_v12  ;;  %v291_v7 = vld [vmem:[%s15488_s0 + $0x7d8] sm:$0xff]  ;;  %8395 = vmatmul.msk.f32.gmra.mxu2 %vm617_vm1, %v389_v28  ;;  %v10403_v52 = vpop.f32.mrf.mxu3  ;;  %v390_v28 = vld [vmem:[%s15488_s0 + $0xaf0] sm:$0xff] }
 0x175   :  { %15680 = vst [vmem:[#allocation45_spill] sm:$0xff] %v10403_v52  ;;  %8532 = vmatmul.msk.f32.gmra.mxu3 %vm617_vm1, %v526_v24  ;;  %v527_v24 = vld [vmem:[%s15488_s0 + $0xf38] sm:$0xff] }
 0x178   :  { %v10354_v39 = vpop.f32.mrf.mxu0 }
 0x179   :  { %15673 = vst [vmem:[#allocation38_spill] sm:$0xff] %v10354_v39  ;;  %v359_v39 = vld [vmem:[%s15488_s0 + $0x9f8] sm:$0xff] }
 0x17b   :  { %8093 = vmatmul.msk.f32.gmra.mxu0 %vm617_vm1, %v87_v54  ;;  %v88_v54 = vld [vmem:[%s15488_s0 + $0x180] sm:$0xff]  ;;  %v10405_v21 = vpop.f32.mrf.mxu1 }
 0x17c   :  { %8297 = vmatmul.msk.f32.gmra.mxu1 %vm617_vm1, %v291_v7  ;;  %15681 = vst [vmem:[#allocation46_spill] sm:$0xff] %v10405_v21  ;;  %v292_v7 = vld [vmem:[%s15488_s0 + $0x7e0] sm:$0xff]  ;;  %8396 = vmatmul.msk.f32.gmra.mxu2 %vm617_vm1, %v390_v28  ;;  %v10425_v0 = vpop.f32.mrf.mxu3  ;;  %v391_v28 = vld [vmem:[%s15488_s0 + $0xaf8] sm:$0xff] }
 0x17d   :  { %15683 = vst [vmem:[#allocation48_spill] sm:$0xff] %v10425_v0  ;;  %8533 = vmatmul.msk.f32.gmra.mxu3 %vm617_vm1, %v527_v24  ;;  %v528_v24 = vld [vmem:[%s15488_s0 + $0xf40] sm:$0xff] }
 0x180   :  { %v10376_v35 = vpop.f32.mrf.mxu0 }
 0x181   :  { %15676 = vst [vmem:[#allocation41_spill] sm:$0xff] %v10376_v35  ;;  %v455_v35 = vld [vmem:[%s15488_s0 + $0xcf8] sm:$0xff] }
 0x183   :  { %8094 = vmatmul.msk.f32.gmra.mxu0 %vm617_vm1, %v88_v54  ;;  %v89_v54 = vld [vmem:[%s15488_s0 + $0x188] sm:$0xff]  ;;  %v10427_v48 = vpop.f32.mrf.mxu1 }
 0x184   :  { %8298 = vmatmul.msk.f32.gmra.mxu1 %vm617_vm1, %v292_v7  ;;  %15684 = vst [vmem:[#allocation49_spill] sm:$0xff] %v10427_v48  ;;  %v293_v7 = vld [vmem:[%s15488_s0 + $0x7e8] sm:$0xff]  ;;  %8397 = vmatmul.msk.f32.gmra.mxu2 %vm617_vm1, %v391_v28  ;;  %v10447_v32 = vpop.f32.mrf.mxu3  ;;  %v392_v28 = vld [vmem:[%s15488_s0 + $0xb00] sm:$0xff] }
 0x185   :  { %15686 = vst [vmem:[#allocation51_spill] sm:$0xff] %v10447_v32  ;;  %8534 = vmatmul.msk.f32.gmra.mxu3 %vm617_vm1, %v528_v24  ;;  %v529_v24 = vld [vmem:[%s15488_s0 + $0xf48] sm:$0xff] }
 0x188   :  { %v10398_v12 = vpop.f32.mrf.mxu0 }
 0x189   :  { %15679 = vst [vmem:[#allocation44_spill] sm:$0xff] %v10398_v12 }
 0x18b   :  { %8095 = vmatmul.msk.f32.gmra.mxu0 %vm617_vm1, %v89_v54  ;;  %v90_v54 = vld [vmem:[%s15488_s0 + $0x190] sm:$0xff]  ;;  %v10449_v16 = vpop.f32.mrf.mxu1 }
 0x18c   :  { %8299 = vmatmul.msk.f32.gmra.mxu1 %vm617_vm1, %v293_v7  ;;  %15687 = vst [vmem:[#allocation52_spill] sm:$0xff] %v10449_v16  ;;  %v294_v7 = vld [vmem:[%s15488_s0 + $0x7f0] sm:$0xff]  ;;  %8398 = vmatmul.msk.f32.gmra.mxu2 %vm617_vm1, %v392_v28  ;;  %v10469_v6 = vpop.f32.mrf.mxu3  ;;  %v393_v28 = vld [vmem:[%s15488_s0 + $0xb08] sm:$0xff] }
 0x18d   :  { %15689 = vst [vmem:[#allocation54_spill] sm:$0xff] %v10469_v6  ;;  %8535 = vmatmul.msk.f32.gmra.mxu3 %vm617_vm1, %v529_v24  ;;  %v530_v24 = vld [vmem:[%s15488_s0 + $0xf50] sm:$0xff] }
 0x190   :  { %v10420_v21 = vpop.f32.mrf.mxu0 }
 0x191   :  { %15682 = vst [vmem:[#allocation47_spill] sm:$0xff] %v10420_v21  ;;  %v4676_v21 = vld [vmem:[%s15491_s3 + $0x8] sm:$0xff] }
 0x192   :  { %5035 = vmatpush.msrb.mxu2 %v4676_v21  ;;  %v353_v21 = vld [vmem:[%s15488_s0 + $0x9c8] sm:$0xff] }
 0x193   :  { %8096 = vmatmul.msk.f32.gmra.mxu0 %vm617_vm1, %v90_v54  ;;  %v91_v54 = vld [vmem:[%s15488_s0 + $0x198] sm:$0xff]  ;;  %v10471_v60 = vpop.f32.mrf.mxu1 }
 0x194   :  { %8300 = vmatmul.msk.f32.gmra.mxu1 %vm617_vm1, %v294_v7  ;;  %15690 = vst [vmem:[#allocation55_spill] sm:$0xff] %v10471_v60  ;;  %v295_v7 = vld [vmem:[%s15488_s0 + $0x7f8] sm:$0xff]  ;;  %8399 = vmatmul.msk.f32.gmra.mxu2 %vm617_vm1, %v393_v28  ;;  %v10491_v51 = vpop.f32.mrf.mxu3  ;;  %v394_v28 = vld [vmem:[%s15488_s0 + $0xb10] sm:$0xff] }
 0x195   :  { %15692 = vst [vmem:[#allocation57_spill] sm:$0xff] %v10491_v51  ;;  %8536 = vmatmul.msk.f32.gmra.mxu3 %vm617_vm1, %v530_v24  ;;  %v531_v24 = vld [vmem:[%s15488_s0 + $0xf58] sm:$0xff]  ;;  %v10541_v51 = vpop.f32.mrf.mxu2 }
 0x196   :  { %15701 = vst [vmem:[#allocation66_spill] sm:$0xff] %v10541_v51 }
 0x198   :  { %v10442_v48 = vpop.f32.mrf.mxu0 }
 0x199   :  { %15685 = vst [vmem:[#allocation50_spill] sm:$0xff] %v10442_v48 }
 0x19b   :  { %8097 = vmatmul.msk.f32.gmra.mxu0 %vm617_vm1, %v91_v54  ;;  %v92_v54 = vld [vmem:[%s15488_s0 + $0x1a0] sm:$0xff]  ;;  %v10493_v43 = vpop.f32.mrf.mxu1 }
 0x19c   :  { %8301 = vmatmul.msk.f32.gmra.mxu1 %vm617_vm1, %v295_v7  ;;  %15693 = vst [vmem:[#allocation58_spill] sm:$0xff] %v10493_v43  ;;  %v296_v7 = vld [vmem:[%s15488_s0 + $0x800] sm:$0xff]  ;;  %8400 = vmatmul.msk.f32.gmra.mxu2 %vm617_vm1, %v394_v28  ;;  %v10513_v36 = vpop.f32.mrf.mxu3  ;;  %v395_v28 = vld [vmem:[%s15488_s0 + $0xb18] sm:$0xff] }
 0x19d   :  { %15695 = vst [vmem:[#allocation60_spill] sm:$0xff] %v10513_v36  ;;  %8537 = vmatmul.msk.f32.gmra.mxu3 %vm617_vm1, %v531_v24  ;;  %v532_v24 = vld [vmem:[%s15488_s0 + $0xf60] sm:$0xff] }
 0x1a0   :  { %v10464_v16 = vpop.f32.mrf.mxu0 }
 0x1a1   :  { %15688 = vst [vmem:[#allocation53_spill] sm:$0xff] %v10464_v16 }
 0x1a3   :  { %8098 = vmatmul.msk.f32.gmra.mxu0 %vm617_vm1, %v92_v54  ;;  %v93_v54 = vld [vmem:[%s15488_s0 + $0x1a8] sm:$0xff]  ;;  %v10515_v30 = vpop.f32.mrf.mxu1 }
 0x1a4   :  { %8302 = vmatmul.msk.f32.gmra.mxu1 %vm617_vm1, %v296_v7  ;;  %15696 = vst [vmem:[#allocation61_spill] sm:$0xff] %v10515_v30  ;;  %v297_v7 = vld [vmem:[%s15488_s0 + $0x808] sm:$0xff]  ;;  %8401 = vmatmul.msk.f32.gmra.mxu2 %vm617_vm1, %v395_v28  ;;  %v10537_v15 = vpop.f32.mrf.mxu3  ;;  %v396_v28 = vld [vmem:[%s15488_s0 + $0xb20] sm:$0xff] }
 0x1a5   :  { %15699 = vst [vmem:[#allocation64_spill] sm:$0xff] %v10537_v15  ;;  %8538 = vmatmul.msk.f32.gmra.mxu3 %vm617_vm1, %v532_v24  ;;  %v533_v24 = vld [vmem:[%s15488_s0 + $0xf68] sm:$0xff] }
 0x1a8   :  { %v10486_v60 = vpop.f32.mrf.mxu0 }
 0x1a9   :  { %15691 = vst [vmem:[#allocation56_spill] sm:$0xff] %v10486_v60 }
 0x1ab   :  { %8099 = vmatmul.msk.f32.gmra.mxu0 %vm617_vm1, %v93_v54  ;;  %v94_v54 = vld [vmem:[%s15488_s0 + $0x1b0] sm:$0xff]  ;;  %v10539_v36 = vpop.f32.mrf.mxu1 }
 0x1ac   :  { %8303 = vmatmul.msk.f32.gmra.mxu1 %vm617_vm1, %v297_v7  ;;  %15700 = vst [vmem:[#allocation65_spill] sm:$0xff] %v10539_v36  ;;  %v298_v7 = vld [vmem:[%s15488_s0 + $0x810] sm:$0xff]  ;;  %8402 = vmatmul.msk.f32.gmra.mxu2 %vm617_vm1, %v396_v28  ;;  %v10561_v15 = vpop.f32.mrf.mxu3  ;;  %v397_v28 = vld [vmem:[%s15488_s0 + $0xb28] sm:$0xff] }
 0x1ad   :  { %15703 = vst [vmem:[#allocation68_spill] sm:$0xff] %v10561_v15  ;;  %8539 = vmatmul.msk.f32.gmra.mxu3 %vm617_vm1, %v533_v24  ;;  %v534_v24 = vld [vmem:[%s15488_s0 + $0xf70] sm:$0xff] }
 0x1b0   :  { %v10508_v43 = vpop.f32.mrf.mxu0 }
 0x1b1   :  { %15694 = vst [vmem:[#allocation59_spill] sm:$0xff] %v10508_v43 }
 0x1b3   :  { %8100 = vmatmul.msk.f32.gmra.mxu0 %vm617_vm1, %v94_v54  ;;  %v95_v54 = vld [vmem:[%s15488_s0 + $0x1b8] sm:$0xff]  ;;  %v10563_v6 = vpop.f32.mrf.mxu1 }
 0x1b4   :  { %8304 = vmatmul.msk.f32.gmra.mxu1 %vm617_vm1, %v298_v7  ;;  %15704 = vst [vmem:[#allocation69_spill] sm:$0xff] %v10563_v6  ;;  %v299_v7 = vld [vmem:[%s15488_s0 + $0x818] sm:$0xff]  ;;  %8403 = vmatmul.msk.f32.gmra.mxu2 %vm617_vm1, %v397_v28  ;;  %v10585_v15 = vpop.f32.mrf.mxu3  ;;  %v398_v28 = vld [vmem:[%s15488_s0 + $0xb30] sm:$0xff] }
 0x1b5   :  { %15707 = vst [vmem:[#allocation72_spill] sm:$0xff] %v10585_v15  ;;  %8540 = vmatmul.msk.f32.gmra.mxu3 %vm617_vm1, %v534_v24  ;;  %v535_v24 = vld [vmem:[%s15488_s0 + $0xf78] sm:$0xff] }
 0x1b8   :  { %v10532_v30 = vpop.f32.mrf.mxu0 }
 0x1b9   :  { %15698 = vst [vmem:[#allocation63_spill] sm:$0xff] %v10532_v30  ;;  %v10565_v30 = vpop.f32.mrf.mxu2 }
 0x1ba   :  { %15705 = vst [vmem:[#allocation70_spill] sm:$0xff] %v10565_v30 }
 0x1bb   :  { %8101 = vmatmul.msk.f32.gmra.mxu0 %vm617_vm1, %v95_v54  ;;  %v96_v54 = vld [vmem:[%s15488_s0 + $0x1c0] sm:$0xff] }
 0x1bc   :  { %8305 = vmatmul.msk.f32.gmra.mxu1 %vm617_vm1, %v299_v7  ;;  %v300_v7 = vld [vmem:[%s15488_s0 + $0x820] sm:$0xff]  ;;  %8404 = vmatmul.msk.f32.gmra.mxu2 %vm617_vm1, %v398_v28  ;;  %v10609_v15 = vpop.f32.mrf.mxu3  ;;  %v399_v28 = vld [vmem:[%s15488_s0 + $0xb38] sm:$0xff] }
 0x1bd   :  { %15711 = vst [vmem:[#allocation76_spill] sm:$0xff] %v10609_v15  ;;  %8541 = vmatmul.msk.f32.gmra.mxu3 %vm617_vm1, %v535_v24  ;;  %v536_v24 = vld [vmem:[%s15488_s0 + $0xf80] sm:$0xff] }
 0x1c0   :  { %v10556_v36 = vpop.f32.mrf.mxu0 }
 0x1c1   :  { %15702 = vst [vmem:[#allocation67_spill] sm:$0xff] %v10556_v36  ;;  %v10587_v36 = vpop.f32.mrf.mxu1  ;;  %v10589_v32 = vpop.f32.mrf.mxu2 }
 0x1c2   :  { %15708 = vst [vmem:[#allocation73_spill] sm:$0xff] %v10587_v36 }
 0x1c3   :  { %8102 = vmatmul.msk.f32.gmra.mxu0 %vm617_vm1, %v96_v54  ;;  %v97_v54 = vld [vmem:[%s15488_s0 + $0x1c8] sm:$0xff]  ;;  %15709 = vst [vmem:[#allocation74_spill] sm:$0xff] %v10589_v32 }
 0x1c4   :  { %8306 = vmatmul.msk.f32.gmra.mxu1 %vm617_vm1, %v300_v7  ;;  %v301_v7 = vld [vmem:[%s15488_s0 + $0x828] sm:$0xff]  ;;  %8405 = vmatmul.msk.f32.gmra.mxu2 %vm617_vm1, %v399_v28  ;;  %v10633_v15 = vpop.f32.mrf.mxu3  ;;  %v400_v28 = vld [vmem:[%s15488_s0 + $0xb40] sm:$0xff] }
 0x1c5   :  { %15715 = vst [vmem:[#allocation80_spill] sm:$0xff] %v10633_v15  ;;  %8542 = vmatmul.msk.f32.gmra.mxu3 %vm617_vm1, %v536_v24  ;;  %v537_v24 = vld [vmem:[%s15488_s0 + $0xf88] sm:$0xff] }
 0x1c8   :  { %v10580_v6 = vpop.f32.mrf.mxu0 }
 0x1c9   :  { %15706 = vst [vmem:[#allocation71_spill] sm:$0xff] %v10580_v6  ;;  %v10611_v6 = vpop.f32.mrf.mxu1  ;;  %v10613_v43 = vpop.f32.mrf.mxu2 }
 0x1ca   :  { %15712 = vst [vmem:[#allocation77_spill] sm:$0xff] %v10611_v6 }
 0x1cb   :  { %8103 = vmatmul.msk.f32.gmra.mxu0 %vm617_vm1, %v97_v54  ;;  %v98_v54 = vld [vmem:[%s15488_s0 + $0x1d0] sm:$0xff]  ;;  %15713 = vst [vmem:[#allocation78_spill] sm:$0xff] %v10613_v43 }
 0x1cc   :  { %8307 = vmatmul.msk.f32.gmra.mxu1 %vm617_vm1, %v301_v7  ;;  %v302_v7 = vld [vmem:[%s15488_s0 + $0x830] sm:$0xff]  ;;  %8406 = vmatmul.msk.f32.gmra.mxu2 %vm617_vm1, %v400_v28  ;;  %v10657_v15 = vpop.f32.mrf.mxu3  ;;  %v401_v28 = vld [vmem:[%s15488_s0 + $0xb48] sm:$0xff] }
 0x1cd   :  { %15719 = vst [vmem:[#allocation84_spill] sm:$0xff] %v10657_v15  ;;  %8543 = vmatmul.msk.f32.gmra.mxu3 %vm617_vm1, %v537_v24  ;;  %v538_v24 = vld [vmem:[%s15488_s0 + $0xf90] sm:$0xff] }
 0x1d0   :  { %v10604_v36 = vpop.f32.mrf.mxu0 }
 0x1d1   :  { %15710 = vst [vmem:[#allocation75_spill] sm:$0xff] %v10604_v36  ;;  %v10635_v36 = vpop.f32.mrf.mxu1  ;;  %v10637_v0 = vpop.f32.mrf.mxu2 }
 0x1d2   :  { %15716 = vst [vmem:[#allocation81_spill] sm:$0xff] %v10635_v36 }
 0x1d3   :  { %8104 = vmatmul.msk.f32.gmra.mxu0 %vm617_vm1, %v98_v54  ;;  %v99_v54 = vld [vmem:[%s15488_s0 + $0x1d8] sm:$0xff]  ;;  %15717 = vst [vmem:[#allocation82_spill] sm:$0xff] %v10637_v0 }
 0x1d4   :  { %8308 = vmatmul.msk.f32.gmra.mxu1 %vm617_vm1, %v302_v7  ;;  %v303_v7 = vld [vmem:[%s15488_s0 + $0x838] sm:$0xff]  ;;  %8407 = vmatmul.msk.f32.gmra.mxu2 %vm617_vm1, %v401_v28  ;;  %v10681_v15 = vpop.f32.mrf.mxu3  ;;  %v402_v28 = vld [vmem:[%s15488_s0 + $0xb50] sm:$0xff] }
 0x1d5   :  { %15723 = vst [vmem:[#allocation88_spill] sm:$0xff] %v10681_v15  ;;  %8544 = vmatmul.msk.f32.gmra.mxu3 %vm617_vm1, %v538_v24  ;;  %v539_v24 = vld [vmem:[%s15488_s0 + $0xf98] sm:$0xff] }
 0x1d8   :  { %v10628_v6 = vpop.f32.mrf.mxu0 }
 0x1d9   :  { %15714 = vst [vmem:[#allocation79_spill] sm:$0xff] %v10628_v6  ;;  %v10659_v6 = vpop.f32.mrf.mxu1  ;;  %v10661_v60 = vpop.f32.mrf.mxu2 }
 0x1da   :  { %15720 = vst [vmem:[#allocation85_spill] sm:$0xff] %v10659_v6 }
 0x1db   :  { %8105 = vmatmul.msk.f32.gmra.mxu0 %vm617_vm1, %v99_v54  ;;  %v100_v54 = vld [vmem:[%s15488_s0 + $0x1e0] sm:$0xff]  ;;  %15721 = vst [vmem:[#allocation86_spill] sm:$0xff] %v10661_v60 }
 0x1dc   :  { %8309 = vmatmul.msk.f32.gmra.mxu1 %vm617_vm1, %v303_v7  ;;  %v304_v7 = vld [vmem:[%s15488_s0 + $0x840] sm:$0xff]  ;;  %8408 = vmatmul.msk.f32.gmra.mxu2 %vm617_vm1, %v402_v28  ;;  %v10705_v15 = vpop.f32.mrf.mxu3  ;;  %v403_v28 = vld [vmem:[%s15488_s0 + $0xb58] sm:$0xff] }
 0x1dd   :  { %15727 = vst [vmem:[#allocation92_spill] sm:$0xff] %v10705_v15  ;;  %8545 = vmatmul.msk.f32.gmra.mxu3 %vm617_vm1, %v539_v24  ;;  %v540_v24 = vld [vmem:[%s15488_s0 + $0xfa0] sm:$0xff] }
 0x1e0   :  { %v10652_v36 = vpop.f32.mrf.mxu0 }
 0x1e1   :  { %15718 = vst [vmem:[#allocation83_spill] sm:$0xff] %v10652_v36  ;;  %v10683_v36 = vpop.f32.mrf.mxu1  ;;  %v10685_v52 = vpop.f32.mrf.mxu2 }
 0x1e2   :  { %15724 = vst [vmem:[#allocation89_spill] sm:$0xff] %v10683_v36 }
 0x1e3   :  { %8106 = vmatmul.msk.f32.gmra.mxu0 %vm617_vm1, %v100_v54  ;;  %v101_v54 = vld [vmem:[%s15488_s0 + $0x1e8] sm:$0xff]  ;;  %15725 = vst [vmem:[#allocation90_spill] sm:$0xff] %v10685_v52 }
 0x1e4   :  { %8310 = vmatmul.msk.f32.gmra.mxu1 %vm617_vm1, %v304_v7  ;;  %v305_v7 = vld [vmem:[%s15488_s0 + $0x848] sm:$0xff]  ;;  %8409 = vmatmul.msk.f32.gmra.mxu2 %vm617_vm1, %v403_v28  ;;  %v404_v28 = vld [vmem:[%s15488_s0 + $0xb60] sm:$0xff] }
 0x1e5   :  { %8546 = vmatmul.msk.f32.gmra.mxu3 %vm617_vm1, %v540_v24  ;;  %v541_v24 = vld [vmem:[%s15488_s0 + $0xfa8] sm:$0xff] }
 0x1e8   :  { %v10676_v6 = vpop.f32.mrf.mxu0 }
 0x1e9   :  { %15722 = vst [vmem:[#allocation87_spill] sm:$0xff] %v10676_v6  ;;  %v10709_v16 = vpop.f32.mrf.mxu1  ;;  %v10711_v62 = vpop.f32.mrf.mxu2 }
 0x1ea   :  { %15728 = vst [vmem:[#allocation93_spill] sm:$0xff] %v10709_v16  ;;  %v10731_v16 = vpop.f32.mrf.mxu3 }
 0x1eb   :  { %8107 = vmatmul.msk.f32.gmra.mxu0 %vm617_vm1, %v101_v54  ;;  %v102_v54 = vld [vmem:[%s15488_s0 + $0x1f0] sm:$0xff]  ;;  %15729 = vst [vmem:[#allocation94_spill] sm:$0xff] %v10711_v62 }
 0x1ec   :  { %8311 = vmatmul.msk.f32.gmra.mxu1 %vm617_vm1, %v305_v7  ;;  %15731 = vst [vmem:[#allocation96_spill] sm:$0xff] %v10731_v16  ;;  %v306_v7 = vld [vmem:[%s15488_s0 + $0x850] sm:$0xff]  ;;  %8410 = vmatmul.msk.f32.gmra.mxu2 %vm617_vm1, %v404_v28  ;;  %v405_v28 = vld [vmem:[%s15488_s0 + $0xb68] sm:$0xff] }
 0x1ed   :  { %8547 = vmatmul.msk.f32.gmra.mxu3 %vm617_vm1, %v541_v24  ;;  %v542_v24 = vld [vmem:[%s15488_s0 + $0xfb0] sm:$0xff] }
 0x1f0   :  { %v10700_v36 = vpop.f32.mrf.mxu0 }
 0x1f1   :  { %15726 = vst [vmem:[#allocation91_spill] sm:$0xff] %v10700_v36  ;;  %v10735_v22 = vpop.f32.mrf.mxu1  ;;  %v10737_v36 = vpop.f32.mrf.mxu2 }
 0x1f2   :  { %15732 = vst [vmem:[#allocation97_spill] sm:$0xff] %v10735_v22  ;;  %v10757_v22 = vpop.f32.mrf.mxu3 }
 0x1f3   :  { %8108 = vmatmul.msk.f32.gmra.mxu0 %vm617_vm1, %v102_v54  ;;  %v103_v54 = vld [vmem:[%s15488_s0 + $0x1f8] sm:$0xff]  ;;  %15733 = vst [vmem:[#allocation98_spill] sm:$0xff] %v10737_v36 }
 0x1f4   :  { %8312 = vmatmul.msk.f32.gmra.mxu1 %vm617_vm1, %v306_v7  ;;  %15735 = vst [vmem:[#allocation100_spill] sm:$0xff] %v10757_v22  ;;  %v307_v7 = vld [vmem:[%s15488_s0 + $0x858] sm:$0xff]  ;;  %8411 = vmatmul.msk.f32.gmra.mxu2 %vm617_vm1, %v405_v28  ;;  %v406_v28 = vld [vmem:[%s15488_s0 + $0xb70] sm:$0xff] }
 0x1f5   :  { %8548 = vmatmul.msk.f32.gmra.mxu3 %vm617_vm1, %v542_v24  ;;  %v543_v24 = vld [vmem:[%s15488_s0 + $0xfb8] sm:$0xff] }
 0x1f8   :  { %v10726_v6 = vpop.f32.mrf.mxu0 }
 0x1f9   :  { %15730 = vst [vmem:[#allocation95_spill] sm:$0xff] %v10726_v6  ;;  %v10761_v51 = vpop.f32.mrf.mxu1  ;;  %v10763_v6 = vpop.f32.mrf.mxu2 }
 0x1fa   :  { %15736 = vst [vmem:[#allocation101_spill] sm:$0xff] %v10761_v51  ;;  %v10783_v51 = vpop.f32.mrf.mxu3 }
 0x1fb   :  { %8109 = vmatmul.msk.f32.gmra.mxu0 %vm617_vm1, %v103_v54  ;;  %v104_v54 = vld [vmem:[%s15488_s0 + $0x200] sm:$0xff]  ;;  %15737 = vst [vmem:[#allocation102_spill] sm:$0xff] %v10763_v6 }
 0x1fc   :  { %8313 = vmatmul.msk.f32.gmra.mxu1 %vm617_vm1, %v307_v7  ;;  %15739 = vst [vmem:[#allocation104_spill] sm:$0xff] %v10783_v51  ;;  %v308_v7 = vld [vmem:[%s15488_s0 + $0x860] sm:$0xff]  ;;  %8412 = vmatmul.msk.f32.gmra.mxu2 %vm617_vm1, %v406_v28  ;;  %v407_v28 = vld [vmem:[%s15488_s0 + $0xb78] sm:$0xff] }
 0x1fd   :  { %8549 = vmatmul.msk.f32.gmra.mxu3 %vm617_vm1, %v543_v24  ;;  %v544_v24 = vld [vmem:[%s15488_s0 + $0xfc0] sm:$0xff] }
 0x200   :  { %v10752_v15 = vpop.f32.mrf.mxu0 }
 0x201   :  { %15734 = vst [vmem:[#allocation99_spill] sm:$0xff] %v10752_v15  ;;  %v10787_v30 = vpop.f32.mrf.mxu1  ;;  %v10789_v15 = vpop.f32.mrf.mxu2 }
 0x202   :  { %15740 = vst [vmem:[#allocation105_spill] sm:$0xff] %v10787_v30  ;;  %v10809_v30 = vpop.f32.mrf.mxu3 }
 0x203   :  { %8110 = vmatmul.msk.f32.gmra.mxu0 %vm617_vm1, %v104_v54  ;;  %v105_v54 = vld [vmem:[%s15488_s0 + $0x208] sm:$0xff]  ;;  %15741 = vst [vmem:[#allocation106_spill] sm:$0xff] %v10789_v15 }
 0x204   :  { %8314 = vmatmul.msk.f32.gmra.mxu1 %vm617_vm1, %v308_v7  ;;  %15743 = vst [vmem:[#allocation108_spill] sm:$0xff] %v10809_v30  ;;  %v309_v7 = vld [vmem:[%s15488_s0 + $0x868] sm:$0xff]  ;;  %8413 = vmatmul.msk.f32.gmra.mxu2 %vm617_vm1, %v407_v28  ;;  %v408_v28 = vld [vmem:[%s15488_s0 + $0xb80] sm:$0xff] }
 0x205   :  { %8550 = vmatmul.msk.f32.gmra.mxu3 %vm617_vm1, %v544_v24  ;;  %v545_v24 = vld [vmem:[%s15488_s0 + $0xfc8] sm:$0xff] }
 0x208   :  { %v10778_v16 = vpop.f32.mrf.mxu0 }
 0x209   :  { %15738 = vst [vmem:[#allocation103_spill] sm:$0xff] %v10778_v16  ;;  %v10813_v32 = vpop.f32.mrf.mxu1  ;;  %v10815_v16 = vpop.f32.mrf.mxu2 }
 0x20a   :  { %15744 = vst [vmem:[#allocation109_spill] sm:$0xff] %v10813_v32  ;;  %v10835_v32 = vpop.f32.mrf.mxu3 }
 0x20b   :  { %8111 = vmatmul.msk.f32.gmra.mxu0 %vm617_vm1, %v105_v54  ;;  %v106_v54 = vld [vmem:[%s15488_s0 + $0x210] sm:$0xff]  ;;  %15745 = vst [vmem:[#allocation110_spill] sm:$0xff] %v10815_v16 }
 0x20c   :  { %8315 = vmatmul.msk.f32.gmra.mxu1 %vm617_vm1, %v309_v7  ;;  %15747 = vst [vmem:[#allocation112_spill] sm:$0xff] %v10835_v32  ;;  %v310_v7 = vld [vmem:[%s15488_s0 + $0x870] sm:$0xff]  ;;  %8414 = vmatmul.msk.f32.gmra.mxu2 %vm617_vm1, %v408_v28  ;;  %v409_v28 = vld [vmem:[%s15488_s0 + $0xb88] sm:$0xff] }
 0x20d   :  { %8551 = vmatmul.msk.f32.gmra.mxu3 %vm617_vm1, %v545_v24  ;;  %v546_v24 = vld [vmem:[%s15488_s0 + $0xfd0] sm:$0xff] }
 0x210   :  { %v10804_v22 = vpop.f32.mrf.mxu0 }
 0x211   :  { %15742 = vst [vmem:[#allocation107_spill] sm:$0xff] %v10804_v22  ;;  %v10839_v43 = vpop.f32.mrf.mxu1  ;;  %v10841_v22 = vpop.f32.mrf.mxu2 }
 0x212   :  { %15748 = vst [vmem:[#allocation113_spill] sm:$0xff] %v10839_v43  ;;  %v10861_v43 = vpop.f32.mrf.mxu3 }
 0x213   :  { %8112 = vmatmul.msk.f32.gmra.mxu0 %vm617_vm1, %v106_v54  ;;  %v107_v54 = vld [vmem:[%s15488_s0 + $0x218] sm:$0xff]  ;;  %15749 = vst [vmem:[#allocation114_spill] sm:$0xff] %v10841_v22 }
 0x214   :  { %8316 = vmatmul.msk.f32.gmra.mxu1 %vm617_vm1, %v310_v7  ;;  %15751 = vst [vmem:[#allocation116_spill] sm:$0xff] %v10861_v43  ;;  %v311_v7 = vld [vmem:[%s15488_s0 + $0x878] sm:$0xff]  ;;  %8415 = vmatmul.msk.f32.gmra.mxu2 %vm617_vm1, %v409_v28  ;;  %v410_v28 = vld [vmem:[%s15488_s0 + $0xb90] sm:$0xff] }
 0x215   :  { %8552 = vmatmul.msk.f32.gmra.mxu3 %vm617_vm1, %v546_v24  ;;  %v547_v24 = vld [vmem:[%s15488_s0 + $0xfd8] sm:$0xff] }
 0x218   :  { %v10830_v51 = vpop.f32.mrf.mxu0 }
 0x219   :  { %15746 = vst [vmem:[#allocation111_spill] sm:$0xff] %v10830_v51  ;;  %v10865_v0 = vpop.f32.mrf.mxu1  ;;  %v10867_v51 = vpop.f32.mrf.mxu2 }
 0x21a   :  { %15752 = vst [vmem:[#allocation117_spill] sm:$0xff] %v10865_v0  ;;  %v10887_v0 = vpop.f32.mrf.mxu3 }
 0x21b   :  { %8113 = vmatmul.msk.f32.gmra.mxu0 %vm617_vm1, %v107_v54  ;;  %v108_v54 = vld [vmem:[%s15488_s0 + $0x220] sm:$0xff]  ;;  %15753 = vst [vmem:[#allocation118_spill] sm:$0xff] %v10867_v51 }
 0x21c   :  { %8317 = vmatmul.msk.f32.gmra.mxu1 %vm617_vm1, %v311_v7  ;;  %15755 = vst [vmem:[#allocation120_spill] sm:$0xff] %v10887_v0  ;;  %v312_v7 = vld [vmem:[%s15488_s0 + $0x880] sm:$0xff]  ;;  %8416 = vmatmul.msk.f32.gmra.mxu2 %vm617_vm1, %v410_v28  ;;  %v411_v28 = vld [vmem:[%s15488_s0 + $0xb98] sm:$0xff] }
 0x21d   :  { %8553 = vmatmul.msk.f32.gmra.mxu3 %vm617_vm1, %v547_v24  ;;  %v548_v24 = vld [vmem:[%s15488_s0 + $0xfe0] sm:$0xff] }
 0x220   :  { %v10856_v30 = vpop.f32.mrf.mxu0 }
 0x221   :  { %15750 = vst [vmem:[#allocation115_spill] sm:$0xff] %v10856_v30  ;;  %v10891_v60 = vpop.f32.mrf.mxu1  ;;  %v10893_v30 = vpop.f32.mrf.mxu2 }
 0x222   :  { %15756 = vst [vmem:[#allocation121_spill] sm:$0xff] %v10891_v60  ;;  %v10913_v60 = vpop.f32.mrf.mxu3 }
 0x223   :  { %8114 = vmatmul.msk.f32.gmra.mxu0 %vm617_vm1, %v108_v54  ;;  %v109_v54 = vld [vmem:[%s15488_s0 + $0x228] sm:$0xff]  ;;  %15757 = vst [vmem:[#allocation122_spill] sm:$0xff] %v10893_v30 }
 0x224   :  { %8318 = vmatmul.msk.f32.gmra.mxu1 %vm617_vm1, %v312_v7  ;;  %15759 = vst [vmem:[#allocation124_spill] sm:$0xff] %v10913_v60  ;;  %v313_v7 = vld [vmem:[%s15488_s0 + $0x888] sm:$0xff]  ;;  %8417 = vmatmul.msk.f32.gmra.mxu2 %vm617_vm1, %v411_v28  ;;  %v412_v28 = vld [vmem:[%s15488_s0 + $0xba0] sm:$0xff] }
 0x225   :  { %8554 = vmatmul.msk.f32.gmra.mxu3 %vm617_vm1, %v548_v24  ;;  %v549_v24 = vld [vmem:[%s15488_s0 + $0xfe8] sm:$0xff] }
 0x228   :  { %v10882_v32 = vpop.f32.mrf.mxu0 }
 0x229   :  { %15754 = vst [vmem:[#allocation119_spill] sm:$0xff] %v10882_v32  ;;  %v10917_v52 = vpop.f32.mrf.mxu1  ;;  %v10919_v32 = vpop.f32.mrf.mxu2 }
 0x22a   :  { %15760 = vst [vmem:[#allocation125_spill] sm:$0xff] %v10917_v52  ;;  %v10939_v52 = vpop.f32.mrf.mxu3 }
 0x22b   :  { %8115 = vmatmul.msk.f32.gmra.mxu0 %vm617_vm1, %v109_v54  ;;  %v110_v54 = vld [vmem:[%s15488_s0 + $0x230] sm:$0xff]  ;;  %15761 = vst [vmem:[#allocation126_spill] sm:$0xff] %v10919_v32 }
 0x22c   :  { %8319 = vmatmul.msk.f32.gmra.mxu1 %vm617_vm1, %v313_v7  ;;  %15763 = vst [vmem:[#allocation128_spill] sm:$0xff] %v10939_v52  ;;  %v314_v7 = vld [vmem:[%s15488_s0 + $0x890] sm:$0xff]  ;;  %8418 = vmatmul.msk.f32.gmra.mxu2 %vm617_vm1, %v412_v28  ;;  %v413_v28 = vld [vmem:[%s15488_s0 + $0xba8] sm:$0xff] }
 0x22d   :  { %8555 = vmatmul.msk.f32.gmra.mxu3 %vm617_vm1, %v549_v24  ;;  %v550_v24 = vld [vmem:[%s15488_s0 + $0xff0] sm:$0xff] }
 0x230   :  { %v10908_v43 = vpop.f32.mrf.mxu0 }
 0x231   :  { %15758 = vst [vmem:[#allocation123_spill] sm:$0xff] %v10908_v43  ;;  %v10943_v62 = vpop.f32.mrf.mxu1  ;;  %v10945_v43 = vpop.f32.mrf.mxu2 }
 0x232   :  { %15764 = vst [vmem:[#allocation129_spill] sm:$0xff] %v10943_v62  ;;  %v10965_v62 = vpop.f32.mrf.mxu3 }
 0x233   :  { %8116 = vmatmul.msk.f32.gmra.mxu0 %vm617_vm1, %v110_v54  ;;  %v111_v54 = vld [vmem:[%s15488_s0 + $0x238] sm:$0xff]  ;;  %15765 = vst [vmem:[#allocation130_spill] sm:$0xff] %v10945_v43 }
 0x234   :  { %8320 = vmatmul.msk.f32.gmra.mxu1 %vm617_vm1, %v314_v7  ;;  %15767 = vst [vmem:[#allocation132_spill] sm:$0xff] %v10965_v62  ;;  %v315_v7 = vld [vmem:[%s15488_s0 + $0x898] sm:$0xff]  ;;  %8419 = vmatmul.msk.f32.gmra.mxu2 %vm617_vm1, %v413_v28  ;;  %v414_v28 = vld [vmem:[%s15488_s0 + $0xbb0] sm:$0xff] }
 0x235   :  { %8556 = vmatmul.msk.f32.gmra.mxu3 %vm617_vm1, %v550_v24  ;;  %v551_v24 = vld [vmem:[%s15488_s0 + $0xff8] sm:$0xff] }
 0x238   :  { %v10934_v0 = vpop.f32.mrf.mxu0 }
 0x239   :  { %15762 = vst [vmem:[#allocation127_spill] sm:$0xff] %v10934_v0  ;;  %v10969_v36 = vpop.f32.mrf.mxu1  ;;  %v10971_v0 = vpop.f32.mrf.mxu2 }
 0x23a   :  { %15768 = vst [vmem:[#allocation133_spill] sm:$0xff] %v10969_v36  ;;  %v10991_v36 = vpop.f32.mrf.mxu3 }
 0x23b   :  { %8117 = vmatmul.msk.f32.gmra.mxu0 %vm617_vm1, %v111_v54  ;;  %v112_v54 = vld [vmem:[%s15488_s0 + $0x240] sm:$0xff]  ;;  %15769 = vst [vmem:[#allocation134_spill] sm:$0xff] %v10971_v0 }
 0x23c   :  { %8321 = vmatmul.msk.f32.gmra.mxu1 %vm617_vm1, %v315_v7  ;;  %15771 = vst [vmem:[#allocation136_spill] sm:$0xff] %v10991_v36  ;;  %v316_v7 = vld [vmem:[%s15488_s0 + $0x8a0] sm:$0xff]  ;;  %8420 = vmatmul.msk.f32.gmra.mxu2 %vm617_vm1, %v414_v28  ;;  %v415_v28 = vld [vmem:[%s15488_s0 + $0xbb8] sm:$0xff] }
 0x23d   :  { %8557 = vmatmul.msk.f32.gmra.mxu3 %vm617_vm1, %v551_v24 }
 0x240   :  { %v10960_v60 = vpop.f32.mrf.mxu0 }
 0x241   :  { %15766 = vst [vmem:[#allocation131_spill] sm:$0xff] %v10960_v60  ;;  %v10995_v6 = vpop.f32.mrf.mxu1  ;;  %v10997_v60 = vpop.f32.mrf.mxu2 }
 0x242   :  { %15772 = vst [vmem:[#allocation137_spill] sm:$0xff] %v10995_v6  ;;  %v11017_v6 = vpop.f32.mrf.mxu3 }
 0x243   :  { %8118 = vmatmul.msk.f32.gmra.mxu0 %vm617_vm1, %v112_v54  ;;  %v113_v54 = vld [vmem:[%s15488_s0 + $0x248] sm:$0xff]  ;;  %15773 = vst [vmem:[#allocation138_spill] sm:$0xff] %v10997_v60 }
 0x244   :  { %8322 = vmatmul.msk.f32.gmra.mxu1 %vm617_vm1, %v316_v7  ;;  %15775 = vst [vmem:[#allocation140_spill] sm:$0xff] %v11017_v6  ;;  %v317_v7 = vld [vmem:[%s15488_s0 + $0x8a8] sm:$0xff]  ;;  %8421 = vmatmul.msk.f32.gmra.mxu2 %vm617_vm1, %v415_v28  ;;  %v318_v28 = vld [vmem:[%s15488_s0 + $0x8b0] sm:$0xff] }
 0x248   :  { %v10986_v52 = vpop.f32.mrf.mxu0 }
 0x249   :  { %15770 = vst [vmem:[#allocation135_spill] sm:$0xff] %v10986_v52  ;;  %v11021_v15 = vpop.f32.mrf.mxu1  ;;  %v11023_v52 = vpop.f32.mrf.mxu2 }
 0x24a   :  { %15776 = vst [vmem:[#allocation141_spill] sm:$0xff] %v11021_v15  ;;  %v115_v15 = vld [vmem:[%s15488_s0 + $0x258] sm:$0xff]  ;;  %v11046_v6 = vpop.f32.mrf.mxu3 }
 0x24b   :  { %8119 = vmatmul.msk.f32.gmra.mxu0 %vm617_vm1, %v113_v54  ;;  %v114_v54 = vld [vmem:[%s15488_s0 + $0x250] sm:$0xff]  ;;  %15777 = vst [vmem:[#allocation142_spill] sm:$0xff] %v11023_v52 }
 0x24c   :  { %8323 = vmatmul.msk.f32.gmra.mxu1 %vm617_vm1, %v317_v7  ;;  %15779 = vst [vmem:[#allocation144_spill] sm:$0xff] %v11046_v6 }
 0x250   :  { %v11012_v62 = vpop.f32.mrf.mxu0 }
 0x251   :  { %15774 = vst [vmem:[#allocation139_spill] sm:$0xff] %v11012_v62  ;;  %v11050_v16 = vpop.f32.mrf.mxu1  ;;  %v11052_v24 = vpop.f32.mrf.mxu2 }
 0x252   :  { %15780 = vst [vmem:[#allocation145_spill] sm:$0xff] %v11050_v16  ;;  %v11072_v16 = vpop.f32.mrf.mxu3 }
 0x253   :  { %8120 = vmatmul.msk.f32.gmra.mxu0 %vm617_vm1, %v114_v54  ;;  %v4678_v54 = vld [vmem:[%s15491_s3 + $0x18] sm:$0xff]  ;;  %15781 = vst [vmem:[#allocation146_spill] sm:$0xff] %v11052_v24 }
 0x254   :  { %4802 = vmatpush.msrb.mxu1 %v4678_v54  ;;  %v552_v54 = vld [vmem:[%s15488_s0 + $0x1000] sm:$0xff]  ;;  %15783 = vst [vmem:[#allocation148_spill] sm:$0xff] %v11072_v16 }
 0x255   :  { %8324 = vmatmul.msk.f32.gmra.mxu1 %vm617_vm1, %v318_v28  ;;  %8558 = vmatmul.msk.f32.gmra.mxu3 %vm617_vm1, %v552_v54  ;;  %v553_v28 = vld [vmem:[%s15488_s0 + $0x1008] sm:$0xff] }
 0x256   :  { %v417_v54 = vld [vmem:[%s15488_s0 + $0xbc8] sm:$0xff] }
 0x258   :  { %v11041_v36 = vpop.f32.mrf.mxu0 }
 0x259   :  { %15778 = vst [vmem:[#allocation143_spill] sm:$0xff] %v11041_v36  ;;  %v416_v36 = vld [vmem:[%s15488_s0 + $0xbc0] sm:$0xff]  ;;  %v11076_v22 = vpop.f32.mrf.mxu1  ;;  %v11078_v62 = vpop.f32.mrf.mxu2 }
 0x25a   :  { %8422 = vmatmul.msk.f32.gmra.mxu2 %vm617_vm1, %v416_v36  ;;  %15784 = vst [vmem:[#allocation149_spill] sm:$0xff] %v11076_v22  ;;  %v319_v36 = vld [vmem:[%s15488_s0 + $0x8b8] sm:$0xff]  ;;  %v11098_v22 = vpop.f32.mrf.mxu3 }
 0x25b   :  { %8121 = vmatmul.msk.f32.gmra.mxu0 %vm617_vm1, %v115_v15  ;;  %v116_v15 = vld [vmem:[%s15488_s0 + $0x260] sm:$0xff]  ;;  %15785 = vst [vmem:[#allocation150_spill] sm:$0xff] %v11078_v62 }
 0x25c   :  { %15787 = vst [vmem:[#allocation152_spill] sm:$0xff] %v11098_v22 }
 0x25d   :  { %8325 = vmatmul.msk.f32.gmra.mxu1 %vm617_vm1, %v319_v36  ;;  %8559 = vmatmul.msk.f32.gmra.mxu3 %vm617_vm1, %v553_v28  ;;  %v320_v36 = vld [vmem:[%s15488_s0 + $0x8c0] sm:$0xff]  ;;  %v554_v28 = vld [vmem:[%s15488_s0 + $0x1010] sm:$0xff] }
 0x260   :  { %v11067_v7 = vpop.f32.mrf.mxu0 }
 0x261   :  { %15782 = vst [vmem:[#allocation147_spill] sm:$0xff] %v11067_v7  ;;  %v11102_v51 = vpop.f32.mrf.mxu1  ;;  %v11104_v7 = vpop.f32.mrf.mxu2 }
 0x262   :  { %8423 = vmatmul.msk.f32.gmra.mxu2 %vm617_vm1, %v417_v54  ;;  %15788 = vst [vmem:[#allocation153_spill] sm:$0xff] %v11102_v51  ;;  %v418_v54 = vld [vmem:[%s15488_s0 + $0xbd0] sm:$0xff]  ;;  %v11124_v51 = vpop.f32.mrf.mxu3 }
 0x263   :  { %8122 = vmatmul.msk.f32.gmra.mxu0 %vm617_vm1, %v116_v15  ;;  %v117_v15 = vld [vmem:[%s15488_s0 + $0x268] sm:$0xff]  ;;  %15789 = vst [vmem:[#allocation154_spill] sm:$0xff] %v11104_v7 }
 0x264   :  { %15791 = vst [vmem:[#allocation156_spill] sm:$0xff] %v11124_v51 }
 0x265   :  { %8326 = vmatmul.msk.f32.gmra.mxu1 %vm617_vm1, %v320_v36  ;;  %8560 = vmatmul.msk.f32.gmra.mxu3 %vm617_vm1, %v554_v28  ;;  %v321_v36 = vld [vmem:[%s15488_s0 + $0x8c8] sm:$0xff]  ;;  %v555_v28 = vld [vmem:[%s15488_s0 + $0x1018] sm:$0xff] }
 0x268   :  { %v11093_v6 = vpop.f32.mrf.mxu0 }
 0x269   :  { %15786 = vst [vmem:[#allocation151_spill] sm:$0xff] %v11093_v6  ;;  %v11128_v30 = vpop.f32.mrf.mxu1  ;;  %v11130_v6 = vpop.f32.mrf.mxu2 }
 0x26a   :  { %8424 = vmatmul.msk.f32.gmra.mxu2 %vm617_vm1, %v418_v54  ;;  %15792 = vst [vmem:[#allocation157_spill] sm:$0xff] %v11128_v30  ;;  %v419_v54 = vld [vmem:[%s15488_s0 + $0xbd8] sm:$0xff]  ;;  %v11150_v30 = vpop.f32.mrf.mxu3 }
 0x26b   :  { %8123 = vmatmul.msk.f32.gmra.mxu0 %vm617_vm1, %v117_v15  ;;  %v118_v15 = vld [vmem:[%s15488_s0 + $0x270] sm:$0xff]  ;;  %15793 = vst [vmem:[#allocation158_spill] sm:$0xff] %v11130_v6 }
 0x26c   :  { %15795 = vst [vmem:[#allocation160_spill] sm:$0xff] %v11150_v30 }
 0x26d   :  { %8327 = vmatmul.msk.f32.gmra.mxu1 %vm617_vm1, %v321_v36  ;;  %8561 = vmatmul.msk.f32.gmra.mxu3 %vm617_vm1, %v555_v28  ;;  %v322_v36 = vld [vmem:[%s15488_s0 + $0x8d0] sm:$0xff]  ;;  %v556_v28 = vld [vmem:[%s15488_s0 + $0x1020] sm:$0xff] }
 0x270   :  { %v11119_v16 = vpop.f32.mrf.mxu0 }
 0x271   :  { %15790 = vst [vmem:[#allocation155_spill] sm:$0xff] %v11119_v16  ;;  %v11154_v32 = vpop.f32.mrf.mxu1  ;;  %v11156_v16 = vpop.f32.mrf.mxu2 }
 0x272   :  { %8425 = vmatmul.msk.f32.gmra.mxu2 %vm617_vm1, %v419_v54  ;;  %15796 = vst [vmem:[#allocation161_spill] sm:$0xff] %v11154_v32  ;;  %v420_v54 = vld [vmem:[%s15488_s0 + $0xbe0] sm:$0xff]  ;;  %v11176_v32 = vpop.f32.mrf.mxu3 }
 0x273   :  { %8124 = vmatmul.msk.f32.gmra.mxu0 %vm617_vm1, %v118_v15  ;;  %v119_v15 = vld [vmem:[%s15488_s0 + $0x278] sm:$0xff]  ;;  %15797 = vst [vmem:[#allocation162_spill] sm:$0xff] %v11156_v16  ;;  %v565_v16 = vld [vmem:[%s15488_s0 + $0x1068] sm:$0xff] }
 0x274   :  { %15799 = vst [vmem:[#allocation164_spill] sm:$0xff] %v11176_v32 }
 0x275   :  { %8328 = vmatmul.msk.f32.gmra.mxu1 %vm617_vm1, %v322_v36  ;;  %8562 = vmatmul.msk.f32.gmra.mxu3 %vm617_vm1, %v556_v28  ;;  %v323_v36 = vld [vmem:[%s15488_s0 + $0x8d8] sm:$0xff]  ;;  %v557_v28 = vld [vmem:[%s15488_s0 + $0x1028] sm:$0xff] }
 0x278   :  { %v11145_v22 = vpop.f32.mrf.mxu0 }
 0x279   :  { %15794 = vst [vmem:[#allocation159_spill] sm:$0xff] %v11145_v22  ;;  %v11180_v43 = vpop.f32.mrf.mxu1  ;;  %v11182_v22 = vpop.f32.mrf.mxu2 }
 0x27a   :  { %8426 = vmatmul.msk.f32.gmra.mxu2 %vm617_vm1, %v420_v54  ;;  %15800 = vst [vmem:[#allocation165_spill] sm:$0xff] %v11180_v43  ;;  %v421_v54 = vld [vmem:[%s15488_s0 + $0xbe8] sm:$0xff]  ;;  %v11202_v43 = vpop.f32.mrf.mxu3 }
 0x27b   :  { %8125 = vmatmul.msk.f32.gmra.mxu0 %vm617_vm1, %v119_v15  ;;  %v120_v15 = vld [vmem:[%s15488_s0 + $0x280] sm:$0xff]  ;;  %15801 = vst [vmem:[#allocation166_spill] sm:$0xff] %v11182_v22  ;;  %v430_v22 = vld [vmem:[%s15488_s0 + $0xc30] sm:$0xff] }
 0x27c   :  { %15803 = vst [vmem:[#allocation168_spill] sm:$0xff] %v11202_v43 }
 0x27d   :  { %8329 = vmatmul.msk.f32.gmra.mxu1 %vm617_vm1, %v323_v36  ;;  %8563 = vmatmul.msk.f32.gmra.mxu3 %vm617_vm1, %v557_v28  ;;  %v324_v36 = vld [vmem:[%s15488_s0 + $0x8e0] sm:$0xff]  ;;  %v558_v28 = vld [vmem:[%s15488_s0 + $0x1030] sm:$0xff] }
 0x280   :  { %v11171_v51 = vpop.f32.mrf.mxu0 }
 0x281   :  { %15798 = vst [vmem:[#allocation163_spill] sm:$0xff] %v11171_v51  ;;  %v11206_v0 = vpop.f32.mrf.mxu1  ;;  %v11208_v51 = vpop.f32.mrf.mxu2 }
 0x282   :  { %8427 = vmatmul.msk.f32.gmra.mxu2 %vm617_vm1, %v421_v54  ;;  %15804 = vst [vmem:[#allocation169_spill] sm:$0xff] %v11206_v0  ;;  %v422_v54 = vld [vmem:[%s15488_s0 + $0xbf0] sm:$0xff]  ;;  %v11228_v0 = vpop.f32.mrf.mxu3 }
 0x283   :  { %8126 = vmatmul.msk.f32.gmra.mxu0 %vm617_vm1, %v120_v15  ;;  %v121_v15 = vld [vmem:[%s15488_s0 + $0x288] sm:$0xff]  ;;  %15805 = vst [vmem:[#allocation170_spill] sm:$0xff] %v11208_v51  ;;  %v431_v51 = vld [vmem:[%s15488_s0 + $0xc38] sm:$0xff] }
 0x284   :  { %15807 = vst [vmem:[#allocation172_spill] sm:$0xff] %v11228_v0 }
 0x285   :  { %8330 = vmatmul.msk.f32.gmra.mxu1 %vm617_vm1, %v324_v36  ;;  %8564 = vmatmul.msk.f32.gmra.mxu3 %vm617_vm1, %v558_v28  ;;  %v325_v36 = vld [vmem:[%s15488_s0 + $0x8e8] sm:$0xff]  ;;  %v559_v28 = vld [vmem:[%s15488_s0 + $0x1038] sm:$0xff] }
 0x288   :  { %v11197_v30 = vpop.f32.mrf.mxu0 }
 0x289   :  { %15802 = vst [vmem:[#allocation167_spill] sm:$0xff] %v11197_v30  ;;  %v11232_v60 = vpop.f32.mrf.mxu1  ;;  %v11234_v30 = vpop.f32.mrf.mxu2 }
 0x28a   :  { %8428 = vmatmul.msk.f32.gmra.mxu2 %vm617_vm1, %v422_v54  ;;  %15808 = vst [vmem:[#allocation173_spill] sm:$0xff] %v11232_v60  ;;  %v423_v54 = vld [vmem:[%s15488_s0 + $0xbf8] sm:$0xff]  ;;  %v11254_v60 = vpop.f32.mrf.mxu3 }
 0x28b   :  { %8127 = vmatmul.msk.f32.gmra.mxu0 %vm617_vm1, %v121_v15  ;;  %v122_v15 = vld [vmem:[%s15488_s0 + $0x290] sm:$0xff]  ;;  %15809 = vst [vmem:[#allocation174_spill] sm:$0xff] %v11234_v30  ;;  %v432_v30 = vld [vmem:[%s15488_s0 + $0xc40] sm:$0xff] }
 0x28c   :  { %15811 = vst [vmem:[#allocation176_spill] sm:$0xff] %v11254_v60 }
 0x28d   :  { %8331 = vmatmul.msk.f32.gmra.mxu1 %vm617_vm1, %v325_v36  ;;  %8565 = vmatmul.msk.f32.gmra.mxu3 %vm617_vm1, %v559_v28  ;;  %v326_v36 = vld [vmem:[%s15488_s0 + $0x8f0] sm:$0xff]  ;;  %v560_v28 = vld [vmem:[%s15488_s0 + $0x1040] sm:$0xff] }
 0x290   :  { %v11223_v32 = vpop.f32.mrf.mxu0 }
 0x291   :  { %15806 = vst [vmem:[#allocation171_spill] sm:$0xff] %v11223_v32  ;;  %v11258_v52 = vpop.f32.mrf.mxu1  ;;  %v11260_v32 = vpop.f32.mrf.mxu2 }
 0x292   :  { %8429 = vmatmul.msk.f32.gmra.mxu2 %vm617_vm1, %v423_v54  ;;  %15812 = vst [vmem:[#allocation177_spill] sm:$0xff] %v11258_v52  ;;  %v424_v54 = vld [vmem:[%s15488_s0 + $0xc00] sm:$0xff]  ;;  %v11280_v52 = vpop.f32.mrf.mxu3 }
 0x293   :  { %8128 = vmatmul.msk.f32.gmra.mxu0 %vm617_vm1, %v122_v15  ;;  %v123_v15 = vld [vmem:[%s15488_s0 + $0x298] sm:$0xff]  ;;  %15813 = vst [vmem:[#allocation178_spill] sm:$0xff] %v11260_v32  ;;  %v433_v32 = vld [vmem:[%s15488_s0 + $0xc48] sm:$0xff] }
 0x294   :  { %15815 = vst [vmem:[#allocation180_spill] sm:$0xff] %v11280_v52 }
 0x295   :  { %8332 = vmatmul.msk.f32.gmra.mxu1 %vm617_vm1, %v326_v36  ;;  %8566 = vmatmul.msk.f32.gmra.mxu3 %vm617_vm1, %v560_v28  ;;  %v327_v36 = vld [vmem:[%s15488_s0 + $0x8f8] sm:$0xff]  ;;  %v561_v28 = vld [vmem:[%s15488_s0 + $0x1048] sm:$0xff] }
 0x298   :  { %v11249_v43 = vpop.f32.mrf.mxu0 }
 0x299   :  { %15810 = vst [vmem:[#allocation175_spill] sm:$0xff] %v11249_v43  ;;  %v11284_v24 = vpop.f32.mrf.mxu1  ;;  %v11286_v43 = vpop.f32.mrf.mxu2 }
 0x29a   :  { %8430 = vmatmul.msk.f32.gmra.mxu2 %vm617_vm1, %v424_v54  ;;  %15816 = vst [vmem:[#allocation181_spill] sm:$0xff] %v11284_v24  ;;  %v425_v54 = vld [vmem:[%s15488_s0 + $0xc08] sm:$0xff]  ;;  %v11306_v24 = vpop.f32.mrf.mxu3 }
 0x29b   :  { %8129 = vmatmul.msk.f32.gmra.mxu0 %vm617_vm1, %v123_v15  ;;  %v124_v15 = vld [vmem:[%s15488_s0 + $0x2a0] sm:$0xff]  ;;  %15817 = vst [vmem:[#allocation182_spill] sm:$0xff] %v11286_v43  ;;  %v434_v43 = vld [vmem:[%s15488_s0 + $0xc50] sm:$0xff] }
 0x29c   :  { %15819 = vst [vmem:[#allocation184_spill] sm:$0xff] %v11306_v24 }
 0x29d   :  { %8333 = vmatmul.msk.f32.gmra.mxu1 %vm617_vm1, %v327_v36  ;;  %8567 = vmatmul.msk.f32.gmra.mxu3 %vm617_vm1, %v561_v28  ;;  %v328_v36 = vld [vmem:[%s15488_s0 + $0x900] sm:$0xff]  ;;  %v562_v28 = vld [vmem:[%s15488_s0 + $0x1050] sm:$0xff] }
 0x2a0   :  { %v11275_v0 = vpop.f32.mrf.mxu0 }
 0x2a1   :  { %15814 = vst [vmem:[#allocation179_spill] sm:$0xff] %v11275_v0  ;;  %v11310_v62 = vpop.f32.mrf.mxu1  ;;  %v11312_v0 = vpop.f32.mrf.mxu2 }
 0x2a2   :  { %8431 = vmatmul.msk.f32.gmra.mxu2 %vm617_vm1, %v425_v54  ;;  %15820 = vst [vmem:[#allocation185_spill] sm:$0xff] %v11310_v62  ;;  %v426_v54 = vld [vmem:[%s15488_s0 + $0xc10] sm:$0xff]  ;;  %v11332_v62 = vpop.f32.mrf.mxu3 }
 0x2a3   :  { %8130 = vmatmul.msk.f32.gmra.mxu0 %vm617_vm1, %v124_v15  ;;  %v125_v15 = vld [vmem:[%s15488_s0 + $0x2a8] sm:$0xff]  ;;  %15821 = vst [vmem:[#allocation186_spill] sm:$0xff] %v11312_v0  ;;  %v435_v0 = vld [vmem:[%s15488_s0 + $0xc58] sm:$0xff] }
 0x2a4   :  { %15823 = vst [vmem:[#allocation188_spill] sm:$0xff] %v11332_v62 }
 0x2a5   :  { %8334 = vmatmul.msk.f32.gmra.mxu1 %vm617_vm1, %v328_v36  ;;  %8568 = vmatmul.msk.f32.gmra.mxu3 %vm617_vm1, %v562_v28  ;;  %v329_v36 = vld [vmem:[%s15488_s0 + $0x908] sm:$0xff]  ;;  %v563_v28 = vld [vmem:[%s15488_s0 + $0x1058] sm:$0xff] }
 0x2a8   :  { %v11301_v60 = vpop.f32.mrf.mxu0 }
 0x2a9   :  { %15818 = vst [vmem:[#allocation183_spill] sm:$0xff] %v11301_v60  ;;  %v11336_v7 = vpop.f32.mrf.mxu1  ;;  %v11338_v60 = vpop.f32.mrf.mxu2 }
 0x2aa   :  { %8432 = vmatmul.msk.f32.gmra.mxu2 %vm617_vm1, %v426_v54  ;;  %15824 = vst [vmem:[#allocation189_spill] sm:$0xff] %v11336_v7  ;;  %v427_v54 = vld [vmem:[%s15488_s0 + $0xc18] sm:$0xff]  ;;  %v11358_v7 = vpop.f32.mrf.mxu3 }
 0x2ab   :  { %8131 = vmatmul.msk.f32.gmra.mxu0 %vm617_vm1, %v125_v15  ;;  %v126_v15 = vld [vmem:[%s15488_s0 + $0x2b0] sm:$0xff]  ;;  %15825 = vst [vmem:[#allocation190_spill] sm:$0xff] %v11338_v60 }
 0x2ac   :  { %15827 = vst [vmem:[#allocation192_spill] sm:$0xff] %v11358_v7  ;;  %v429_v7 = vld [vmem:[%s15488_s0 + $0xc28] sm:$0xff] }
 0x2ad   :  { %8335 = vmatmul.msk.f32.gmra.mxu1 %vm617_vm1, %v329_v36  ;;  %8569 = vmatmul.msk.f32.gmra.mxu3 %vm617_vm1, %v563_v28  ;;  %v330_v36 = vld [vmem:[%s15488_s0 + $0x910] sm:$0xff]  ;;  %v564_v28 = vld [vmem:[%s15488_s0 + $0x1060] sm:$0xff] }
 0x2b0   :  { %v11327_v52 = vpop.f32.mrf.mxu0 }
 0x2b1   :  { %15822 = vst [vmem:[#allocation187_spill] sm:$0xff] %v11327_v52  ;;  %v11362_v6 = vpop.f32.mrf.mxu1  ;;  %v11364_v52 = vpop.f32.mrf.mxu2 }
 0x2b2   :  { %8433 = vmatmul.msk.f32.gmra.mxu2 %vm617_vm1, %v427_v54  ;;  %15828 = vst [vmem:[#allocation193_spill] sm:$0xff] %v11362_v6  ;;  %v428_v54 = vld [vmem:[%s15488_s0 + $0xc20] sm:$0xff]  ;;  %v11384_v6 = vpop.f32.mrf.mxu3 }
 0x2b3   :  { %8132 = vmatmul.msk.f32.gmra.mxu0 %vm617_vm1, %v126_v15  ;;  %v127_v15 = vld [vmem:[%s15488_s0 + $0x2b8] sm:$0xff]  ;;  %15829 = vst [vmem:[#allocation194_spill] sm:$0xff] %v11364_v52  ;;  %v136_v52 = vld [vmem:[%s15488_s0 + $0x300] sm:$0xff] }
 0x2b4   :  { %15831 = vst [vmem:[#allocation196_spill] sm:$0xff] %v11384_v6 }
 0x2b5   :  { %8336 = vmatmul.msk.f32.gmra.mxu1 %vm617_vm1, %v330_v36  ;;  %8570 = vmatmul.msk.f32.gmra.mxu3 %vm617_vm1, %v564_v28 }
 0x2b8   :  { %v11353_v24 = vpop.f32.mrf.mxu0 }
 0x2b9   :  { %15826 = vst [vmem:[#allocation191_spill] sm:$0xff] %v11353_v24  ;;  %v11388_v36 = vpop.f32.mrf.mxu1  ;;  %v11390_v28 = vpop.f32.mrf.mxu2  ;;  %v446_v24 = vld [vmem:[%s15488_s0 + $0xcb0] sm:$0xff] }
 0x2ba   :  { %8434 = vmatmul.msk.f32.gmra.mxu2 %vm617_vm1, %v428_v54  ;;  %15832 = vst [vmem:[#allocation197_spill] sm:$0xff] %v11388_v36  ;;  %v331_v54 = vld [vmem:[%s15488_s0 + $0x918] sm:$0xff]  ;;  %v11410_v6 = vpop.f32.mrf.mxu3 }
 0x2bb   :  { %8133 = vmatmul.msk.f32.gmra.mxu0 %vm617_vm1, %v127_v15  ;;  %v128_v15 = vld [vmem:[%s15488_s0 + $0x2c0] sm:$0xff]  ;;  %15833 = vst [vmem:[#allocation198_spill] sm:$0xff] %v11390_v28 }
 0x2bc   :  { %15835 = vst [vmem:[#allocation200_spill] sm:$0xff] %v11410_v6 }
 0x2bd   :  { %8337 = vmatmul.msk.f32.gmra.mxu1 %vm617_vm1, %v331_v54  ;;  %8571 = vmatmul.msk.f32.gmra.mxu3 %vm617_vm1, %v565_v16 }
 0x2c0   :  { %v11379_v62 = vpop.f32.mrf.mxu0 }
 0x2c1   :  { %15830 = vst [vmem:[#allocation195_spill] sm:$0xff] %v11379_v62  ;;  %v11414_v54 = vpop.f32.mrf.mxu1  ;;  %v11416_v16 = vpop.f32.mrf.mxu2  ;;  %v445_v62 = vld [vmem:[%s15488_s0 + $0xca8] sm:$0xff] }
 0x2c2   :  { %8435 = vmatmul.msk.f32.gmra.mxu2 %vm617_vm1, %v429_v7  ;;  %15836 = vst [vmem:[#allocation201_spill] sm:$0xff] %v11414_v54  ;;  %v332_v7 = vld [vmem:[%s15488_s0 + $0x920] sm:$0xff]  ;;  %v11436_v6 = vpop.f32.mrf.mxu3 }
 0x2c3   :  { %8134 = vmatmul.msk.f32.gmra.mxu0 %vm617_vm1, %v128_v15  ;;  %v129_v15 = vld [vmem:[%s15488_s0 + $0x2c8] sm:$0xff]  ;;  %15837 = vst [vmem:[#allocation202_spill] sm:$0xff] %v11416_v16  ;;  %v439_v16 = vld [vmem:[%s15488_s0 + $0xc78] sm:$0xff] }
 0x2c4   :  { %15839 = vst [vmem:[#allocation204_spill] sm:$0xff] %v11436_v6 }
 0x2c5   :  { %8338 = vmatmul.msk.f32.gmra.mxu1 %vm617_vm1, %v332_v7 }
 0x2c8   :  { %v11405_v36 = vpop.f32.mrf.mxu0 }
 0x2c9   :  { %15834 = vst [vmem:[#allocation199_spill] sm:$0xff] %v11405_v36  ;;  %v566_v36 = vld [vmem:[%s15488_s0 + $0x1070] sm:$0xff]  ;;  %v11440_v7 = vpop.f32.mrf.mxu1 }
 0x2ca   :  { %8572 = vmatmul.msk.f32.gmra.mxu3 %vm617_vm1, %v566_v36  ;;  %8436 = vmatmul.msk.f32.gmra.mxu2 %vm617_vm1, %v430_v22  ;;  %15840 = vst [vmem:[#allocation205_spill] sm:$0xff] %v11440_v7  ;;  %v11442_v36 = vpop.f32.mrf.mxu2  ;;  %v333_v22 = vld [vmem:[%s15488_s0 + $0x928] sm:$0xff]  ;;  %v11462_v6 = vpop.f32.mrf.mxu3 }
 0x2cb   :  { %8135 = vmatmul.msk.f32.gmra.mxu0 %vm617_vm1, %v129_v15  ;;  %v130_v15 = vld [vmem:[%s15488_s0 + $0x2d0] sm:$0xff]  ;;  %15841 = vst [vmem:[#allocation206_spill] sm:$0xff] %v11442_v36  ;;  %v440_v36 = vld [vmem:[%s15488_s0 + $0xc80] sm:$0xff] }
 0x2cc   :  { %15843 = vst [vmem:[#allocation208_spill] sm:$0xff] %v11462_v6 }
 0x2cd   :  { %8339 = vmatmul.msk.f32.gmra.mxu1 %vm617_vm1, %v333_v22 }
 0x2d0   :  { %v11431_v54 = vpop.f32.mrf.mxu0 }
 0x2d1   :  { %15838 = vst [vmem:[#allocation203_spill] sm:$0xff] %v11431_v54  ;;  %v567_v54 = vld [vmem:[%s15488_s0 + $0x1078] sm:$0xff] }
 0x2d2   :  { %8573 = vmatmul.msk.f32.gmra.mxu3 %vm617_vm1, %v567_v54  ;;  %8437 = vmatmul.msk.f32.gmra.mxu2 %vm617_vm1, %v431_v51  ;;  %v11466_v22 = vpop.f32.mrf.mxu1  ;;  %v11468_v54 = vpop.f32.mrf.mxu2  ;;  %v334_v51 = vld [vmem:[%s15488_s0 + $0x930] sm:$0xff] }
 0x2d3   :  { %8136 = vmatmul.msk.f32.gmra.mxu0 %vm617_vm1, %v130_v15  ;;  %v131_v15 = vld [vmem:[%s15488_s0 + $0x2d8] sm:$0xff]  ;;  %15844 = vst [vmem:[#allocation209_spill] sm:$0xff] %v11466_v22 }
 0x2d4   :  { %15845 = vst [vmem:[#allocation210_spill] sm:$0xff] %v11468_v54 }
 0x2d5   :  { %8340 = vmatmul.msk.f32.gmra.mxu1 %vm617_vm1, %v334_v51 }
 0x2d8   :  { %v11457_v7 = vpop.f32.mrf.mxu0  ;;  %v11488_v6 = vpop.f32.mrf.mxu3 }
 0x2d9   :  { %15842 = vst [vmem:[#allocation207_spill] sm:$0xff] %v11457_v7  ;;  %v568_v7 = vld [vmem:[%s15488_s0 + $0x1080] sm:$0xff] }
 0x2da   :  { %8574 = vmatmul.msk.f32.gmra.mxu3 %vm617_vm1, %v568_v7  ;;  %8438 = vmatmul.msk.f32.gmra.mxu2 %vm617_vm1, %v432_v30  ;;  %15847 = vst [vmem:[#allocation212_spill] sm:$0xff] %v11488_v6  ;;  %v11492_v51 = vpop.f32.mrf.mxu1  ;;  %v335_v30 = vld [vmem:[%s15488_s0 + $0x938] sm:$0xff] }
 0x2db   :  { %8137 = vmatmul.msk.f32.gmra.mxu0 %vm617_vm1, %v131_v15  ;;  %v132_v15 = vld [vmem:[%s15488_s0 + $0x2e0] sm:$0xff]  ;;  %15848 = vst [vmem:[#allocation213_spill] sm:$0xff] %v11492_v51 }
 0x2dd   :  { %v11494_v7 = vpop.f32.mrf.mxu2  ;;  %8341 = vmatmul.msk.f32.gmra.mxu1 %vm617_vm1, %v335_v30 }
 0x2de   :  { %15849 = vst [vmem:[#allocation214_spill] sm:$0xff] %v11494_v7  ;;  %v141_v7 = vld [vmem:[%s15488_s0 + $0x328] sm:$0xff] }
 0x2e0   :  { %v11483_v22 = vpop.f32.mrf.mxu0  ;;  %v11514_v6 = vpop.f32.mrf.mxu3 }
 0x2e1   :  { %15846 = vst [vmem:[#allocation211_spill] sm:$0xff] %v11483_v22  ;;  %v569_v22 = vld [vmem:[%s15488_s0 + $0x1088] sm:$0xff] }
 0x2e2   :  { %8575 = vmatmul.msk.f32.gmra.mxu3 %vm617_vm1, %v569_v22  ;;  %8439 = vmatmul.msk.f32.gmra.mxu2 %vm617_vm1, %v433_v32  ;;  %15851 = vst [vmem:[#allocation216_spill] sm:$0xff] %v11514_v6  ;;  %v11521_v22 = vpop.f32.mrf.mxu1  ;;  %v336_v32 = vld [vmem:[%s15488_s0 + $0x940] sm:$0xff] }
 0x2e3   :  { %8138 = vmatmul.msk.f32.gmra.mxu0 %vm617_vm1, %v132_v15  ;;  %v133_v15 = vld [vmem:[%s15488_s0 + $0x2e8] sm:$0xff]  ;;  %15853 = vst [vmem:[#allocation218_spill] sm:$0xff] %v11521_v22  ;;  %v134_v22 = vld [vmem:[%s15488_s0 + $0x2f0] sm:$0xff] }
 0x2e5   :  { %v11518_v30 = vpop.f32.mrf.mxu2  ;;  %8342 = vmatmul.msk.f32.gmra.mxu1 %vm617_vm1, %v336_v32 }
 0x2e6   :  { %15852 = vst [vmem:[#allocation217_spill] sm:$0xff] %v11518_v30 }
 0x2e8   :  { %v11509_v51 = vpop.f32.mrf.mxu0  ;;  %v11540_v6 = vpop.f32.mrf.mxu3 }
 0x2e9   :  { %15850 = vst [vmem:[#allocation215_spill] sm:$0xff] %v11509_v51  ;;  %v570_v51 = vld [vmem:[%s15488_s0 + $0x1090] sm:$0xff] }
 0x2ea   :  { %8576 = vmatmul.msk.f32.gmra.mxu3 %vm617_vm1, %v570_v51  ;;  %8440 = vmatmul.msk.f32.gmra.mxu2 %vm617_vm1, %v434_v43  ;;  %15855 = vst [vmem:[#allocation220_spill] sm:$0xff] %v11540_v6  ;;  %v337_v51 = vld [vmem:[%s15488_s0 + $0x948] sm:$0xff]  ;;  %v571_v43 = vld [vmem:[%s15488_s0 + $0x1098] sm:$0xff] }
 0x2eb   :  { %8139 = vmatmul.msk.f32.gmra.mxu0 %vm617_vm1, %v133_v15  ;;  %v135_v6 = vld [vmem:[%s15488_s0 + $0x2f8] sm:$0xff] }
 0x2ed   :  { %v11544_v32 = vpop.f32.mrf.mxu2  ;;  %8343 = vmatmul.msk.f32.gmra.mxu1 %vm617_vm1, %v337_v51 }
 0x2ee   :  { %15856 = vst [vmem:[#allocation221_spill] sm:$0xff] %v11544_v32  ;;  %v444_v32 = vld [vmem:[%s15488_s0 + $0xca0] sm:$0xff] }
 0x2f0   :  { %v11535_v15 = vpop.f32.mrf.mxu0  ;;  %v11566_v60 = vpop.f32.mrf.mxu3 }
 0x2f1   :  { %15854 = vst [vmem:[#allocation219_spill] sm:$0xff] %v11535_v15  ;;  %v11553_v15 = vpop.f32.mrf.mxu1 }
 0x2f2   :  { %15857 = vst [vmem:[#allocation222_spill] sm:$0xff] %v11553_v15  ;;  %8577 = vmatmul.msk.f32.gmra.mxu3 %vm617_vm1, %v571_v43  ;;  %8441 = vmatmul.msk.f32.gmra.mxu2 %vm617_vm1, %v435_v0  ;;  %v338_v43 = vld [vmem:[%s15488_s0 + $0x950] sm:$0xff]  ;;  %v572_v0 = vld [vmem:[%s15488_s0 + $0x10a0] sm:$0xff] }
 0x2f3   :  { %8140 = vmatmul.msk.f32.gmra.mxu0 %vm617_vm1, %v134_v22  ;;  %15859 = vst [vmem:[#allocation224_spill] sm:$0xff] %v11566_v60  ;;  %v436_v15 = vld [vmem:[%s15488_s0 + $0xc60] sm:$0xff] }
 0x2f5   :  { %v11570_v51 = vpop.f32.mrf.mxu2  ;;  %8344 = vmatmul.msk.f32.gmra.mxu1 %vm617_vm1, %v338_v43  ;;  %v437_v43 = vld [vmem:[%s15488_s0 + $0xc68] sm:$0xff] }
 0x2f6   :  { %15860 = vst [vmem:[#allocation225_spill] sm:$0xff] %v11570_v51 }
 0x2f8   :  { %v11561_v22 = vpop.f32.mrf.mxu0 }
 0x2f9   :  { %15858 = vst [vmem:[#allocation223_spill] sm:$0xff] %v11561_v22  ;;  %v11585_v60 = vpop.f32.mrf.mxu1  ;;  %v11592_v22 = vpop.f32.mrf.mxu3 }
 0x2fa   :  { %8578 = vmatmul.msk.f32.gmra.mxu3 %vm617_vm1, %v572_v0  ;;  %8442 = vmatmul.msk.f32.gmra.mxu2 %vm617_vm1, %v436_v15  ;;  %15861 = vst [vmem:[#allocation226_spill] sm:$0xff] %v11585_v60  ;;  %v339_v15 = vld [vmem:[%s15488_s0 + $0x958] sm:$0xff]  ;;  %v573_v60 = vld [vmem:[%s15488_s0 + $0x10a8] sm:$0xff] }
 0x2fb   :  { %8141 = vmatmul.msk.f32.gmra.mxu0 %vm617_vm1, %v135_v6  ;;  %15863 = vst [vmem:[#allocation228_spill] sm:$0xff] %v11592_v22 }
 0x2fd   :  { %v11596_v0 = vpop.f32.mrf.mxu2  ;;  %8345 = vmatmul.msk.f32.gmra.mxu1 %vm617_vm1, %v339_v15  ;;  %v438_v15 = vld [vmem:[%s15488_s0 + $0xc70] sm:$0xff] }
 0x2fe   :  { %15864 = vst [vmem:[#allocation229_spill] sm:$0xff] %v11596_v0 }
 0x300   :  { %v11587_v6 = vpop.f32.mrf.mxu0 }
 0x301   :  { %15862 = vst [vmem:[#allocation227_spill] sm:$0xff] %v11587_v6  ;;  %v11616_v28 = vpop.f32.mrf.mxu3  ;;  %v11618_v6 = vpop.f32.mrf.mxu1 }
 0x302   :  { %8579 = vmatmul.msk.f32.gmra.mxu3 %vm617_vm1, %v573_v60  ;;  %8443 = vmatmul.msk.f32.gmra.mxu2 %vm617_vm1, %v437_v43  ;;  %15866 = vst [vmem:[#allocation231_spill] sm:$0xff] %v11616_v28  ;;  %v340_v43 = vld [vmem:[%s15488_s0 + $0x960] sm:$0xff] }
 0x303   :  { %8142 = vmatmul.msk.f32.gmra.mxu0 %vm617_vm1, %v136_v52  ;;  %v137_v52 = vld [vmem:[%s15488_s0 + $0x308] sm:$0xff]  ;;  %15867 = vst [vmem:[#allocation232_spill] sm:$0xff] %v11618_v6 }
 0x305   :  { %v11622_v60 = vpop.f32.mrf.mxu2  ;;  %8346 = vmatmul.msk.f32.gmra.mxu1 %vm617_vm1, %v340_v43 }
 0x306   :  { %15868 = vst [vmem:[#allocation233_spill] sm:$0xff] %v11622_v60  ;;  %v146_v60 = vld [vmem:[%s15488_s0 + $0x350] sm:$0xff] }
 0x308   :  { %v11611_v22 = vpop.f32.mrf.mxu0 }
 0x309   :  { %15865 = vst [vmem:[#allocation230_spill] sm:$0xff] %v11611_v22  ;;  %v574_v22 = vld [vmem:[%s15488_s0 + $0x10b0] sm:$0xff]  ;;  %v11642_v28 = vpop.f32.mrf.mxu3 }
 0x30a   :  { %8580 = vmatmul.msk.f32.gmra.mxu3 %vm617_vm1, %v574_v22  ;;  %8444 = vmatmul.msk.f32.gmra.mxu2 %vm617_vm1, %v438_v15  ;;  %15870 = vst [vmem:[#allocation235_spill] sm:$0xff] %v11642_v28  ;;  %v11649_v22 = vpop.f32.mrf.mxu1  ;;  %v341_v15 = vld [vmem:[%s15488_s0 + $0x968] sm:$0xff] }
 0x30b   :  { %8143 = vmatmul.msk.f32.gmra.mxu0 %vm617_vm1, %v137_v52  ;;  %v138_v52 = vld [vmem:[%s15488_s0 + $0x310] sm:$0xff]  ;;  %15872 = vst [vmem:[#allocation237_spill] sm:$0xff] %v11649_v22  ;;  %v139_v22 = vld [vmem:[%s15488_s0 + $0x318] sm:$0xff] }
 0x30d   :  { %v11646_v43 = vpop.f32.mrf.mxu2  ;;  %8347 = vmatmul.msk.f32.gmra.mxu1 %vm617_vm1, %v341_v15 }
 0x30e   :  { %15871 = vst [vmem:[#allocation236_spill] sm:$0xff] %v11646_v43 }
 0x310   :  { %v11637_v6 = vpop.f32.mrf.mxu0 }
 0x311   :  { %15869 = vst [vmem:[#allocation234_spill] sm:$0xff] %v11637_v6  ;;  %v575_v6 = vld [vmem:[%s15488_s0 + $0x10b8] sm:$0xff]  ;;  %v11668_v28 = vpop.f32.mrf.mxu3 }
 0x312   :  { %8581 = vmatmul.msk.f32.gmra.mxu3 %vm617_vm1, %v575_v6  ;;  %8445 = vmatmul.msk.f32.gmra.mxu2 %vm617_vm1, %v439_v16  ;;  %15874 = vst [vmem:[#allocation239_spill] sm:$0xff] %v11668_v28  ;;  %v342_v6 = vld [vmem:[%s15488_s0 + $0x970] sm:$0xff]  ;;  %v576_v16 = vld [vmem:[%s15488_s0 + $0x10c0] sm:$0xff] }
 0x313   :  { %8144 = vmatmul.msk.f32.gmra.mxu0 %vm617_vm1, %v138_v52  ;;  %v140_v28 = vld [vmem:[%s15488_s0 + $0x320] sm:$0xff] }
 0x315   :  { %v11672_v15 = vpop.f32.mrf.mxu2  ;;  %8348 = vmatmul.msk.f32.gmra.mxu1 %vm617_vm1, %v342_v6 }
 0x316   :  { %15875 = vst [vmem:[#allocation240_spill] sm:$0xff] %v11672_v15 }
 0x318   :  { %v11663_v52 = vpop.f32.mrf.mxu0 }
 0x319   :  { %15873 = vst [vmem:[#allocation238_spill] sm:$0xff] %v11663_v52  ;;  %v11681_v52 = vpop.f32.mrf.mxu1  ;;  %v11694_v54 = vpop.f32.mrf.mxu3 }
 0x31a   :  { %15876 = vst [vmem:[#allocation241_spill] sm:$0xff] %v11681_v52  ;;  %8582 = vmatmul.msk.f32.gmra.mxu3 %vm617_vm1, %v576_v16  ;;  %8446 = vmatmul.msk.f32.gmra.mxu2 %vm617_vm1, %v440_v36  ;;  %v343_v16 = vld [vmem:[%s15488_s0 + $0x978] sm:$0xff]  ;;  %v577_v36 = vld [vmem:[%s15488_s0 + $0x10c8] sm:$0xff] }
 0x31b   :  { %8145 = vmatmul.msk.f32.gmra.mxu0 %vm617_vm1, %v139_v22  ;;  %15878 = vst [vmem:[#allocation243_spill] sm:$0xff] %v11694_v54  ;;  %v441_v52 = vld [vmem:[%s15488_s0 + $0xc88] sm:$0xff] }
 0x31d   :  { %v11698_v6 = vpop.f32.mrf.mxu2  ;;  %8349 = vmatmul.msk.f32.gmra.mxu1 %vm617_vm1, %v343_v16  ;;  %v442_v16 = vld [vmem:[%s15488_s0 + $0xc90] sm:$0xff] }
 0x31e   :  { %15879 = vst [vmem:[#allocation244_spill] sm:$0xff] %v11698_v6 }
 0x320   :  { %v11689_v22 = vpop.f32.mrf.mxu0 }
 0x321   :  { %15877 = vst [vmem:[#allocation242_spill] sm:$0xff] %v11689_v22  ;;  %v11713_v54 = vpop.f32.mrf.mxu1  ;;  %v11720_v22 = vpop.f32.mrf.mxu3 }
 0x322   :  { %8583 = vmatmul.msk.f32.gmra.mxu3 %vm617_vm1, %v577_v36  ;;  %8447 = vmatmul.msk.f32.gmra.mxu2 %vm617_vm1, %v441_v52  ;;  %15880 = vst [vmem:[#allocation245_spill] sm:$0xff] %v11713_v54  ;;  %v344_v52 = vld [vmem:[%s15488_s0 + $0x980] sm:$0xff]  ;;  %v578_v54 = vld [vmem:[%s15488_s0 + $0x10d0] sm:$0xff] }
 0x323   :  { %8146 = vmatmul.msk.f32.gmra.mxu0 %vm617_vm1, %v140_v28  ;;  %15882 = vst [vmem:[#allocation247_spill] sm:$0xff] %v11720_v22 }
 0x325   :  { %v11724_v36 = vpop.f32.mrf.mxu2  ;;  %8350 = vmatmul.msk.f32.gmra.mxu1 %vm617_vm1, %v344_v52  ;;  %v443_v52 = vld [vmem:[%s15488_s0 + $0xc98] sm:$0xff] }
 0x326   :  { %15883 = vst [vmem:[#allocation248_spill] sm:$0xff] %v11724_v36 }
 0x328   :  { %v11715_v28 = vpop.f32.mrf.mxu0 }
 0x329   :  { %15881 = vst [vmem:[#allocation246_spill] sm:$0xff] %v11715_v28  ;;  %v11744_v30 = vpop.f32.mrf.mxu3  ;;  %v11746_v28 = vpop.f32.mrf.mxu1 }
 0x32a   :  { %8584 = vmatmul.msk.f32.gmra.mxu3 %vm617_vm1, %v578_v54  ;;  %8448 = vmatmul.msk.f32.gmra.mxu2 %vm617_vm1, %v442_v16  ;;  %15885 = vst [vmem:[#allocation250_spill] sm:$0xff] %v11744_v30  ;;  %v345_v16 = vld [vmem:[%s15488_s0 + $0x988] sm:$0xff] }
 0x32b   :  { %8147 = vmatmul.msk.f32.gmra.mxu0 %vm617_vm1, %v141_v7  ;;  %v142_v7 = vld [vmem:[%s15488_s0 + $0x330] sm:$0xff]  ;;  %15886 = vst [vmem:[#allocation251_spill] sm:$0xff] %v11746_v28 }
 0x32d   :  { %v11750_v54 = vpop.f32.mrf.mxu2  ;;  %8351 = vmatmul.msk.f32.gmra.mxu1 %vm617_vm1, %v345_v16 }
 0x32e   :  { %15887 = vst [vmem:[#allocation252_spill] sm:$0xff] %v11750_v54 }
 0x330   :  { %v11739_v22 = vpop.f32.mrf.mxu0 }
 0x331   :  { %15884 = vst [vmem:[#allocation249_spill] sm:$0xff] %v11739_v22  ;;  %v579_v22 = vld [vmem:[%s15488_s0 + $0x10d8] sm:$0xff]  ;;  %v11770_v30 = vpop.f32.mrf.mxu3 }
 0x332   :  { %8585 = vmatmul.msk.f32.gmra.mxu3 %vm617_vm1, %v579_v22  ;;  %8449 = vmatmul.msk.f32.gmra.mxu2 %vm617_vm1, %v443_v52  ;;  %15889 = vst [vmem:[#allocation254_spill] sm:$0xff] %v11770_v30  ;;  %v11777_v22 = vpop.f32.mrf.mxu1  ;;  %v346_v52 = vld [vmem:[%s15488_s0 + $0x990] sm:$0xff]  ;;  %v144_v30 = vld [vmem:[%s15488_s0 + $0x340] sm:$0xff] }
 0x333   :  { %8148 = vmatmul.msk.f32.gmra.mxu0 %vm617_vm1, %v142_v7  ;;  %v143_v7 = vld [vmem:[%s15488_s0 + $0x338] sm:$0xff] }
 0x335   :  { %v11774_v16 = vpop.f32.mrf.mxu2  ;;  %8352 = vmatmul.msk.f32.gmra.mxu1 %vm617_vm1, %v346_v52 }
 0x336   :  { %15890 = vst [vmem:[#allocation255_spill] sm:$0xff] %v11774_v16 }
 0x338   :  { %v11765_v28 = vpop.f32.mrf.mxu0 }
 0x339   :  { %15888 = vst [vmem:[#allocation253_spill] sm:$0xff] %v11765_v28  ;;  %v580_v28 = vld [vmem:[%s15488_s0 + $0x10e0] sm:$0xff]  ;;  %v11796_v51 = vpop.f32.mrf.mxu3 }
 0x33a   :  { %8586 = vmatmul.msk.f32.gmra.mxu3 %vm617_vm1, %v580_v28  ;;  %8450 = vmatmul.msk.f32.gmra.mxu2 %vm617_vm1, %v444_v32  ;;  %15892 = vst [vmem:[#allocation257_spill] sm:$0xff] %v11796_v51  ;;  %v347_v28 = vld [vmem:[%s15488_s0 + $0x998] sm:$0xff]  ;;  %v581_v32 = vld [vmem:[%s15488_s0 + $0x10e8] sm:$0xff] }
 0x33b   :  { %8149 = vmatmul.msk.f32.gmra.mxu0 %vm617_vm1, %v143_v7  ;;  %v145_v51 = vld [vmem:[%s15488_s0 + $0x348] sm:$0xff] }
 0x33d   :  { %v11800_v52 = vpop.f32.mrf.mxu2  ;;  %8353 = vmatmul.msk.f32.gmra.mxu1 %vm617_vm1, %v347_v28 }
 0x33e   :  { %15893 = vst [vmem:[#allocation258_spill] sm:$0xff] %v11800_v52 }
 0x340   :  { %v11791_v7 = vpop.f32.mrf.mxu0 }
 0x341   :  { %15891 = vst [vmem:[#allocation256_spill] sm:$0xff] %v11791_v7  ;;  %v11809_v7 = vpop.f32.mrf.mxu1  ;;  %v11822_v0 = vpop.f32.mrf.mxu3 }
 0x342   :  { %8587 = vmatmul.msk.f32.gmra.mxu3 %vm617_vm1, %v581_v32  ;;  %8451 = vmatmul.msk.f32.gmra.mxu2 %vm617_vm1, %v445_v62  ;;  %15895 = vst [vmem:[#allocation260_spill] sm:$0xff] %v11822_v0  ;;  %v348_v32 = vld [vmem:[%s15488_s0 + $0x9a0] sm:$0xff]  ;;  %v582_v62 = vld [vmem:[%s15488_s0 + $0x10f0] sm:$0xff] }
 0x343   :  { %8150 = vmatmul.msk.f32.gmra.mxu0 %vm617_vm1, %v144_v30 }
 0x345   :  { %v11826_v28 = vpop.f32.mrf.mxu2  ;;  %8354 = vmatmul.msk.f32.gmra.mxu1 %vm617_vm1, %v348_v32  ;;  %v447_v32 = vld [vmem:[%s15488_s0 + $0xcb8] sm:$0xff] }
 0x346   :  { %15896 = vst [vmem:[#allocation261_spill] sm:$0xff] %v11826_v28 }
 0x348   :  { %v11817_v30 = vpop.f32.mrf.mxu0 }
 0x349   :  { %15894 = vst [vmem:[#allocation259_spill] sm:$0xff] %v11817_v30  ;;  %v11841_v0 = vpop.f32.mrf.mxu1 }
 0x34a   :  { %8588 = vmatmul.msk.f32.gmra.mxu3 %vm617_vm1, %v582_v62  ;;  %8452 = vmatmul.msk.f32.gmra.mxu2 %vm617_vm1, %v446_v24  ;;  %v349_v24 = vld [vmem:[%s15488_s0 + $0x9a8] sm:$0xff] }
 0x34b   :  { %8151 = vmatmul.msk.f32.gmra.mxu0 %vm617_vm1, %v145_v51 }
 0x34d   :  { %v11848_v30 = vpop.f32.mrf.mxu3  ;;  %v11852_v62 = vpop.f32.mrf.mxu2  ;;  %8355 = vmatmul.msk.f32.gmra.mxu1 %vm617_vm1, %v349_v24  ;;  %v448_v24 = vld [vmem:[%s15488_s0 + $0xcc0] sm:$0xff] }
 0x34e   :  { %15898 = vst [vmem:[#allocation263_spill] sm:$0xff] %v11848_v30 }
 0x34f   :  { %15899 = vst [vmem:[#allocation264_spill] sm:$0xff] %v11852_v62 }
 0x350   :  { %v11843_v51 = vpop.f32.mrf.mxu0 }
 0x351   :  { %15897 = vst [vmem:[#allocation262_spill] sm:$0xff] %v11843_v51  ;;  %v583_v51 = vld [vmem:[%s15488_s0 + $0x10f8] sm:$0xff]  ;;  %v11874_v48 = vpop.f32.mrf.mxu1 }
 0x352   :  { %8589 = vmatmul.msk.f32.gmra.mxu3 %vm617_vm1, %v583_v51  ;;  %8453 = vmatmul.msk.f32.gmra.mxu2 %vm617_vm1, %v447_v32  ;;  %v350_v32 = vld [vmem:[%s15488_s0 + $0x9b0] sm:$0xff] }
 0x353   :  { %8152 = vmatmul.msk.f32.gmra.mxu0 %vm617_vm1, %v146_v60  ;;  %v147_v60 = vld [vmem:[%s15488_s0 + $0x358] sm:$0xff] }
 0x355   :  { %v11872_v43 = vpop.f32.mrf.mxu3  ;;  %v11878_v51 = vpop.f32.mrf.mxu2  ;;  %8356 = vmatmul.msk.f32.gmra.mxu1 %vm617_vm1, %v350_v32 }
 0x356   :  { %15901 = vst [vmem:[#allocation266_spill] sm:$0xff] %v11872_v43 }
 0x357   :  { %15902 = vst [vmem:[#allocation267_spill] sm:$0xff] %v11878_v51  ;;  %v156_v51 = vld [vmem:[%s15488_s0 + $0x3a0] sm:$0xff] }
 0x358   :  { %v11867_v30 = vpop.f32.mrf.mxu0 }
 0x359   :  { %15900 = vst [vmem:[#allocation265_spill] sm:$0xff] %v11867_v30  ;;  %v584_v30 = vld [vmem:[%s15488_s0 + $0x1100] sm:$0xff] }
 0x35a   :  { %8590 = vmatmul.msk.f32.gmra.mxu3 %vm617_vm1, %v584_v30  ;;  %8454 = vmatmul.msk.f32.gmra.mxu2 %vm617_vm1, %v448_v24  ;;  %v11905_v30 = vpop.f32.mrf.mxu1  ;;  %v351_v24 = vld [vmem:[%s15488_s0 + $0x9b8] sm:$0xff] }
 0x35b   :  { %8153 = vmatmul.msk.f32.gmra.mxu0 %vm617_vm1, %v147_v60  ;;  %v148_v60 = vld [vmem:[%s15488_s0 + $0x360] sm:$0xff] }
 0x35d   :  { %v11898_v15 = vpop.f32.mrf.mxu3  ;;  %v11902_v32 = vpop.f32.mrf.mxu2  ;;  %8357 = vmatmul.msk.f32.gmra.mxu1 %vm617_vm1, %v351_v24 }
 0x35e   :  { %15904 = vst [vmem:[#allocation269_spill] sm:$0xff] %v11898_v15  ;;  %v149_v15 = vld [vmem:[%s15488_s0 + $0x368] sm:$0xff] }
 0x35f   :  { %15905 = vst [vmem:[#allocation270_spill] sm:$0xff] %v11902_v32 }
 0x360   :  { %v11893_v43 = vpop.f32.mrf.mxu0 }
 0x361   :  { %15903 = vst [vmem:[#allocation268_spill] sm:$0xff] %v11893_v43  ;;  %v585_v43 = vld [vmem:[%s15488_s0 + $0x1108] sm:$0xff] }
 0x362   :  { %8591 = vmatmul.msk.f32.gmra.mxu3 %vm617_vm1, %v585_v43  ;;  %8455 = vmatmul.msk.f32.gmra.mxu2 %vm617_vm1, %v449_v55  ;;  %v352_v43 = vld [vmem:[%s15488_s0 + $0x9c0] sm:$0xff]  ;;  %v586_v55 = vld [vmem:[%s15488_s0 + $0x1110] sm:$0xff] }
 0x363   :  { %8154 = vmatmul.msk.f32.gmra.mxu0 %vm617_vm1, %v148_v60 }
 0x365   :  { %v11924_v6 = vpop.f32.mrf.mxu3  ;;  %v11928_v24 = vpop.f32.mrf.mxu2  ;;  %8358 = vmatmul.msk.f32.gmra.mxu1 %vm617_vm1, %v352_v43  ;;  %v150_v43 = vld [vmem:[%s15488_s0 + $0x370] sm:$0xff] }
 0x366   :  { %15907 = vst [vmem:[#allocation272_spill] sm:$0xff] %v11924_v6  ;;  %v5147_v6 = vld [vmem:[%s15491_s3 + $0x28] sm:$0xff] }
 0x367   :  { %15908 = vst [vmem:[#allocation273_spill] sm:$0xff] %v11928_v24  ;;  %5270 = vmatpush.msrb.mxu3 %v5147_v6  ;;  %v587_v6 = vld [vmem:[%s15488_s0 + $0x1118] sm:$0xff] }
 0x368   :  { %v11919_v60 = vpop.f32.mrf.mxu0 }
 0x369   :  { %15906 = vst [vmem:[#allocation271_spill] sm:$0xff] %v11919_v60  ;;  %v11937_v60 = vpop.f32.mrf.mxu1 }
 0x36a   :  { %8592 = vmatmul.msk.f32.gmra.mxu3 %vm617_vm1, %v586_v55 }
 0x36b   :  { %8155 = vmatmul.msk.f32.gmra.mxu0 %vm617_vm1, %v149_v15  ;;  %v450_v15 = vld [vmem:[%s15488_s0 + $0xcd0] sm:$0xff] }
 0x36c   :  { %8456 = vmatmul.msk.f32.gmra.mxu2 %vm617_vm1, %v450_v15  ;;  %v451_v15 = vld [vmem:[%s15488_s0 + $0xcd8] sm:$0xff] }
 0x36d   :  { %v11956_v55 = vpop.f32.mrf.mxu3  ;;  %v11960_v12 = vpop.f32.mrf.mxu2  ;;  %8359 = vmatmul.msk.f32.gmra.mxu1 %vm617_vm1, %v353_v21  ;;  %v452_v21 = vld [vmem:[%s15488_s0 + $0xce0] sm:$0xff] }
 0x36e   :  { %15910 = vst [vmem:[#allocation275_spill] sm:$0xff] %v11956_v55  ;;  %v151_v55 = vld [vmem:[%s15488_s0 + $0x378] sm:$0xff] }
 0x36f   :  { %15911 = vst [vmem:[#allocation276_spill] sm:$0xff] %v11960_v12 }
 0x370   :  { %v11951_v36 = vpop.f32.mrf.mxu0 }
 0x371   :  { %15909 = vst [vmem:[#allocation274_spill] sm:$0xff] %v11951_v36  ;;  %v11974_v8 = vpop.f32.mrf.mxu1  ;;  %v354_v36 = vld [vmem:[%s15488_s0 + $0x9d0] sm:$0xff] }
 0x372   :  { %8593 = vmatmul.msk.f32.gmra.mxu3 %vm617_vm1, %v587_v6 }
 0x373   :  { %8156 = vmatmul.msk.f32.gmra.mxu0 %vm617_vm1, %v150_v43 }
 0x374   :  { %8457 = vmatmul.msk.f32.gmra.mxu2 %vm617_vm1, %v451_v15  ;;  %v588_v15 = vld [vmem:[%s15488_s0 + $0x1120] sm:$0xff] }
 0x375   :  { %v11982_v54 = vpop.f32.mrf.mxu3  ;;  %v11986_v6 = vpop.f32.mrf.mxu2  ;;  %8360 = vmatmul.msk.f32.gmra.mxu1 %vm617_vm1, %v354_v36  ;;  %v453_v36 = vld [vmem:[%s15488_s0 + $0xce8] sm:$0xff] }
 0x376   :  { %15913 = vst [vmem:[#allocation278_spill] sm:$0xff] %v11982_v54 }
 0x377   :  { %15914 = vst [vmem:[#allocation279_spill] sm:$0xff] %v11986_v6 }
 0x378   :  { %v11977_v43 = vpop.f32.mrf.mxu0 }
 0x379   :  { %15912 = vst [vmem:[#allocation277_spill] sm:$0xff] %v11977_v43  ;;  %v12008_v43 = vpop.f32.mrf.mxu1 }
 0x37a   :  { %8594 = vmatmul.msk.f32.gmra.mxu3 %vm617_vm1, %v588_v15 }
 0x37b   :  { %8157 = vmatmul.msk.f32.gmra.mxu0 %vm617_vm1, %v151_v55  ;;  %v152_v55 = vld [vmem:[%s15488_s0 + $0x380] sm:$0xff] }
 0x37c   :  { %8458 = vmatmul.msk.f32.gmra.mxu2 %vm617_vm1, %v452_v21  ;;  %v355_v21 = vld [vmem:[%s15488_s0 + $0x9d8] sm:$0xff] }
 0x37d   :  { %v12006_v16 = vpop.f32.mrf.mxu3  ;;  %v12012_v15 = vpop.f32.mrf.mxu2  ;;  %8361 = vmatmul.msk.f32.gmra.mxu1 %vm617_vm1, %v355_v21 }
 0x37e   :  { %15916 = vst [vmem:[#allocation281_spill] sm:$0xff] %v12006_v16 }
 0x37f   :  { %15917 = vst [vmem:[#allocation282_spill] sm:$0xff] %v12012_v15 }
 0x380   :  { %v12001_v54 = vpop.f32.mrf.mxu0 }
 0x381   :  { %15915 = vst [vmem:[#allocation280_spill] sm:$0xff] %v12001_v54  ;;  %v589_v54 = vld [vmem:[%s15488_s0 + $0x1128] sm:$0xff] }
 0x382   :  { %8595 = vmatmul.msk.f32.gmra.mxu3 %vm617_vm1, %v589_v54  ;;  %v12038_v54 = vpop.f32.mrf.mxu1 }
 0x383   :  { %8158 = vmatmul.msk.f32.gmra.mxu0 %vm617_vm1, %v152_v55  ;;  %v153_v55 = vld [vmem:[%s15488_s0 + $0x388] sm:$0xff] }
 0x384   :  { %8459 = vmatmul.msk.f32.gmra.mxu2 %vm617_vm1, %v453_v36  ;;  %v356_v36 = vld [vmem:[%s15488_s0 + $0x9e0] sm:$0xff] }
 0x385   :  { %v12032_v52 = vpop.f32.mrf.mxu3  ;;  %v12036_v21 = vpop.f32.mrf.mxu2  ;;  %8362 = vmatmul.msk.f32.gmra.mxu1 %vm617_vm1, %v356_v36 }
 0x386   :  { %15919 = vst [vmem:[#allocation284_spill] sm:$0xff] %v12032_v52 }
 0x387   :  { %15920 = vst [vmem:[#allocation285_spill] sm:$0xff] %v12036_v21 }
 0x388   :  { %v12027_v16 = vpop.f32.mrf.mxu0 }
 0x389   :  { %15918 = vst [vmem:[#allocation283_spill] sm:$0xff] %v12027_v16  ;;  %v590_v16 = vld [vmem:[%s15488_s0 + $0x1130] sm:$0xff] }
 0x38a   :  { %8596 = vmatmul.msk.f32.gmra.mxu3 %vm617_vm1, %v590_v16  ;;  %v357_v16 = vld [vmem:[%s15488_s0 + $0x9e8] sm:$0xff] }
 0x38b   :  { %8159 = vmatmul.msk.f32.gmra.mxu0 %vm617_vm1, %v153_v55  ;;  %v154_v55 = vld [vmem:[%s15488_s0 + $0x390] sm:$0xff] }
 0x38c   :  { %8460 = vmatmul.msk.f32.gmra.mxu2 %vm617_vm1, %v454_v44  ;;  %v591_v44 = vld [vmem:[%s15488_s0 + $0x1138] sm:$0xff] }
 0x38d   :  { %v12058_v28 = vpop.f32.mrf.mxu3  ;;  %v12062_v36 = vpop.f32.mrf.mxu2  ;;  %8363 = vmatmul.msk.f32.gmra.mxu1 %vm617_vm1, %v357_v16 }
 0x38e   :  { %15922 = vst [vmem:[#allocation287_spill] sm:$0xff] %v12058_v28  ;;  %v155_v28 = vld [vmem:[%s15488_s0 + $0x398] sm:$0xff] }
 0x38f   :  { %15923 = vst [vmem:[#allocation288_spill] sm:$0xff] %v12062_v36 }
 0x390   :  { %v12053_v52 = vpop.f32.mrf.mxu0 }
 0x391   :  { %15921 = vst [vmem:[#allocation286_spill] sm:$0xff] %v12053_v52  ;;  %v12071_v52 = vpop.f32.mrf.mxu1 }
 0x392   :  { %8597 = vmatmul.msk.f32.gmra.mxu3 %vm617_vm1, %v591_v44  ;;  %v358_v44 = vld [vmem:[%s15488_s0 + $0x9f0] sm:$0xff] }
 0x393   :  { %8160 = vmatmul.msk.f32.gmra.mxu0 %vm617_vm1, %v154_v55 }
 0x394   :  { %8461 = vmatmul.msk.f32.gmra.mxu2 %vm617_vm1, %v455_v35  ;;  %v592_v35 = vld [vmem:[%s15488_s0 + $0x1140] sm:$0xff] }
 0x395   :  { %v12084_v62 = vpop.f32.mrf.mxu3  ;;  %v12088_v16 = vpop.f32.mrf.mxu2  ;;  %8364 = vmatmul.msk.f32.gmra.mxu1 %vm617_vm1, %v358_v44  ;;  %v457_v44 = vld [vmem:[%s15488_s0 + $0xd08] sm:$0xff] }
 0x396   :  { %15925 = vst [vmem:[#allocation290_spill] sm:$0xff] %v12084_v62 }
 0x397   :  { %15926 = vst [vmem:[#allocation291_spill] sm:$0xff] %v12088_v16 }
 0x398   :  { %v12079_v55 = vpop.f32.mrf.mxu0 }
 0x399   :  { %15924 = vst [vmem:[#allocation289_spill] sm:$0xff] %v12079_v55  ;;  %v12102_v62 = vpop.f32.mrf.mxu1 }
 0x39a   :  { %8598 = vmatmul.msk.f32.gmra.mxu3 %vm617_vm1, %v592_v35 }
 0x39b   :  { %8161 = vmatmul.msk.f32.gmra.mxu0 %vm617_vm1, %v155_v28 }
 0x39c   :  { %8462 = vmatmul.msk.f32.gmra.mxu2 %vm617_vm1, %v456_v18  ;;  %v593_v18 = vld [vmem:[%s15488_s0 + $0x1148] sm:$0xff] }
 0x39d   :  { %v12110_v55 = vpop.f32.mrf.mxu3  ;;  %v12114_v35 = vpop.f32.mrf.mxu2  ;;  %8365 = vmatmul.msk.f32.gmra.mxu1 %vm617_vm1, %v359_v39  ;;  %v458_v39 = vld [vmem:[%s15488_s0 + $0xd10] sm:$0xff] }
 0x39e   :  { %15928 = vst [vmem:[#allocation293_spill] sm:$0xff] %v12110_v55 }
 0x39f   :  { %15929 = vst [vmem:[#allocation294_spill] sm:$0xff] %v12114_v35  ;;  %v466_v35 = vld [vmem:[%s15488_s0 + $0xd50] sm:$0xff] }
 0x3a0   :  { %v12105_v28 = vpop.f32.mrf.mxu0 }
 0x3a1   :  { %15927 = vst [vmem:[#allocation292_spill] sm:$0xff] %v12105_v28  ;;  %v12136_v28 = vpop.f32.mrf.mxu1 }
 0x3a2   :  { %8599 = vmatmul.msk.f32.gmra.mxu3 %vm617_vm1, %v593_v18 }
 0x3a3   :  { %8162 = vmatmul.msk.f32.gmra.mxu0 %vm617_vm1, %v156_v51  ;;  %v157_v51 = vld [vmem:[%s15488_s0 + $0x3a8] sm:$0xff] }
 0x3a4   :  { %8463 = vmatmul.msk.f32.gmra.mxu2 %vm617_vm1, %v457_v44  ;;  %v360_v44 = vld [vmem:[%s15488_s0 + $0xa00] sm:$0xff] }
 0x3a5   :  { %v12134_v32 = vpop.f32.mrf.mxu3  ;;  %v12140_v18 = vpop.f32.mrf.mxu2  ;;  %8366 = vmatmul.msk.f32.gmra.mxu1 %vm617_vm1, %v360_v44 }
 0x3a6   :  { %15931 = vst [vmem:[#allocation296_spill] sm:$0xff] %v12134_v32 }
 0x3a7   :  { %15932 = vst [vmem:[#allocation297_spill] sm:$0xff] %v12140_v18 }
 0x3a8   :  { %v12129_v55 = vpop.f32.mrf.mxu0 }
 0x3a9   :  { %15930 = vst [vmem:[#allocation295_spill] sm:$0xff] %v12129_v55  ;;  %v594_v55 = vld [vmem:[%s15488_s0 + $0x1150] sm:$0xff] }
 0x3aa   :  { %8600 = vmatmul.msk.f32.gmra.mxu3 %vm617_vm1, %v594_v55  ;;  %v12166_v55 = vpop.f32.mrf.mxu1 }
 0x3ab   :  { %8163 = vmatmul.msk.f32.gmra.mxu0 %vm617_vm1, %v157_v51  ;;  %v158_v51 = vld [vmem:[%s15488_s0 + $0x3b0] sm:$0xff] }
 0x3ac   :  { %8464 = vmatmul.msk.f32.gmra.mxu2 %vm617_vm1, %v458_v39  ;;  %v361_v39 = vld [vmem:[%s15488_s0 + $0xa08] sm:$0xff] }
 0x3ad   :  { %v12160_v24 = vpop.f32.mrf.mxu3  ;;  %v12164_v44 = vpop.f32.mrf.mxu2  ;;  %8367 = vmatmul.msk.f32.gmra.mxu1 %vm617_vm1, %v361_v39 }
 0x3ae   :  { %15934 = vst [vmem:[#allocation299_spill] sm:$0xff] %v12160_v24 }
 0x3af   :  { %15935 = vst [vmem:[#allocation300_spill] sm:$0xff] %v12164_v44 }
 0x3b0   :  { %v12155_v32 = vpop.f32.mrf.mxu0 }
 0x3b1   :  { %15933 = vst [vmem:[#allocation298_spill] sm:$0xff] %v12155_v32  ;;  %v595_v32 = vld [vmem:[%s15488_s0 + $0x1158] sm:$0xff] }
 0x3b2   :  { %8601 = vmatmul.msk.f32.gmra.mxu3 %vm617_vm1, %v595_v32  ;;  %v362_v32 = vld [vmem:[%s15488_s0 + $0xa10] sm:$0xff] }
 0x3b3   :  { %8164 = vmatmul.msk.f32.gmra.mxu0 %vm617_vm1, %v158_v51  ;;  %v159_v51 = vld [vmem:[%s15488_s0 + $0x3b8] sm:$0xff] }
 0x3b4   :  { %8465 = vmatmul.msk.f32.gmra.mxu2 %vm617_vm1, %v459_v63  ;;  %v596_v63 = vld [vmem:[%s15488_s0 + $0x1160] sm:$0xff] }
 0x3b5   :  { %v12186_v12 = vpop.f32.mrf.mxu3  ;;  %v12190_v39 = vpop.f32.mrf.mxu2  ;;  %8368 = vmatmul.msk.f32.gmra.mxu1 %vm617_vm1, %v362_v32 }
 0x3b6   :  { %15937 = vst [vmem:[#allocation302_spill] sm:$0xff] %v12186_v12  ;;  %v160_v12 = vld [vmem:[%s15488_s0 + $0x3c0] sm:$0xff] }
 0x3b7   :  { %15938 = vst [vmem:[#allocation303_spill] sm:$0xff] %v12190_v39  ;;  %v469_v39 = vld [vmem:[%s15488_s0 + $0xd68] sm:$0xff] }
 0x3b8   :  { %v12181_v24 = vpop.f32.mrf.mxu0 }
 0x3b9   :  { %15936 = vst [vmem:[#allocation301_spill] sm:$0xff] %v12181_v24  ;;  %v12199_v24 = vpop.f32.mrf.mxu1 }
 0x3ba   :  { %8602 = vmatmul.msk.f32.gmra.mxu3 %vm617_vm1, %v596_v63  ;;  %v363_v63 = vld [vmem:[%s15488_s0 + $0xa18] sm:$0xff] }
 0x3bb   :  { %8165 = vmatmul.msk.f32.gmra.mxu0 %vm617_vm1, %v159_v51 }
 0x3bc   :  { %8466 = vmatmul.msk.f32.gmra.mxu2 %vm617_vm1, %v460_v3  ;;  %v597_v3 = vld [vmem:[%s15488_s0 + $0x1168] sm:$0xff] }
 0x3bd   :  { %v12212_v6 = vpop.f32.mrf.mxu3  ;;  %v12216_v32 = vpop.f32.mrf.mxu2  ;;  %8369 = vmatmul.msk.f32.gmra.mxu1 %vm617_vm1, %v363_v63  ;;  %v462_v63 = vld [vmem:[%s15488_s0 + $0xd30] sm:$0xff] }
 0x3be   :  { %15940 = vst [vmem:[#allocation305_spill] sm:$0xff] %v12212_v6  ;;  %v161_v6 = vld [vmem:[%s15488_s0 + $0x3c8] sm:$0xff] }
 0x3bf   :  { %15941 = vst [vmem:[#allocation306_spill] sm:$0xff] %v12216_v32  ;;  %v470_v32 = vld [vmem:[%s15488_s0 + $0xd70] sm:$0xff] }
 0x3c0   :  { %v12207_v51 = vpop.f32.mrf.mxu0 }
 0x3c1   :  { %15939 = vst [vmem:[#allocation304_spill] sm:$0xff] %v12207_v51  ;;  %v12230_v51 = vpop.f32.mrf.mxu1 }
 0x3c2   :  { %8603 = vmatmul.msk.f32.gmra.mxu3 %vm617_vm1, %v597_v3 }
 0x3c3   :  { %8166 = vmatmul.msk.f32.gmra.mxu0 %vm617_vm1, %v160_v12 }
 0x3c4   :  { %8467 = vmatmul.msk.f32.gmra.mxu2 %vm617_vm1, %v461_v46  ;;  %v598_v46 = vld [vmem:[%s15488_s0 + $0x1170] sm:$0xff] }
 0x3c5   :  { %v12238_v15 = vpop.f32.mrf.mxu3  ;;  %v12242_v3 = vpop.f32.mrf.mxu2  ;;  %8370 = vmatmul.msk.f32.gmra.mxu1 %vm617_vm1, %v364_v38  ;;  %v463_v38 = vld [vmem:[%s15488_s0 + $0xd38] sm:$0xff] }
 0x3c6   :  { %15943 = vst [vmem:[#allocation308_spill] sm:$0xff] %v12238_v15 }
 0x3c7   :  { %15944 = vst [vmem:[#allocation309_spill] sm:$0xff] %v12242_v3  ;;  %v471_v3 = vld [vmem:[%s15488_s0 + $0xd78] sm:$0xff] }
 0x3c8   :  { %v12233_v12 = vpop.f32.mrf.mxu0 }
 0x3c9   :  { %15942 = vst [vmem:[#allocation307_spill] sm:$0xff] %v12233_v12  ;;  %v12264_v21 = vpop.f32.mrf.mxu1 }
 0x3ca   :  { %8604 = vmatmul.msk.f32.gmra.mxu3 %vm617_vm1, %v598_v46 }
 0x3cb   :  { %8167 = vmatmul.msk.f32.gmra.mxu0 %vm617_vm1, %v161_v6  ;;  %v162_v6 = vld [vmem:[%s15488_s0 + $0x3d0] sm:$0xff] }
 0x3cc   :  { %8468 = vmatmul.msk.f32.gmra.mxu2 %vm617_vm1, %v462_v63  ;;  %v365_v63 = vld [vmem:[%s15488_s0 + $0xa28] sm:$0xff] }
 0x3cd   :  { %v12262_v15 = vpop.f32.mrf.mxu3  ;;  %v12268_v46 = vpop.f32.mrf.mxu2  ;;  %8371 = vmatmul.msk.f32.gmra.mxu1 %vm617_vm1, %v365_v63 }
 0x3ce   :  { %15946 = vst [vmem:[#allocation311_spill] sm:$0xff] %v12262_v15 }
 0x3cf   :  { %15947 = vst [vmem:[#allocation312_spill] sm:$0xff] %v12268_v46 }
 0x3d0   :  { %v12257_v12 = vpop.f32.mrf.mxu0 }
 0x3d1   :  { %15945 = vst [vmem:[#allocation310_spill] sm:$0xff] %v12257_v12  ;;  %v599_v12 = vld [vmem:[%s15488_s0 + $0x1178] sm:$0xff] }
 0x3d2   :  { %8605 = vmatmul.msk.f32.gmra.mxu3 %vm617_vm1, %v599_v12  ;;  %v12294_v12 = vpop.f32.mrf.mxu1 }
 0x3d3   :  { %8168 = vmatmul.msk.f32.gmra.mxu0 %vm617_vm1, %v162_v6  ;;  %v163_v6 = vld [vmem:[%s15488_s0 + $0x3d8] sm:$0xff] }
 0x3d4   :  { %8469 = vmatmul.msk.f32.gmra.mxu2 %vm617_vm1, %v463_v38  ;;  %v366_v38 = vld [vmem:[%s15488_s0 + $0xa30] sm:$0xff] }
 0x3d5   :  { %v12288_v36 = vpop.f32.mrf.mxu3  ;;  %v12292_v63 = vpop.f32.mrf.mxu2  ;;  %8372 = vmatmul.msk.f32.gmra.mxu1 %vm617_vm1, %v366_v38 }
 0x3d6   :  { %15949 = vst [vmem:[#allocation314_spill] sm:$0xff] %v12288_v36 }
 0x3d7   :  { %15950 = vst [vmem:[#allocation315_spill] sm:$0xff] %v12292_v63 }
 0x3d8   :  { %v12283_v15 = vpop.f32.mrf.mxu0 }
 0x3d9   :  { %15948 = vst [vmem:[#allocation313_spill] sm:$0xff] %v12283_v15  ;;  %v600_v15 = vld [vmem:[%s15488_s0 + $0x1180] sm:$0xff] }
 0x3da   :  { %8606 = vmatmul.msk.f32.gmra.mxu3 %vm617_vm1, %v600_v15  ;;  %v367_v15 = vld [vmem:[%s15488_s0 + $0xa38] sm:$0xff] }
 0x3db   :  { %8169 = vmatmul.msk.f32.gmra.mxu0 %vm617_vm1, %v163_v6  ;;  %v164_v6 = vld [vmem:[%s15488_s0 + $0x3e0] sm:$0xff] }
 0x3dc   :  { %8470 = vmatmul.msk.f32.gmra.mxu2 %vm617_vm1, %v464_v31  ;;  %v601_v31 = vld [vmem:[%s15488_s0 + $0x1188] sm:$0xff] }
 0x3dd   :  { %v12314_v16 = vpop.f32.mrf.mxu3  ;;  %v12318_v38 = vpop.f32.mrf.mxu2  ;;  %8373 = vmatmul.msk.f32.gmra.mxu1 %vm617_vm1, %v367_v15 }
 0x3de   :  { %15952 = vst [vmem:[#allocation317_spill] sm:$0xff] %v12314_v16 }
 0x3df   :  { %15953 = vst [vmem:[#allocation318_spill] sm:$0xff] %v12318_v38  ;;  %v165_v38 = vld [vmem:[%s15488_s0 + $0x3e8] sm:$0xff] }
 0x3e0   :  { %v12309_v36 = vpop.f32.mrf.mxu0 }
 0x3e1   :  { %15951 = vst [vmem:[#allocation316_spill] sm:$0xff] %v12309_v36  ;;  %v12327_v36 = vpop.f32.mrf.mxu1 }
 0x3e2   :  { %8607 = vmatmul.msk.f32.gmra.mxu3 %vm617_vm1, %v601_v31  ;;  %v368_v31 = vld [vmem:[%s15488_s0 + $0xa40] sm:$0xff] }
 0x3e3   :  { %8170 = vmatmul.msk.f32.gmra.mxu0 %vm617_vm1, %v164_v6 }
 0x3e4   :  { %8471 = vmatmul.msk.f32.gmra.mxu2 %vm617_vm1, %v465_v10  ;;  %v602_v10 = vld [vmem:[%s15488_s0 + $0x1190] sm:$0xff] }
 0x3e5   :  { %v12340_v16 = vpop.f32.mrf.mxu3  ;;  %v12344_v15 = vpop.f32.mrf.mxu2  ;;  %8374 = vmatmul.msk.f32.gmra.mxu1 %vm617_vm1, %v368_v31  ;;  %v467_v31 = vld [vmem:[%s15488_s0 + $0xd58] sm:$0xff] }
 0x3e6   :  { %15955 = vst [vmem:[#allocation320_spill] sm:$0xff] %v12340_v16 }
 0x3e7   :  { %15956 = vst [vmem:[#allocation321_spill] sm:$0xff] %v12344_v15  ;;  %v166_v15 = vld [vmem:[%s15488_s0 + $0x3f0] sm:$0xff] }
 0x3e8   :  { %v12335_v6 = vpop.f32.mrf.mxu0 }
 0x3e9   :  { %15954 = vst [vmem:[#allocation319_spill] sm:$0xff] %v12335_v6  ;;  %v12358_v16 = vpop.f32.mrf.mxu1  ;;  %v369_v6 = vld [vmem:[%s15488_s0 + $0xa48] sm:$0xff] }
 0x3ea   :  { %8608 = vmatmul.msk.f32.gmra.mxu3 %vm617_vm1, %v602_v10 }
 0x3eb   :  { %8171 = vmatmul.msk.f32.gmra.mxu0 %vm617_vm1, %v165_v38 }
 0x3ec   :  { %8472 = vmatmul.msk.f32.gmra.mxu2 %vm617_vm1, %v466_v35  ;;  %v603_v35 = vld [vmem:[%s15488_s0 + $0x1198] sm:$0xff] }
 0x3ed   :  { %v12366_v18 = vpop.f32.mrf.mxu3  ;;  %8375 = vmatmul.msk.f32.gmra.mxu1 %vm617_vm1, %v369_v6  ;;  %v468_v6 = vld [vmem:[%s15488_s0 + $0xd60] sm:$0xff] }
 0x3ee   :  { %15958 = vst [vmem:[#allocation323_spill] sm:$0xff] %v12366_v18 }
 0x3ef   :  { %v12370_v10 = vpop.f32.mrf.mxu2 }
 0x3f0   :  { %v12361_v38 = vpop.f32.mrf.mxu0  ;;  %15959 = vst [vmem:[#allocation324_spill] sm:$0xff] %v12370_v10 }
 0x3f1   :  { %15957 = vst [vmem:[#allocation322_spill] sm:$0xff] %v12361_v38  ;;  %v12392_v44 = vpop.f32.mrf.mxu1 }
 0x3f2   :  { %8609 = vmatmul.msk.f32.gmra.mxu3 %vm617_vm1, %v603_v35 }
 0x3f3   :  { %8172 = vmatmul.msk.f32.gmra.mxu0 %vm617_vm1, %v166_v15  ;;  %v167_v15 = vld [vmem:[%s15488_s0 + $0x3f8] sm:$0xff] }
 0x3f4   :  { %8473 = vmatmul.msk.f32.gmra.mxu2 %vm617_vm1, %v467_v31  ;;  %v370_v31 = vld [vmem:[%s15488_s0 + $0xa50] sm:$0xff] }
 0x3f5   :  { %v12390_v18 = vpop.f32.mrf.mxu3  ;;  %8376 = vmatmul.msk.f32.gmra.mxu1 %vm617_vm1, %v370_v31 }
 0x3f6   :  { %15961 = vst [vmem:[#allocation326_spill] sm:$0xff] %v12390_v18 }
 0x3f7   :  { %v12396_v35 = vpop.f32.mrf.mxu2 }
 0x3f8   :  { %v12385_v10 = vpop.f32.mrf.mxu0  ;;  %15962 = vst [vmem:[#allocation327_spill] sm:$0xff] %v12396_v35 }
 0x3f9   :  { %15960 = vst [vmem:[#allocation325_spill] sm:$0xff] %v12385_v10  ;;  %v604_v10 = vld [vmem:[%s15488_s0 + $0x11a0] sm:$0xff] }
 0x3fa   :  { %8610 = vmatmul.msk.f32.gmra.mxu3 %vm617_vm1, %v604_v10  ;;  %v12422_v10 = vpop.f32.mrf.mxu1 }
 0x3fb   :  { %8173 = vmatmul.msk.f32.gmra.mxu0 %vm617_vm1, %v167_v15  ;;  %v168_v15 = vld [vmem:[%s15488_s0 + $0x400] sm:$0xff] }
 0x3fc   :  { %8474 = vmatmul.msk.f32.gmra.mxu2 %vm617_vm1, %v468_v6  ;;  %v371_v6 = vld [vmem:[%s15488_s0 + $0xa58] sm:$0xff] }
 0x3fd   :  { %v12416_v18 = vpop.f32.mrf.mxu3  ;;  %8377 = vmatmul.msk.f32.gmra.mxu1 %vm617_vm1, %v371_v6 }
 0x3fe   :  { %15964 = vst [vmem:[#allocation329_spill] sm:$0xff] %v12416_v18 }
 0x3ff   :  { %v12420_v31 = vpop.f32.mrf.mxu2 }
 0x400   :  { %v12411_v35 = vpop.f32.mrf.mxu0  ;;  %15965 = vst [vmem:[#allocation330_spill] sm:$0xff] %v12420_v31 }
 0x401   :  { %15963 = vst [vmem:[#allocation328_spill] sm:$0xff] %v12411_v35  ;;  %v605_v35 = vld [vmem:[%s15488_s0 + $0x11a8] sm:$0xff] }
 0x402   :  { %8611 = vmatmul.msk.f32.gmra.mxu3 %vm617_vm1, %v605_v35  ;;  %v372_v35 = vld [vmem:[%s15488_s0 + $0xa60] sm:$0xff] }
 0x403   :  { %8174 = vmatmul.msk.f32.gmra.mxu0 %vm617_vm1, %v168_v15  ;;  %v169_v15 = vld [vmem:[%s15488_s0 + $0x408] sm:$0xff] }
 0x404   :  { %8475 = vmatmul.msk.f32.gmra.mxu2 %vm617_vm1, %v469_v39  ;;  %v606_v39 = vld [vmem:[%s15488_s0 + $0x11b0] sm:$0xff] }
 0x405   :  { %v12442_v18 = vpop.f32.mrf.mxu3  ;;  %8378 = vmatmul.msk.f32.gmra.mxu1 %vm617_vm1, %v372_v35 }
 0x406   :  { %15967 = vst [vmem:[#allocation332_spill] sm:$0xff] %v12442_v18 }
 0x407   :  { %v12446_v6 = vpop.f32.mrf.mxu2 }
 0x408   :  { %v12437_v31 = vpop.f32.mrf.mxu0  ;;  %15968 = vst [vmem:[#allocation333_spill] sm:$0xff] %v12446_v6  ;;  %v170_v6 = vld [vmem:[%s15488_s0 + $0x410] sm:$0xff] }
 0x409   :  { %15966 = vst [vmem:[#allocation331_spill] sm:$0xff] %v12437_v31  ;;  %v12455_v31 = vpop.f32.mrf.mxu1 }
 0x40a   :  { %8612 = vmatmul.msk.f32.gmra.mxu3 %vm617_vm1, %v606_v39  ;;  %v373_v39 = vld [vmem:[%s15488_s0 + $0xa68] sm:$0xff] }
 0x40b   :  { %8175 = vmatmul.msk.f32.gmra.mxu0 %vm617_vm1, %v169_v15 }
 0x40c   :  { %8476 = vmatmul.msk.f32.gmra.mxu2 %vm617_vm1, %v470_v32  ;;  %v607_v32 = vld [vmem:[%s15488_s0 + $0x11b8] sm:$0xff] }
 0x40d   :  { %v12468_v18 = vpop.f32.mrf.mxu3  ;;  %8379 = vmatmul.msk.f32.gmra.mxu1 %vm617_vm1, %v373_v39  ;;  %v472_v39 = vld [vmem:[%s15488_s0 + $0xd80] sm:$0xff] }
 0x40e   :  { %15970 = vst [vmem:[#allocation335_spill] sm:$0xff] %v12468_v18 }
 0x40f   :  { %v12472_v35 = vpop.f32.mrf.mxu2 }
 0x410   :  { %v12463_v15 = vpop.f32.mrf.mxu0  ;;  %15971 = vst [vmem:[#allocation336_spill] sm:$0xff] %v12472_v35  ;;  %v171_v35 = vld [vmem:[%s15488_s0 + $0x418] sm:$0xff] }
 0x411   :  { %15969 = vst [vmem:[#allocation334_spill] sm:$0xff] %v12463_v15  ;;  %v12486_v18 = vpop.f32.mrf.mxu1  ;;  %v374_v15 = vld [vmem:[%s15488_s0 + $0xa70] sm:$0xff] }
 0x412   :  { %8613 = vmatmul.msk.f32.gmra.mxu3 %vm617_vm1, %v607_v32 }
 0x413   :  { %8176 = vmatmul.msk.f32.gmra.mxu0 %vm617_vm1, %v170_v6 }
 0x414   :  { %8477 = vmatmul.msk.f32.gmra.mxu2 %vm617_vm1, %v471_v3  ;;  %v608_v3 = vld [vmem:[%s15488_s0 + $0x11c0] sm:$0xff] }
 0x415   :  { %v12494_v46 = vpop.f32.mrf.mxu3  ;;  %8380 = vmatmul.msk.f32.gmra.mxu1 %vm617_vm1, %v374_v15  ;;  %v375_v15 = vld [vmem:[%s15488_s0 + $0xa78] sm:$0xff] }
 0x416   :  { %15973 = vst [vmem:[#allocation338_spill] sm:$0xff] %v12494_v46 }
 0x417   :  { %v12498_v32 = vpop.f32.mrf.mxu2 }
 0x418   :  { %v12489_v6 = vpop.f32.mrf.mxu0  ;;  %15974 = vst [vmem:[#allocation339_spill] sm:$0xff] %v12498_v32 }
 0x419   :  { %15972 = vst [vmem:[#allocation337_spill] sm:$0xff] %v12489_v6  ;;  %v12518_v46 = vpop.f32.mrf.mxu1 }
 0x41a   :  { %8614 = vmatmul.msk.f32.gmra.mxu3 %vm617_vm1, %v608_v3  ;;  %v473_v3 = vld [vmem:[%s15488_s0 + $0xd88] sm:$0xff] }
 0x41b   :  { %8177 = vmatmul.msk.f32.gmra.mxu0 %vm617_vm1, %v171_v35  ;;  %v172_v35 = vld [vmem:[%s15488_s0 + $0x420] sm:$0xff] }
 0x41c   :  { %8478 = vmatmul.msk.f32.gmra.mxu2 %vm617_vm1, %v472_v39  ;;  %v609_v39 = vld [vmem:[%s15488_s0 + $0x11c8] sm:$0xff] }
 0x41d   :  { %8381 = vmatmul.msk.f32.gmra.mxu1 %vm617_vm1, %v375_v15  ;;  %v376_v15 = vld [vmem:[%s15488_s0 + $0xa80] sm:$0xff] }
 0x41f   :  { %v12520_v63 = vpop.f32.mrf.mxu2 }
 0x420   :  { %v12513_v32 = vpop.f32.mrf.mxu0  ;;  %15976 = vst [vmem:[#allocation341_spill] sm:$0xff] %v12520_v63 }
 0x421   :  { %15975 = vst [vmem:[#allocation340_spill] sm:$0xff] %v12513_v32  ;;  %v12542_v6 = vpop.f32.mrf.mxu1 }
 0x422   :  { %8615 = vmatmul.msk.f32.gmra.mxu3 %vm617_vm1, %v609_v39  ;;  %15979 = vst [vmem:[#allocation344_spill] sm:$0xff] %v12542_v6  ;;  %v610_v39 = vld [vmem:[%s15488_s0 + $0x11d0] sm:$0xff] }
 0x423   :  { %8178 = vmatmul.msk.f32.gmra.mxu0 %vm617_vm1, %v172_v35  ;;  %v173_v35 = vld [vmem:[%s15488_s0 + $0x428] sm:$0xff] }
 0x424   :  { %8479 = vmatmul.msk.f32.gmra.mxu2 %vm617_vm1, %v473_v3  ;;  %v474_v3 = vld [vmem:[%s15488_s0 + $0xd90] sm:$0xff] }
 0x425   :  { %8382 = vmatmul.msk.f32.gmra.mxu1 %vm617_vm1, %v376_v15  ;;  %v377_v15 = vld [vmem:[%s15488_s0 + $0xa88] sm:$0xff] }
 0x427   :  { %v12540_v32 = vpop.f32.mrf.mxu2 }
 0x428   :  { %v12535_v63 = vpop.f32.mrf.mxu0  ;;  %15978 = vst [vmem:[#allocation343_spill] sm:$0xff] %v12540_v32 }
 0x429   :  { %15977 = vst [vmem:[#allocation342_spill] sm:$0xff] %v12535_v63  ;;  %v12571_v38 = vpop.f32.mrf.mxu1 }
 0x42a   :  { %8616 = vmatmul.msk.f32.gmra.mxu3 %vm617_vm1, %v610_v39  ;;  %v611_v39 = vld [vmem:[%s15488_s0 + $0x11d8] sm:$0xff]  ;;  %15982 = vst [vmem:[#allocation347_spill] sm:$0xff] %v12571_v38 }
 0x42b   :  { %8179 = vmatmul.msk.f32.gmra.mxu0 %vm617_vm1, %v173_v35  ;;  %v174_v35 = vld [vmem:[%s15488_s0 + $0x430] sm:$0xff] }
 0x42c   :  { %8480 = vmatmul.msk.f32.gmra.mxu2 %vm617_vm1, %v474_v3  ;;  %v4677_v3 = vld [vmem:[%s15491_s3 + $0x10] sm:$0xff] }
 0x42d   :  { %8383 = vmatmul.msk.f32.gmra.mxu1 %vm617_vm1, %v377_v15  ;;  %v612_v15 = vld [vmem:[%s15488_s0 + $0x11e0] sm:$0xff] }
 0x42e   :  { %4803 = vmatpush.msrb.mxu1 %v4677_v3 }
 0x42f   :  { %v12562_v63 = vpop.f32.mrf.mxu2 }
 0x430   :  { %v12557_v32 = vpop.f32.mrf.mxu0  ;;  %15981 = vst [vmem:[#allocation346_spill] sm:$0xff] %v12562_v63 }
 0x431   :  { %15980 = vst [vmem:[#allocation345_spill] sm:$0xff] %v12557_v32  ;;  %v175_v32 = vld [vmem:[%s15488_s0 + $0x438] sm:$0xff] }
 0x432   :  { %8617 = vmatmul.msk.f32.gmra.mxu3 %vm617_vm1, %v611_v39  ;;  %v476_v39 = vld [vmem:[%s15488_s0 + $0xda0] sm:$0xff] }
 0x433   :  { %8180 = vmatmul.msk.f32.gmra.mxu0 %vm617_vm1, %v174_v35  ;;  %v475_v35 = vld [vmem:[%s15488_s0 + $0xd98] sm:$0xff] }
 0x434   :  { %8481 = vmatmul.msk.f32.gmra.mxu2 %vm617_vm1, %v475_v35  ;;  %v176_v35 = vld [vmem:[%s15488_s0 + $0x440] sm:$0xff] }
 0x437   :  { %v12587_v14 = vpop.f32.mrf.mxu2 }
 0x438   :  { %v12582_v63 = vpop.f32.mrf.mxu0  ;;  %15984 = vst [vmem:[#allocation349_spill] sm:$0xff] %v12587_v14 }
 0x439   :  { %15983 = vst [vmem:[#allocation348_spill] sm:$0xff] %v12582_v63 }
 0x43a   :  { %8618 = vmatmul.msk.f32.gmra.mxu3 %vm617_vm1, %v612_v15  ;;  %v477_v15 = vld [vmem:[%s15488_s0 + $0xda8] sm:$0xff] }
 0x43b   :  { %8181 = vmatmul.msk.f32.gmra.mxu0 %vm617_vm1, %v175_v32  ;;  %v613_v32 = vld [vmem:[%s15488_s0 + $0x11e8] sm:$0xff] }
 0x43c   :  { %8482 = vmatmul.msk.f32.gmra.mxu2 %vm617_vm1, %v476_v39 }
 0x43f   :  { %v12603_v14 = vpop.f32.mrf.mxu2 }
 0x440   :  { %v12598_v3 = vpop.f32.mrf.mxu0  ;;  %15986 = vst [vmem:[#allocation351_spill] sm:$0xff] %v12603_v14  ;;  %v177_v14 = vld [vmem:[%s15488_s0 + $0x448] sm:$0xff] }
 0x441   :  { %15985 = vst [vmem:[#allocation350_spill] sm:$0xff] %v12598_v3 }
 0x442   :  { %8619 = vmatmul.msk.f32.gmra.mxu3 %vm617_vm1, %v613_v32  ;;  %v478_v32 = vld [vmem:[%s15488_s0 + $0xdb0] sm:$0xff] }
 0x443   :  { %8182 = vmatmul.msk.f32.gmra.mxu0 %vm617_vm1, %v176_v35  ;;  %v614_v35 = vld [vmem:[%s15488_s0 + $0x11f0] sm:$0xff] }
 0x444   :  { %8483 = vmatmul.msk.f32.gmra.mxu2 %vm617_vm1, %v477_v15 }
 0x447   :  { %v12619_v3 = vpop.f32.mrf.mxu2 }
 0x448   :  { %v12614_v39 = vpop.f32.mrf.mxu0  ;;  %15988 = vst [vmem:[#allocation353_spill] sm:$0xff] %v12619_v3  ;;  %v178_v3 = vld [vmem:[%s15488_s0 + $0x450] sm:$0xff] }
 0x449   :  { %15987 = vst [vmem:[#allocation352_spill] sm:$0xff] %v12614_v39 }
 0x44a   :  { %8620 = vmatmul.msk.f32.gmra.mxu3 %vm617_vm1, %v614_v35  ;;  %v615_v35 = vld [vmem:[%s15488_s0 + $0x11f8] sm:$0xff] }
 0x44b   :  { %8183 = vmatmul.msk.f32.gmra.mxu0 %vm617_vm1, %v177_v14 }
 0x44c   :  { %8484 = vmatmul.msk.f32.gmra.mxu2 %vm617_vm1, %v478_v32  ;;  %v479_v32 = vld [vmem:[%s15488_s0 + $0xdb8] sm:$0xff] }
 0x44f   :  { %v12636_v14 = vpop.f32.mrf.mxu2 }
 0x450   :  { %v12630_v15 = vpop.f32.mrf.mxu0  ;;  %15990 = vst [vmem:[#allocation355_spill] sm:$0xff] %v12636_v14 }
 0x451   :  { %15989 = vst [vmem:[#allocation354_spill] sm:$0xff] %v12630_v15 }
 0x452   :  { %8621 = vmatmul.msk.f32.gmra.mxu3 %vm617_vm1, %v615_v35  ;;  %v480_v35 = vld [vmem:[%s15488_s0 + $0xdc0] sm:$0xff] }
 0x453   :  { %8184 = vmatmul.msk.f32.gmra.mxu0 %vm617_vm1, %v178_v3  ;;  %v179_v3 = vld [vmem:[%s15488_s0 + $0x458] sm:$0xff] }
 0x454   :  { %8485 = vmatmul.msk.f32.gmra.mxu2 %vm617_vm1, %v479_v32  ;;  %v180_v32 = vld [vmem:[%s15488_s0 + $0x460] sm:$0xff] }
 0x457   :  { %v12652_v14 = vpop.f32.mrf.mxu2 }
 0x458   :  { %v12646_v15 = vpop.f32.mrf.mxu0  ;;  %15992 = vst [vmem:[#allocation357_spill] sm:$0xff] %v12652_v14 }
 0x459   :  { %15991 = vst [vmem:[#allocation356_spill] sm:$0xff] %v12646_v15 }
 0x45b   :  { %8185 = vmatmul.msk.f32.gmra.mxu0 %vm617_vm1, %v179_v3  ;;  %v481_v3 = vld [vmem:[%s15488_s0 + $0xdc8] sm:$0xff] }
 0x45c   :  { %8486 = vmatmul.msk.f32.gmra.mxu2 %vm617_vm1, %v480_v35  ;;  %v181_v35 = vld [vmem:[%s15488_s0 + $0x468] sm:$0xff] }
 0x45f   :  { %v12667_v15 = vpop.f32.mrf.mxu2 }
 0x460   :  { %v12658_v39 = vpop.f32.mrf.mxu0  ;;  %15994 = vst [vmem:[#allocation359_spill] sm:$0xff] %v12667_v15 }
 0x461   :  { %15993 = vst [vmem:[#allocation358_spill] sm:$0xff] %v12658_v39 }
 0x463   :  { %8186 = vmatmul.msk.f32.gmra.mxu0 %vm617_vm1, %v180_v32  ;;  %v482_v32 = vld [vmem:[%s15488_s0 + $0xdd0] sm:$0xff] }
 0x464   :  { %8487 = vmatmul.msk.f32.gmra.mxu2 %vm617_vm1, %v481_v3  ;;  %v182_v3 = vld [vmem:[%s15488_s0 + $0x470] sm:$0xff] }
 0x467   :  { %v12685_v15 = vpop.f32.mrf.mxu2 }
 0x468   :  { %v12670_v14 = vpop.f32.mrf.mxu0  ;;  %15997 = vst [vmem:[#allocation362_spill] sm:$0xff] %v12685_v15 }
 0x469   :  { %15995 = vst [vmem:[#allocation360_spill] sm:$0xff] %v12670_v14 }
 0x46b   :  { %8187 = vmatmul.msk.f32.gmra.mxu0 %vm617_vm1, %v181_v35  ;;  %v483_v35 = vld [vmem:[%s15488_s0 + $0xdd8] sm:$0xff] }
 0x46c   :  { %8488 = vmatmul.msk.f32.gmra.mxu2 %vm617_vm1, %v482_v32  ;;  %v183_v32 = vld [vmem:[%s15488_s0 + $0x478] sm:$0xff] }
 0x470   :  { %v12680_v39 = vpop.f32.mrf.mxu0 }
 0x471   :  { %15996 = vst [vmem:[#allocation361_spill] sm:$0xff] %v12680_v39  ;;  %v12698_v39 = vpop.f32.mrf.mxu2 }
 0x472   :  { %15999 = vst [vmem:[#allocation364_spill] sm:$0xff] %v12698_v39 }
 0x473   :  { %8188 = vmatmul.msk.f32.gmra.mxu0 %vm617_vm1, %v182_v3  ;;  %v484_v3 = vld [vmem:[%s15488_s0 + $0xde0] sm:$0xff] }
 0x474   :  { %8489 = vmatmul.msk.f32.gmra.mxu2 %vm617_vm1, %v483_v35  ;;  %v184_v35 = vld [vmem:[%s15488_s0 + $0x480] sm:$0xff] }
 0x478   :  { %v12692_v14 = vpop.f32.mrf.mxu0 }
 0x479   :  { %15998 = vst [vmem:[#allocation363_spill] sm:$0xff] %v12692_v14  ;;  %v12710_v14 = vpop.f32.mrf.mxu2 }
 0x47a   :  { %16001 = vst [vmem:[#allocation366_spill] sm:$0xff] %v12710_v14 }
 0x47b   :  { %8189 = vmatmul.msk.f32.gmra.mxu0 %vm617_vm1, %v183_v32  ;;  %v485_v32 = vld [vmem:[%s15488_s0 + $0xde8] sm:$0xff] }
 0x47c   :  { %8490 = vmatmul.msk.f32.gmra.mxu2 %vm617_vm1, %v484_v3  ;;  %v185_v3 = vld [vmem:[%s15488_s0 + $0x488] sm:$0xff] }
 0x480   :  { %v12704_v15 = vpop.f32.mrf.mxu0 }
 0x481   :  { %16000 = vst [vmem:[#allocation365_spill] sm:$0xff] %v12704_v15  ;;  %v12725_v15 = vpop.f32.mrf.mxu2 }
 0x482   :  { %16003 = vst [vmem:[#allocation368_spill] sm:$0xff] %v12725_v15 }
 0x483   :  { %8190 = vmatmul.msk.f32.gmra.mxu0 %vm617_vm1, %v184_v35  ;;  %v486_v35 = vld [vmem:[%s15488_s0 + $0xdf0] sm:$0xff] }
 0x484   :  { %8491 = vmatmul.msk.f32.gmra.mxu2 %vm617_vm1, %v485_v32  ;;  %v186_v32 = vld [vmem:[%s15488_s0 + $0x490] sm:$0xff] }
 0x488   :  { %v12716_v39 = vpop.f32.mrf.mxu0 }
 0x489   :  { %16002 = vst [vmem:[#allocation367_spill] sm:$0xff] %v12716_v39  ;;  %v12743_v15 = vpop.f32.mrf.mxu2 }
 0x48a   :  { %16006 = vst [vmem:[#allocation371_spill] sm:$0xff] %v12743_v15 }
 0x48b   :  { %8191 = vmatmul.msk.f32.gmra.mxu0 %vm617_vm1, %v185_v3  ;;  %v487_v3 = vld [vmem:[%s15488_s0 + $0xdf8] sm:$0xff] }
 0x48c   :  { %8492 = vmatmul.msk.f32.gmra.mxu2 %vm617_vm1, %v486_v35  ;;  %v187_v35 = vld [vmem:[%s15488_s0 + $0x498] sm:$0xff] }
 0x490   :  { %v12728_v14 = vpop.f32.mrf.mxu0 }
 0x491   :  { %16004 = vst [vmem:[#allocation369_spill] sm:$0xff] %v12728_v14 }
 0x493   :  { %8192 = vmatmul.msk.f32.gmra.mxu0 %vm617_vm1, %v186_v32  ;;  %v488_v32 = vld [vmem:[%s15488_s0 + $0xe00] sm:$0xff] }
 0x494   :  { %8493 = vmatmul.msk.f32.gmra.mxu2 %vm617_vm1, %v487_v3  ;;  %v188_v3 = vld [vmem:[%s15488_s0 + $0x4a0] sm:$0xff] }
 0x498   :  { %v12738_v39 = vpop.f32.mrf.mxu0 }
 0x499   :  { %16005 = vst [vmem:[#allocation370_spill] sm:$0xff] %v12738_v39  ;;  %v12756_v39 = vpop.f32.mrf.mxu2 }
 0x49a   :  { %16008 = vst [vmem:[#allocation373_spill] sm:$0xff] %v12756_v39 }
 0x49b   :  { %8193 = vmatmul.msk.f32.gmra.mxu0 %vm617_vm1, %v187_v35  ;;  %v489_v35 = vld [vmem:[%s15488_s0 + $0xe08] sm:$0xff] }
 0x49c   :  { %8494 = vmatmul.msk.f32.gmra.mxu2 %vm617_vm1, %v488_v32  ;;  %v189_v32 = vld [vmem:[%s15488_s0 + $0x4a8] sm:$0xff] }
 0x4a0   :  { %v12750_v14 = vpop.f32.mrf.mxu0 }
 0x4a1   :  { %16007 = vst [vmem:[#allocation372_spill] sm:$0xff] %v12750_v14  ;;  %v12768_v14 = vpop.f32.mrf.mxu2 }
 0x4a2   :  { %16010 = vst [vmem:[#allocation375_spill] sm:$0xff] %v12768_v14 }
 0x4a3   :  { %8194 = vmatmul.msk.f32.gmra.mxu0 %vm617_vm1, %v188_v3  ;;  %v490_v3 = vld [vmem:[%s15488_s0 + $0xe10] sm:$0xff] }
 0x4a4   :  { %8495 = vmatmul.msk.f32.gmra.mxu2 %vm617_vm1, %v489_v35  ;;  %v190_v35 = vld [vmem:[%s15488_s0 + $0x4b0] sm:$0xff] }
 0x4a8   :  { %v12762_v15 = vpop.f32.mrf.mxu0 }
 0x4a9   :  { %16009 = vst [vmem:[#allocation374_spill] sm:$0xff] %v12762_v15  ;;  %v3663_v15 = vpop.f32.mrf.mxu2 }
 0x4ab   :  { %8195 = vmatmul.msk.f32.gmra.mxu0 %vm617_vm1, %v189_v32  ;;  %v491_v32 = vld [vmem:[%s15488_s0 + $0xe18] sm:$0xff] }
 0x4ac   :  { %8496 = vmatmul.msk.f32.gmra.mxu2 %vm617_vm1, %v490_v3  ;;  %v191_v3 = vld [vmem:[%s15488_s0 + $0x4b8] sm:$0xff] }
 0x4b0   :  { %v12774_v39 = vpop.f32.mrf.mxu0 }
 0x4b1   :  { %16011 = vst [vmem:[#allocation376_spill] sm:$0xff] %v12774_v39  ;;  %v492_v39 = vld [vmem:[%s15488_s0 + $0xe20] sm:$0xff]  ;;  %v3666_v63 = vpop.f32.mrf.mxu2 }
 0x4b3   :  { %8196 = vmatmul.msk.f32.gmra.mxu0 %vm617_vm1, %v190_v35 }
 0x4b4   :  { %8497 = vmatmul.msk.f32.gmra.mxu2 %vm617_vm1, %v491_v32  ;;  %v192_v32 = vld [vmem:[%s15488_s0 + $0x4c0] sm:$0xff] }
 0x4b8   :  { %v12784_v14 = vpop.f32.mrf.mxu0 }
 0x4b9   :  { %16012 = vst [vmem:[#allocation377_spill] sm:$0xff] %v12784_v14  ;;  %v493_v14 = vld [vmem:[%s15488_s0 + $0xe28] sm:$0xff] }
 0x4bb   :  { %8197 = vmatmul.msk.f32.gmra.mxu0 %vm617_vm1, %v191_v3 }
 0x4bc   :  { %8498 = vmatmul.msk.f32.gmra.mxu2 %vm617_vm1, %v492_v39  ;;  %v193_v39 = vld [vmem:[%s15488_s0 + $0x4c8] sm:$0xff] }
 0x4c0   :  { %v12794_v35 = vpop.f32.mrf.mxu0 }
 0x4c1   :  { %16013 = vst [vmem:[#allocation378_spill] sm:$0xff] %v12794_v35  ;;  %v3669_v35 = vpop.f32.mrf.mxu2 }
 0x4c3   :  { %8198 = vmatmul.msk.f32.gmra.mxu0 %vm617_vm1, %v192_v32 }
 0x4c4   :  { %8499 = vmatmul.msk.f32.gmra.mxu2 %vm617_vm1, %v493_v14  ;;  %v194_v14 = vld [vmem:[%s15488_s0 + $0x4d0] sm:$0xff] }
 0x4c8   :  { %v12804_v3 = vpop.f32.mrf.mxu0 }
 0x4c9   :  { %16014 = vst [vmem:[#allocation379_spill] sm:$0xff] %v12804_v3  ;;  %v3672_v3 = vpop.f32.mrf.mxu2 }
 0x4cb   :  { %8199 = vmatmul.msk.f32.gmra.mxu0 %vm617_vm1, %v193_v39  ;;  %v495_v39 = vld [vmem:[%s15488_s0 + $0xe38] sm:$0xff] }
 0x4cc   :  { %8500 = vmatmul.msk.f32.gmra.mxu2 %vm617_vm1, %v494_v58  ;;  %v195_v58 = vld [vmem:[%s15488_s0 + $0x4d8] sm:$0xff] }
 0x4d0   :  { %v12814_v32 = vpop.f32.mrf.mxu0 }
 0x4d1   :  { %16015 = vst [vmem:[#allocation380_spill] sm:$0xff] %v12814_v32  ;;  %v496_v32 = vld [vmem:[%s15488_s0 + $0xe40] sm:$0xff] }
 0x4d3   :  { %8200 = vmatmul.msk.f32.gmra.mxu0 %vm617_vm1, %v194_v14  ;;  %v3675_v14 = vpop.f32.mrf.mxu2 }
 0x4d4   :  { %8501 = vmatmul.msk.f32.gmra.mxu2 %vm617_vm1, %v495_v39  ;;  %v196_v39 = vld [vmem:[%s15488_s0 + $0x4e0] sm:$0xff] }
 0x4d8   :  { %v12824_v4 = vpop.f32.mrf.mxu0 }
 0x4d9   :  { %16016 = vst [vmem:[#allocation381_spill] sm:$0xff] %v12824_v4  ;;  %v4675_v4 = vld [vmem:[%s15491_s3] sm:$0xff] }
 0x4da   :  { %5036 = vmatpush.msrb.mxu2 %v4675_v4 }
 0x4db   :  { %8201 = vmatmul.msk.f32.gmra.mxu0 %vm617_vm1, %v195_v58 }
 0x4dc   :  { %8502 = vmatmul.msk.f32.gmra.mxu2 %vm617_vm1, %v496_v32  ;;  %v3678_v32 = vpop.f32.mrf.mxu2 }
 0x4e0   :  { %v12834_v42 = vpop.f32.mrf.mxu0 }
 0x4e1   :  { %16017 = vst [vmem:[#allocation382_spill] sm:$0xff] %v12834_v42 }
 0x4e3   :  { %8202 = vmatmul.msk.f32.gmra.mxu0 %vm617_vm1, %v196_v39  ;;  %v198_v39 = vld [vmem:[%s15488_s0 + $0x4f0] sm:$0xff] }
 0x4e4   :  { %v12854_v25 = vpop.f32.mrf.mxu2 }
 0x4e8   :  { %v12843_v58 = vpop.f32.mrf.mxu0 }
 0x4e9   :  { %16018 = vst [vmem:[#allocation383_spill] sm:$0xff] %v12843_v58  ;;  %v199_v58 = vld [vmem:[%s15488_s0 + $0x4f8] sm:$0xff] }
 0x4eb   :  { %8203 = vmatmul.msk.f32.gmra.mxu0 %vm617_vm1, %v197_v59  ;;  %v4239_v59 = vmax.f32 %v11777_v22, %v3663_v15  ;;  %v4240_v22 = vmax.f32 %v11809_v7, %v3666_v63  ;;  %v202_v63 = vld [vmem:[%s15488_s0 + $0x510] sm:$0xff] }
 0x4ec   :  { %v12863_v38 = vpop.f32.mrf.mxu2 }
 0x4f0   :  { %v12849_v42 = vpop.f32.mrf.mxu0 }
 0x4f1   :  { %16019 = vst [vmem:[#allocation384_spill] sm:$0xff] %v12849_v42 }
 0x4f3   :  { %8204 = vmatmul.msk.f32.gmra.mxu0 %vm617_vm1, %v198_v39  ;;  %v12873_v39 = vld [vmem:[%s15490_s2] ss:$0 sm:$0xff] }
 0x4f4   :  { %v12878_v15 = vpop.f32.mrf.mxu2 }
 0x4f8   :  { %v12857_v4 = vpop.f32.mrf.mxu0 }
 0x4f9   :  { %16020 = vst [vmem:[#allocation385_spill] sm:$0xff] %v12857_v4 }
 0x4fb   :  { %8205 = vmatmul.msk.f32.gmra.mxu0 %vm617_vm1, %v199_v58 }
 0x500   :  { %v2799_v42 = vpop.f32.mrf.mxu0 }
 0x501   :  { %v4095_v11 = vmax.f32 %v9846_v17, %v2799_v42  ;;  %v201_v17 = vld [vmem:[%s15488_s0 + $0x508] sm:$0xff] }
 0x503   :  { %v4383_v4 = vmax.f32 %v4095_v11, %v4239_v59  ;;  %8206 = vmatmul.msk.f32.gmra.mxu0 %vm617_vm1, %v200_v50  ;;  %v4241_v11 = vmax.f32 %v11841_v0, %v3669_v35 }
 0x505   :  { %v4531_v58 = vadd.f32 %v12873_v39, %v4383_v4  ;;  %v12892_v4 = vpop.f32.mrf.mxu2 }
 0x507   :  { %8658 = vmatmul.msk.f32.vlgmr.msrb.gmra.mxu2 %vm4679_vm2, %v4531_v58 }
 0x508   :  { %v2802_v6 = vpop.f32.mrf.mxu0 }
 0x509   :  { %v4096_v42 = vmax.f32 %v9856_v20, %v2802_v6  ;;  %v203_v6 = vld [vmem:[%s15488_s0 + $0x518] sm:$0xff] }
 0x50b   :  { %v4384_v2 = vmax.f32 %v4096_v42, %v4240_v22  ;;  %8207 = vmatmul.msk.f32.gmra.mxu0 %vm617_vm1, %v201_v17  ;;  %v4243_v42 = vmax.f32 %v11905_v30, %v3675_v14  ;;  %v205_v14 = vld [vmem:[%s15488_s0 + $0x528] sm:$0xff] }
 0x50d   :  { %v4532_v50 = vadd.f32 %v12873_v39, %v4384_v2  ;;  %v4242_v2 = vmax.f32 %v11874_v48, %v3672_v3  ;;  %v12903_v22 = vpop.f32.mrf.mxu2  ;;  %v204_v3 = vld [vmem:[%s15488_s0 + $0x520] sm:$0xff] }
 0x50f   :  { %8659 = vmatmul.msk.f32.gmra.mxu2 %vm4679_vm2, %v4532_v50 }
 0x510   :  { %v2805_v7 = vpop.f32.mrf.mxu0 }
 0x511   :  { %v4097_v59 = vmax.f32 %v9866_v23, %v2805_v7 }
 0x513   :  { %v4385_v58 = vmax.f32 %v4097_v59, %v4241_v11  ;;  %8208 = vmatmul.msk.f32.gmra.mxu0 %vm617_vm1, %v202_v63  ;;  %v4244_v63 = vmax.f32 %v11937_v60, %v3678_v32  ;;  %v206_v32 = vld [vmem:[%s15488_s0 + $0x530] sm:$0xff] }
 0x515   :  { %v4533_v20 = vadd.f32 %v12873_v39, %v4385_v58 }
 0x517   :  { %8660 = vmatmul.msk.f32.gmra.mxu2 %vm4679_vm2, %v4533_v20  ;;  %v4245_v20 = vmax.f32 %v11974_v8, %v12854_v25  ;;  %v207_v8 = vld [vmem:[%s15488_s0 + $0x538] sm:$0xff] }
 0x518   :  { %v2808_v0 = vpop.f32.mrf.mxu0 }
 0x519   :  { %v4098_v35 = vmax.f32 %v9876_v26, %v2808_v0  ;;  %v12914_v26 = vpop.f32.mrf.mxu2 }
 0x51b   :  { %v4386_v17 = vmax.f32 %v4098_v35, %v4242_v2  ;;  %8209 = vmatmul.msk.f32.gmra.mxu0 %vm617_vm1, %v203_v6  ;;  %v4246_v35 = vmax.f32 %v12008_v43, %v12863_v38  ;;  %v208_v38 = vld [vmem:[%s15488_s0 + $0x540] sm:$0xff] }
 0x51d   :  { %v4534_v23 = vadd.f32 %v12873_v39, %v4386_v17 }
 0x51f   :  { %8661 = vmatmul.msk.f32.gmra.mxu2 %vm4679_vm2, %v4534_v23 }
 0x520   :  { %v2811_v48 = vpop.f32.mrf.mxu0 }
 0x521   :  { %v4099_v50 = vmax.f32 %v9886_v29, %v2811_v48  ;;  %v3699_v2 = vpop.f32.mrf.mxu2  ;;  %v4247_v48 = vmax.f32 %v12038_v54, %v12878_v15  ;;  %v209_v15 = vld [vmem:[%s15488_s0 + $0x548] sm:$0xff] }
 0x523   :  { %v4387_v11 = vmax.f32 %v4099_v50, %v4243_v42  ;;  %8210 = vmatmul.msk.f32.gmra.mxu0 %vm617_vm1, %v204_v3 }
 0x525   :  { %v4535_v7 = vadd.f32 %v12873_v39, %v4387_v11 }
 0x527   :  { %8662 = vmatmul.msk.f32.gmra.mxu2 %vm4679_vm2, %v4535_v7  ;;  %v4248_v7 = vmax.f32 %v12071_v52, %v12892_v4  ;;  %v4249_v52 = vmax.f32 %v12102_v62, %v12903_v22  ;;  %v211_v22 = vld [vmem:[%s15488_s0 + $0x558] sm:$0xff] }
 0x528   :  { %v2814_v30 = vpop.f32.mrf.mxu0 }
 0x529   :  { %v4100_v59 = vmax.f32 %v9900_v33, %v2814_v30  ;;  %v3702_v17 = vpop.f32.mrf.mxu2 }
 0x52b   :  { %v4388_v58 = vmax.f32 %v4100_v59, %v4244_v63  ;;  %8211 = vmatmul.msk.f32.gmra.mxu0 %vm617_vm1, %v205_v14  ;;  %v5146_v59 = vld [vmem:[%s15491_s3 + $0x20] sm:$0xff] }
 0x52c   :  { %5271 = vmatpush.msrb.mxu3 %v5146_v59 }
 0x52d   :  { %v4536_v29 = vadd.f32 %v12873_v39, %v4388_v58 }
 0x52f   :  { %8663 = vmatmul.msk.f32.gmra.mxu2 %vm4679_vm2, %v4536_v29 }
 0x530   :  { %v2817_v60 = vpop.f32.mrf.mxu0 }
 0x531   :  { %v4101_v0 = vmax.f32 %v9914_v37, %v2817_v60  ;;  %v3705_v50 = vpop.f32.mrf.mxu2  ;;  %v4250_v60 = vmax.f32 %v12136_v28, %v12914_v26  ;;  %v212_v26 = vld [vmem:[%s15488_s0 + $0x560] sm:$0xff] }
 0x533   :  { %v4389_v6 = vmax.f32 %v4101_v0, %v4245_v20  ;;  %8212 = vmatmul.msk.f32.gmra.mxu0 %vm617_vm1, %v206_v32 }
 0x535   :  { %v4537_v33 = vadd.f32 %v12873_v39, %v4389_v6 }
 0x537   :  { %8664 = vmatmul.msk.f32.gmra.mxu2 %vm4679_vm2, %v4537_v33  ;;  %v4251_v33 = vmax.f32 %v12166_v55, %v3699_v2  ;;  %v213_v2 = vld [vmem:[%s15488_s0 + $0x568] sm:$0xff] }
 0x538   :  { %v2820_v25 = vpop.f32.mrf.mxu0 }
 0x539   :  { %v4102_v23 = vmax.f32 %v9928_v41, %v2820_v25 }
 0x53b   :  { %v4390_v42 = vmax.f32 %v4102_v23, %v4246_v35  ;;  %8213 = vmatmul.msk.f32.gmra.mxu0 %vm617_vm1, %v207_v8  ;;  %v4252_v23 = vmax.f32 %v12199_v24, %v3702_v17  ;;  %v214_v17 = vld [vmem:[%s15488_s0 + $0x570] sm:$0xff] }
 0x53d   :  { %v4538_v37 = vadd.f32 %v12873_v39, %v4390_v42 }
 0x53f   :  { %8665 = vmatmul.msk.f32.gmra.mxu2 %vm4679_vm2, %v4538_v37 }
 0x540   :  { %v2823_v43 = vpop.f32.mrf.mxu0 }
 0x541   :  { %v4103_v3 = vmax.f32 %v9942_v45, %v2823_v43  ;;  %v3708_v45 = vpop.f32.mrf.mxu2  ;;  %v4253_v43 = vmax.f32 %v12230_v51, %v3705_v50  ;;  %v215_v50 = vld [vmem:[%s15488_s0 + $0x578] sm:$0xff] }
 0x543   :  { %v4391_v11 = vmax.f32 %v4103_v3, %v4247_v48  ;;  %8214 = vmatmul.msk.f32.gmra.mxu0 %vm617_vm1, %v208_v38 }
 0x545   :  { %v4539_v41 = vadd.f32 %v12873_v39, %v4391_v11 }
 0x547   :  { %8666 = vmatmul.msk.f32.gmra.mxu2 %vm4679_vm2, %v4539_v41  ;;  %v4254_v41 = vmax.f32 %v12264_v21, %v3708_v45 }
 0x548   :  { %v2826_v54 = vpop.f32.mrf.mxu0 }
 0x549   :  { %v4104_v63 = vmax.f32 %v9956_v49, %v2826_v54  ;;  %v210_v49 = vld [vmem:[%s15488_s0 + $0x550] sm:$0xff]  ;;  %v3711_v32 = vpop.f32.mrf.mxu2 }
 0x54b   :  { %v4392_v30 = vmax.f32 %v4104_v63, %v4248_v7  ;;  %8215 = vmatmul.msk.f32.gmra.mxu0 %vm617_vm1, %v209_v15  ;;  %v4255_v15 = vmax.f32 %v12294_v12, %v3711_v32 }
 0x54d   :  { %v4540_v14 = vadd.f32 %v12873_v39, %v4392_v30  ;;  %v216_v30 = vld [vmem:[%s15488_s0 + $0x580] sm:$0xff] }
 0x54f   :  { %8667 = vmatmul.msk.f32.gmra.mxu2 %vm4679_vm2, %v4540_v14 }
 0x550   :  { %v2829_v4 = vpop.f32.mrf.mxu0 }
 0x551   :  { %v4105_v58 = vmax.f32 %v9970_v53, %v2829_v4  ;;  %v3714_v35 = vpop.f32.mrf.mxu2 }
 0x552   :  { %v4256_v59 = vmax.f32 %v12327_v36, %v3714_v35  ;;  %v220_v35 = vld [vmem:[%s15488_s0 + $0x5a0] sm:$0xff] }
 0x553   :  { %v4393_v29 = vmax.f32 %v4105_v58, %v4249_v52  ;;  %8216 = vmatmul.msk.f32.gmra.mxu0 %vm617_vm1, %v210_v49  ;;  %v217_v52 = vld [vmem:[%s15488_s0 + $0x588] sm:$0xff] }
 0x555   :  { %v4541_v20 = vadd.f32 %v12873_v39, %v4393_v29 }
 0x557   :  { %8668 = vmatmul.msk.f32.gmra.mxu2 %vm4679_vm2, %v4541_v20  ;;  %v218_v20 = vld [vmem:[%s15488_s0 + $0x590] sm:$0xff] }
 0x558   :  { %v2832_v62 = vpop.f32.mrf.mxu0 }
 0x559   :  { %v4106_v0 = vmax.f32 %v9984_v57, %v2832_v62  ;;  %v3717_v37 = vpop.f32.mrf.mxu2 }
 0x55a   :  { %v4257_v29 = vmax.f32 %v12358_v16, %v3717_v37 }
 0x55b   :  { %v4394_v6 = vmax.f32 %v4106_v0, %v4250_v60  ;;  %8217 = vmatmul.msk.f32.gmra.mxu0 %vm617_vm1, %v211_v22  ;;  %v219_v0 = vld [vmem:[%s15488_s0 + $0x598] sm:$0xff] }
 0x55d   :  { %v4542_v53 = vadd.f32 %v12873_v39, %v4394_v6 }
 0x55f   :  { %8669 = vmatmul.msk.f32.gmra.mxu2 %vm4679_vm2, %v4542_v53 }
 0x560   :  { %v2835_v28 = vpop.f32.mrf.mxu0 }
 0x561   :  { %v4107_v25 = vmax.f32 %v9998_v61, %v2835_v28 }
 0x563   :  { %v4395_v8 = vmax.f32 %v4107_v25, %v4251_v33  ;;  %8218 = vmatmul.msk.f32.gmra.mxu0 %vm617_vm1, %v212_v26 }
 0x565   :  { %v4543_v57 = vadd.f32 %v12873_v39, %v4395_v8 }
 0x567   :  { %8670 = vmatmul.msk.f32.gmra.mxu2 %vm4679_vm2, %v4543_v57 }
 0x568   :  { %v2838_v55 = vpop.f32.mrf.mxu0 }
 0x569   :  { %v4108_v42 = vmax.f32 %v10012_v1, %v2838_v55  ;;  %v3720_v1 = vpop.f32.mrf.mxu2  ;;  %v221_v55 = vld [vmem:[%s15488_s0 + $0x5a8] sm:$0xff] }
 0x56a   :  { %v4258_v22 = vmax.f32 %v12392_v44, %v3720_v1  ;;  %v13048_v44 = vpop.f32.mrf.mxu1  ;;  %v223_v1 = vld [vmem:[%s15488_s0 + $0x5b8] sm:$0xff] }
 0x56b   :  { %v4396_v48 = vmax.f32 %v4108_v42, %v4252_v23  ;;  %8219 = vmatmul.msk.f32.gmra.mxu0 %vm617_vm1, %v213_v2 }
 0x56d   :  { %v4544_v61 = vadd.f32 %v12873_v39, %v4396_v48 }
 0x56f   :  { %8671 = vmatmul.msk.f32.gmra.mxu2 %vm4679_vm2, %v4544_v61  ;;  %v222_v61 = vld [vmem:[%s15488_s0 + $0x5b0] sm:$0xff] }
 0x570   :  { %v2841_v24 = vpop.f32.mrf.mxu0 }
 0x571   :  { %v4109_v38 = vmax.f32 %v10026_v5, %v2841_v24  ;;  %v3723_v63 = vpop.f32.mrf.mxu2 }
 0x572   :  { %v4259_v28 = vmax.f32 %v12422_v10, %v3723_v63  ;;  %v3312_v42 = vpop.f32.mrf.mxu1  ;;  %v16023_v63 = vld [vmem:[#allocation17_spill] sm:$0xff] }
 0x573   :  { %v4397_v3 = vmax.f32 %v4109_v38, %v4253_v43  ;;  %8220 = vmatmul.msk.f32.gmra.mxu0 %vm617_vm1, %v214_v17 }
 0x575   :  { %v4545_v11 = vadd.f32 %v12873_v39, %v4397_v3 }
 0x577   :  { %8672 = vmatmul.msk.f32.gmra.mxu2 %vm4679_vm2, %v4545_v11  ;;  %v16021_v11 = vld [vmem:[#allocation14_spill] sm:$0xff] }
 0x578   :  { %v2844_v51 = vpop.f32.mrf.mxu0 }
 0x579   :  { %v4110_v7 = vmax.f32 %v10040_v9, %v2844_v51  ;;  %v3726_v4 = vpop.f32.mrf.mxu2 }
 0x57a   :  { %v4260_v57 = vmax.f32 %v12455_v31, %v3726_v4  ;;  %v3315_v17 = vpop.f32.mrf.mxu1  ;;  %v16025_v4 = vld [vmem:[#allocation347_spill] sm:$0xff] }
 0x57b   :  { %v4398_v54 = vmax.f32 %v4110_v7, %v4254_v41  ;;  %8221 = vmatmul.msk.f32.gmra.mxu0 %vm617_vm1, %v215_v50 }
 0x57d   :  { %v4546_v5 = vadd.f32 %v12873_v39, %v4398_v54  ;;  %v16022_v54 = vld [vmem:[#allocation344_spill] sm:$0xff] }
 0x57f   :  { %8673 = vmatmul.msk.f32.gmra.mxu2 %vm4679_vm2, %v4546_v5 }
 0x580   :  { %v2847_v21 = vpop.f32.mrf.mxu0 }
 0x581   :  { %v4111_v45 = vmax.f32 %v10054_v13, %v2847_v21  ;;  %v3729_v32 = vpop.f32.mrf.mxu2 }
 0x582   :  { %v4261_v48 = vmax.f32 %v12486_v18, %v3729_v32  ;;  %v3318_v7 = vpop.f32.mrf.mxu1  ;;  %v226_v32 = vld [vmem:[%s15488_s0 + $0x5d0] sm:$0xff] }
 0x583   :  { %v4399_v14 = vmax.f32 %v4111_v45, %v4255_v15  ;;  %8222 = vmatmul.msk.f32.gmra.mxu0 %vm617_vm1, %v216_v30  ;;  %v224_v15 = vld [vmem:[%s15488_s0 + $0x5c0] sm:$0xff] }
 0x585   :  { %v4547_v9 = vadd.f32 %v12873_v39, %v4399_v14 }
 0x587   :  { %8674 = vmatmul.msk.f32.gmra.mxu2 %vm4679_vm2, %v4547_v9 }
 0x588   :  { %v2850_v12 = vpop.f32.mrf.mxu0 }
 0x589   :  { %v4112_v49 = vmax.f32 %v10070_v19, %v2850_v12  ;;  %v225_v12 = vld [vmem:[%s15488_s0 + $0x5c8] sm:$0xff] }
 0x58a   :  { %v3321_v9 = vpop.f32.mrf.mxu1 }
 0x58b   :  { %v4400_v58 = vmax.f32 %v4112_v49, %v4256_v59  ;;  %8223 = vmatmul.msk.f32.gmra.mxu0 %vm617_vm1, %v217_v52  ;;  %v16024_v52 = vld [vmem:[#allocation10_spill] sm:$0xff] }
 0x58c   :  { %v4264_v49 = vmax.f32 %v16025_v4, %v16024_v52  ;;  %v16038_v4 = vld [vmem:[#allocation38_spill] sm:$0xff] }
 0x58d   :  { %v4548_v13 = vadd.f32 %v12873_v39, %v4400_v58  ;;  %v16026_v58 = vld [vmem:[#allocation20_spill] sm:$0xff] }
 0x58f   :  { %8675 = vmatmul.msk.f32.gmra.mxu2 %vm4679_vm2, %v4548_v13 }
 0x590   :  { %v2853_v36 = vpop.f32.mrf.mxu0 }
 0x591   :  { %v4113_v60 = vmax.f32 %v10086_v27, %v2853_v36  ;;  %v3732_v27 = vpop.f32.mrf.mxu2 }
 0x592   :  { %v4262_v3 = vmax.f32 %v12518_v46, %v3732_v27 }
 0x593   :  { %v4401_v62 = vmax.f32 %v4113_v60, %v4257_v29  ;;  %8224 = vmatmul.msk.f32.gmra.mxu0 %vm617_vm1, %v218_v20 }
 0x595   :  { %v4549_v19 = vadd.f32 %v12873_v39, %v4401_v62  ;;  %v16027_v62 = vld [vmem:[#allocation12_spill] sm:$0xff] }
 0x597   :  { %8676 = vmatmul.msk.f32.gmra.mxu2 %vm4679_vm2, %v4549_v19  ;;  %v4265_v19 = vmax.f32 %v13048_v44, %v16027_v62  ;;  %v16030_v44 = vld [vmem:[#allocation26_spill] sm:$0xff] }
 0x598   :  { %v2856_v16 = vpop.f32.mrf.mxu0 }
 0x599   :  { %v4114_v6 = vmax.f32 %v10102_v34, %v2856_v16  ;;  %v3735_v23 = vpop.f32.mrf.mxu2 }
 0x59a   :  { %v4263_v5 = vmax.f32 %v16022_v54, %v3735_v23  ;;  %v230_v54 = vld [vmem:[%s15488_s0 + $0x5f0] sm:$0xff] }
 0x59b   :  { %v4402_v53 = vmax.f32 %v4114_v6, %v4258_v22  ;;  %8225 = vmatmul.msk.f32.gmra.mxu0 %vm617_vm1, %v219_v0  ;;  %v16028_v22 = vld [vmem:[#allocation23_spill] sm:$0xff]  ;;  %v3324_v0 = vpop.f32.mrf.mxu1 }
 0x59d   :  { %v4550_v33 = vadd.f32 %v12873_v39, %v4402_v53 }
 0x59f   :  { %8677 = vmatmul.msk.f32.gmra.mxu2 %vm4679_vm2, %v4550_v33  ;;  %v227_v33 = vld [vmem:[%s15488_s0 + $0x5d8] sm:$0xff] }
 0x5a0   :  { %v2859_v26 = vpop.f32.mrf.mxu0 }
 0x5a1   :  { %v4115_v25 = vmax.f32 %v10118_v40, %v2859_v26  ;;  %v13069_v43 = vpop.f32.mrf.mxu2 }
 0x5a3   :  { %v4403_v34 = vmax.f32 %v4115_v25, %v4259_v28  ;;  %8226 = vmatmul.msk.f32.gmra.mxu0 %vm617_vm1, %v220_v35  ;;  %v16029_v28 = vld [vmem:[#allocation15_spill] sm:$0xff] }
 0x5a4   :  { %v4266_v26 = vmax.f32 %v3312_v42, %v16029_v28  ;;  %v16032_v42 = vld [vmem:[#allocation29_spill] sm:$0xff] }
 0x5a5   :  { %v4551_v8 = vadd.f32 %v12873_v39, %v4403_v34 }
 0x5a7   :  { %8678 = vmatmul.msk.f32.gmra.mxu2 %vm4679_vm2, %v4551_v8  ;;  %v3327_v8 = vpop.f32.mrf.mxu1 }
 0x5a8   :  { %v2862_v10 = vpop.f32.mrf.mxu0 }
 0x5a9   :  { %v4116_v2 = vmax.f32 %v10134_v47, %v2862_v10  ;;  %v13080_v51 = vpop.f32.mrf.mxu2  ;;  %v228_v10 = vld [vmem:[%s15488_s0 + $0x5e0] sm:$0xff] }
 0x5ab   :  { %v4404_v37 = vmax.f32 %v4116_v2, %v4260_v57  ;;  %8227 = vmatmul.msk.f32.gmra.mxu0 %vm617_vm1, %v221_v55  ;;  %v16031_v55 = vld [vmem:[#allocation18_spill] sm:$0xff] }
 0x5ac   :  { %v4267_v2 = vmax.f32 %v3315_v17, %v16031_v55  ;;  %v16034_v17 = vld [vmem:[#allocation32_spill] sm:$0xff]  ;;  %v234_v55 = vld [vmem:[%s15488_s0 + $0x610] sm:$0xff] }
 0x5ad   :  { %v4552_v40 = vadd.f32 %v12873_v39, %v4404_v37 }
 0x5af   :  { %8679 = vmatmul.msk.f32.gmra.mxu2 %vm4679_vm2, %v4552_v40 }
 0x5b0   :  { %v2865_v31 = vpop.f32.mrf.mxu0 }
 0x5b1   :  { %v4117_v24 = vmax.f32 %v10156_v56, %v2865_v31  ;;  %v13091_v45 = vpop.f32.mrf.mxu2 }
 0x5b3   :  { %v4405_v47 = vmax.f32 %v4117_v24, %v4261_v48  ;;  %8228 = vmatmul.msk.f32.gmra.mxu0 %vm617_vm1, %v222_v61  ;;  %v3330_v61 = vpop.f32.mrf.mxu1 }
 0x5b5   :  { %v4553_v38 = vadd.f32 %v12873_v39, %v4405_v47  ;;  %v229_v47 = vld [vmem:[%s15488_s0 + $0x5e8] sm:$0xff] }
 0x5b7   :  { %8680 = vmatmul.msk.f32.gmra.mxu2 %vm4679_vm2, %v4553_v38  ;;  %v16033_v38 = vld [vmem:[#allocation21_spill] sm:$0xff] }
 0x5b8   :  { %v2868_v18 = vpop.f32.mrf.mxu0 }
 0x5b9   :  { %v4118_v41 = vmax.f32 %v16021_v11, %v2868_v18  ;;  %v13103_v20 = vpop.f32.mrf.mxu2 }
 0x5bb   :  { %v4406_v56 = vmax.f32 %v4118_v41, %v4262_v3  ;;  %8229 = vmatmul.msk.f32.gmra.mxu0 %vm617_vm1, %v223_v1  ;;  %v4268_v3 = vmax.f32 %v3318_v7, %v16033_v38  ;;  %v16036_v7 = vld [vmem:[#allocation35_spill] sm:$0xff] }
 0x5bd   :  { %v4554_v50 = vadd.f32 %v12873_v39, %v4406_v56  ;;  %v3333_v56 = vpop.f32.mrf.mxu1 }
 0x5bf   :  { %8681 = vmatmul.msk.f32.gmra.mxu2 %vm4679_vm2, %v4554_v50 }
 0x5c0   :  { %v2871_v46 = vpop.f32.mrf.mxu0 }
 0x5c1   :  { %v4119_v21 = vmax.f32 %v16023_v63, %v2871_v46  ;;  %v13119_v35 = vpop.f32.mrf.mxu2 }
 0x5c3   :  { %v4407_v30 = vmax.f32 %v4119_v21, %v4263_v5  ;;  %8230 = vmatmul.msk.f32.gmra.mxu0 %vm617_vm1, %v224_v15  ;;  %v16035_v5 = vld [vmem:[#allocation24_spill] sm:$0xff] }
 0x5c4   :  { %v4269_v46 = vmax.f32 %v3321_v9, %v16035_v5 }
 0x5c5   :  { %v4555_v14 = vadd.f32 %v12873_v39, %v4407_v30 }
 0x5c7   :  { %8682 = vmatmul.msk.f32.gmra.mxu2 %vm4679_vm2, %v4555_v14 }
 0x5c8   :  { %v2874_v59 = vpop.f32.mrf.mxu0 }
 0x5c9   :  { %v4120_v13 = vmax.f32 %v16026_v58, %v2874_v59  ;;  %v13130_v40 = vpop.f32.mrf.mxu2  ;;  %v231_v59 = vld [vmem:[%s15488_s0 + $0x5f8] sm:$0xff] }
 0x5cb   :  { %v4408_v29 = vmax.f32 %v4120_v13, %v4264_v49  ;;  %8231 = vmatmul.msk.f32.gmra.mxu0 %vm617_vm1, %v225_v12  ;;  %v16037_v12 = vld [vmem:[#allocation27_spill] sm:$0xff]  ;;  %v3336_v49 = vpop.f32.mrf.mxu1 }
 0x5cc   :  { %v4270_v52 = vmax.f32 %v3324_v0, %v16037_v12 }
 0x5cd   :  { %v4556_v36 = vadd.f32 %v12873_v39, %v4408_v29 }
 0x5cf   :  { %8683 = vmatmul.msk.f32.gmra.mxu2 %vm4679_vm2, %v4556_v36  ;;  %v232_v36 = vld [vmem:[%s15488_s0 + $0x600] sm:$0xff] }
 0x5d0   :  { %v2877_v60 = vpop.f32.mrf.mxu0 }
 0x5d1   :  { %v4121_v16 = vmax.f32 %v16028_v22, %v2877_v60  ;;  %v13141_v11 = vpop.f32.mrf.mxu2  ;;  %v16039_v60 = vld [vmem:[#allocation30_spill] sm:$0xff] }
 0x5d3   :  { %v4409_v6 = vmax.f32 %v4121_v16, %v4265_v19  ;;  %8232 = vmatmul.msk.f32.gmra.mxu0 %vm617_vm1, %v226_v32  ;;  %v4271_v32 = vmax.f32 %v3327_v8, %v16039_v60  ;;  %v16040_v19 = vld [vmem:[#allocation41_spill] sm:$0xff]  ;;  %v3339_v0 = vpop.f32.mrf.mxu1 }
 0x5d5   :  { %v4557_v53 = vadd.f32 %v12873_v39, %v4409_v6 }
 0x5d7   :  { %8684 = vmatmul.msk.f32.gmra.mxu2 %vm4679_vm2, %v4557_v53 }
 0x5d8   :  { %v2880_v27 = vpop.f32.mrf.mxu0 }
 0x5d9   :  { %v4122_v25 = vmax.f32 %v16030_v44, %v2880_v27  ;;  %v13152_v30 = vpop.f32.mrf.mxu2  ;;  %v233_v27 = vld [vmem:[%s15488_s0 + $0x608] sm:$0xff] }
 0x5db   :  { %v4410_v34 = vmax.f32 %v4122_v25, %v4266_v26  ;;  %8233 = vmatmul.msk.f32.gmra.mxu0 %vm617_vm1, %v227_v33  ;;  %v16041_v33 = vld [vmem:[#allocation33_spill] sm:$0xff]  ;;  %v16042_v26 = vld [vmem:[#allocation44_spill] sm:$0xff] }
 0x5dc   :  { %v4272_v28 = vmax.f32 %v3330_v61, %v16041_v33 }
 0x5dd   :  { %v4558_v57 = vadd.f32 %v12873_v39, %v4410_v34 }
 0x5df   :  { %8685 = vmatmul.msk.f32.gmra.mxu2 %vm4679_vm2, %v4558_v57  ;;  %v3342_v57 = vpop.f32.mrf.mxu1 }
 0x5e0   :  { %v2883_v23 = vpop.f32.mrf.mxu0 }
 0x5e1   :  { %v4123_v37 = vmax.f32 %v16032_v42, %v2883_v23  ;;  %v13167_v62 = vpop.f32.mrf.mxu2  ;;  %v5418_v23 = vld [vmem:[%s15491_s3 + $0x38] sm:$0xff] }
 0x5e2   :  { %5541 = vmatpush.msra.mxu1 %v5418_v23 }
 0x5e3   :  { %v4411_v48 = vmax.f32 %v4123_v37, %v4267_v2  ;;  %8234 = vmatmul.msk.f32.gmra.mxu0 %vm617_vm1, %v228_v10  ;;  %v16043_v2 = vld [vmem:[#allocation36_spill] sm:$0xff]  ;;  %v16044_v37 = vld [vmem:[#allocation47_spill] sm:$0xff] }
 0x5e4   :  { %v4273_v42 = vmax.f32 %v3333_v56, %v16043_v2 }
 0x5e5   :  { %v4559_v31 = vadd.f32 %v12873_v39, %v4411_v48 }
 0x5e7   :  { %8686 = vmatmul.msk.f32.gmra.mxu2 %vm4679_vm2, %v4559_v31 }
 0x5e8   :  { %v2886_v24 = vpop.f32.mrf.mxu0 }
 0x5e9   :  { %v4124_v18 = vmax.f32 %v16034_v17, %v2886_v24  ;;  %v13178_v25 = vpop.f32.mrf.mxu2  ;;  %v16045_v17 = vld [vmem:[#allocation39_spill] sm:$0xff] }
 0x5eb   :  { %v4412_v1 = vmax.f32 %v4124_v18, %v4268_v3  ;;  %8235 = vmatmul.msk.f32.gmra.mxu0 %vm617_vm1, %v229_v47  ;;  %v3345_v47 = vpop.f32.mrf.mxu1  ;;  %v235_v3 = vld [vmem:[%s15488_s0 + $0x618] sm:$0xff]  ;;  %v4274_v18 = vmax.f32 %v3336_v49, %v16045_v17  ;;  %v241_v17 = vld [vmem:[%s15488_s0 + $0x648] sm:$0xff] }
 0x5ed   :  { %v4560_v41 = vadd.f32 %v12873_v39, %v4412_v1  ;;  %v16046_v1 = vld [vmem:[#allocation50_spill] sm:$0xff] }
 0x5ef   :  { %8687 = vmatmul.msk.f32.gmra.mxu2 %vm4679_vm2, %v4560_v41 }
 0x5f0   :  { %v2889_v50 = vpop.f32.mrf.mxu0 }
 0x5f1   :  { %v4125_v15 = vmax.f32 %v16036_v7, %v2889_v50  ;;  %v13192_v61 = vpop.f32.mrf.mxu2  ;;  %v16047_v7 = vld [vmem:[#allocation42_spill] sm:$0xff] }
 0x5f3   :  { %v4413_v63 = vmax.f32 %v4125_v15, %v4269_v46  ;;  %8236 = vmatmul.msk.f32.gmra.mxu0 %vm617_vm1, %v230_v54  ;;  %v236_v46 = vld [vmem:[%s15488_s0 + $0x620] sm:$0xff]  ;;  %v4275_v15 = vmax.f32 %v3339_v0, %v16047_v7  ;;  %v16052_v0 = vld [vmem:[#allocation59_spill] sm:$0xff] }
 0x5f5   :  { %v4561_v21 = vadd.f32 %v12873_v39, %v4413_v63  ;;  %v16048_v63 = vld [vmem:[#allocation53_spill] sm:$0xff] }
 0x5f7   :  { %8688 = vmatmul.msk.f32.gmra.mxu2 %vm4679_vm2, %v4561_v21 }
 0x5f8   :  { %v2892_v14 = vpop.f32.mrf.mxu0 }
 0x5f9   :  { %v4126_v9 = vmax.f32 %v16038_v4, %v2892_v14  ;;  %v13203_v54 = vpop.f32.mrf.mxu2  ;;  %v3348_v14 = vpop.f32.mrf.mxu1  ;;  %v237_v4 = vld [vmem:[%s15488_s0 + $0x628] sm:$0xff] }
 0x5fb   :  { %v4414_v58 = vmax.f32 %v4126_v9, %v4270_v52  ;;  %8237 = vmatmul.msk.f32.gmra.mxu0 %vm617_vm1, %v231_v59  ;;  %v16049_v9 = vld [vmem:[#allocation45_spill] sm:$0xff] }
 0x5fc   :  { %v4276_v49 = vmax.f32 %v3342_v57, %v16049_v9 }
 0x5fd   :  { %v4562_v13 = vadd.f32 %v12873_v39, %v4414_v58  ;;  %v16050_v58 = vld [vmem:[#allocation56_spill] sm:$0xff] }
 0x5ff   :  { %8689 = vmatmul.msk.f32.gmra.mxu2 %vm4679_vm2, %v4562_v13 }
 0x600   :  { %v2895_v29 = vpop.f32.mrf.mxu0 }
 0x601   :  { %v4127_v22 = vmax.f32 %v16040_v19, %v2895_v29  ;;  %v238_v19 = vld [vmem:[%s15488_s0 + $0x630] sm:$0xff] }
 0x603   :  { %v4415_v16 = vmax.f32 %v4127_v22, %v4271_v32  ;;  %8238 = vmatmul.msk.f32.gmra.mxu0 %vm617_vm1, %v232_v36  ;;  %v3351_v36 = vpop.f32.mrf.mxu1  ;;  %v16051_v22 = vld [vmem:[#allocation48_spill] sm:$0xff] }
 0x605   :  { %v4563_v6 = vadd.f32 %v12873_v39, %v4415_v16  ;;  %v4277_v16 = vmax.f32 %v3345_v47, %v16051_v22 }
 0x607   :  { %8690 = vmatmul.msk.f32.gmra.mxu2 %vm4679_vm2, %v4563_v6 }
 0x608   :  { %v2898_v53 = vpop.f32.mrf.mxu0 }
 0x609   :  { %v4128_v44 = vmax.f32 %v16042_v26, %v2898_v53  ;;  %v239_v26 = vld [vmem:[%s15488_s0 + $0x638] sm:$0xff] }
 0x60b   :  { %v4416_v34 = vmax.f32 %v4128_v44, %v4272_v28  ;;  %8239 = vmatmul.msk.f32.gmra.mxu0 %vm617_vm1, %v233_v27  ;;  %v3354_v33 = vpop.f32.mrf.mxu1  ;;  %v16053_v44 = vld [vmem:[#allocation51_spill] sm:$0xff] }
 0x60d   :  { %v4564_v8 = vadd.f32 %v12873_v39, %v4416_v34  ;;  %v4278_v34 = vmax.f32 %v3348_v14, %v16053_v44  ;;  %v16060_v14 = vld [vmem:[#allocation75_spill] sm:$0xff] }
 0x60f   :  { %8691 = vmatmul.msk.f32.gmra.mxu2 %vm4679_vm2, %v4564_v8  ;;  %v16054_v8 = vld [vmem:[#allocation63_spill] sm:$0xff] }
 0x610   :  { %v2901_v10 = vpop.f32.mrf.mxu0 }
 0x611   :  { %v4129_v48 = vmax.f32 %v16044_v37, %v2901_v10  ;;  %v16055_v37 = vld [vmem:[#allocation54_spill] sm:$0xff] }
 0x613   :  { %v4417_v31 = vmax.f32 %v4129_v48, %v4273_v42  ;;  %8240 = vmatmul.msk.f32.gmra.mxu0 %vm617_vm1, %v234_v55  ;;  %v3357_v55 = vpop.f32.mrf.mxu1  ;;  %v240_v42 = vld [vmem:[%s15488_s0 + $0x640] sm:$0xff]  ;;  %v4279_v48 = vmax.f32 %v3351_v36, %v16055_v37  ;;  %v246_v37 = vld [vmem:[%s15488_s0 + $0x670] sm:$0xff] }
 0x615   :  { %v4565_v24 = vadd.f32 %v12873_v39, %v4417_v31  ;;  %v16056_v31 = vld [vmem:[#allocation67_spill] sm:$0xff] }
 0x617   :  { %8692 = vmatmul.msk.f32.gmra.mxu2 %vm4679_vm2, %v4565_v24 }
 0x618   :  { %v2904_v38 = vpop.f32.mrf.mxu0 }
 0x619   :  { %v4130_v41 = vmax.f32 %v16046_v1, %v2904_v38 }
 0x61b   :  { %v4418_v56 = vmax.f32 %v4130_v41, %v4274_v18  ;;  %8241 = vmatmul.msk.f32.gmra.mxu0 %vm617_vm1, %v235_v3  ;;  %v16057_v18 = vld [vmem:[#allocation57_spill] sm:$0xff]  ;;  %v16058_v41 = vld [vmem:[#allocation71_spill] sm:$0xff] }
 0x61c   :  { %v4280_v1 = vmax.f32 %v3354_v33, %v16057_v18 }
 0x61d   :  { %v4566_v50 = vadd.f32 %v12873_v39, %v4418_v56 }
 0x61f   :  { %8693 = vmatmul.msk.f32.gmra.mxu2 %vm4679_vm2, %v4566_v50  ;;  %v3360_v50 = vpop.f32.mrf.mxu1 }
 0x620   :  { %v2907_v5 = vpop.f32.mrf.mxu0 }
 0x621   :  { %v4131_v21 = vmax.f32 %v16048_v63, %v2907_v5  ;;  %v16059_v63 = vld [vmem:[#allocation60_spill] sm:$0xff] }
 0x623   :  { %v4419_v59 = vmax.f32 %v4131_v21, %v4275_v15  ;;  %8242 = vmatmul.msk.f32.gmra.mxu0 %vm617_vm1, %v236_v46  ;;  %v242_v15 = vld [vmem:[%s15488_s0 + $0x650] sm:$0xff]  ;;  %v4281_v21 = vmax.f32 %v3357_v55, %v16059_v63 }
 0x625   :  { %v4567_v12 = vadd.f32 %v12873_v39, %v4419_v59 }
 0x627   :  { %8622 = vmatmul.msk.f32.vlgmr.msrb.gmra.mxu1 %vm4679_vm2, %v4567_v12 }
 0x628   :  { %v2910_v52 = vpop.f32.mrf.mxu0 }
 0x629   :  { %v4132_v13 = vmax.f32 %v16050_v58, %v2910_v52  ;;  %v3363_v52 = vpop.f32.mrf.mxu1  ;;  %v16061_v58 = vld [vmem:[#allocation64_spill] sm:$0xff] }
 0x62b   :  { %v4420_v29 = vmax.f32 %v4132_v13, %v4276_v49  ;;  %8243 = vmatmul.msk.f32.gmra.mxu0 %vm617_vm1, %v237_v4  ;;  %v243_v49 = vld [vmem:[%s15488_s0 + $0x658] sm:$0xff]  ;;  %v4282_v13 = vmax.f32 %v3360_v50, %v16061_v58 }
 0x62c   :  { %v16070_v50 = vld [vmem:[#allocation95_spill] sm:$0xff] }
 0x62d   :  { %v4568_v60 = vadd.f32 %v12873_v39, %v4420_v29  ;;  %v16062_v29 = vld [vmem:[#allocation79_spill] sm:$0xff] }
 0x62f   :  { %8623 = vmatmul.msk.f32.gmra.mxu1 %vm4679_vm2, %v4568_v60 }
 0x630   :  { %v2913_v32 = vpop.f32.mrf.mxu0 }
 0x631   :  { %v4133_v6 = vmax.f32 %v16052_v0, %v2913_v32  ;;  %v16063_v0 = vld [vmem:[#allocation68_spill] sm:$0xff] }
 0x633   :  { %v4421_v53 = vmax.f32 %v4133_v6, %v4277_v16  ;;  %8244 = vmatmul.msk.f32.gmra.mxu0 %vm617_vm1, %v238_v19  ;;  %v3366_v19 = vpop.f32.mrf.mxu1  ;;  %v244_v16 = vld [vmem:[%s15488_s0 + $0x660] sm:$0xff]  ;;  %v4283_v6 = vmax.f32 %v3363_v52, %v16063_v0  ;;  %v250_v0 = vld [vmem:[%s15488_s0 + $0x690] sm:$0xff] }
 0x635   :  { %v4569_v27 = vadd.f32 %v12873_v39, %v4421_v53  ;;  %v16064_v53 = vld [vmem:[#allocation83_spill] sm:$0xff] }
 0x637   :  { %8624 = vmatmul.msk.f32.gmra.mxu1 %vm4679_vm2, %v4569_v27 }
 0x638   :  { %v2916_v28 = vpop.f32.mrf.mxu0 }
 0x639   :  { %v4134_v57 = vmax.f32 %v16054_v8, %v2916_v28  ;;  %v16065_v8 = vld [vmem:[#allocation72_spill] sm:$0xff] }
 0x63b   :  { %v4422_v23 = vmax.f32 %v4134_v57, %v4278_v34  ;;  %8245 = vmatmul.msk.f32.gmra.mxu0 %vm617_vm1, %v239_v26  ;;  %v3369_v26 = vpop.f32.mrf.mxu1  ;;  %v245_v34 = vld [vmem:[%s15488_s0 + $0x668] sm:$0xff]  ;;  %v4284_v57 = vmax.f32 %v3366_v19, %v16065_v8  ;;  %v251_v8 = vld [vmem:[%s15488_s0 + $0x698] sm:$0xff] }
 0x63d   :  { %v4570_v10 = vadd.f32 %v12873_v39, %v4422_v23  ;;  %v16066_v23 = vld [vmem:[#allocation87_spill] sm:$0xff] }
 0x63f   :  { %8625 = vmatmul.msk.f32.gmra.mxu1 %vm4679_vm2, %v4570_v10 }
 0x640   :  { %v2919_v2 = vpop.f32.mrf.mxu0 }
 0x641   :  { %v4135_v24 = vmax.f32 %v16056_v31, %v2919_v2 }
 0x643   :  { %v4423_v47 = vmax.f32 %v4135_v24, %v4279_v48  ;;  %8246 = vmatmul.msk.f32.gmra.mxu0 %vm617_vm1, %v240_v42  ;;  %v16067_v48 = vld [vmem:[#allocation76_spill] sm:$0xff]  ;;  %v16068_v24 = vld [vmem:[#allocation91_spill] sm:$0xff] }
 0x644   :  { %v4285_v31 = vmax.f32 %v3369_v26, %v16067_v48  ;;  %v5417_v48 = vld [vmem:[%s15491_s3 + $0x30] sm:$0xff] }
 0x645   :  { %v4571_v38 = vadd.f32 %v12873_v39, %v4423_v47  ;;  %5542 = vmatpush.msra.mxu1 %v5417_v48 }
 0x647   :  { %8626 = vmatmul.msk.f32.gmra.mxu1 %vm4679_vm2, %v4571_v38  ;;  %v3372_v38 = vpop.f32.mrf.mxu1 }
 0x648   :  { %v2922_v3 = vpop.f32.mrf.mxu0 }
 0x649   :  { %v4136_v56 = vmax.f32 %v16058_v41, %v2922_v3  ;;  %v16069_v41 = vld [vmem:[#allocation80_spill] sm:$0xff] }
 0x64b   :  { %v4424_v5 = vmax.f32 %v4136_v56, %v4280_v1  ;;  %8247 = vmatmul.msk.f32.gmra.mxu0 %vm617_vm1, %v241_v17  ;;  %v247_v1 = vld [vmem:[%s15488_s0 + $0x678] sm:$0xff]  ;;  %v4286_v56 = vmax.f32 %v3372_v38, %v16069_v41 }
 0x64d   :  { %v4572_v46 = vadd.f32 %v12873_v39, %v4424_v5 }
 0x64f   :  { %8627 = vmatmul.msk.f32.gmra.mxu1 %vm4679_vm2, %v4572_v46 }
 0x650   :  { %v2925_v7 = vpop.f32.mrf.mxu0 }
 0x651   :  { %v4137_v59 = vmax.f32 %v16060_v14, %v2925_v7  ;;  %v3375_v7 = vpop.f32.mrf.mxu1  ;;  %v16071_v14 = vld [vmem:[#allocation84_spill] sm:$0xff] }
 0x653   :  { %v4425_v12 = vmax.f32 %v4137_v59, %v4281_v21  ;;  %8248 = vmatmul.msk.f32.gmra.mxu0 %vm617_vm1, %v242_v15  ;;  %v248_v21 = vld [vmem:[%s15488_s0 + $0x680] sm:$0xff]  ;;  %v4287_v59 = vmax.f32 %v3375_v7, %v16071_v14 }
 0x655   :  { %v4573_v4 = vadd.f32 %v12873_v39, %v4425_v12  ;;  %v16072_v12 = vld [vmem:[#allocation99_spill] sm:$0xff] }
 0x657   :  { %8628 = vmatmul.msk.f32.gmra.mxu1 %vm4679_vm2, %v4573_v4 }
 0x658   :  { %v2928_v9 = vpop.f32.mrf.mxu0 }
 0x659   :  { %v4138_v36 = vmax.f32 %v16062_v29, %v2928_v9  ;;  %v16073_v29 = vld [vmem:[#allocation88_spill] sm:$0xff] }
 0x65b   :  { %v4426_v60 = vmax.f32 %v4138_v36, %v4282_v13  ;;  %8249 = vmatmul.msk.f32.gmra.mxu0 %vm617_vm1, %v243_v49  ;;  %v3378_v49 = vpop.f32.mrf.mxu1  ;;  %v249_v13 = vld [vmem:[%s15488_s0 + $0x688] sm:$0xff] }
 0x65c   :  { %v4288_v36 = vmax.f32 %v3378_v49, %v16073_v29 }
 0x65d   :  { %v4574_v32 = vadd.f32 %v12873_v39, %v4426_v60  ;;  %v16074_v60 = vld [vmem:[#allocation103_spill] sm:$0xff] }
 0x65f   :  { %8629 = vmatmul.msk.f32.gmra.mxu1 %vm4679_vm2, %v4574_v32 }
 0x660   :  { %v2931_v22 = vpop.f32.mrf.mxu0 }
 0x661   :  { %v4139_v27 = vmax.f32 %v16064_v53, %v2931_v22 }
 0x663   :  { %v4427_v33 = vmax.f32 %v4139_v27, %v4283_v6  ;;  %8250 = vmatmul.msk.f32.gmra.mxu0 %vm617_vm1, %v244_v16  ;;  %v16075_v6 = vld [vmem:[#allocation107_spill] sm:$0xff]  ;;  %v16076_v27 = vld [vmem:[#allocation62_spill] sm:$0xff] }
 0x665   :  { %v4575_v28 = vadd.f32 %v12873_v39, %v4427_v33  ;;  %v16077_v33 = vld [vmem:[#allocation92_spill] sm:$0xff] }
 0x667   :  { %8630 = vmatmul.msk.f32.gmra.mxu1 %vm4679_vm2, %v4575_v28  ;;  %v16078_v28 = vmax.f32 %v16076_v27, %v16077_v33 }
 0x668   :  { %v2934_v44 = vpop.f32.mrf.mxu0 }
 0x669   :  { %v4140_v10 = vmax.f32 %v16066_v23, %v2934_v44 }
 0x66b   :  { %v4428_v55 = vmax.f32 %v4140_v10, %v4284_v57  ;;  %8251 = vmatmul.msk.f32.gmra.mxu0 %vm617_vm1, %v245_v34  ;;  %v16079_v57 = vld [vmem:[#allocation111_spill] sm:$0xff]  ;;  %v16080_v10 = vld [vmem:[#allocation66_spill] sm:$0xff] }
 0x66d   :  { %v4576_v2 = vadd.f32 %v12873_v39, %v4428_v55  ;;  %v16081_v55 = vld [vmem:[#allocation96_spill] sm:$0xff] }
 0x66f   :  { %8631 = vmatmul.msk.f32.gmra.mxu1 %vm4679_vm2, %v4576_v2  ;;  %v16082_v2 = vmax.f32 %v16080_v10, %v16081_v55  ;;  %v16101_v10 = vld [vmem:[#allocation116_spill] sm:$0xff] }
 0x670   :  { %v2937_v42 = vpop.f32.mrf.mxu0 }
 0x671   :  { %v4141_v47 = vmax.f32 %v16068_v24, %v2937_v42  ;;  %v252_v24 = vld [vmem:[%s15488_s0 + $0x6a0] sm:$0xff] }
 0x673   :  { %v4429_v3 = vmax.f32 %v4141_v47, %v4285_v31  ;;  %8252 = vmatmul.msk.f32.gmra.mxu0 %vm617_vm1, %v246_v37  ;;  %v16083_v47 = vld [vmem:[#allocation115_spill] sm:$0xff] }
 0x675   :  { %v4577_v17 = vadd.f32 %v12873_v39, %v4429_v3  ;;  %v16084_v3 = vld [vmem:[#allocation70_spill] sm:$0xff] }
 0x677   :  { %8632 = vmatmul.msk.f32.gmra.mxu1 %vm4679_vm2, %v4577_v17  ;;  %v16085_v17 = vld [vmem:[#allocation100_spill] sm:$0xff] }
 0x678   :  { %v2940_v18 = vpop.f32.mrf.mxu0 }
 0x679   :  { %v4142_v5 = vmax.f32 %v16070_v50, %v2940_v18  ;;  %v16086_v18 = vmax.f32 %v16084_v3, %v16085_v17  ;;  %v16105_v3 = vld [vmem:[#allocation120_spill] sm:$0xff] }
 0x67b   :  { %v4430_v46 = vmax.f32 %v4142_v5, %v4286_v56  ;;  %8253 = vmatmul.msk.f32.gmra.mxu0 %vm617_vm1, %v247_v1  ;;  %v253_v5 = vld [vmem:[%s15488_s0 + $0x6a8] sm:$0xff] }
 0x67d   :  { %v4578_v15 = vadd.f32 %v12873_v39, %v4430_v46  ;;  %v16087_v46 = vld [vmem:[#allocation119_spill] sm:$0xff] }
 0x67f   :  { %8633 = vmatmul.msk.f32.gmra.mxu1 %vm4679_vm2, %v4578_v15  ;;  %v16088_v15 = vld [vmem:[#allocation74_spill] sm:$0xff] }
 0x680   :  { %v2943_v63 = vpop.f32.mrf.mxu0 }
 0x681   :  { %v4143_v52 = vmax.f32 %v16072_v12, %v2943_v63  ;;  %v16089_v63 = vld [vmem:[#allocation104_spill] sm:$0xff] }
 0x683   :  { %v4431_v4 = vmax.f32 %v4143_v52, %v4287_v59  ;;  %8254 = vmatmul.msk.f32.gmra.mxu0 %vm617_vm1, %v248_v21  ;;  %v16090_v21 = vmax.f32 %v16088_v15, %v16089_v63  ;;  %v16108_v15 = vld [vmem:[#allocation94_spill] sm:$0xff]  ;;  %v16109_v63 = vld [vmem:[#allocation124_spill] sm:$0xff] }
 0x685   :  { %v4579_v9 = vadd.f32 %v12873_v39, %v4431_v4  ;;  %v254_v4 = vld [vmem:[%s15488_s0 + $0x6b0] sm:$0xff] }
 0x687   :  { %8634 = vmatmul.msk.f32.gmra.mxu1 %vm4679_vm2, %v4579_v9  ;;  %v16091_v9 = vld [vmem:[#allocation123_spill] sm:$0xff] }
 0x688   :  { %v2946_v58 = vpop.f32.mrf.mxu0 }
 0x689   :  { %v4144_v32 = vmax.f32 %v16074_v60, %v2946_v58  ;;  %v16092_v58 = vld [vmem:[#allocation78_spill] sm:$0xff] }
 0x68b   :  { %v4432_v19 = vmax.f32 %v4144_v32, %v4288_v36  ;;  %8255 = vmatmul.msk.f32.gmra.mxu0 %vm617_vm1, %v249_v13  ;;  %v16093_v13 = vld [vmem:[#allocation108_spill] sm:$0xff] }
 0x68c   :  { %v16094_v29 = vmax.f32 %v16092_v58, %v16093_v13  ;;  %v16112_v58 = vld [vmem:[#allocation98_spill] sm:$0xff]  ;;  %v16113_v13 = vld [vmem:[#allocation128_spill] sm:$0xff] }
 0x68d   :  { %v4580_v22 = vadd.f32 %v12873_v39, %v4432_v19 }
 0x68f   :  { %8635 = vmatmul.msk.f32.gmra.mxu1 %vm4679_vm2, %v4580_v22  ;;  %v255_v22 = vld [vmem:[%s15488_s0 + $0x6b8] sm:$0xff] }
 0x690   :  { %v2949_v16 = vpop.f32.mrf.mxu0 }
 0x691   :  { %v4145_v53 = vmax.f32 %v16075_v6, %v2949_v16  ;;  %v16095_v16 = vld [vmem:[#allocation127_spill] sm:$0xff]  ;;  %v16096_v6 = vld [vmem:[#allocation82_spill] sm:$0xff] }
 0x693   :  { %v4433_v26 = vmax.f32 %v4145_v53, %v16078_v28  ;;  %8256 = vmatmul.msk.f32.gmra.mxu0 %vm617_vm1, %v250_v0  ;;  %v16097_v53 = vld [vmem:[#allocation112_spill] sm:$0xff] }
 0x694   :  { %v16098_v27 = vmax.f32 %v16096_v6, %v16097_v53  ;;  %v16116_v53 = vld [vmem:[#allocation102_spill] sm:$0xff] }
 0x695   :  { %v4581_v44 = vadd.f32 %v12873_v39, %v4433_v26 }
 0x697   :  { %8636 = vmatmul.msk.f32.gmra.mxu1 %vm4679_vm2, %v4581_v44 }
 0x698   :  { %v2952_v34 = vpop.f32.mrf.mxu0 }
 0x699   :  { %v4146_v23 = vmax.f32 %v16079_v57, %v2952_v34  ;;  %v256_v34 = vld [vmem:[%s15488_s0 + $0x6c0] sm:$0xff] }
 0x69b   :  { %v4434_v42 = vmax.f32 %v4146_v23, %v16082_v2  ;;  %8257 = vmatmul.msk.f32.gmra.mxu0 %vm617_vm1, %v251_v8  ;;  %v16099_v8 = vld [vmem:[#allocation131_spill] sm:$0xff]  ;;  %v16100_v23 = vld [vmem:[#allocation86_spill] sm:$0xff] }
 0x69c   :  { %v16102_v55 = vmax.f32 %v16100_v23, %v16101_v10  ;;  %v16119_v23 = vld [vmem:[#allocation151_spill] sm:$0xff] }
 0x69d   :  { %v4582_v37 = vadd.f32 %v12873_v39, %v4434_v42 }
 0x69f   :  { %8637 = vmatmul.msk.f32.gmra.mxu1 %vm4679_vm2, %v4582_v37 }
 0x6a0   :  { %v2955_v31 = vpop.f32.mrf.mxu0 }
 0x6a1   :  { %v4147_v38 = vmax.f32 %v16083_v47, %v2955_v31  ;;  %v257_v31 = vld [vmem:[%s15488_s0 + $0x6c8] sm:$0xff] }
 0x6a3   :  { %v4435_v1 = vmax.f32 %v4147_v38, %v16086_v18  ;;  %8258 = vmatmul.msk.f32.gmra.mxu0 %vm617_vm1, %v252_v24  ;;  %v16103_v24 = vld [vmem:[#allocation135_spill] sm:$0xff]  ;;  %v16104_v38 = vld [vmem:[#allocation90_spill] sm:$0xff] }
 0x6a4   :  { %v13349_v41 = vpop.f32.mrf.mxu1  ;;  %v16106_v17 = vmax.f32 %v16104_v38, %v16105_v3  ;;  %v16123_v3 = vld [vmem:[#allocation155_spill] sm:$0xff] }
 0x6a5   :  { %v4583_v56 = vadd.f32 %v12873_v39, %v4435_v1 }
 0x6a7   :  { %8638 = vmatmul.msk.f32.gmra.mxu1 %vm4679_vm2, %v4583_v56 }
 0x6a8   :  { %v2958_v50 = vpop.f32.mrf.mxu0 }
 0x6a9   :  { %v4148_v7 = vmax.f32 %v16087_v46, %v2958_v50  ;;  %v16107_v46 = vld [vmem:[#allocation139_spill] sm:$0xff] }
 0x6ab   :  { %v4436_v14 = vmax.f32 %v4148_v7, %v16090_v21  ;;  %8259 = vmatmul.msk.f32.gmra.mxu0 %vm617_vm1, %v253_v5  ;;  %v258_v5 = vld [vmem:[%s15488_s0 + $0x6d0] sm:$0xff]  ;;  %v16110_v21 = vmax.f32 %v16108_v15, %v16109_v63 }
 0x6ac   :  { %v13361_v59 = vpop.f32.mrf.mxu1  ;;  %v16127_v63 = vld [vmem:[#allocation159_spill] sm:$0xff] }
 0x6ad   :  { %v4584_v12 = vadd.f32 %v12873_v39, %v4436_v14 }
 0x6af   :  { %8639 = vmatmul.msk.f32.gmra.mxu1 %vm4679_vm2, %v4584_v12 }
 0x6b0   :  { %v2961_v52 = vpop.f32.mrf.mxu0 }
 0x6b1   :  { %v4149_v49 = vmax.f32 %v16091_v9, %v2961_v52  ;;  %v16111_v9 = vld [vmem:[#allocation143_spill] sm:$0xff] }
 0x6b3   :  { %v4437_v36 = vmax.f32 %v4149_v49, %v16094_v29  ;;  %8260 = vmatmul.msk.f32.gmra.mxu0 %vm617_vm1, %v254_v4  ;;  %v16114_v29 = vmax.f32 %v16112_v58, %v16113_v13 }
 0x6b4   :  { %v13373_v60 = vpop.f32.mrf.mxu1 }
 0x6b5   :  { %v4585_v32 = vadd.f32 %v12873_v39, %v4437_v36 }
 0x6b7   :  { %8640 = vmatmul.msk.f32.gmra.mxu1 %vm4679_vm2, %v4585_v32  ;;  %v13434_v32 = vpop.f32.mrf.mxu3 }
 0x6b8   :  { %v2964_v19 = vpop.f32.mrf.mxu0 }
 0x6b9   :  { %v4150_v0 = vmax.f32 %v16095_v16, %v2964_v19 }
 0x6bb   :  { %v4438_v33 = vmax.f32 %v4150_v0, %v16098_v27  ;;  %8261 = vmatmul.msk.f32.gmra.mxu0 %vm617_vm1, %v255_v22  ;;  %v16115_v0 = vld [vmem:[#allocation147_spill] sm:$0xff]  ;;  %v16117_v27 = vld [vmem:[#allocation132_spill] sm:$0xff] }
 0x6bc   :  { %v13385_v28 = vpop.f32.mrf.mxu1 }
 0x6bd   :  { %v4586_v26 = vadd.f32 %v12873_v39, %v4438_v33  ;;  %v16118_v33 = vmax.f32 %v16116_v53, %v16117_v27 }
 0x6bf   :  { %8641 = vmatmul.msk.f32.gmra.mxu1 %vm4679_vm2, %v4586_v26 }
 0x6c0   :  { %v2967_v44 = vpop.f32.mrf.mxu0 }
 0x6c1   :  { %v4151_v57 = vmax.f32 %v16099_v8, %v2967_v44  ;;  %v13447_v8 = vpop.f32.mrf.mxu3 }
 0x6c3   :  { %v4439_v2 = vmax.f32 %v4151_v57, %v16102_v55  ;;  %8262 = vmatmul.msk.f32.gmra.mxu0 %vm617_vm1, %v256_v34  ;;  %v16120_v55 = vld [vmem:[#allocation106_spill] sm:$0xff] }
 0x6c4   :  { %v13397_v42 = vpop.f32.mrf.mxu1 }
 0x6c5   :  { %v4587_v37 = vadd.f32 %v12873_v39, %v4439_v2  ;;  %v13414_v39 = vld [vmem:[%s15490_s2] ss:$0 sm:$0xff] }
 0x6c6   :  { %v16121_v2 = vld [vmem:[#allocation136_spill] sm:$0xff] }
 0x6c7   :  { %8642 = vmatmul.msk.f32.gmra.mxu1 %vm4679_vm2, %v4587_v37  ;;  %v16122_v37 = vmax.f32 %v16120_v55, %v16121_v2  ;;  %v16137_v55 = vld [vmem:[#allocation152_spill] sm:$0xff] }
 0x6c8   :  { %v2970_v48 = vpop.f32.mrf.mxu0 }
 0x6c9   :  { %v4152_v47 = vmax.f32 %v16103_v24, %v2970_v48 }
 0x6cb   :  { %v4440_v18 = vmax.f32 %v4152_v47, %v16106_v17  ;;  %8263 = vmatmul.msk.f32.gmra.mxu0 %vm617_vm1, %v257_v31  ;;  %v13458_v47 = vpop.f32.mrf.mxu3 }
 0x6cc   :  { %v13409_v1 = vpop.f32.mrf.mxu1 }
 0x6cd   :  { %v4588_v56 = vadd.f32 %v13414_v39, %v4440_v18  ;;  %v16124_v18 = vld [vmem:[#allocation110_spill] sm:$0xff] }
 0x6cf   :  { %8643 = vmatmul.msk.f32.gmra.mxu1 %vm4679_vm2, %v4588_v56  ;;  %v16125_v56 = vld [vmem:[#allocation140_spill] sm:$0xff] }
 0x6d0   :  { %v2973_v50 = vpop.f32.mrf.mxu0 }
 0x6d1   :  { %v4153_v7 = vmax.f32 %v16107_v46, %v2973_v50  ;;  %v16126_v50 = vmax.f32 %v16124_v18, %v16125_v56  ;;  %v16141_v56 = vld [vmem:[#allocation126_spill] sm:$0xff] }
 0x6d3   :  { %v4441_v14 = vmax.f32 %v4153_v7, %v16110_v21  ;;  %8264 = vmatmul.msk.f32.gmra.mxu0 %vm617_vm1, %v258_v5 }
 0x6d4   :  { %v13426_v12 = vpop.f32.mrf.mxu1 }
 0x6d5   :  { %v4589_v52 = vadd.f32 %v13414_v39, %v4441_v14  ;;  %v13469_v14 = vpop.f32.mrf.mxu3 }
 0x6d7   :  { %8644 = vmatmul.msk.f32.gmra.mxu1 %vm4679_vm2, %v4589_v52  ;;  %v16128_v52 = vld [vmem:[#allocation114_spill] sm:$0xff] }
 0x6d8   :  { %v2976_v4 = vpop.f32.mrf.mxu0 }
 0x6d9   :  { %v4154_v49 = vmax.f32 %v16111_v9, %v2976_v4  ;;  %v16129_v4 = vld [vmem:[#allocation144_spill] sm:$0xff] }
 0x6da   :  { %v16130_v9 = vmax.f32 %v16128_v52, %v16129_v4  ;;  %v16145_v4 = vld [vmem:[#allocation175_spill] sm:$0xff] }
 0x6db   :  { %v4442_v36 = vmax.f32 %v4154_v49, %v16114_v29 }
 0x6dc   :  { %v13436_v19 = vpop.f32.mrf.mxu1 }
 0x6dd   :  { %v4590_v22 = vadd.f32 %v13414_v39, %v4442_v36  ;;  %v16131_v36 = vld [vmem:[#allocation163_spill] sm:$0xff]  ;;  %v13482_v27 = vpop.f32.mrf.mxu3 }
 0x6df   :  { %8645 = vmatmul.msk.f32.gmra.mxu1 %vm4679_vm2, %v4590_v22 }
 0x6e0   :  { %v2979_v16 = vpop.f32.mrf.mxu0 }
 0x6e1   :  { %v4155_v6 = vmax.f32 %v16115_v0, %v2979_v16  ;;  %v16132_v16 = vld [vmem:[#allocation118_spill] sm:$0xff]  ;;  %v16133_v0 = vld [vmem:[#allocation148_spill] sm:$0xff] }
 0x6e3   :  { %v4443_v26 = vmax.f32 %v4155_v6, %v16118_v33  ;;  %v16134_v6 = vmax.f32 %v16132_v16, %v16133_v0 }
 0x6e4   :  { %v13444_v44 = vpop.f32.mrf.mxu1 }
 0x6e5   :  { %v4591_v34 = vadd.f32 %v13414_v39, %v4443_v26 }
 0x6e7   :  { %8646 = vmatmul.msk.f32.gmra.mxu1 %vm4679_vm2, %v4591_v34 }
 0x6e8   :  { %v2982_v57 = vpop.f32.mrf.mxu0 }
 0x6e9   :  { %v4156_v10 = vmax.f32 %v16119_v23, %v2982_v57  ;;  %v16135_v57 = vld [vmem:[#allocation167_spill] sm:$0xff] }
 0x6eb   :  { %v4444_v48 = vmax.f32 %v4156_v10, %v16122_v37  ;;  %v16136_v10 = vld [vmem:[#allocation122_spill] sm:$0xff] }
 0x6ec   :  { %v13454_v31 = vpop.f32.mrf.mxu1  ;;  %v16138_v2 = vmax.f32 %v16136_v10, %v16137_v55 }
 0x6ed   :  { %v4592_v24 = vadd.f32 %v13414_v39, %v4444_v48 }
 0x6ef   :  { %8647 = vmatmul.msk.f32.gmra.mxu1 %vm4679_vm2, %v4592_v24 }
 0x6f0   :  { %v2985_v38 = vpop.f32.mrf.mxu0 }
 0x6f1   :  { %v4157_v17 = vmax.f32 %v16123_v3, %v2985_v38  ;;  %v13495_v38 = vpop.f32.mrf.mxu3 }
 0x6f3   :  { %v4445_v5 = vmax.f32 %v4157_v17, %v16126_v50  ;;  %v16140_v17 = vld [vmem:[#allocation171_spill] sm:$0xff]  ;;  %v16142_v50 = vld [vmem:[#allocation156_spill] sm:$0xff] }
 0x6f4   :  { %v13464_v46 = vpop.f32.mrf.mxu1 }
 0x6f5   :  { %v4593_v7 = vadd.f32 %v13414_v39, %v4445_v5  ;;  %v16143_v5 = vmax.f32 %v16141_v56, %v16142_v50 }
 0x6f7   :  { %8648 = vmatmul.msk.f32.gmra.mxu1 %vm4679_vm2, %v4593_v7 }
 0x6f8   :  { %v2988_v15 = vpop.f32.mrf.mxu0 }
 0x6f9   :  { %v4158_v21 = vmax.f32 %v16127_v63, %v2988_v15 }
 0x6fb   :  { %v4446_v49 = vmax.f32 %v4158_v21, %v16130_v9  ;;  %v13506_v21 = vpop.f32.mrf.mxu3 }
 0x6fc   :  { %v13474_v58 = vpop.f32.mrf.mxu1 }
 0x6fd   :  { %v4594_v13 = vadd.f32 %v13414_v39, %v4446_v49  ;;  %v16146_v49 = vld [vmem:[#allocation130_spill] sm:$0xff] }
 0x6ff   :  { %8649 = vmatmul.msk.f32.gmra.mxu1 %vm4679_vm2, %v4594_v13  ;;  %v16147_v13 = vld [vmem:[#allocation160_spill] sm:$0xff] }
 0x700   :  { %v2991_v29 = vpop.f32.mrf.mxu0 }
 0x701   :  { %v4159_v22 = vmax.f32 %v16131_v36, %v2991_v29  ;;  %v16148_v29 = vmax.f32 %v16146_v49, %v16147_v13  ;;  %v16161_v49 = vld [vmem:[#allocation142_spill] sm:$0xff]  ;;  %v16162_v13 = vld [vmem:[#allocation172_spill] sm:$0xff] }
 0x703   :  { %v4447_v53 = vmax.f32 %v4159_v22, %v16134_v6  ;;  %v16150_v6 = vld [vmem:[#allocation179_spill] sm:$0xff] }
 0x704   :  { %v13484_v33 = vpop.f32.mrf.mxu1 }
 0x705   :  { %v4595_v26 = vadd.f32 %v13414_v39, %v4447_v53 }
 0x707   :  { %8650 = vmatmul.msk.f32.gmra.mxu1 %vm4679_vm2, %v4595_v26  ;;  %v13517_v26 = vpop.f32.mrf.mxu3 }
 0x708   :  { %v2994_v34 = vpop.f32.mrf.mxu0 }
 0x709   :  { %v4160_v23 = vmax.f32 %v16135_v57, %v2994_v34  ;;  %v16151_v34 = vld [vmem:[#allocation134_spill] sm:$0xff]  ;;  %v16152_v57 = vld [vmem:[#allocation164_spill] sm:$0xff] }
 0x70b   :  { %v4448_v37 = vmax.f32 %v4160_v23, %v16138_v2  ;;  %v16153_v23 = vmax.f32 %v16151_v34, %v16152_v57  ;;  %v16165_v34 = vld [vmem:[#allocation191_spill] sm:$0xff] }
 0x70c   :  { %v13492_v48 = vpop.f32.mrf.mxu1 }
 0x70d   :  { %16139 = vst [vmem:[#allocation14_spill] sm:$0xff] %v13492_v48  ;;  %v4596_v24 = vadd.f32 %v13414_v39, %v4448_v37  ;;  %v16203_v48 = vld [vmem:[#allocation325_spill] sm:$0xff] }
 0x70f   :  { %8651 = vmatmul.msk.f32.gmra.mxu1 %vm4679_vm2, %v4596_v24  ;;  %v16155_v24 = vld [vmem:[#allocation183_spill] sm:$0xff] }
 0x710   :  { %v2997_v3 = vpop.f32.mrf.mxu0 }
 0x711   :  { %v4161_v18 = vmax.f32 %v16140_v17, %v2997_v3  ;;  %v16156_v17 = vld [vmem:[#allocation138_spill] sm:$0xff] }
 0x713   :  { %v4449_v7 = vmax.f32 %v4161_v18, %v16143_v5  ;;  %v16157_v18 = vld [vmem:[#allocation168_spill] sm:$0xff]  ;;  %v13530_v5 = vpop.f32.mrf.mxu3 }
 0x714   :  { %v13502_v15 = vpop.f32.mrf.mxu1  ;;  %v16158_v56 = vmax.f32 %v16156_v17, %v16157_v18  ;;  %v16171_v17 = vld [vmem:[#allocation316_spill] sm:$0xff] }
 0x715   :  { %16144 = vst [vmem:[#allocation344_spill] sm:$0xff] %v13502_v15  ;;  %v4597_v63 = vadd.f32 %v13414_v39, %v4449_v7 }
 0x717   :  { %8652 = vmatmul.msk.f32.gmra.mxu1 %vm4679_vm2, %v4597_v63 }
 0x718   :  { %v3000_v52 = vpop.f32.mrf.mxu0 }
 0x719   :  { %v4162_v9 = vmax.f32 %v16145_v4, %v3000_v52  ;;  %v16160_v4 = vld [vmem:[#allocation187_spill] sm:$0xff] }
 0x71b   :  { %v4450_v36 = vmax.f32 %v4162_v9, %v16148_v29  ;;  %v16163_v29 = vmax.f32 %v16161_v49, %v16162_v13  ;;  %v16175_v13 = vld [vmem:[#allocation195_spill] sm:$0xff] }
 0x71c   :  { %v13512_v22 = vpop.f32.mrf.mxu1 }
 0x71d   :  { %16149 = vst [vmem:[#allocation17_spill] sm:$0xff] %v13512_v22  ;;  %v4598_v16 = vadd.f32 %v13414_v39, %v4450_v36  ;;  %v16202_v22 = vld [vmem:[#allocation117_spill] sm:$0xff] }
 0x71f   :  { %8653 = vmatmul.msk.f32.gmra.mxu1 %vm4679_vm2, %v4598_v16 }
 0x720   :  { %v3003_v0 = vpop.f32.mrf.mxu0 }
 0x721   :  { %v4163_v53 = vmax.f32 %v16150_v6, %v3003_v0  ;;  %v13543_v6 = vpop.f32.mrf.mxu3 }
 0x723   :  { %v4451_v10 = vmax.f32 %v4163_v53, %v16153_v23  ;;  %v16166_v23 = vld [vmem:[#allocation146_spill] sm:$0xff] }
 0x724   :  { %v13522_v55 = vpop.f32.mrf.mxu1 }
 0x725   :  { %16154 = vst [vmem:[#allocation10_spill] sm:$0xff] %v13522_v55  ;;  %v4599_v2 = vadd.f32 %v13414_v39, %v4451_v10  ;;  %v16167_v10 = vld [vmem:[#allocation176_spill] sm:$0xff] }
 0x727   :  { %8654 = vmatmul.msk.f32.gmra.mxu1 %vm4679_vm2, %v4599_v2  ;;  %v16168_v2 = vmax.f32 %v16166_v23, %v16167_v10  ;;  %v16180_v10 = vld [vmem:[#allocation109_spill] sm:$0xff] }
 0x728   :  { %v3006_v37 = vpop.f32.mrf.mxu0 }
 0x729   :  { %v4164_v3 = vmax.f32 %v16155_v24, %v3006_v37 }
 0x72b   :  { %v4452_v50 = vmax.f32 %v4164_v3, %v16158_v56  ;;  %v16170_v3 = vld [vmem:[#allocation105_spill] sm:$0xff] }
 0x72c   :  { %v13532_v7 = vpop.f32.mrf.mxu1  ;;  %v4203_v18 = vmax.f32 %v16171_v17, %v16170_v3 }
 0x72d   :  { %16159 = vst [vmem:[#allocation347_spill] sm:$0xff] %v13532_v7  ;;  %v4600_v63 = vadd.f32 %v13414_v39, %v4452_v50  ;;  %v13556_v50 = vpop.f32.mrf.mxu3 }
 0x72f   :  { %8655 = vmatmul.msk.f32.gmra.mxu1 %vm4679_vm2, %v4600_v63 }
 0x730   :  { %v3009_v52 = vpop.f32.mrf.mxu0 }
 0x731   :  { %v4165_v9 = vmax.f32 %v16160_v4, %v3009_v52  ;;  %v16172_v52 = vld [vmem:[#allocation282_spill] sm:$0xff]  ;;  %v16173_v4 = vld [vmem:[#allocation305_spill] sm:$0xff] }
 0x733   :  { %v4453_v36 = vmax.f32 %v4165_v9, %v16163_v29  ;;  %v16174_v9 = vmax.f32 %v16172_v52, %v16173_v4  ;;  %v16185_v4 = vld [vmem:[#allocation199_spill] sm:$0xff] }
 0x734   :  { %v13540_v16 = vpop.f32.mrf.mxu1 }
 0x735   :  { %16164 = vst [vmem:[#allocation20_spill] sm:$0xff] %v13540_v16  ;;  %v4601_v0 = vadd.f32 %v13414_v39, %v4453_v36  ;;  %v4491_v49 = vmax.f32 %v4203_v18, %v16174_v9  ;;  %v16176_v36 = vld [vmem:[#allocation150_spill] sm:$0xff]  ;;  %v16182_v18 = vld [vmem:[#allocation285_spill] sm:$0xff] }
 0x737   :  { %8656 = vmatmul.msk.f32.gmra.mxu1 %vm4679_vm2, %v4601_v0  ;;  %v16177_v0 = vld [vmem:[#allocation180_spill] sm:$0xff]  ;;  %v4639_v23 = vadd.f32 %v13414_v39, %v4491_v49 }
 0x738   :  { %v3012_v53 = vpop.f32.mrf.mxu0  ;;  %v16187_v49 = vld [vmem:[#allocation184_spill] sm:$0xff] }
 0x739   :  { %v4166_v57 = vmax.f32 %v16165_v34, %v3012_v53  ;;  %v16178_v53 = vmax.f32 %v16176_v36, %v16177_v0 }
 0x73b   :  { %v4454_v37 = vmax.f32 %v4166_v57, %v16168_v2  ;;  %v16181_v2 = vld [vmem:[#allocation319_spill] sm:$0xff] }
 0x73c   :  { %v13550_v24 = vpop.f32.mrf.mxu1 }
 0x73d   :  { %16169 = vst [vmem:[#allocation12_spill] sm:$0xff] %v13550_v24  ;;  %v4602_v56 = vadd.f32 %v13414_v39, %v4454_v37  ;;  %v4204_v37 = vmax.f32 %v16181_v2, %v16180_v10  ;;  %v16190_v10 = vld [vmem:[#allocation113_spill] sm:$0xff]  ;;  %v16191_v2 = vld [vmem:[#allocation322_spill] sm:$0xff] }
 0x73f   :  { %8657 = vmatmul.msk.f32.gmra.mxu1 %vm4679_vm2, %v4602_v56  ;;  %v16183_v56 = vld [vmem:[#allocation308_spill] sm:$0xff] }
 0x740   :  { %v3015_v63 = vpop.f32.mrf.mxu0 }
 0x741   :  { %v4167_v29 = vmax.f32 %v16175_v13, %v3015_v63  ;;  %v16184_v63 = vmax.f32 %v16182_v18, %v16183_v56  ;;  %v13577_v13 = vpop.f32.mrf.mxu3  ;;  %v16193_v18 = vld [vmem:[#allocation311_spill] sm:$0xff] }
 0x743   :  { %v4455_v34 = vmax.f32 %v4167_v29, %v16178_v53  ;;  %v4492_v52 = vmax.f32 %v4204_v37, %v16184_v63  ;;  %v16186_v29 = vld [vmem:[#allocation154_spill] sm:$0xff] }
 0x744   :  { %v13565_v57 = vpop.f32.mrf.mxu1  ;;  %v16188_v36 = vmax.f32 %v16186_v29, %v16187_v49  ;;  %v16196_v29 = vld [vmem:[#allocation158_spill] sm:$0xff]  ;;  %v16197_v49 = vld [vmem:[#allocation188_spill] sm:$0xff] }
 0x745   :  { %16179 = vst [vmem:[#allocation23_spill] sm:$0xff] %v13565_v57  ;;  %v4603_v3 = vadd.f32 %v13414_v39, %v4455_v34  ;;  %v4640_v34 = vadd.f32 %v13414_v39, %v4492_v52  ;;  %v16247_v57 = vld [vmem:[#allocation337_spill] sm:$0xff] }
 0x747   :  { %8694 = vmatmul.msk.f32.vlgmr.msrb.gmra.mxu3 %vm4679_vm2, %v4603_v3  ;;  %8730 = vmatmul.msk.f32.vlgmr.msra.gmra.mxu1 %vm4679_vm2, %v4639_v23  ;;  %v4205_v23 = vmax.f32 %v16191_v2, %v16190_v10  ;;  %v16201_v2 = vld [vmem:[#allocation207_spill] sm:$0xff] }
 0x748   :  { %v3018_v17 = vpop.f32.mrf.mxu0 }
 0x749   :  { %v4168_v9 = vmax.f32 %v16185_v4, %v3018_v17  ;;  %v16192_v17 = vld [vmem:[#allocation288_spill] sm:$0xff]  ;;  %v16195_v4 = vld [vmem:[#allocation203_spill] sm:$0xff]  ;;  %v13597_v7 = vpop.f32.mrf.mxu3 }
 0x74a   :  { %v16194_v56 = vmax.f32 %v16192_v17, %v16193_v18  ;;  %v16205_v17 = vld [vmem:[#allocation192_spill] sm:$0xff] }
 0x74b   :  { %v4456_v0 = vmax.f32 %v4168_v9, %v16188_v36  ;;  %v16198_v36 = vmax.f32 %v16196_v29, %v16197_v49 }
 0x74c   :  { %v13582_v53 = vpop.f32.mrf.mxu1  ;;  %v4493_v63 = vmax.f32 %v4205_v23, %v16194_v56 }
 0x74d   :  { %16189 = vst [vmem:[#allocation15_spill] sm:$0xff] %v13582_v53  ;;  %v4604_v3 = vadd.f32 %v13414_v39, %v4456_v0  ;;  %v16200_v0 = vld [vmem:[#allocation5_spill] sm:$0xff]  ;;  %v4206_v53 = vmax.f32 %v16203_v48, %v16202_v22  ;;  %v16212_v48 = vld [vmem:[#allocation211_spill] sm:$0xff] }
 0x74f   :  { %8695 = vmatmul.msk.f32.gmra.mxu3 %vm4679_vm2, %v4604_v3  ;;  %8731 = vmatmul.msk.f32.gmra.mxu1 %vm4679_vm2, %v4640_v34  ;;  %v4170_v3 = vmax.f32 %v16201_v2, %v16200_v0  ;;  %v4641_v34 = vadd.f32 %v13414_v39, %v4493_v63  ;;  %v16211_v0 = vld [vmem:[#allocation6_spill] sm:$0xff]  ;;  %v16213_v2 = vld [vmem:[#allocation121_spill] sm:$0xff] }
 0x750   :  { %v3021_v37 = vpop.f32.mrf.mxu0  ;;  %v4171_v22 = vmax.f32 %v16212_v48, %v16211_v0  ;;  %v16222_v0 = vld [vmem:[#allocation7_spill] sm:$0xff] }
 0x751   :  { %v4169_v9 = vmax.f32 %v16195_v4, %v3021_v37  ;;  %v16204_v37 = vld [vmem:[#allocation162_spill] sm:$0xff]  ;;  %v16207_v4 = vld [vmem:[#allocation291_spill] sm:$0xff]  ;;  %v13623_v24 = vpop.f32.mrf.mxu3 }
 0x752   :  { %v16206_v18 = vmax.f32 %v16204_v37, %v16205_v17  ;;  %v16223_v48 = vld [vmem:[#allocation215_spill] sm:$0xff] }
 0x753   :  { %v4457_v52 = vmax.f32 %v4169_v9, %v16198_v36  ;;  %v16208_v9 = vld [vmem:[#allocation314_spill] sm:$0xff] }
 0x754   :  { %v13599_v10 = vpop.f32.mrf.mxu1  ;;  %v4458_v56 = vmax.f32 %v4170_v3, %v16206_v18  ;;  %v16209_v29 = vmax.f32 %v16207_v4, %v16208_v9  ;;  %v16215_v3 = vld [vmem:[#allocation166_spill] sm:$0xff] }
 0x755   :  { %16199 = vst [vmem:[#allocation26_spill] sm:$0xff] %v13599_v10  ;;  %v4605_v23 = vadd.f32 %v13414_v39, %v4457_v52  ;;  %v16218_v18 = vld [vmem:[#allocation294_spill] sm:$0xff] }
 0x756   :  { %v4494_v49 = vmax.f32 %v4206_v53, %v16209_v29  ;;  %v4606_v63 = vadd.f32 %v13414_v39, %v4458_v56  ;;  %v16216_v53 = vld [vmem:[#allocation196_spill] sm:$0xff]  ;;  %v16219_v56 = vld [vmem:[#allocation317_spill] sm:$0xff] }
 0x757   :  { %8696 = vmatmul.msk.f32.gmra.mxu3 %vm4679_vm2, %v4605_v23  ;;  %8732 = vmatmul.msk.f32.gmra.mxu1 %vm4679_vm2, %v4641_v34  ;;  %v16214_v23 = vld [vmem:[#allocation328_spill] sm:$0xff]  ;;  %v16217_v37 = vmax.f32 %v16215_v3, %v16216_v53  ;;  %v16220_v4 = vmax.f32 %v16218_v18, %v16219_v56  ;;  %v16226_v3 = vld [vmem:[#allocation170_spill] sm:$0xff]  ;;  %v16229_v18 = vld [vmem:[#allocation297_spill] sm:$0xff] }
 0x758   :  { %v4642_v52 = vadd.f32 %v13414_v39, %v4494_v49  ;;  %v4207_v34 = vmax.f32 %v16214_v23, %v16213_v2  ;;  %v4172_v2 = vmax.f32 %v16223_v48, %v16222_v0  ;;  %v16233_v48 = vld [vmem:[#allocation8_spill] sm:$0xff] }
 0x759   :  { %v4459_v17 = vmax.f32 %v4171_v22, %v16217_v37  ;;  %v13643_v22 = vpop.f32.mrf.mxu3 }
 0x75a   :  { %v4495_v9 = vmax.f32 %v4207_v34, %v16220_v4  ;;  %v16227_v34 = vld [vmem:[#allocation200_spill] sm:$0xff] }
 0x75b   :  { %v4607_v49 = vadd.f32 %v13414_v39, %v4459_v17  ;;  %v16228_v53 = vmax.f32 %v16226_v3, %v16227_v34  ;;  %v16230_v17 = vld [vmem:[#allocation320_spill] sm:$0xff]  ;;  %v16237_v34 = vld [vmem:[#allocation174_spill] sm:$0xff] }
 0x75c   :  { %v13615_v36 = vpop.f32.mrf.mxu1  ;;  %v4643_v23 = vadd.f32 %v13414_v39, %v4495_v9  ;;  %v16231_v56 = vmax.f32 %v16229_v18, %v16230_v17  ;;  %v16240_v17 = vld [vmem:[#allocation300_spill] sm:$0xff] }
 0x75d   :  { %16210 = vst [vmem:[#allocation18_spill] sm:$0xff] %v13615_v36  ;;  %v16225_v36 = vld [vmem:[#allocation331_spill] sm:$0xff]  ;;  %v4460_v37 = vmax.f32 %v4172_v2, %v16228_v53  ;;  %v16238_v53 = vld [vmem:[#allocation204_spill] sm:$0xff] }
 0x75e   :  { %v9516_v2 = vld [vmem:[%s15493_s5 + $0x34] sm:$0xf] }
 0x75f   :  { %8697 = vmatmul.msk.f32.gmra.mxu3 %vm4679_vm2, %v4606_v63  ;;  %8733 = vmatmul.msk.f32.gmra.mxu1 %vm4679_vm2, %v4642_v52  ;;  %v16224_v63 = vld [vmem:[#allocation125_spill] sm:$0xff]  ;;  %v4608_v9 = vadd.f32 %v13414_v39, %v4460_v37  ;;  %v16239_v37 = vmax.f32 %v16237_v34, %v16238_v53  ;;  %v16248_v53 = vld [vmem:[#allocation178_spill] sm:$0xff] }
 0x760   :  { %v4208_v52 = vmax.f32 %v16225_v36, %v16224_v63  ;;  %v16234_v36 = vld [vmem:[#allocation219_spill] sm:$0xff] }
 0x761   :  { %v4173_v63 = vmax.f32 %v16234_v36, %v16233_v48 }
 0x762   :  { %v4496_v4 = vmax.f32 %v4208_v52, %v16231_v56  ;;  %v8778_v52 = vld [vmem:[%s15493_s5 + $0x38] sm:$0xf0]  ;;  %v16241_v56 = vld [vmem:[#allocation323_spill] sm:$0xff] }
 0x763   :  { %v8781_v3 = vor.u32 %v9516_v2, %v8778_v52  ;;  %v4461_v18 = vmax.f32 %v4173_v63, %v16239_v37  ;;  %v16246_v52 = vld [vmem:[#allocation133_spill] sm:$0xff]  ;;  %v8776_v63 = vld [vmem:[%s15493_s5 + $0x30] sm:$0xf]  ;;  %v16249_v37 = vld [vmem:[#allocation208_spill] sm:$0xff] }
 0x764   :  { %v13633_v29 = vpop.f32.mrf.mxu1  ;;  %v4210_v34 = vmax.f32 %v16247_v57, %v16246_v52  ;;  %v16252_v57 = vld [vmem:[#allocation326_spill] sm:$0xff] }
 0x765   :  { %16221 = vst [vmem:[#allocation29_spill] sm:$0xff] %v13633_v29  ;;  %v16236_v29 = vld [vmem:[#allocation334_spill] sm:$0xff]  ;;  %5782 = vmatpush.bf16.msra.mxu3 %v8781_v3  ;;  %v4609_v36 = vadd.f32 %v13414_v39, %v4461_v18  ;;  %v16250_v18 = vmax.f32 %v16248_v53, %v16249_v37 }
 0x767   :  { %8698 = vmatmul.msk.f32.gmra.mxu3 %vm4679_vm2, %v4607_v49  ;;  %8734 = vmatmul.msk.f32.gmra.mxu1 %vm4679_vm2, %v4643_v23  ;;  %v4644_v49 = vadd.f32 %v13414_v39, %v4496_v4  ;;  %v16235_v23 = vld [vmem:[#allocation129_spill] sm:$0xff] }
 0x768   :  { %v4209_v10 = vmax.f32 %v16236_v29, %v16235_v23  ;;  %v16242_v29 = vmax.f32 %v16240_v17, %v16241_v56  ;;  %v16245_v23 = vld [vmem:[#allocation223_spill] sm:$0xff] }
 0x769   :  { %v16251_v56 = vld [vmem:[#allocation303_spill] sm:$0xff] }
 0x76a   :  { %v4497_v4 = vmax.f32 %v4209_v10, %v16242_v29  ;;  %v9517_v10 = vld [vmem:[%s15493_s5 + $0x34] sm:$0xf0]  ;;  %v16253_v29 = vmax.f32 %v16251_v56, %v16252_v57  ;;  %v16263_v56 = vld [vmem:[#allocation329_spill] sm:$0xff] }
 0x76b   :  { %v8777_v3 = vor.u32 %v9517_v10, %v8776_v63  ;;  %v16255_v63 = vld [vmem:[#allocation11_spill] sm:$0xff] }
 0x76c   :  { %v13651_v0 = vpop.f32.mrf.mxu1  ;;  %v4645_v2 = vadd.f32 %v13414_v39, %v4497_v4  ;;  %v4498_v4 = vmax.f32 %v4210_v34, %v16253_v29  ;;  %v16256_v10 = vld [vmem:[#allocation227_spill] sm:$0xff]  ;;  %v16260_v34 = vld [vmem:[#allocation212_spill] sm:$0xff] }
 0x76d   :  { %16232 = vst [vmem:[#allocation21_spill] sm:$0xff] %v13651_v0  ;;  %5769 = vmatpush.bf16.msra.mxu2 %v8777_v3  ;;  %v16257_v3 = vld [vmem:[#allocation137_spill] sm:$0xff] }
 0x76f   :  { %8699 = vmatmul.msk.f32.gmra.mxu3 %vm4679_vm2, %v4608_v9  ;;  %8735 = vmatmul.msk.f32.gmra.mxu1 %vm4679_vm2, %v4644_v49  ;;  %v13673_v9 = vpop.f32.mrf.mxu3  ;;  %v16244_v49 = vld [vmem:[#allocation9_spill] sm:$0xff] }
 0x770   :  { %v4174_v0 = vmax.f32 %v16245_v23, %v16244_v49 }
 0x772   :  { %v4462_v17 = vmax.f32 %v4174_v0, %v16250_v18  ;;  %v16259_v0 = vld [vmem:[#allocation182_spill] sm:$0xff] }
 0x773   :  { %v16261_v53 = vmax.f32 %v16259_v0, %v16260_v34  ;;  %v16262_v18 = vld [vmem:[#allocation306_spill] sm:$0xff] }
 0x774   :  { %v13675_v48 = vpop.f32.mrf.mxu1  ;;  %v4610_v52 = vadd.f32 %v13414_v39, %v4462_v17  ;;  %v16264_v57 = vmax.f32 %v16262_v18, %v16263_v56 }
 0x775   :  { %16243 = vst [vmem:[#allocation32_spill] sm:$0xff] %v13675_v48  ;;  %v16258_v48 = vld [vmem:[#allocation340_spill] sm:$0xff] }
 0x776   :  { %v4211_v16 = vmax.f32 %v16258_v48, %v16257_v3  ;;  %v16269_v3 = vld [vmem:[#allocation342_spill] sm:$0xff] }
 0x777   :  { %8700 = vmatmul.msk.f32.gmra.mxu3 %vm4679_vm2, %v4609_v36  ;;  %8736 = vmatmul.msk.f32.gmra.mxu1 %vm4679_vm2, %v4645_v2  ;;  %v13697_v49 = vpop.f32.mrf.mxu3  ;;  %v4175_v36 = vmax.f32 %v16256_v10, %v16255_v63  ;;  %v4646_v2 = vadd.f32 %v13414_v39, %v4498_v4  ;;  %v16266_v4 = vld [vmem:[#allocation13_spill] sm:$0xff]  ;;  %v16267_v10 = vld [vmem:[#allocation230_spill] sm:$0xff] }
 0x778   :  { %v4499_v17 = vmax.f32 %v4211_v16, %v16264_v57  ;;  %v16271_v16 = vld [vmem:[#allocation216_spill] sm:$0xff] }
 0x779   :  { %v4463_v37 = vmax.f32 %v4175_v36, %v16261_v53  ;;  %v16270_v36 = vld [vmem:[#allocation186_spill] sm:$0xff]  ;;  %v16273_v53 = vld [vmem:[#allocation309_spill] sm:$0xff] }
 0x77a   :  { %v4647_v48 = vadd.f32 %v13414_v39, %v4499_v17  ;;  %v16272_v0 = vmax.f32 %v16270_v36, %v16271_v16  ;;  %v16282_v36 = vld [vmem:[#allocation190_spill] sm:$0xff] }
 0x77b   :  { %v4611_v63 = vadd.f32 %v13414_v39, %v4463_v37  ;;  %v16274_v37 = vld [vmem:[#allocation332_spill] sm:$0xff] }
 0x77c   :  { %v13699_v23 = vpop.f32.mrf.mxu1  ;;  %v16275_v18 = vmax.f32 %v16273_v53, %v16274_v37  ;;  %v16285_v53 = vld [vmem:[#allocation312_spill] sm:$0xff] }
 0x77d   :  { %16254 = vst [vmem:[#allocation24_spill] sm:$0xff] %v13699_v23  ;;  %v4176_v23 = vmax.f32 %v16267_v10, %v16266_v4  ;;  %v16277_v4 = vld [vmem:[#allocation16_spill] sm:$0xff]  ;;  %v16278_v10 = vld [vmem:[#allocation234_spill] sm:$0xff] }
 0x77f   :  { %8701 = vmatmul.msk.f32.gmra.mxu3 %vm4679_vm2, %v4610_v52  ;;  %8737 = vmatmul.msk.f32.gmra.mxu1 %vm4679_vm2, %v4646_v2  ;;  %v16268_v52 = vld [vmem:[#allocation141_spill] sm:$0xff]  ;;  %v13723_v55 = vpop.f32.mrf.mxu3  ;;  %v4464_v34 = vmax.f32 %v4176_v23, %v16272_v0 }
 0x780   :  { %v4212_v2 = vmax.f32 %v16269_v3, %v16268_v52  ;;  %v4177_v52 = vmax.f32 %v16278_v10, %v16277_v4  ;;  %v16288_v4 = vld [vmem:[#allocation19_spill] sm:$0xff]  ;;  %v16289_v10 = vld [vmem:[#allocation238_spill] sm:$0xff] }
 0x781   :  { %v4612_v17 = vadd.f32 %v13414_v39, %v4464_v34  ;;  %v16286_v34 = vld [vmem:[#allocation335_spill] sm:$0xff] }
 0x782   :  { %v4500_v56 = vmax.f32 %v4212_v2, %v16275_v18  ;;  %v16283_v2 = vld [vmem:[#allocation220_spill] sm:$0xff]  ;;  %v16287_v37 = vmax.f32 %v16285_v53, %v16286_v34  ;;  %v16297_v53 = vld [vmem:[#allocation338_spill] sm:$0xff] }
 0x783   :  { %v16284_v16 = vmax.f32 %v16282_v36, %v16283_v2  ;;  %v16294_v36 = vld [vmem:[#allocation224_spill] sm:$0xff] }
 0x784   :  { %v13715_v29 = vpop.f32.mrf.mxu1  ;;  %v4648_v3 = vadd.f32 %v13414_v39, %v4500_v56  ;;  %v4178_v56 = vmax.f32 %v16289_v10, %v16288_v4  ;;  %v16300_v10 = vld [vmem:[#allocation22_spill] sm:$0xff] }
 0x785   :  { %16265 = vst [vmem:[#allocation35_spill] sm:$0xff] %v13715_v29  ;;  %v16280_v29 = vld [vmem:[#allocation345_spill] sm:$0xff]  ;;  %v4465_v0 = vmax.f32 %v4177_v52, %v16284_v16  ;;  %v16293_v52 = vld [vmem:[#allocation194_spill] sm:$0xff]  ;;  %v16296_v16 = vld [vmem:[#allocation315_spill] sm:$0xff] }
 0x786   :  { %v16295_v2 = vmax.f32 %v16293_v52, %v16294_v36  ;;  %v16298_v34 = vmax.f32 %v16296_v16, %v16297_v53  ;;  %v16306_v36 = vld [vmem:[#allocation228_spill] sm:$0xff]  ;;  %v16308_v53 = vld [vmem:[#allocation25_spill] sm:$0xff] }
 0x787   :  { %8702 = vmatmul.msk.f32.gmra.mxu3 %vm4679_vm2, %v4611_v63  ;;  %8738 = vmatmul.msk.f32.gmra.mxu1 %vm4679_vm2, %v4647_v48  ;;  %v16279_v63 = vld [vmem:[#allocation145_spill] sm:$0xff]  ;;  %v13743_v23 = vpop.f32.mrf.mxu3 }
 0x788   :  { %v4213_v48 = vmax.f32 %v16280_v29, %v16279_v63  ;;  %16281 = vst [vmem:[#allocation38_spill] sm:$0xff] %v13743_v23  ;;  %v4613_v29 = vadd.f32 %v13414_v39, %v4465_v0  ;;  %v16292_v63 = vld [vmem:[#allocation348_spill] sm:$0xff] }
 0x78a   :  { %v4501_v18 = vmax.f32 %v4213_v48, %v16287_v37  ;;  %v4466_v48 = vmax.f32 %v4178_v56, %v16295_v2  ;;  %v16304_v56 = vld [vmem:[#allocation318_spill] sm:$0xff] }
 0x78b   :  { %v4359_v52 = vmax.f32 %v16304_v56, %v13434_v32 }
 0x78c   :  { %v13733_v57 = vpop.f32.mrf.mxu1  ;;  %v4614_v0 = vadd.f32 %v13414_v39, %v4466_v48 }
 0x78d   :  { %16276 = vst [vmem:[#allocation27_spill] sm:$0xff] %v13733_v57 }
 0x78f   :  { %8703 = vmatmul.msk.f32.gmra.mxu3 %vm4679_vm2, %v4612_v17  ;;  %8739 = vmatmul.msk.f32.gmra.mxu1 %vm4679_vm2, %v4648_v3  ;;  %v4649_v17 = vadd.f32 %v13414_v39, %v4501_v18  ;;  %v16291_v3 = vld [vmem:[#allocation149_spill] sm:$0xff]  ;;  %v13767_v4 = vpop.f32.mrf.mxu3 }
 0x790   :  { %v4214_v15 = vmax.f32 %v16292_v63, %v16291_v3  ;;  %v16301_v3 = vld [vmem:[#allocation242_spill] sm:$0xff] }
 0x791   :  { %v4179_v63 = vmax.f32 %v16301_v3, %v16300_v10 }
 0x792   :  { %v4502_v37 = vmax.f32 %v4214_v15, %v16298_v34  ;;  %v16305_v15 = vld [vmem:[#allocation198_spill] sm:$0xff] }
 0x793   :  { %v16307_v2 = vmax.f32 %v16305_v15, %v16306_v36  ;;  %v16309_v34 = vld [vmem:[#allocation246_spill] sm:$0xff] }
 0x794   :  { %v13753_v57 = vpop.f32.mrf.mxu1  ;;  %v4180_v10 = vmax.f32 %v16309_v34, %v16308_v53  ;;  %v16319_v53 = vld [vmem:[#allocation249_spill] sm:$0xff] }
 0x795   :  { %16290 = vst [vmem:[#allocation30_spill] sm:$0xff] %v13753_v57  ;;  %v16303_v57 = vld [vmem:[#allocation350_spill] sm:$0xff]  ;;  %v4467_v48 = vmax.f32 %v4179_v63, %v16307_v2  ;;  %v16315_v63 = vld [vmem:[#allocation231_spill] sm:$0xff] }
 0x797   :  { %8704 = vmatmul.msk.f32.gmra.mxu3 %vm4679_vm2, %v4613_v29  ;;  %8740 = vmatmul.msk.f32.gmra.mxu1 %vm4679_vm2, %v4649_v17  ;;  %v4650_v29 = vadd.f32 %v13414_v39, %v4502_v37  ;;  %v16302_v17 = vld [vmem:[#allocation153_spill] sm:$0xff]  ;;  %v13786_v3 = vpop.f32.mrf.mxu3 }
 0x798   :  { %v4215_v23 = vmax.f32 %v16303_v57, %v16302_v17  ;;  %v4615_v57 = vadd.f32 %v13414_v39, %v4467_v48  ;;  %v16311_v17 = vld [vmem:[#allocation157_spill] sm:$0xff] }
 0x79a   :  { %v4503_v16 = vmax.f32 %v4215_v23, %v4359_v52  ;;  %v16314_v23 = vld [vmem:[#allocation202_spill] sm:$0xff] }
 0x79b   :  { %v16316_v52 = vmax.f32 %v16314_v23, %v16315_v63 }
 0x79c   :  { %v13770_v18 = vpop.f32.mrf.mxu1  ;;  %v4651_v32 = vadd.f32 %v13414_v39, %v4503_v16  ;;  %v16318_v16 = vld [vmem:[#allocation28_spill] sm:$0xff] }
 0x79d   :  { %16299 = vst [vmem:[#allocation41_spill] sm:$0xff] %v13770_v18  ;;  %v4468_v15 = vmax.f32 %v4180_v10, %v16316_v52  ;;  %v4181_v34 = vmax.f32 %v16319_v53, %v16318_v16  ;;  %v16324_v10 = vld [vmem:[#allocation235_spill] sm:$0xff] }
 0x79e   :  { %v16326_v52 = vld [vmem:[#allocation31_spill] sm:$0xff] }
 0x79f   :  { %8705 = vmatmul.msk.f32.gmra.mxu3 %vm4679_vm2, %v4614_v0  ;;  %8741 = vmatmul.msk.f32.gmra.mxu1 %vm4679_vm2, %v4650_v29  ;;  %v16312_v0 = vld [vmem:[#allocation352_spill] sm:$0xff]  ;;  %v16313_v29 = vld [vmem:[#allocation321_spill] sm:$0xff]  ;;  %v4616_v2 = vadd.f32 %v13414_v39, %v4468_v15 }
 0x7a0   :  { %v4216_v56 = vmax.f32 %v16312_v0, %v16311_v17  ;;  %v4360_v18 = vmax.f32 %v16313_v29, %v13447_v8  ;;  %v16320_v0 = vld [vmem:[#allocation161_spill] sm:$0xff]  ;;  %v16321_v8 = vld [vmem:[#allocation354_spill] sm:$0xff] }
 0x7a1   :  { %v4217_v29 = vmax.f32 %v16321_v8, %v16320_v0  ;;  %v16327_v15 = vld [vmem:[#allocation253_spill] sm:$0xff]  ;;  %v16330_v8 = vld [vmem:[#allocation356_spill] sm:$0xff] }
 0x7a2   :  { %v4504_v36 = vmax.f32 %v4216_v56, %v4360_v18  ;;  %v16323_v18 = vld [vmem:[#allocation206_spill] sm:$0xff]  ;;  %v16329_v0 = vld [vmem:[#allocation165_spill] sm:$0xff] }
 0x7a3   :  { %v16325_v56 = vmax.f32 %v16323_v18, %v16324_v10 }
 0x7a4   :  { %v13788_v37 = vpop.f32.mrf.mxu1  ;;  %v4652_v17 = vadd.f32 %v13414_v39, %v4504_v36  ;;  %v4182_v36 = vmax.f32 %v16327_v15, %v16326_v52  ;;  %v16336_v52 = vld [vmem:[#allocation34_spill] sm:$0xff]  ;;  %v16337_v15 = vld [vmem:[#allocation256_spill] sm:$0xff] }
 0x7a5   :  { %16310 = vst [vmem:[#allocation33_spill] sm:$0xff] %v13788_v37  ;;  %v13811_v37 = vpop.f32.mrf.mxu3  ;;  %v4469_v23 = vmax.f32 %v4181_v34, %v16325_v56  ;;  %v16332_v34 = vld [vmem:[#allocation210_spill] sm:$0xff] }
 0x7a7   :  { %8706 = vmatmul.msk.f32.gmra.mxu3 %vm4679_vm2, %v4615_v57  ;;  %8742 = vmatmul.msk.f32.gmra.mxu1 %vm4679_vm2, %v4651_v32  ;;  %v16322_v57 = vld [vmem:[#allocation324_spill] sm:$0xff]  ;;  %v4617_v53 = vadd.f32 %v13414_v39, %v4469_v23 }
 0x7a8   :  { %v4361_v32 = vmax.f32 %v16322_v57, %v13458_v47  ;;  %v4218_v57 = vmax.f32 %v16330_v8, %v16329_v0  ;;  %v4183_v0 = vmax.f32 %v16337_v15, %v16336_v52  ;;  %v16338_v8 = vld [vmem:[#allocation169_spill] sm:$0xff]  ;;  %v16345_v52 = vld [vmem:[#allocation259_spill] sm:$0xff] }
 0x7aa   :  { %v4505_v63 = vmax.f32 %v4217_v29, %v4361_v32  ;;  %v16333_v29 = vld [vmem:[#allocation239_spill] sm:$0xff] }
 0x7ab   :  { %v16334_v32 = vmax.f32 %v16332_v34, %v16333_v29 }
 0x7ac   :  { %v13802_v48 = vpop.f32.mrf.mxu1  ;;  %v4653_v47 = vadd.f32 %v13414_v39, %v4505_v63 }
 0x7ad   :  { %16317 = vst [vmem:[#allocation44_spill] sm:$0xff] %v13802_v48  ;;  %v4470_v18 = vmax.f32 %v4182_v36, %v16334_v32  ;;  %v13833_v10 = vpop.f32.mrf.mxu3  ;;  %v16341_v36 = vld [vmem:[#allocation214_spill] sm:$0xff] }
 0x7af   :  { %8707 = vmatmul.msk.f32.gmra.mxu3 %vm4679_vm2, %v4616_v2  ;;  %8743 = vmatmul.msk.f32.gmra.mxu1 %vm4679_vm2, %v4652_v17  ;;  %v16331_v2 = vld [vmem:[#allocation327_spill] sm:$0xff]  ;;  %v4618_v23 = vadd.f32 %v13414_v39, %v4470_v18  ;;  %v16344_v18 = vld [vmem:[#allocation37_spill] sm:$0xff] }
 0x7b0   :  { %v4362_v17 = vmax.f32 %v16331_v2, %v13469_v14 }
 0x7b2   :  { %v4506_v56 = vmax.f32 %v4218_v57, %v4362_v17  ;;  %v16342_v57 = vld [vmem:[#allocation243_spill] sm:$0xff] }
 0x7b3   :  { %v16343_v17 = vmax.f32 %v16341_v36, %v16342_v57 }
 0x7b4   :  { %v13820_v16 = vpop.f32.mrf.mxu1  ;;  %v4654_v14 = vadd.f32 %v13414_v39, %v4506_v56  ;;  %v4184_v56 = vmax.f32 %v16345_v52, %v16344_v18  ;;  %v16352_v52 = vld [vmem:[#allocation40_spill] sm:$0xff] }
 0x7b5   :  { %16328 = vst [vmem:[#allocation36_spill] sm:$0xff] %v13820_v16  ;;  %v4471_v34 = vmax.f32 %v4183_v0, %v16343_v17  ;;  %v13850_v32 = vpop.f32.mrf.mxu3  ;;  %v16350_v0 = vld [vmem:[#allocation247_spill] sm:$0xff]  ;;  %v5039_v17 = vadd.f32 %v13069_v43, %v13349_v41  ;;  %v16357_v43 = vld [vmem:[#allocation221_spill] sm:$0xff]  ;;  %v16358_v41 = vld [vmem:[#allocation250_spill] sm:$0xff] }
 0x7b7   :  { %8708 = vmatmul.msk.f32.gmra.mxu3 %vm4679_vm2, %v4617_v53  ;;  %8744 = vmatmul.msk.f32.gmra.mxu1 %vm4679_vm2, %v4653_v47  ;;  %v16339_v53 = vld [vmem:[#allocation358_spill] sm:$0xff] }
 0x7b8   :  { %v4219_v2 = vmax.f32 %v16339_v53, %v16338_v8  ;;  %v16340_v47 = vld [vmem:[#allocation330_spill] sm:$0xff]  ;;  %v4619_v8 = vadd.f32 %v13414_v39, %v4471_v34 }
 0x7b9   :  { %v4363_v16 = vmax.f32 %v16340_v47, %v13482_v27  ;;  %v16346_v27 = vld [vmem:[#allocation173_spill] sm:$0xff]  ;;  %v16347_v47 = vld [vmem:[#allocation360_spill] sm:$0xff] }
 0x7bb   :  { %v4507_v29 = vmax.f32 %v4219_v2, %v4363_v16  ;;  %v16349_v16 = vld [vmem:[#allocation217_spill] sm:$0xff] }
 0x7bc   :  { %v13836_v63 = vpop.f32.mrf.mxu1  ;;  %v16351_v2 = vmax.f32 %v16349_v16, %v16350_v0  ;;  %v16356_v16 = vld [vmem:[#allocation336_spill] sm:$0xff] }
 0x7bd   :  { %16335 = vst [vmem:[#allocation47_spill] sm:$0xff] %v13836_v63  ;;  %v4655_v53 = vadd.f32 %v13414_v39, %v4507_v29 }
 0x7be   :  { %v4472_v36 = vmax.f32 %v4184_v56, %v16351_v2  ;;  %v4365_v56 = vmax.f32 %v16356_v16, %v13506_v21  ;;  %v16361_v21 = vld [vmem:[#allocation265_spill] sm:$0xff] }
 0x7bf   :  { %8709 = vmatmul.msk.f32.gmra.mxu3 %vm4679_vm2, %v4618_v23  ;;  %8745 = vmatmul.msk.f32.gmra.mxu1 %vm4679_vm2, %v4654_v14  ;;  %v4220_v23 = vmax.f32 %v16347_v47, %v16346_v27  ;;  %v16348_v14 = vld [vmem:[#allocation333_spill] sm:$0xff]  ;;  %v16353_v27 = vld [vmem:[#allocation262_spill] sm:$0xff] }
 0x7c0   :  { %v4364_v63 = vmax.f32 %v16348_v14, %v13495_v38  ;;  %v4620_v18 = vadd.f32 %v13414_v39, %v4472_v36  ;;  %v4185_v47 = vmax.f32 %v16353_v27, %v16352_v52  ;;  %v16354_v14 = vld [vmem:[#allocation177_spill] sm:$0xff]  ;;  %v5042_v36 = vadd.f32 %v13080_v51, %v13361_v59  ;;  %v16360_v52 = vld [vmem:[#allocation43_spill] sm:$0xff]  ;;  %v16366_v59 = vld [vmem:[#allocation254_spill] sm:$0xff] }
 0x7c1   :  { %v16362_v27 = vld [vmem:[#allocation181_spill] sm:$0xff] }
 0x7c2   :  { %v4508_v57 = vmax.f32 %v4220_v23, %v4364_v63  ;;  %v16359_v23 = vmax.f32 %v16357_v43, %v16358_v41  ;;  %v16365_v51 = vld [vmem:[#allocation225_spill] sm:$0xff]  ;;  %v5045_v41 = vadd.f32 %v13091_v45, %v13373_v60 }
 0x7c3   :  { %v16367_v16 = vmax.f32 %v16365_v51, %v16366_v59  ;;  %v16373_v45 = vld [vmem:[#allocation229_spill] sm:$0xff] }
 0x7c4   :  { %v5544_v15 = vpop.f32.mrf.mxu1  ;;  %v4473_v0 = vmax.f32 %v4185_v47, %v16359_v23  ;;  %v16374_v60 = vld [vmem:[#allocation257_spill] sm:$0xff] }
 0x7c7   :  { %8710 = vmatmul.msk.f32.gmra.mxu3 %vm4679_vm2, %v4619_v8  ;;  %8746 = vmatmul.msk.f32.gmra.mxu1 %vm4679_vm2, %v4655_v53  ;;  %v4656_v8 = vadd.f32 %v13414_v39, %v4508_v57  ;;  %v16355_v53 = vld [vmem:[#allocation361_spill] sm:$0xff] }
 0x7c8   :  { %v4221_v48 = vmax.f32 %v16355_v53, %v16354_v14  ;;  %v16364_v53 = vld [vmem:[#allocation339_spill] sm:$0xff] }
 0x7c9   :  { %v4366_v47 = vmax.f32 %v16364_v53, %v13517_v26  ;;  %v16369_v26 = vld [vmem:[#allocation268_spill] sm:$0xff] }
 0x7ca   :  { %v5273_v34 = vpop.f32.mrf.mxu3  ;;  %v4509_v2 = vmax.f32 %v4221_v48, %v4365_v56 }
 0x7cb   :  { %v5381_v29 = vadd.f32 %v5273_v34, %v5039_v17  ;;  %v4621_v34 = vadd.f32 %v13414_v39, %v4473_v0 }
 0x7cc   :  { %v5547_v38 = vpop.f32.mrf.mxu1 }
 0x7cd   :  { %v13875_v63 = vadd.f32 %v5544_v15, %v5381_v29  ;;  %v4186_v15 = vmax.f32 %v16361_v21, %v16360_v52  ;;  %v16371_v52 = vld [vmem:[#allocation365_spill] sm:$0xff] }
 0x7cf   :  { %8711 = vmatmul.msk.f32.gmra.mxu3 %vm4679_vm2, %v4620_v18  ;;  %8747 = vmatmul.msk.f32.gmra.mxu1 %vm4679_vm2, %v4656_v8  ;;  %v4657_v18 = vadd.f32 %v13414_v39, %v4509_v2  ;;  %v16363_v8 = vld [vmem:[#allocation363_spill] sm:$0xff]  ;;  %v4474_v56 = vmax.f32 %v4186_v15, %v16367_v16 }
 0x7d0   :  { %v4222_v14 = vmax.f32 %v16363_v8, %v16362_v27  ;;  %v16375_v8 = vmax.f32 %v16373_v45, %v16374_v60  ;;  %v16384_v60 = vld [vmem:[#allocation52_spill] sm:$0xff] }
 0x7d1   :  { %v4622_v2 = vadd.f32 %v13414_v39, %v4474_v56  ;;  %v16376_v56 = vld [vmem:[#allocation49_spill] sm:$0xff] }
 0x7d2   :  { %v5276_v57 = vpop.f32.mrf.mxu3  ;;  %v4510_v43 = vmax.f32 %v4222_v14, %v4366_v47  ;;  %v5048_v47 = vadd.f32 %v13103_v20, %v13385_v28  ;;  %v16381_v20 = vld [vmem:[#allocation233_spill] sm:$0xff]  ;;  %v16382_v28 = vld [vmem:[#allocation260_spill] sm:$0xff] }
 0x7d3   :  { %v5382_v17 = vadd.f32 %v5276_v57, %v5042_v36  ;;  %v16368_v36 = vld [vmem:[#allocation46_spill] sm:$0xff] }
 0x7d4   :  { %v5550_v29 = vpop.f32.mrf.mxu1 }
 0x7d5   :  { %v13892_v48 = vadd.f32 %v5547_v38, %v5382_v17  ;;  %v4187_v38 = vmax.f32 %v16369_v26, %v16368_v36  ;;  %v4658_v17 = vadd.f32 %v13414_v39, %v4510_v43  ;;  %v16380_v36 = vld [vmem:[#allocation343_spill] sm:$0xff] }
 0x7d6   :  { %v4368_v26 = vmax.f32 %v16380_v36, %v13543_v6  ;;  %v16385_v6 = vld [vmem:[#allocation274_spill] sm:$0xff] }
 0x7d7   :  { %8712 = vmatmul.msk.f32.gmra.mxu3 %vm4679_vm2, %v4621_v34  ;;  %8748 = vmatmul.msk.f32.gmra.mxu1 %vm4679_vm2, %v4657_v18  ;;  %v16370_v34 = vld [vmem:[#allocation185_spill] sm:$0xff]  ;;  %v4475_v14 = vmax.f32 %v4187_v38, %v16375_v8 }
 0x7d8   :  { %v4223_v21 = vmax.f32 %v16371_v52, %v16370_v34  ;;  %v16372_v18 = vld [vmem:[#allocation341_spill] sm:$0xff] }
 0x7d9   :  { %v4367_v15 = vmax.f32 %v16372_v18, %v13530_v5  ;;  %v4623_v16 = vadd.f32 %v13414_v39, %v4475_v14  ;;  %v16377_v5 = vld [vmem:[#allocation271_spill] sm:$0xff] }
 0x7da   :  { %v5279_v23 = vpop.f32.mrf.mxu3 }
 0x7db   :  { %v5383_v0 = vadd.f32 %v5279_v23, %v5045_v41  ;;  %v4511_v53 = vmax.f32 %v4223_v21, %v4367_v15  ;;  %v16378_v23 = vld [vmem:[#allocation189_spill] sm:$0xff]  ;;  %v5051_v21 = vadd.f32 %v13119_v35, %v13397_v42  ;;  %v16389_v35 = vld [vmem:[#allocation236_spill] sm:$0xff]  ;;  %v16390_v42 = vld [vmem:[#allocation263_spill] sm:$0xff] }
 0x7dc   :  { %v5553_v57 = vpop.f32.mrf.mxu1 }
 0x7dd   :  { %v13909_v27 = vadd.f32 %v5550_v29, %v5383_v0  ;;  %v4188_v29 = vmax.f32 %v16377_v5, %v16376_v56  ;;  %v4659_v41 = vadd.f32 %v13414_v39, %v4511_v53  ;;  %v16379_v0 = vld [vmem:[#allocation367_spill] sm:$0xff]  ;;  %v16386_v53 = vld [vmem:[#allocation193_spill] sm:$0xff]  ;;  %v16391_v5 = vmax.f32 %v16389_v35, %v16390_v42 }
 0x7de   :  { %v16402_v42 = vld [vmem:[#allocation201_spill] sm:$0xff] }
 0x7df   :  { %8713 = vmatmul.msk.f32.gmra.mxu3 %vm4679_vm2, %v4622_v2  ;;  %8749 = vmatmul.msk.f32.gmra.mxu1 %vm4679_vm2, %v4658_v17  ;;  %v4224_v2 = vmax.f32 %v16379_v0, %v16378_v23  ;;  %v16383_v17 = vmax.f32 %v16381_v20, %v16382_v28  ;;  %v5054_v23 = vadd.f32 %v13130_v40, %v13409_v1  ;;  %v16397_v40 = vld [vmem:[#allocation240_spill] sm:$0xff]  ;;  %v16398_v1 = vld [vmem:[#allocation266_spill] sm:$0xff] }
 0x7e1   :  { %v4476_v34 = vmax.f32 %v4188_v29, %v16383_v17  ;;  %v4512_v52 = vmax.f32 %v4224_v2, %v4368_v26  ;;  %v16392_v26 = vld [vmem:[#allocation55_spill] sm:$0xff]  ;;  %v16394_v17 = vld [vmem:[#allocation197_spill] sm:$0xff] }
 0x7e2   :  { %v5282_v51 = vpop.f32.mrf.mxu3 }
 0x7e3   :  { %v5384_v59 = vadd.f32 %v5282_v51, %v5048_v47  ;;  %v4624_v45 = vadd.f32 %v13414_v39, %v4476_v34  ;;  %v4660_v14 = vadd.f32 %v13414_v39, %v4512_v52  ;;  %v16387_v47 = vld [vmem:[#allocation369_spill] sm:$0xff]  ;;  %v16395_v34 = vld [vmem:[#allocation370_spill] sm:$0xff] }
 0x7e4   :  { %v5556_v43 = vpop.f32.mrf.mxu1  ;;  %v4225_v51 = vmax.f32 %v16387_v47, %v16386_v53  ;;  %v4226_v52 = vmax.f32 %v16395_v34, %v16394_v17 }
 0x7e5   :  { %v13926_v38 = vadd.f32 %v5553_v57, %v5384_v59  ;;  %v4189_v57 = vmax.f32 %v16385_v6, %v16384_v60  ;;  %v16388_v59 = vld [vmem:[#allocation346_spill] sm:$0xff] }
 0x7e7   :  { %8714 = vmatmul.msk.f32.gmra.mxu3 %vm4679_vm2, %v4623_v16  ;;  %8750 = vmatmul.msk.f32.gmra.mxu1 %vm4679_vm2, %v4659_v41  ;;  %v4369_v16 = vmax.f32 %v16388_v59, %v13556_v50  ;;  %v4477_v29 = vmax.f32 %v4189_v57, %v16391_v5  ;;  %v16393_v50 = vld [vmem:[#allocation277_spill] sm:$0xff]  ;;  %v5057_v57 = vadd.f32 %v13141_v11, %v13426_v12  ;;  %v16403_v5 = vld [vmem:[#allocation372_spill] sm:$0xff]  ;;  %v8770_v12 = vld [vmem:[%s15493_s5 + $0x28] sm:$0xf0] }
 0x7e8   :  { %v9514_v11 = vld [vmem:[%s15493_s5 + $0x24] sm:$0xf] }
 0x7e9   :  { %v4513_v41 = vmax.f32 %v4225_v51, %v4369_v16  ;;  %v4625_v36 = vadd.f32 %v13414_v39, %v4477_v29  ;;  %v16401_v51 = vld [vmem:[#allocation280_spill] sm:$0xff]  ;;  %v4227_v29 = vmax.f32 %v16403_v5, %v16402_v42 }
 0x7ea   :  { %v5285_v18 = vpop.f32.mrf.mxu3 }
 0x7eb   :  { %v5385_v15 = vadd.f32 %v5285_v18, %v5051_v21  ;;  %v4661_v28 = vadd.f32 %v13414_v39, %v4513_v41  ;;  %v16396_v21 = vld [vmem:[#allocation349_spill] sm:$0xff]  ;;  %v16404_v41 = vld [vmem:[#allocation351_spill] sm:$0xff] }
 0x7ec   :  { %v5559_v8 = vpop.f32.mrf.mxu1  ;;  %v4370_v18 = vmax.f32 %v16396_v21, %v13577_v13  ;;  %v16409_v21 = vld [vmem:[#allocation283_spill] sm:$0xff] }
 0x7ed   :  { %v13943_v56 = vadd.f32 %v5556_v43, %v5385_v15  ;;  %v4190_v43 = vmax.f32 %v16393_v50, %v16392_v26 }
 0x7ee   :  { %v4514_v6 = vmax.f32 %v4226_v52, %v4370_v18  ;;  %v16408_v52 = vld [vmem:[#allocation61_spill] sm:$0xff] }
 0x7ef   :  { %8715 = vmatmul.msk.f32.gmra.mxu3 %vm4679_vm2, %v4624_v45  ;;  %8751 = vmatmul.msk.f32.gmra.mxu1 %vm4679_vm2, %v4660_v14  ;;  %v16399_v45 = vmax.f32 %v16397_v40, %v16398_v1  ;;  %v13969_v14 = vpop.f32.mrf.mxu2  ;;  %v4192_v18 = vmax.f32 %v16409_v21, %v16408_v52 }
 0x7f0   :  { %v4662_v35 = vadd.f32 %v13414_v39, %v4514_v6  ;;  %v16411_v6 = vld [vmem:[#allocation374_spill] sm:$0xff] }
 0x7f1   :  { %v4478_v60 = vmax.f32 %v4190_v43, %v16399_v45  ;;  %v8773_v43 = vor.u32 %v9514_v11, %v8770_v12  ;;  %v16417_v11 = vld [vmem:[#allocation286_spill] sm:$0xff] }
 0x7f2   :  { %v5288_v0 = vpop.f32.mrf.mxu3 }
 0x7f3   :  { %v5386_v2 = vadd.f32 %v5288_v0, %v5054_v23  ;;  %v4626_v13 = vadd.f32 %v13414_v39, %v4478_v60  ;;  %v4371_v23 = vmax.f32 %v16404_v41, %v13597_v7  ;;  %5783 = vmatpush.bf16.msra.mxu3 %v8773_v43  ;;  %v16410_v60 = vld [vmem:[#allocation205_spill] sm:$0xff] }
 0x7f4   :  { %v5562_v20 = vpop.f32.mrf.mxu1 }
 0x7f5   :  { %v13960_v15 = vadd.f32 %v5559_v8, %v5386_v2  ;;  %v16400_v8 = vld [vmem:[#allocation58_spill] sm:$0xff]  ;;  %v16405_v2 = vld [vmem:[#allocation244_spill] sm:$0xff]  ;;  %v4515_v7 = vmax.f32 %v4227_v29, %v4371_v23  ;;  %v16416_v23 = vld [vmem:[#allocation65_spill] sm:$0xff] }
 0x7f6   :  { %v4191_v59 = vmax.f32 %v16401_v51, %v16400_v8  ;;  %v16413_v8 = vld [vmem:[#allocation248_spill] sm:$0xff]  ;;  %v4193_v12 = vmax.f32 %v16417_v11, %v16416_v23 }
 0x7f7   :  { %8716 = vmatmul.msk.f32.gmra.mxu3 %vm4679_vm2, %v4625_v36  ;;  %8752 = vmatmul.msk.f32.gmra.mxu1 %vm4679_vm2, %v4661_v28  ;;  %v16406_v36 = vld [vmem:[#allocation269_spill] sm:$0xff]  ;;  %v13997_v40 = vpop.f32.mrf.mxu2  ;;  %v4663_v45 = vadd.f32 %v13414_v39, %v4515_v7  ;;  %v16414_v51 = vld [vmem:[#allocation272_spill] sm:$0xff]  ;;  %v16420_v7 = vld [vmem:[#allocation355_spill] sm:$0xff] }
 0x7f8   :  { %v16407_v26 = vmax.f32 %v16405_v2, %v16406_v36 }
 0x7fa   :  { %v5291_v53 = vpop.f32.mrf.mxu3  ;;  %v4479_v50 = vmax.f32 %v4191_v59, %v16407_v26  ;;  %v16415_v59 = vmax.f32 %v16413_v8, %v16414_v51  ;;  %v16418_v26 = vld [vmem:[#allocation209_spill] sm:$0xff] }
 0x7fb   :  { %v5387_v47 = vadd.f32 %v5291_v53, %v5057_v57  ;;  %v4228_v57 = vmax.f32 %v16411_v6, %v16410_v60  ;;  %v16412_v53 = vld [vmem:[#allocation353_spill] sm:$0xff] }
 0x7fc   :  { %v5565_v16 = vpop.f32.mrf.mxu1  ;;  %v4627_v34 = vadd.f32 %v13414_v39, %v4479_v50  ;;  %v16419_v50 = vld [vmem:[#allocation376_spill] sm:$0xff]  ;;  %v16425_v6 = vld [vmem:[#allocation289_spill] sm:$0xff] }
 0x7fd   :  { %v13979_v0 = vadd.f32 %v5562_v20, %v5387_v47  ;;  %v5060_v20 = vadd.f32 %v13152_v30, %v13436_v19  ;;  %v4372_v47 = vmax.f32 %v16412_v53, %v13623_v24  ;;  %v8768_v19 = vld [vmem:[%s15493_s5 + $0x20] sm:$0xf]  ;;  %v4229_v43 = vmax.f32 %v16419_v50, %v16418_v26 }
 0x7fe   :  { %v16428_v51 = vld [vmem:[#allocation357_spill] sm:$0xff] }
 0x7ff   :  { %8717 = vmatmul.msk.f32.gmra.mxu3 %vm4679_vm2, %v4626_v13  ;;  %8753 = vmatmul.msk.f32.gmra.mxu1 %vm4679_vm2, %v4662_v35  ;;  %v9515_v13 = vld [vmem:[%s15493_s5 + $0x24] sm:$0xf0]  ;;  %v4480_v35 = vmax.f32 %v4192_v18, %v16415_v59  ;;  %v4516_v24 = vmax.f32 %v4228_v57, %v4372_v47  ;;  %v5066_v18 = vadd.f32 %v13178_v25, %v13454_v31  ;;  %v16429_v31 = vld [vmem:[#allocation255_spill] sm:$0xff] }
 0x800   :  { %v8769_v42 = vor.u32 %v9515_v13, %v8768_v19  ;;  %v16426_v19 = vld [vmem:[#allocation213_spill] sm:$0xff]  ;;  %v4374_v59 = vmax.f32 %v16428_v51, %v13673_v9  ;;  %v16443_v51 = vld [vmem:[#allocation379_spill] sm:$0xff] }
 0x801   :  { %v4628_v41 = vadd.f32 %v13414_v39, %v4480_v35  ;;  %v4664_v36 = vadd.f32 %v13414_v39, %v4516_v24  ;;  %v16427_v13 = vld [vmem:[#allocation377_spill] sm:$0xff] }
 0x802   :  { %v5294_v28 = vpop.f32.mrf.mxu3  ;;  %5770 = vmatpush.bf16.msra.mxu2 %v8769_v42  ;;  %v4230_v8 = vmax.f32 %v16427_v13, %v16426_v19  ;;  %v16430_v42 = vld [vmem:[#allocation278_spill] sm:$0xff] }
 0x803   :  { %v5388_v17 = vadd.f32 %v5294_v28, %v5060_v20  ;;  %v4373_v20 = vmax.f32 %v16420_v7, %v13643_v22  ;;  %v16431_v24 = vmax.f32 %v16429_v31, %v16430_v42  ;;  %v16435_v7 = vld [vmem:[#allocation378_spill] sm:$0xff] }
 0x804   :  { %v5568_v1 = vpop.f32.mrf.mxu1  ;;  %v16444_v31 = vld [vmem:[#allocation362_spill] sm:$0xff] }
 0x805   :  { %v14004_v30 = vadd.f32 %v5565_v16, %v5388_v17  ;;  %v5063_v16 = vadd.f32 %v13167_v62, %v13444_v44  ;;  %v14029_v62 = vpop.f32.mrf.mxu2  ;;  %v16421_v44 = vld [vmem:[#allocation252_spill] sm:$0xff]  ;;  %v16422_v17 = vld [vmem:[#allocation275_spill] sm:$0xff]  ;;  %v4517_v21 = vmax.f32 %v4229_v43, %v4373_v20  ;;  %v16434_v43 = vld [vmem:[#allocation218_spill] sm:$0xff]  ;;  %v4376_v42 = vmax.f32 %v16444_v31, %v13723_v55 }
 0x806   :  { %v4231_v20 = vmax.f32 %v16435_v7, %v16434_v43 }
 0x807   :  { %8718 = vmatmul.msk.f32.gmra.mxu3 %vm4679_vm2, %v4627_v34  ;;  %8754 = vmatmul.msk.f32.gmra.mxu1 %vm4679_vm2, %v4663_v45  ;;  %v16423_v34 = vmax.f32 %v16421_v44, %v16422_v17  ;;  %v4665_v47 = vadd.f32 %v13414_v39, %v4517_v21  ;;  %v16436_v44 = vld [vmem:[#allocation359_spill] sm:$0xff] }
 0x808   :  { %v4375_v17 = vmax.f32 %v16436_v44, %v13697_v49  ;;  %v16451_v44 = vld [vmem:[#allocation380_spill] sm:$0xff] }
 0x809   :  { %v4481_v52 = vmax.f32 %v4193_v12, %v16423_v34  ;;  %v16432_v12 = vld [vmem:[#allocation73_spill] sm:$0xff] }
 0x80a   :  { %v5297_v5 = vpop.f32.mrf.mxu3 }
 0x80b   :  { %v5389_v29 = vadd.f32 %v5297_v5, %v5063_v16  ;;  %v4629_v22 = vadd.f32 %v13414_v39, %v4481_v52  ;;  %v16438_v52 = vld [vmem:[#allocation281_spill] sm:$0xff] }
 0x80c   :  { %v5571_v2 = vpop.f32.mrf.mxu1 }
 0x80d   :  { %v14027_v28 = vadd.f32 %v5568_v1, %v5389_v29  ;;  %v16424_v1 = vld [vmem:[#allocation69_spill] sm:$0xff]  ;;  %v14055_v5 = vpop.f32.mrf.mxu2  ;;  %v4518_v29 = vmax.f32 %v4230_v8, %v4374_v59  ;;  %v16442_v8 = vld [vmem:[#allocation222_spill] sm:$0xff] }
 0x80e   :  { %v4194_v57 = vmax.f32 %v16425_v6, %v16424_v1  ;;  %v4232_v59 = vmax.f32 %v16443_v51, %v16442_v8  ;;  %v16459_v51 = vld [vmem:[#allocation232_spill] sm:$0xff] }
 0x80f   :  { %8719 = vmatmul.msk.f32.gmra.mxu3 %vm4679_vm2, %v4628_v41  ;;  %8755 = vmatmul.msk.f32.gmra.mxu1 %vm4679_vm2, %v4664_v36  ;;  %v5069_v41 = vadd.f32 %v13192_v61, %v13464_v46  ;;  %v4666_v50 = vadd.f32 %v13414_v39, %v4518_v29  ;;  %v16437_v46 = vld [vmem:[#allocation258_spill] sm:$0xff] }
 0x810   :  { %v4482_v16 = vmax.f32 %v4194_v57, %v16431_v24  ;;  %v16439_v21 = vmax.f32 %v16437_v46, %v16438_v52  ;;  %v16440_v57 = vld [vmem:[#allocation77_spill] sm:$0xff]  ;;  %v16452_v46 = vld [vmem:[#allocation38_spill] sm:$0xff]  ;;  %v16453_v52 = vld [vmem:[#allocation364_spill] sm:$0xff] }
 0x812   :  { %v5300_v45 = vpop.f32.mrf.mxu3  ;;  %v4630_v11 = vadd.f32 %v13414_v39, %v4482_v16  ;;  %v16446_v16 = vld [vmem:[#allocation284_spill] sm:$0xff] }
 0x813   :  { %v5390_v60 = vadd.f32 %v5300_v45, %v5066_v18  ;;  %v4519_v45 = vmax.f32 %v4231_v20, %v4375_v17  ;;  %v16450_v20 = vld [vmem:[#allocation226_spill] sm:$0xff] }
 0x814   :  { %v5574_v53 = vpop.f32.mrf.mxu1  ;;  %v4233_v17 = vmax.f32 %v16451_v44, %v16450_v20  ;;  %v16467_v20 = vld [vmem:[#allocation304_spill] sm:$0xff] }
 0x815   :  { %v14046_v35 = vadd.f32 %v5571_v2, %v5390_v60  ;;  %v16433_v2 = vld [vmem:[#allocation292_spill] sm:$0xff]  ;;  %v5072_v60 = vadd.f32 %v13203_v54, %v13474_v58  ;;  %v4667_v13 = vadd.f32 %v13414_v39, %v4519_v45  ;;  %v16445_v58 = vld [vmem:[#allocation261_spill] sm:$0xff]  ;;  %v16455_v45 = vld [vmem:[#allocation287_spill] sm:$0xff] }
 0x816   :  { %v4195_v36 = vmax.f32 %v16433_v2, %v16432_v12  ;;  %v16447_v29 = vmax.f32 %v16445_v58, %v16446_v16  ;;  %v16448_v2 = vld [vmem:[#allocation81_spill] sm:$0xff] }
 0x817   :  { %v5688_v25 = vmax.f32 %v13875_v63, %v14046_v35  ;;  %8720 = vmatmul.msk.f32.gmra.mxu3 %vm4679_vm2, %v4629_v22  ;;  %8756 = vmatmul.msk.f32.gmra.mxu1 %vm4679_vm2, %v4665_v47  ;;  %v14078_v22 = vpop.f32.mrf.mxu2  ;;  %v9521_v63 = vld [vmem:[%s15493_s5 + $0x54] sm:$0xf0] }
 0x818   :  { %v4483_v18 = vmax.f32 %v4195_v36, %v16439_v21  ;;  %v16449_v36 = vld [vmem:[#allocation298_spill] sm:$0xff]  ;;  %v4377_v21 = vmax.f32 %v16453_v52, %v16452_v46  ;;  %v16468_v46 = vld [vmem:[#allocation237_spill] sm:$0xff] }
 0x819   :  { %v16469_v52 = vld [vmem:[#allocation382_spill] sm:$0xff] }
 0x81a   :  { %v5303_v9 = vpop.f32.mrf.mxu3  ;;  %v4631_v6 = vadd.f32 %v13414_v39, %v4483_v18  ;;  %v16454_v18 = vld [vmem:[#allocation264_spill] sm:$0xff] }
 0x81b   :  { %v5391_v23 = vadd.f32 %v5303_v9, %v5069_v41  ;;  %v4520_v9 = vmax.f32 %v4232_v59, %v4376_v42  ;;  %v16460_v59 = vld [vmem:[#allocation381_spill] sm:$0xff]  ;;  %v16461_v42 = vld [vmem:[#allocation366_spill] sm:$0xff] }
 0x81c   :  { %v5577_v26 = vpop.f32.mrf.mxu1  ;;  %v4234_v31 = vmax.f32 %v16460_v59, %v16459_v51  ;;  %v4378_v58 = vmax.f32 %v16461_v42, %v13767_v4  ;;  %v9691_v59 = vld [vmem:[%s15490_s2] ss:$0 sm:$0xff] }
 0x81d   :  { %v14067_v34 = vadd.f32 %v5574_v53, %v5391_v23  ;;  %v16441_v53 = vld [vmem:[#allocation295_spill] sm:$0xff]  ;;  %v5075_v23 = vadd.f32 %v13969_v14, %v13484_v33  ;;  %v4668_v7 = vadd.f32 %v13414_v39, %v4520_v9 }
 0x81e   :  { %v4196_v47 = vmax.f32 %v16441_v53, %v16440_v57  ;;  %v16457_v57 = vld [vmem:[#allocation85_spill] sm:$0xff] }
 0x81f   :  { %v5689_v61 = vmax.f32 %v13892_v48, %v14067_v34  ;;  %8721 = vmatmul.msk.f32.gmra.mxu3 %vm4679_vm2, %v4630_v11  ;;  %8757 = vmatmul.msk.f32.gmra.mxu1 %vm4679_vm2, %v4666_v50  ;;  %v14102_v50 = vpop.f32.mrf.mxu2  ;;  %v16458_v53 = vld [vmem:[#allocation301_spill] sm:$0xff] }
 0x820   :  { %v4484_v41 = vmax.f32 %v4196_v47, %v16447_v29  ;;  %v4198_v47 = vmax.f32 %v16458_v53, %v16457_v57  ;;  %v16462_v29 = vld [vmem:[#allocation267_spill] sm:$0xff]  ;;  %v16472_v57 = vld [vmem:[#allocation293_spill] sm:$0xff] }
 0x822   :  { %v5306_v49 = vpop.f32.mrf.mxu3  ;;  %v4632_v55 = vadd.f32 %v13414_v39, %v4484_v41  ;;  %v16463_v41 = vld [vmem:[#allocation290_spill] sm:$0xff] }
 0x823   :  { %v5392_v1 = vadd.f32 %v5306_v49, %v5072_v60  ;;  %v16456_v60 = vmax.f32 %v16454_v18, %v16455_v45  ;;  %v16464_v9 = vmax.f32 %v16462_v29, %v16463_v41  ;;  %v16470_v18 = vld [vmem:[#allocation368_spill] sm:$0xff]  ;;  %v16477_v29 = vld [vmem:[#allocation383_spill] sm:$0xff] }
 0x824   :  { %v5580_v19 = vpop.f32.mrf.mxu1  ;;  %v4379_v45 = vmax.f32 %v16470_v18, %v13786_v3  ;;  %v16475_v3 = vld [vmem:[#allocation307_spill] sm:$0xff] }
 0x825   :  { %v14088_v24 = vadd.f32 %v5577_v26, %v5392_v1  ;;  %v4197_v26 = vmax.f32 %v16449_v36, %v16448_v2  ;;  %v4521_v1 = vmax.f32 %v4233_v17, %v4377_v21  ;;  %v4235_v21 = vmax.f32 %v16469_v52, %v16468_v46  ;;  %v16483_v52 = vld [vmem:[#allocation97_spill] sm:$0xff] }
 0x827   :  { %v5690_v54 = vmax.f32 %v13909_v27, %v14088_v24  ;;  %8722 = vmatmul.msk.f32.gmra.mxu3 %vm4679_vm2, %v4631_v6  ;;  %8758 = vmatmul.msk.f32.gmra.mxu1 %vm4679_vm2, %v4667_v13  ;;  %v4485_v49 = vmax.f32 %v4197_v26, %v16456_v60  ;;  %v4669_v8 = vadd.f32 %v13414_v39, %v4521_v1  ;;  %v5092_v16 = vpop.f32.mrf.mxu2  ;;  %v16471_v1 = vld [vmem:[#allocation270_spill] sm:$0xff]  ;;  %v9525_v24 = vld [vmem:[%s15493_s5 + $0x74] sm:$0xf0] }
 0x828   :  { %v8830_v27 = vld [vmem:[%s15493_s5 + $0x70] sm:$0xf] }
 0x82a   :  { %v5309_v11 = vpop.f32.mrf.mxu3 }
 0x82b   :  { %v5393_v12 = vadd.f32 %v5309_v11, %v5075_v23  ;;  %v4486_v23 = vmax.f32 %v4198_v47, %v16464_v9  ;;  %v4522_v11 = vmax.f32 %v4234_v31, %v4378_v58  ;;  %v4523_v47 = vmax.f32 %v4235_v21, %v4379_v45  ;;  %v16476_v58 = vld [vmem:[#allocation241_spill] sm:$0xff]  ;;  %v16478_v9 = vld [vmem:[#allocation371_spill] sm:$0xff]  ;;  %v16484_v21 = vld [vmem:[#allocation310_spill] sm:$0xff] }
 0x82c   :  { %v14104_v43 = vpop.f32.mrf.mxu1  ;;  %v4236_v41 = vmax.f32 %v16477_v29, %v16476_v58  ;;  %v4201_v18 = vmax.f32 %v16484_v21, %v16483_v52 }
 0x82d   :  { %v14111_v33 = vadd.f32 %v5580_v19, %v5393_v12  ;;  %v4633_v19 = vadd.f32 %v13414_v39, %v4485_v49  ;;  %v16465_v12 = vld [vmem:[#allocation344_spill] sm:$0xff]  ;;  %v4634_v26 = vadd.f32 %v13414_v39, %v4486_v23  ;;  %v4670_v17 = vadd.f32 %v13414_v39, %v4522_v11  ;;  %v16479_v11 = vld [vmem:[#allocation273_spill] sm:$0xff] }
 0x82e   :  { %v16473_v39 = vmax.f32 %v16471_v1, %v16472_v57  ;;  %v4671_v42 = vadd.f32 %v9691_v59, %v4523_v47  ;;  %v4380_v23 = vmax.f32 %v16478_v9, %v13811_v37  ;;  %v16485_v1 = vld [vmem:[#allocation245_spill] sm:$0xff]  ;;  %v16486_v57 = vld [vmem:[#allocation384_spill] sm:$0xff] }
 0x82f   :  { %8723 = vmatmul.msk.f32.gmra.mxu3 %vm4679_vm2, %v4632_v55  ;;  %8759 = vmatmul.msk.f32.gmra.mxu1 %vm4679_vm2, %v4668_v7  ;;  %v5081_v55 = vadd.f32 %v14029_v62, %v16465_v12  ;;  %v16466_v7 = vld [vmem:[#allocation89_spill] sm:$0xff]  ;;  %v14153_v49 = vpop.f32.mrf.mxu2  ;;  %v16480_v12 = vld [vmem:[#allocation296_spill] sm:$0xff] }
 0x830   :  { %v4199_v4 = vmax.f32 %v16467_v20, %v16466_v7 }
 0x832   :  { %v14120_v6 = vpop.f32.mrf.mxu3  ;;  %v4487_v53 = vmax.f32 %v4199_v4, %v16473_v39  ;;  %v4237_v39 = vmax.f32 %v16486_v57, %v16485_v1 }
 0x834   :  { %v5586_v13 = vpop.f32.mrf.mxu1  ;;  %v4635_v31 = vadd.f32 %v9691_v59, %v4487_v53  ;;  %v16487_v53 = vld [vmem:[#allocation373_spill] sm:$0xff] }
 0x835   :  { %v4381_v47 = vmax.f32 %v16487_v53, %v13833_v10 }
 0x837   :  { %8724 = vmatmul.msk.f32.gmra.mxu3 %vm4679_vm2, %v4633_v19  ;;  %8760 = vmatmul.msk.f32.gmra.mxu1 %vm4679_vm2, %v4669_v8  ;;  %v16474_v8 = vld [vmem:[#allocation93_spill] sm:$0xff]  ;;  %v5098_v20 = vpop.f32.mrf.mxu2  ;;  %v4525_v58 = vmax.f32 %v4237_v39, %v4381_v47 }
 0x83a   :  { %v5315_v2 = vpop.f32.mrf.mxu3 }
 0x83b   :  { %v5395_v36 = vadd.f32 %v5315_v2, %v5081_v55  ;;  %v16481_v55 = vmax.f32 %v16479_v11, %v16480_v12  ;;  %v4673_v12 = vadd.f32 %v9691_v59, %v4525_v58  ;;  %v16500_v58 = vld [vmem:[#allocation23_spill] sm:$0xff] }
 0x83c   :  { %v14140_v44 = vpop.f32.mrf.mxu1 }
 0x83d   :  { %v14147_v60 = vadd.f32 %v5586_v13, %v5395_v36  ;;  %v4200_v13 = vmax.f32 %v16475_v3, %v16474_v8  ;;  %v4524_v36 = vmax.f32 %v4236_v41, %v4380_v23  ;;  %v16488_v3 = vld [vmem:[#allocation276_spill] sm:$0xff]  ;;  %v16492_v23 = vld [vmem:[#allocation313_spill] sm:$0xff] }
 0x83f   :  { %8725 = vmatmul.msk.f32.gmra.mxu3 %vm4679_vm2, %v4634_v26  ;;  %8761 = vmatmul.msk.f32.gmra.mxu1 %vm4679_vm2, %v4670_v17  ;;  %v4488_v2 = vmax.f32 %v4200_v13, %v16481_v55  ;;  %v16482_v26 = vld [vmem:[#allocation10_spill] sm:$0xff]  ;;  %v4672_v45 = vadd.f32 %v9691_v59, %v4524_v36  ;;  %v16489_v13 = vld [vmem:[#allocation299_spill] sm:$0xff]  ;;  %v14195_v9 = vpop.f32.mrf.mxu2 }
 0x840   :  { %v5087_v7 = vadd.f32 %v14078_v22, %v16482_v26  ;;  %v16493_v55 = vld [vmem:[#allocation251_spill] sm:$0xff]  ;;  %v16505_v22 = vld [vmem:[#allocation12_spill] sm:$0xff] }
 0x841   :  { %v4636_v46 = vadd.f32 %v9691_v59, %v4488_v2  ;;  %v16494_v2 = vld [vmem:[#allocation385_spill] sm:$0xff]  ;;  %v16495_v26 = vld [vmem:[#allocation375_spill] sm:$0xff]  ;;  %v5096_v62 = vadd.f32 %v14153_v49, %v16505_v22 }
 0x842   :  { %v14158_v19 = vpop.f32.mrf.mxu3  ;;  %v4238_v36 = vmax.f32 %v16494_v2, %v16493_v55  ;;  %v16501_v55 = vld [vmem:[#allocation26_spill] sm:$0xff]  ;;  %v9520_v49 = vld [vmem:[%s15493_s5 + $0x54] sm:$0xf] }
 0x844   :  { %v5592_v51 = vpop.f32.mrf.mxu1 }
 0x847   :  { %8726 = vmatmul.msk.f32.gmra.mxu3 %vm4679_vm2, %v4635_v31  ;;  %8762 = vmatmul.msk.f32.gmra.mxu1 %vm4679_vm2, %v4671_v42  ;;  %v16490_v31 = vmax.f32 %v16488_v3, %v16489_v13 }
 0x849   :  { %v4489_v42 = vmax.f32 %v4201_v18, %v16490_v31  ;;  %v16499_v18 = vld [vmem:[#allocation20_spill] sm:$0xff] }
 0x84a   :  { %v5321_v4 = vpop.f32.mrf.mxu3 }
 0x84b   :  { %v5397_v17 = vadd.f32 %v5321_v4, %v5087_v7  ;;  %v4637_v41 = vadd.f32 %v9691_v59, %v4489_v42  ;;  %v4382_v7 = vmax.f32 %v16495_v26, %v13850_v32  ;;  %v16496_v4 = vld [vmem:[#allocation279_spill] sm:$0xff]  ;;  %v5104_v32 = vpop.f32.mrf.mxu2 }
 0x84c   :  { %v14178_v37 = vpop.f32.mrf.mxu1  ;;  %v5105_v2 = vadd.f32 %v5104_v32, %v16501_v55  ;;  %v16503_v55 = vld [vmem:[#allocation32_spill] sm:$0xff] }
 0x84d   :  { %v14184_v8 = vadd.f32 %v5592_v51, %v5397_v17  ;;  %v16491_v51 = vld [vmem:[#allocation101_spill] sm:$0xff]  ;;  %v16497_v17 = vld [vmem:[#allocation302_spill] sm:$0xff]  ;;  %v4526_v21 = vmax.f32 %v4238_v36, %v4382_v7 }
 0x84e   :  { %v4202_v11 = vmax.f32 %v16492_v23, %v16491_v51 }
 0x84f   :  { %8727 = vmatmul.msk.f32.gmra.mxu3 %vm4679_vm2, %v4636_v46  ;;  %8763 = vmatmul.msk.f32.gmra.mxu1 %vm4679_vm2, %v4672_v45  ;;  %v16498_v46 = vmax.f32 %v16496_v4, %v16497_v17  ;;  %v5093_v45 = vadd.f32 %v5092_v16, %v16499_v18  ;;  %v4674_v47 = vadd.f32 %v9691_v59, %v4526_v21  ;;  %v16502_v21 = vld [vmem:[#allocation29_spill] sm:$0xff] }
 0x850   :  { %v5099_v16 = vadd.f32 %v5098_v20, %v16500_v58  ;;  %v9512_v58 = vld [vmem:[%s15493_s5 + $0x14] sm:$0xf] }
 0x851   :  { %v4490_v52 = vmax.f32 %v4202_v11, %v16498_v46 }
 0x852   :  { %v14193_v29 = vpop.f32.mrf.mxu3 }
 0x853   :  { %v4638_v53 = vadd.f32 %v9691_v59, %v4490_v52  ;;  %v14217_v42 = vpop.f32.mrf.mxu2 }
 0x854   :  { %v5598_v10 = vpop.f32.mrf.mxu1 }
 0x857   :  { %8728 = vmatmul.msk.f32.gmra.mxu3 %vm4679_vm2, %v4637_v41  ;;  %8764 = vmatmul.msk.f32.gmra.mxu1 %vm4679_vm2, %v4673_v12 }
 0x85a   :  { %v5327_v1 = vpop.f32.mrf.mxu3 }
 0x85b   :  { %v5399_v57 = vadd.f32 %v5327_v1, %v5093_v45  ;;  %v5110_v59 = vpop.f32.mrf.mxu2 }
 0x85c   :  { %v14209_v39 = vpop.f32.mrf.mxu1  ;;  %v5111_v18 = vadd.f32 %v5110_v59, %v16502_v21  ;;  %v9513_v59 = vld [vmem:[%s15493_s5 + $0x14] sm:$0xf0]  ;;  %v9510_v21 = vld [vmem:[%s15493_s5 + $0x4] sm:$0xf] }
 0x85d   :  { %v14211_v3 = vadd.f32 %v5598_v10, %v5399_v57 }
 0x85f   :  { %8729 = vmatmul.msk.f32.gmra.mxu3 %vm4679_vm2, %v4638_v53  ;;  %8765 = vmatmul.msk.f32.gmra.mxu1 %vm4679_vm2, %v4674_v47 }
 0x862   :  { %v14215_v13 = vpop.f32.mrf.mxu3 }
 0x863   :  { %v14227_v7 = vpop.f32.mrf.mxu2 }
 0x864   :  { %v5604_v31 = vpop.f32.mrf.mxu1 }
 0x86a   :  { %v5333_v41 = vpop.f32.mrf.mxu3 }
 0x86b   :  { %v5401_v51 = vadd.f32 %v5333_v41, %v5099_v16  ;;  %v5116_v52 = vpop.f32.mrf.mxu2  ;;  %v8796_v16 = vld [vmem:[%s15493_s5 + $0x18] sm:$0xf0] }
 0x86c   :  { %v14220_v23 = vpop.f32.mrf.mxu1  ;;  %v8799_v41 = vor.u32 %v9512_v58, %v8796_v16 }
 0x86d   :  { %v14222_v11 = vadd.f32 %v5604_v31, %v5401_v51  ;;  %v8794_v51 = vld [vmem:[%s15493_s5 + $0x10] sm:$0xf] }
 0x86e   :  { %5831 = vmatpush.bf16.msrb.mxu3 %v8799_v41  ;;  %v9100_v41 = vld [vmem:[%s15493_s5 + $0x250] sm:$0xf] }
 0x872   :  { %v14224_v10 = vpop.f32.mrf.mxu3 }
 0x873   :  { %v5119_v47 = vpop.f32.mrf.mxu2 }
 0x874   :  { %v5610_v12 = vpop.f32.mrf.mxu1 }
 0x87a   :  { %v5339_v36 = vpop.f32.mrf.mxu3 }
 0x87b   :  { %v5403_v26 = vadd.f32 %v5339_v36, %v5105_v2  ;;  %v5117_v2 = vadd.f32 %v5116_v52, %v16503_v55  ;;  %v5122_v36 = vpop.f32.mrf.mxu2  ;;  %v9511_v52 = vld [vmem:[%s15493_s5 + $0x4] sm:$0xf0]  ;;  %v16504_v55 = vld [vmem:[#allocation24_spill] sm:$0xff] }
 0x87c   :  { %v14229_v4 = vpop.f32.mrf.mxu1 }
 0x87d   :  { %v14231_v17 = vadd.f32 %v5610_v12, %v5403_v26  ;;  %v8795_v12 = vor.u32 %v9513_v59, %v8794_v51  ;;  %v9585_v51 = vld [vmem:[%s15493_s5 + $0x254] sm:$0xf0] }
 0x87f   :  { %5818 = vmatpush.bf16.msrb.mxu2 %v8795_v12  ;;  %v9101_v12 = vor.u32 %v9585_v51, %v9100_v41  ;;  %v5400_v41 = vadd.f32 %v14215_v13, %v5096_v62  ;;  %v8812_v62 = vld [vmem:[%s15493_s5 + $0x50] sm:$0xf] }
 0x881   :  { %6772 = vmatpush.bf16.msrb.mxu1 %v9101_v12  ;;  %v5671_v13 = vadd.f32 %v14209_v39, %v5400_v41  ;;  %v8804_v39 = vld [vmem:[%s15493_s5 + $0x40] sm:$0xf]  ;;  %v16507_v41 = vld [vmem:[#allocation27_spill] sm:$0xff] }
 0x882   :  { %v14233_v20 = vpop.f32.mrf.mxu3 }
 0x884   :  { %v5616_v46 = vpop.f32.mrf.mxu1 }
 0x88a   :  { %v5345_v45 = vpop.f32.mrf.mxu3 }
 0x88b   :  { %v5405_v1 = vadd.f32 %v5345_v45, %v5111_v18  ;;  %v8788_v18 = vld [vmem:[%s15493_s5 + $0x8] sm:$0xf0]  ;;  %v8786_v45 = vld [vmem:[%s15493_s5] sm:$0xf] }
 0x88c   :  { %v14236_v57 = vpop.f32.mrf.mxu1  ;;  %v8791_v58 = vor.u32 %v9510_v21, %v8788_v18  ;;  %v8787_v59 = vor.u32 %v9511_v52, %v8786_v45  ;;  %v5125_v18 = vpop.f32.mrf.mxu2  ;;  %v14282_v45 = vld [vmem:[%s15492_s4] ss:$0 sm:$0xff] }
 0x88d   :  { %v14238_v53 = vadd.f32 %v5616_v46, %v5405_v1 }
 0x88e   :  { %5832 = vmatpush.bf16.msrb.mxu3 %v8791_v58  ;;  %5819 = vmatpush.bf16.msrb.mxu2 %v8787_v59  ;;  %v16506_v58 = vld [vmem:[#allocation35_spill] sm:$0xff] }
 0x88f   :  { %v5123_v52 = vadd.f32 %v5122_v36, %v16506_v58 }
 0x892   :  { %v14240_v32 = vpop.f32.mrf.mxu3 }
 0x894   :  { %v5622_v31 = vpop.f32.mrf.mxu1 }
 0x89a   :  { %v5351_v26 = vpop.f32.mrf.mxu3 }
 0x89b   :  { %v5407_v46 = vadd.f32 %v5351_v26, %v5117_v2  ;;  %v5120_v2 = vadd.f32 %v5119_v47, %v16504_v55  ;;  %v5128_v55 = vpop.f32.mrf.mxu2 }
 0x89c   :  { %v5625_v1 = vpop.f32.mrf.mxu1 }
 0x89d   :  { %v14267_v16 = vadd.f32 %v5622_v31, %v5407_v46 }
 0x8a2   :  { %v5354_v26 = vpop.f32.mrf.mxu3 }
 0x8a3   :  { %v5408_v21 = vadd.f32 %v5354_v26, %v5120_v2  ;;  %v8813_v26 = vor.u32 %v9521_v63, %v8812_v62 }
 0x8a4   :  { %v5628_v31 = vpop.f32.mrf.mxu1 }
 0x8a5   :  { %v5679_v46 = vadd.f32 %v5625_v1, %v5408_v21  ;;  %v8814_v1 = vld [vmem:[%s15493_s5 + $0x58] sm:$0xf0]  ;;  %v9518_v21 = vld [vmem:[%s15493_s5 + $0x44] sm:$0xf] }
 0x8a6   :  { %v8817_v2 = vor.u32 %v9520_v49, %v8814_v1 }
 0x8a7   :  { %v5697_v14 = vmax.f32 %v14211_v3, %v5679_v46  ;;  %v8806_v46 = vld [vmem:[%s15493_s5 + $0x48] sm:$0xf0] }
 0x8a9   :  { %v5706_v47 = vmax.f32 %v5688_v25, %v5697_v14  ;;  %v9092_v25 = vld [vmem:[%s15493_s5 + $0x240] sm:$0xf]  ;;  %v9583_v14 = vld [vmem:[%s15493_s5 + $0x244] sm:$0xf0] }
 0x8aa   :  { %v5357_v51 = vpop.f32.mrf.mxu3  ;;  %v9093_v12 = vor.u32 %v9583_v14, %v9092_v25  ;;  %v9588_v14 = vld [vmem:[%s15493_s5 + $0x274] sm:$0xf] }
 0x8ab   :  { %v5719_v22 = vadd.f32 %v14282_v45, %v5706_v47  ;;  %v5409_v3 = vadd.f32 %v5357_v51, %v5123_v52  ;;  %v5126_v47 = vadd.f32 %v5125_v18, %v16507_v41  ;;  %v16508_v18 = vld [vmem:[#allocation15_spill] sm:$0xff]  ;;  %v9112_v41 = vld [vmem:[%s15493_s5 + $0x268] sm:$0xf0] }
 0x8ac   :  { %v5631_v35 = vpop.f32.mrf.mxu1  ;;  %6773 = vmatpush.bf16.msrb.mxu1 %v9093_v12  ;;  %v5102_v48 = vadd.f32 %v14195_v9, %v16508_v18 }
 0x8ad   :  { %v14309_v36 = vpack.c.bf16 %v5719_v22, %v5719_v22  ;;  %v5680_v59 = vadd.f32 %v5628_v31, %v5409_v3  ;;  %v9519_v31 = vld [vmem:[%s15493_s5 + $0x44] sm:$0xf0]  ;;  %v8809_v22 = vor.u32 %v9518_v21, %v8806_v46 }
 0x8ae   :  { %v8805_v3 = vor.u32 %v9519_v31, %v8804_v39  ;;  %v5402_v12 = vadd.f32 %v14224_v10, %v5102_v48  ;;  %v8832_v10 = vld [vmem:[%s15493_s5 + $0x78] sm:$0xf0]  ;;  %v16510_v46 = vld [vmem:[#allocation14_spill] sm:$0xff]  ;;  %v9586_v31 = vld [vmem:[%s15493_s5 + $0x264] sm:$0xf]  ;;  %v16512_v48 = vmax.f32 %v13926_v38, %v14111_v33 }
 0x8af   :  { %v5698_v58 = vmax.f32 %v5671_v13, %v5680_v59  ;;  %v5738_v52 = vrot.slane %v14309_v36, 1  ;;  %v16509_v13 = vld [vmem:[#allocation30_spill] sm:$0xff] }
 0x8b0   :  { %v5129_v59 = vadd.f32 %v5128_v55, %v16509_v13 }
 0x8b1   :  { %v5707_v51 = vmax.f32 %v5689_v61, %v5698_v58  ;;  %8782 = vmatmul.msk.bf16.vlgmr.msra.gmra.mxu2 %vm5759_vm3, %v5738_v52  ;;  %8783 = vmatmul.msk.bf16.vlgmr.msra.gmra.mxu3 %vm5759_vm3, %v5738_v52  ;;  %v5131_v61 = vpop.f32.mrf.mxu2  ;;  %v5078_v58 = vadd.f32 %v13997_v40, %v16510_v46  ;;  %v5673_v52 = vadd.f32 %v14220_v23, %v5402_v12  ;;  %v8824_v23 = vld [vmem:[%s15493_s5 + $0x68] sm:$0xf0] }
 0x8b2   :  { %v5360_v49 = vpop.f32.mrf.mxu3  ;;  %5885 = vmatpush.bf16.msra.mxu3 %v8817_v2  ;;  %5872 = vmatpush.bf16.msra.mxu2 %v8813_v26  ;;  %v9120_v2 = vld [vmem:[%s15493_s5 + $0x278] sm:$0xf0] }
 0x8b3   :  { %v14331_v1 = vadd.f32 %v14282_v45, %v5707_v51  ;;  %v5410_v62 = vadd.f32 %v5360_v49, %v5126_v47  ;;  %v9123_v26 = vor.u32 %v9588_v14, %v9120_v2  ;;  %v8831_v51 = vor.u32 %v9525_v24, %v8830_v27  ;;  %v9522_v49 = vld [vmem:[%s15493_s5 + $0x64] sm:$0xf]  ;;  %v16513_v2 = vld [vmem:[#allocation18_spill] sm:$0xff] }
 0x8b4   :  { %v5634_v63 = vpop.f32.mrf.mxu1  ;;  %v5394_v40 = vadd.f32 %v14120_v6, %v5078_v58  ;;  %v8827_v13 = vor.u32 %v9522_v49, %v8824_v23  ;;  %v8842_v23 = vld [vmem:[%s15493_s5 + $0x88] sm:$0xf0] }
 0x8b5   :  { %v5681_v25 = vadd.f32 %v5631_v35, %v5410_v62  ;;  %6841 = vmatpush.bf16.msra.mxu1 %v9123_v26  ;;  %v8822_v62 = vld [vmem:[%s15493_s5 + $0x60] sm:$0xf] }
 0x8b6   :  { %5886 = vmatpush.bf16.msra.mxu3 %v8809_v22  ;;  %5873 = vmatpush.bf16.msra.mxu2 %v8805_v3  ;;  %v9115_v22 = vor.u32 %v9586_v31, %v9112_v41  ;;  %v5665_v12 = vadd.f32 %v14104_v43, %v5394_v40  ;;  %v9154_v31 = vld [vmem:[%s15493_s5 + $0x2b0] sm:$0xf]  ;;  %v9597_v41 = vld [vmem:[%s15493_s5 + $0x2b4] sm:$0xf0] }
 0x8b7   :  { %v5699_v34 = vmax.f32 %v14222_v11, %v5681_v25  ;;  %v9524_v11 = vld [vmem:[%s15493_s5 + $0x74] sm:$0xf]  ;;  %v16511_v25 = vld [vmem:[#allocation41_spill] sm:$0xff] }
 0x8b8   :  { %v8835_v47 = vor.u32 %v9524_v11, %v8832_v10  ;;  %v5132_v18 = vadd.f32 %v5131_v61, %v16511_v25  ;;  %v5692_v11 = vmax.f32 %v13943_v56, %v5665_v12  ;;  %v8848_v56 = vld [vmem:[%s15493_s5 + $0x90] sm:$0xf]  ;;  %v9155_v25 = vor.u32 %v9597_v41, %v9154_v31  ;;  %v9174_v31 = vld [vmem:[%s15493_s5 + $0x2d8] sm:$0xf0] }
 0x8b9   :  { %v5708_v35 = vmax.f32 %v5690_v54, %v5699_v34  ;;  %6842 = vmatpush.bf16.msra.mxu1 %v9115_v22  ;;  %v5134_v34 = vpop.f32.mrf.mxu2 }
 0x8ba   :  { %v5363_v9 = vpop.f32.mrf.mxu3 }
 0x8bb   :  { %v14351_v21 = vadd.f32 %v14282_v45, %v5708_v35  ;;  %v5411_v55 = vadd.f32 %v5363_v9, %v5129_v59  ;;  %v5108_v9 = vadd.f32 %v14217_v42, %v16513_v2  ;;  %v8850_v42 = vld [vmem:[%s15493_s5 + $0x98] sm:$0xf0] }
 0x8bc   :  { %v5637_v54 = vpop.f32.mrf.mxu1 }
 0x8bd   :  { %v5682_v39 = vadd.f32 %v5634_v63, %v5411_v55  ;;  %v9523_v63 = vld [vmem:[%s15493_s5 + $0x64] sm:$0xf0]  ;;  %v5404_v27 = vadd.f32 %v14233_v20, %v5108_v9 }
 0x8be   :  { %v8823_v59 = vor.u32 %v9523_v63, %v8822_v62  ;;  %v16514_v55 = vld [vmem:[#allocation33_spill] sm:$0xff] }
 0x8bf   :  { %v5700_v3 = vmax.f32 %v5673_v52, %v5682_v39  ;;  %v5135_v10 = vadd.f32 %v5134_v34, %v16514_v55  ;;  %v16515_v52 = vld [vmem:[#allocation17_spill] sm:$0xff]  ;;  %v9529_v39 = vld [vmem:[%s15493_s5 + $0x94] sm:$0xf0] }
 0x8c0   :  { %v5084_v20 = vadd.f32 %v14055_v5, %v16515_v52  ;;  %v5842_v5 = vrot.slane %v14309_v36, 2  ;;  %v9595_v34 = vld [vmem:[%s15493_s5 + $0x2a4] sm:$0xf0] }
 0x8c1   :  { %v5709_v6 = vmax.f32 %v16512_v48, %v5700_v3  ;;  %8800 = vmatmul.msk.bf16.vlgmr.msrb.gmra.mxu2 %vm5759_vm3, %v14309_v36  ;;  %8801 = vmatmul.msk.bf16.vlgmr.msrb.gmra.mxu3 %vm5759_vm3, %v14309_v36  ;;  %v9526_v3 = vld [vmem:[%s15493_s5 + $0x84] sm:$0xf] }
 0x8c2   :  { %v5366_v14 = vpop.f32.mrf.mxu3  ;;  %5941 = vmatpush.bf16.msrb.mxu3 %v8835_v47  ;;  %5928 = vmatpush.bf16.msrb.mxu2 %v8831_v51  ;;  %v5675_v47 = vadd.f32 %v14229_v4, %v5404_v27  ;;  %v5396_v22 = vadd.f32 %v14158_v19, %v5084_v20  ;;  %v8849_v4 = vor.u32 %v9529_v39, %v8848_v56  ;;  %v8840_v19 = vld [vmem:[%s15493_s5 + $0x80] sm:$0xf]  ;;  %v9533_v20 = vld [vmem:[%s15493_s5 + $0xb4] sm:$0xf0]  ;;  %v9600_v39 = vld [vmem:[%s15493_s5 + $0x2d4] sm:$0xf] }
 0x8c3   :  { %v14394_v61 = vadd.f32 %v14282_v45, %v5709_v6  ;;  %v5412_v35 = vadd.f32 %v5366_v14, %v5132_v18  ;;  %v9527_v18 = vld [vmem:[%s15493_s5 + $0x84] sm:$0xf0]  ;;  %v9146_v6 = vld [vmem:[%s15493_s5 + $0x2a0] sm:$0xf] }
 0x8c4   :  { %v5640_v33 = vpop.f32.mrf.mxu1  ;;  %v16516_v14 = vld [vmem:[#allocation44_spill] sm:$0xff]  ;;  %v8841_v2 = vor.u32 %v9527_v18, %v8840_v19  ;;  %v16518_v55 = vld [vmem:[#allocation21_spill] sm:$0xff]  ;;  %v9166_v19 = vld [vmem:[%s15493_s5 + $0x2c8] sm:$0xf0] }
 0x8c5   :  { %v5683_v38 = vadd.f32 %v5637_v54, %v5412_v35  ;;  %v9528_v54 = vld [vmem:[%s15493_s5 + $0x94] sm:$0xf]  ;;  %v5667_v35 = vadd.f32 %v14140_v44, %v5396_v22  ;;  %v5114_v44 = vadd.f32 %v14227_v7, %v16518_v55  ;;  %v5898_v22 = vrot.slane %v14309_v36, 3  ;;  %v9609_v55 = vld [vmem:[%s15493_s5 + $0x314] sm:$0xf0] }
 0x8c6   :  { %5942 = vmatpush.bf16.msrb.mxu3 %v8827_v13  ;;  %5929 = vmatpush.bf16.msrb.mxu2 %v8823_v59  ;;  %v8853_v40 = vor.u32 %v9528_v54, %v8850_v42  ;;  %v16517_v59 = vmax.f32 %v13960_v15, %v14147_v60  ;;  %v9147_v15 = vor.u32 %v9595_v34, %v9146_v6  ;;  %v9532_v7 = vld [vmem:[%s15493_s5 + $0xb4] sm:$0xf] }
 0x8c7   :  { %v5701_v26 = vmax.f32 %v14231_v17, %v5683_v38  ;;  %v5137_v17 = vpop.f32.mrf.mxu2  ;;  %v16521_v18 = vld [vmem:[#allocation47_spill] sm:$0xff]  ;;  %v16522_v6 = vmax.f32 %v14004_v30, %v14184_v8 }
 0x8c8   :  { %v5138_v13 = vadd.f32 %v5137_v17, %v16516_v14 }
 0x8c9   :  { %v5710_v43 = vmax.f32 %v5692_v11, %v5701_v26 }
 0x8ca   :  { %v5369_v24 = vpop.f32.mrf.mxu3 }
 0x8cb   :  { %v5723_v46 = vadd.f32 %v14282_v45, %v5710_v43  ;;  %v5413_v58 = vadd.f32 %v5369_v24, %v5135_v10  ;;  %v5694_v10 = vmax.f32 %v13979_v0, %v5667_v35  ;;  %v16519_v43 = vld [vmem:[#allocation36_spill] sm:$0xff] }
 0x8cc   :  { %v5643_v48 = vpop.f32.mrf.mxu1  ;;  %v8868_v0 = vld [vmem:[%s15493_s5 + $0xb8] sm:$0xf0] }
 0x8cd   :  { %v14424_v51 = vpack.c.bf16 %v5723_v46, %v5723_v46  ;;  %v5684_v49 = vadd.f32 %v5640_v33, %v5413_v58  ;;  %v8845_v33 = vor.u32 %v9526_v3, %v8842_v23  ;;  %v5406_v46 = vadd.f32 %v14240_v32, %v5114_v44  ;;  %v16520_v32 = vld [vmem:[#allocation347_spill] sm:$0xff]  ;;  %v8860_v23 = vld [vmem:[%s15493_s5 + $0xa8] sm:$0xf0] }
 0x8ce   :  { %v5090_v52 = vadd.f32 %v14102_v50, %v16520_v32  ;;  %v8871_v50 = vor.u32 %v9532_v7, %v8868_v0  ;;  %v9540_v32 = vld [vmem:[%s15493_s5 + $0xf4] sm:$0xf] }
 0x8cf   :  { %v5702_v62 = vmax.f32 %v5675_v47, %v5684_v49  ;;  %v6742_v63 = vrot.slane %v14424_v51, 2  ;;  %v5140_v26 = vpop.f32.mrf.mxu2  ;;  %v5677_v41 = vadd.f32 %v14236_v57, %v5406_v46  ;;  %v8858_v57 = vld [vmem:[%s15493_s5 + $0xa0] sm:$0xf]  ;;  %v8878_v46 = vld [vmem:[%s15493_s5 + $0xc8] sm:$0xf0] }
 0x8d0   :  { %v5141_v24 = vadd.f32 %v5140_v26, %v16519_v43  ;;  %v5398_v49 = vadd.f32 %v14193_v29, %v5090_v52  ;;  %v9531_v29 = vld [vmem:[%s15493_s5 + $0xa4] sm:$0xf0]  ;;  %v9536_v26 = vld [vmem:[%s15493_s5 + $0xd4] sm:$0xf]  ;;  %v8904_v52 = vld [vmem:[%s15493_s5 + $0xf8] sm:$0xf0] }
 0x8d1   :  { %v5711_v12 = vmax.f32 %v16517_v59, %v5702_v62  ;;  %8818 = vmatmul.msk.bf16.vlgmr.msra.gmra.mxu2 %vm5759_vm3, %v5842_v5  ;;  %8819 = vmatmul.msk.bf16.vlgmr.msra.gmra.mxu3 %vm5759_vm3, %v5842_v5  ;;  %v9530_v5 = vld [vmem:[%s15493_s5 + $0xa4] sm:$0xf]  ;;  %v9177_v62 = vor.u32 %v9600_v39, %v9174_v31  ;;  %v9541_v39 = vld [vmem:[%s15493_s5 + $0xf4] sm:$0xf0]  ;;  %v9612_v31 = vld [vmem:[%s15493_s5 + $0x334] sm:$0xf] }
 0x8d2   :  { %9106 = vmatmul.msk.bf16.vlgmr.msrb.gmra.mxu1 %vm5759_vm3, %v6742_v63  ;;  %v5372_v38 = vpop.f32.mrf.mxu3  ;;  %5997 = vmatpush.bf16.msra.mxu3 %v8853_v40  ;;  %v5669_v14 = vadd.f32 %v14178_v37, %v5398_v49  ;;  %v8863_v59 = vor.u32 %v9530_v5, %v8860_v23  ;;  %v9538_v5 = vld [vmem:[%s15493_s5 + $0xe4] sm:$0xf]  ;;  %v8894_v23 = vld [vmem:[%s15493_s5 + $0xe0] sm:$0xf] }
 0x8d3   :  { %v14458_v9 = vadd.f32 %v14282_v45, %v5711_v12  ;;  %v5414_v11 = vadd.f32 %v5372_v38, %v5138_v13  ;;  %5984 = vmatpush.bf16.msra.mxu2 %v8849_v4  ;;  %6941 = vmatpush.bf16.msrb.mxu1 %v9155_v25  ;;  %v6798_v4 = vrot.slane %v14424_v51, 3  ;;  %v9598_v25 = vld [vmem:[%s15493_s5 + $0x2c4] sm:$0xf]  ;;  %v8859_v12 = vor.u32 %v9531_v29, %v8858_v57  ;;  %v9220_v29 = vld [vmem:[%s15493_s5 + $0x328] sm:$0xf0] }
 0x8d4   :  { %v5646_v54 = vpop.f32.mrf.mxu1  ;;  %v9169_v30 = vor.u32 %v9598_v25, %v9166_v19  ;;  %v5696_v37 = vmax.f32 %v14027_v28, %v5669_v14  ;;  %v8886_v28 = vld [vmem:[%s15493_s5 + $0xd8] sm:$0xf0]  ;;  %v9610_v57 = vld [vmem:[%s15493_s5 + $0x324] sm:$0xf]  ;;  %v9262_v14 = vld [vmem:[%s15493_s5 + $0x370] sm:$0xf] }
 0x8d5   :  { %v5685_v60 = vadd.f32 %v5643_v48, %v5414_v11  ;;  %v9223_v19 = vor.u32 %v9610_v57, %v9220_v29  ;;  %v9550_v29 = vld [vmem:[%s15493_s5 + $0x144] sm:$0xf] }
 0x8d6   :  { %5998 = vmatpush.bf16.msra.mxu3 %v8845_v33 }
 0x8d7   :  { %v5703_v27 = vmax.f32 %v14238_v53, %v5685_v60  ;;  %5985 = vmatpush.bf16.msra.mxu2 %v8841_v2  ;;  %6942 = vmatpush.bf16.msrb.mxu1 %v9147_v15  ;;  %v8866_v53 = vld [vmem:[%s15493_s5 + $0xb0] sm:$0xf]  ;;  %v5143_v36 = vpop.f32.mrf.mxu2  ;;  %v14528_v15 = vpack.c.bf16 %v14458_v9, %v14458_v9  ;;  %v9537_v9 = vld [vmem:[%s15493_s5 + $0xd4] sm:$0xf0] }
 0x8d8   :  { %v8867_v3 = vor.u32 %v9533_v20, %v8866_v53  ;;  %v5144_v48 = vadd.f32 %v5143_v36, %v16521_v18  ;;  %v8902_v20 = vld [vmem:[%s15493_s5 + $0xf0] sm:$0xf]  ;;  %v9544_v18 = vld [vmem:[%s15493_s5 + $0x114] sm:$0xf] }
 0x8d9   :  { %v5712_v58 = vmax.f32 %v5694_v10, %v5703_v27  ;;  %v6911_v44 = vrot.slane %v14528_v15, 1  ;;  %v8889_v10 = vor.u32 %v9536_v26, %v8886_v28  ;;  %v14554_v27 = vpack.c.bf16 %v14331_v1, %v14331_v1  ;;  %v9200_v1 = vld [vmem:[%s15493_s5 + $0x300] sm:$0xf]  ;;  %v9619_v28 = vld [vmem:[%s15493_s5 + $0x364] sm:$0xf0] }
 0x8da   :  { %v5375_v42 = vpop.f32.mrf.mxu3  ;;  %v6967_v49 = vrot.slane %v14528_v15, 2  ;;  %v9254_v26 = vld [vmem:[%s15493_s5 + $0x360] sm:$0xf] }
 0x8db   :  { %v14467_v56 = vadd.f32 %v14282_v45, %v5712_v58  ;;  %v5415_v17 = vadd.f32 %v5375_v42, %v5141_v24  ;;  %v9534_v24 = vld [vmem:[%s15493_s5 + $0xc4] sm:$0xf]  ;;  %v9535_v42 = vld [vmem:[%s15493_s5 + $0xc4] sm:$0xf0] }
 0x8dc   :  { %v5649_v8 = vpop.f32.mrf.mxu1  ;;  %v8881_v7 = vor.u32 %v9534_v24, %v8878_v46  ;;  %v9624_v24 = vld [vmem:[%s15493_s5 + $0x394] sm:$0xf]  ;;  %v9282_v46 = vld [vmem:[%s15493_s5 + $0x398] sm:$0xf0] }
 0x8dd   :  { %v5686_v47 = vadd.f32 %v5646_v54, %v5415_v17  ;;  %v8876_v54 = vld [vmem:[%s15493_s5 + $0xc0] sm:$0xf]  ;;  %v9607_v17 = vld [vmem:[%s15493_s5 + $0x304] sm:$0xf0] }
 0x8de   :  { %v8877_v0 = vor.u32 %v9535_v42, %v8876_v54  ;;  %v9201_v53 = vor.u32 %v9607_v17, %v9200_v1  ;;  %v9546_v17 = vld [vmem:[%s15493_s5 + $0x124] sm:$0xf] }
 0x8df   :  { %v5704_v40 = vmax.f32 %v5677_v41, %v5686_v47  ;;  %v9228_v41 = vld [vmem:[%s15493_s5 + $0x338] sm:$0xf0]  ;;  %v6011_v47 = vrot.slane %v14554_v27, 1 }
 0x8e1   :  { %v5713_v34 = vmax.f32 %v16522_v6, %v5704_v40  ;;  %8836 = vmatmul.msk.bf16.vlgmr.msrb.gmra.mxu2 %vm5759_vm3, %v5898_v22  ;;  %8837 = vmatmul.msk.bf16.vlgmr.msrb.gmra.mxu3 %vm5759_vm3, %v5898_v22  ;;  %v8907_v22 = vor.u32 %v9540_v32, %v8904_v52  ;;  %v8896_v40 = vld [vmem:[%s15493_s5 + $0xe8] sm:$0xf0]  ;;  %v8920_v6 = vld [vmem:[%s15493_s5 + $0x110] sm:$0xf]  ;;  %v9622_v32 = vld [vmem:[%s15493_s5 + $0x384] sm:$0xf] }
 0x8e2   :  { %9125 = vmatmul.msk.bf16.vlgmr.msra.gmra.mxu1 %vm5759_vm3, %v6798_v4  ;;  %v5378_v13 = vpop.f32.mrf.mxu3  ;;  %6054 = vmatpush.bf16.msrb.mxu3 %v8871_v50  ;;  %v8903_v50 = vor.u32 %v9541_v39, %v8902_v20  ;;  %v8899_v36 = vor.u32 %v9538_v5, %v8896_v40  ;;  %v9274_v52 = vld [vmem:[%s15493_s5 + $0x388] sm:$0xf0]  ;;  %v9316_v5 = vld [vmem:[%s15493_s5 + $0x3d0] sm:$0xf]  ;;  %v9633_v40 = vld [vmem:[%s15493_s5 + $0x3d4] sm:$0xf0] }
 0x8e3   :  { %v14522_v35 = vadd.f32 %v14282_v45, %v5713_v34  ;;  %v5416_v38 = vadd.f32 %v5378_v13, %v5144_v48  ;;  %6041 = vmatpush.bf16.msrb.mxu2 %v8867_v3  ;;  %7010 = vmatpush.bf16.msra.mxu1 %v9177_v62  ;;  %v9231_v3 = vor.u32 %v9612_v31, %v9228_v41  ;;  %v9539_v62 = vld [vmem:[%s15493_s5 + $0xe4] sm:$0xf0]  ;;  %v8922_v48 = vld [vmem:[%s15493_s5 + $0x118] sm:$0xf0]  ;;  %v9545_v34 = vld [vmem:[%s15493_s5 + $0x114] sm:$0xf0] }
 0x8e4   :  { %v8895_v25 = vor.u32 %v9539_v62, %v8894_v23  ;;  %v9621_v13 = vld [vmem:[%s15493_s5 + $0x374] sm:$0xf0]  ;;  %v9277_v31 = vor.u32 %v9622_v32, %v9274_v52  ;;  %v9552_v41 = vld [vmem:[%s15493_s5 + $0x154] sm:$0xf]  ;;  %v14733_v62 = vpack.c.bf16 %v14351_v21, %v14351_v21  ;;  %v9308_v21 = vld [vmem:[%s15493_s5 + $0x3c0] sm:$0xf] }
 0x8e5   :  { %v5687_v33 = vadd.f32 %v5649_v8, %v5416_v38  ;;  %v8921_v38 = vor.u32 %v9545_v34, %v8920_v6  ;;  %v8914_v8 = vld [vmem:[%s15493_s5 + $0x108] sm:$0xf0]  ;;  %v8994_v32 = vld [vmem:[%s15493_s5 + $0x198] sm:$0xf0]  ;;  %v8992_v52 = vld [vmem:[%s15493_s5 + $0x190] sm:$0xf] }
 0x8e6   :  { %6055 = vmatpush.bf16.msrb.mxu3 %v8863_v59  ;;  %v6067_v59 = vrot.slane %v14554_v27, 2 }
 0x8e7   :  { %v5705_v2 = vmax.f32 %v14267_v16, %v5687_v33  ;;  %6042 = vmatpush.bf16.msrb.mxu2 %v8859_v12  ;;  %7011 = vmatpush.bf16.msra.mxu1 %v9169_v30  ;;  %v8884_v16 = vld [vmem:[%s15493_s5 + $0xd0] sm:$0xf]  ;;  %v8925_v12 = vor.u32 %v9544_v18, %v8922_v48  ;;  %v9542_v30 = vld [vmem:[%s15493_s5 + $0x104] sm:$0xf]  ;;  %v9263_v33 = vor.u32 %v9621_v13, %v9262_v14  ;;  %v9551_v18 = vld [vmem:[%s15493_s5 + $0x144] sm:$0xf0] }
 0x8e8   :  { %v8885_v43 = vor.u32 %v9537_v9, %v8884_v16  ;;  %v9255_v9 = vor.u32 %v9619_v28, %v9254_v26  ;;  %v9631_v48 = vld [vmem:[%s15493_s5 + $0x3c4] sm:$0xf0]  ;;  %v9336_v26 = vld [vmem:[%s15493_s5 + $0x3f8] sm:$0xf0]  ;;  %v6236_v28 = vrot.slane %v14733_v62, 1 }
 0x8e9   :  { %v5714_v11 = vmax.f32 %v5696_v37, %v5705_v2  ;;  %v8912_v37 = vld [vmem:[%s15493_s5 + $0x100] sm:$0xf]  ;;  %v14654_v2 = vpack.c.bf16 %v14467_v56, %v14467_v56  ;;  %v8917_v56 = vor.u32 %v9542_v30, %v8914_v8  ;;  %v9309_v14 = vor.u32 %v9631_v48, %v9308_v21  ;;  %v8974_v30 = vld [vmem:[%s15493_s5 + $0x170] sm:$0xf]  ;;  %v9643_v21 = vld [vmem:[%s15493_s5 + $0x424] sm:$0xf0] }
 0x8eb   :  { %v14531_v60 = vadd.f32 %v14282_v45, %v5714_v11  ;;  %v9208_v45 = vld [vmem:[%s15493_s5 + $0x310] sm:$0xf]  ;;  %v9543_v11 = vld [vmem:[%s15493_s5 + $0x104] sm:$0xf0]  ;;  %v7136_v54 = vrot.slane %v14654_v2, 1 }
 0x8ec   :  { %v9209_v58 = vor.u32 %v9609_v55, %v9208_v45  ;;  %v8913_v16 = vor.u32 %v9543_v11, %v8912_v37  ;;  %v9548_v45 = vld [vmem:[%s15493_s5 + $0x134] sm:$0xf]  ;;  %v8940_v55 = vld [vmem:[%s15493_s5 + $0x138] sm:$0xf0]  ;;  %v9557_v37 = vld [vmem:[%s15493_s5 + $0x174] sm:$0xf0] }
 0x8ed   :  { %v8943_v42 = vor.u32 %v9548_v45, %v8940_v55  ;;  %v9636_v11 = vld [vmem:[%s15493_s5 + $0x3f4] sm:$0xf]  ;;  %v8968_v45 = vld [vmem:[%s15493_s5 + $0x168] sm:$0xf0] }
 0x8ee   :  { %v9339_v55 = vor.u32 %v9636_v11, %v9336_v26  ;;  %v9565_v26 = vld [vmem:[%s15493_s5 + $0x1b4] sm:$0xf0] }
 0x8f1   :  { %8854 = vmatmul.msk.bf16.vlgmr.msra.gmra.mxu2 %vm5759_vm3, %v14554_v27  ;;  %8855 = vmatmul.msk.bf16.vlgmr.msra.gmra.mxu3 %vm5759_vm3, %v14554_v27 }
 0x8f2   :  { %9160 = vmatmul.msk.bf16.vlgmr.msrb.gmra.mxu1 %vm5759_vm3, %v6911_v44  ;;  %6110 = vmatpush.bf16.msra.mxu3 %v8889_v10  ;;  %v8938_v10 = vld [vmem:[%s15493_s5 + $0x130] sm:$0xf] }
 0x8f3   :  { %6097 = vmatpush.bf16.msra.mxu2 %v8885_v43  ;;  %7109 = vmatpush.bf16.msrb.mxu1 %v9209_v58  ;;  %v9549_v43 = vld [vmem:[%s15493_s5 + $0x134] sm:$0xf0]  ;;  %v6123_v58 = vrot.slane %v14554_v27, 3  ;;  %v9547_v27 = vld [vmem:[%s15493_s5 + $0x124] sm:$0xf0] }
 0x8f4   :  { %v8939_v1 = vor.u32 %v9549_v43, %v8938_v10  ;;  %v8966_v10 = vld [vmem:[%s15493_s5 + $0x160] sm:$0xf]  ;;  %v14790_v43 = vpack.c.bf16 %v14522_v35, %v14522_v35 }
 0x8f6   :  { %6111 = vmatpush.bf16.msra.mxu3 %v8881_v7  ;;  %v8932_v7 = vld [vmem:[%s15493_s5 + $0x128] sm:$0xf0] }
 0x8f7   :  { %6098 = vmatpush.bf16.msra.mxu2 %v8877_v0  ;;  %7110 = vmatpush.bf16.msrb.mxu1 %v9201_v53  ;;  %v9285_v0 = vor.u32 %v9624_v24, %v9282_v46  ;;  %v8930_v53 = vld [vmem:[%s15493_s5 + $0x120] sm:$0xf]  ;;  %v8935_v20 = vor.u32 %v9546_v17, %v8932_v7  ;;  %v9555_v24 = vld [vmem:[%s15493_s5 + $0x164] sm:$0xf0]  ;;  %v9634_v46 = vld [vmem:[%s15493_s5 + $0x3e4] sm:$0xf] }
 0x8f8   :  { %v8931_v39 = vor.u32 %v9547_v27, %v8930_v53  ;;  %v9560_v27 = vld [vmem:[%s15493_s5 + $0x194] sm:$0xf] }
 0x901   :  { %8872 = vmatmul.msk.bf16.vlgmr.msrb.gmra.mxu2 %vm5759_vm3, %v6011_v47  ;;  %8873 = vmatmul.msk.bf16.vlgmr.msrb.gmra.mxu3 %vm5759_vm3, %v6011_v47  ;;  %v8958_v47 = vld [vmem:[%s15493_s5 + $0x158] sm:$0xf0] }
 0x902   :  { %9179 = vmatmul.msk.bf16.vlgmr.msra.gmra.mxu1 %vm5759_vm3, %v6967_v49  ;;  %6166 = vmatpush.bf16.msrb.mxu3 %v8907_v22  ;;  %v8956_v22 = vld [vmem:[%s15493_s5 + $0x150] sm:$0xf]  ;;  %v8961_v23 = vor.u32 %v9552_v41, %v8958_v47  ;;  %v9645_v47 = vld [vmem:[%s15493_s5 + $0x434] sm:$0xf0] }
 0x903   :  { %6153 = vmatpush.bf16.msrb.mxu2 %v8903_v50  ;;  %7179 = vmatpush.bf16.msra.mxu1 %v9231_v3  ;;  %v9553_v50 = vld [vmem:[%s15493_s5 + $0x154] sm:$0xf0]  ;;  %v7248_v3 = vrot.slane %v14654_v2, 3  ;;  %v9370_v41 = vld [vmem:[%s15493_s5 + $0x430] sm:$0xf] }
 0x904   :  { %v8957_v57 = vor.u32 %v9553_v50, %v8956_v22  ;;  %v6292_v22 = vrot.slane %v14733_v62, 2  ;;  %v7417_v50 = vrot.slane %v14790_v43, 2 }
 0x906   :  { %6167 = vmatpush.bf16.msrb.mxu3 %v8899_v36  ;;  %v8950_v36 = vld [vmem:[%s15493_s5 + $0x148] sm:$0xf0] }
 0x907   :  { %6154 = vmatpush.bf16.msrb.mxu2 %v8895_v25  ;;  %7180 = vmatpush.bf16.msra.mxu1 %v9223_v19  ;;  %v9317_v25 = vor.u32 %v9633_v40, %v9316_v5  ;;  %v8948_v19 = vld [vmem:[%s15493_s5 + $0x140] sm:$0xf]  ;;  %v8953_v6 = vor.u32 %v9550_v29, %v8950_v36  ;;  %v8997_v5 = vor.u32 %v9560_v27, %v8994_v32  ;;  %v8986_v29 = vld [vmem:[%s15493_s5 + $0x188] sm:$0xf0] }
 0x908   :  { %v8949_v34 = vor.u32 %v9551_v18, %v8948_v19  ;;  %v9371_v36 = vor.u32 %v9645_v47, %v9370_v41  ;;  %v9559_v19 = vld [vmem:[%s15493_s5 + $0x184] sm:$0xf0]  ;;  %v9362_v18 = vld [vmem:[%s15493_s5 + $0x420] sm:$0xf]  ;;  %v14903_v41 = vpack.c.bf16 %v14531_v60, %v14531_v60  ;;  %v9566_v60 = vld [vmem:[%s15493_s5 + $0x1c4] sm:$0xf] }
 0x911   :  { %8890 = vmatmul.msk.bf16.vlgmr.msra.gmra.mxu2 %vm5759_vm3, %v6067_v59  ;;  %8891 = vmatmul.msk.bf16.vlgmr.msra.gmra.mxu3 %vm5759_vm3, %v6067_v59 }
 0x912   :  { %9214 = vmatmul.msk.bf16.vlgmr.msrb.gmra.mxu1 %vm5759_vm3, %v14654_v2  ;;  %6222 = vmatpush.bf16.msra.mxu3 %v8925_v12  ;;  %v9556_v12 = vld [vmem:[%s15493_s5 + $0x174] sm:$0xf] }
 0x913   :  { %6209 = vmatpush.bf16.msra.mxu2 %v8921_v38  ;;  %7278 = vmatpush.bf16.msrb.mxu1 %v9263_v33  ;;  %v8976_v38 = vld [vmem:[%s15493_s5 + $0x178] sm:$0xf0] }
 0x916   :  { %6223 = vmatpush.bf16.msra.mxu3 %v8917_v56  ;;  %v8979_v56 = vor.u32 %v9556_v12, %v8976_v38 }
 0x917   :  { %6210 = vmatpush.bf16.msra.mxu2 %v8913_v16  ;;  %7279 = vmatpush.bf16.msrb.mxu1 %v9255_v9  ;;  %v8975_v16 = vor.u32 %v9557_v37, %v8974_v30  ;;  %v9554_v9 = vld [vmem:[%s15493_s5 + $0x164] sm:$0xf]  ;;  %v9564_v30 = vld [vmem:[%s15493_s5 + $0x1b4] sm:$0xf] }
 0x918   :  { %v8971_v35 = vor.u32 %v9554_v9, %v8968_v45  ;;  %v7473_v9 = vrot.slane %v14790_v43, 3 }
 0x921   :  { %8908 = vmatmul.msk.bf16.vlgmr.msrb.gmra.mxu2 %vm5759_vm3, %v6123_v58  ;;  %8909 = vmatmul.msk.bf16.vlgmr.msrb.gmra.mxu3 %vm5759_vm3, %v6123_v58  ;;  %v9328_v58 = vld [vmem:[%s15493_s5 + $0x3e8] sm:$0xf0] }
 0x922   :  { %9233 = vmatmul.msk.bf16.vlgmr.msra.gmra.mxu1 %vm5759_vm3, %v7136_v54  ;;  %6279 = vmatpush.bf16.msrb.mxu3 %v8943_v42  ;;  %v8967_v42 = vor.u32 %v9555_v24, %v8966_v10  ;;  %v9562_v24 = vld [vmem:[%s15493_s5 + $0x1a4] sm:$0xf] }
 0x923   :  { %6266 = vmatpush.bf16.msrb.mxu2 %v8939_v1  ;;  %7347 = vmatpush.bf16.msra.mxu1 %v9285_v0  ;;  %v9331_v1 = vor.u32 %v9634_v46, %v9328_v58  ;;  %v9004_v46 = vld [vmem:[%s15493_s5 + $0x1a8] sm:$0xf0] }
 0x926   :  { %6280 = vmatpush.bf16.msrb.mxu3 %v8935_v20 }
 0x927   :  { %6267 = vmatpush.bf16.msrb.mxu2 %v8931_v39  ;;  %7348 = vmatpush.bf16.msra.mxu1 %v9277_v31  ;;  %v9561_v31 = vld [vmem:[%s15493_s5 + $0x194] sm:$0xf0] }
 0x931   :  { %8926 = vmatmul.msk.bf16.vlgmr.msra.gmra.mxu2 %vm5759_vm3, %v14733_v62  ;;  %8927 = vmatmul.msk.bf16.vlgmr.msra.gmra.mxu3 %vm5759_vm3, %v14733_v62 }
 0x932   :  { %9268 = vmatmul.msk.bf16.vlgmr.msrb.gmra.mxu1 %vm5759_vm3, %v7248_v3  ;;  %6335 = vmatpush.bf16.msra.mxu3 %v8961_v23  ;;  %v8993_v23 = vor.u32 %v9561_v31, %v8992_v52  ;;  %v9030_v31 = vld [vmem:[%s15493_s5 + $0x1d8] sm:$0xf0] }
 0x933   :  { %6322 = vmatpush.bf16.msra.mxu2 %v8957_v57  ;;  %7447 = vmatpush.bf16.msrb.mxu1 %v9317_v25  ;;  %v9558_v57 = vld [vmem:[%s15493_s5 + $0x184] sm:$0xf]  ;;  %v8984_v25 = vld [vmem:[%s15493_s5 + $0x180] sm:$0xf] }
 0x934   :  { %v5772_v13 = vpop.f32.mrf.mxu2  ;;  %v5785_v59 = vpop.f32.mrf.mxu3  ;;  %v8989_v48 = vor.u32 %v9558_v57, %v8986_v29  ;;  %v14913_v29 = vpack.c.bf16 %v14394_v61, %v14394_v61  ;;  %v9567_v61 = vld [vmem:[%s15493_s5 + $0x1c4] sm:$0xf0] }
 0x936   :  { %6336 = vmatpush.bf16.msra.mxu3 %v8953_v6  ;;  %v8985_v6 = vor.u32 %v9559_v19, %v8984_v25  ;;  %v9022_v19 = vld [vmem:[%s15493_s5 + $0x1c8] sm:$0xf0] }
 0x937   :  { %6323 = vmatpush.bf16.msra.mxu2 %v8949_v34  ;;  %7448 = vmatpush.bf16.msrb.mxu1 %v9309_v14  ;;  %v9363_v34 = vor.u32 %v9643_v21, %v9362_v18  ;;  %v7586_v18 = vrot.slane %v14903_v41, 1  ;;  %v9020_v21 = vld [vmem:[%s15493_s5 + $0x1c0] sm:$0xf] }
 0x93c   :  { %v5774_v8 = vpop.f32.mrf.mxu2  ;;  %v5787_v33 = vpop.f32.mrf.mxu3 }
 0x93d   :  { %v9012_v8 = vld [vmem:[%s15493_s5 + $0x1b8] sm:$0xf0]  ;;  %v9010_v33 = vld [vmem:[%s15493_s5 + $0x1b0] sm:$0xf] }
 0x93e   :  { %v9015_v45 = vor.u32 %v9564_v30, %v9012_v8  ;;  %v9011_v10 = vor.u32 %v9565_v26, %v9010_v33  ;;  %v9048_v30 = vld [vmem:[%s15493_s5 + $0x1f8] sm:$0xf0] }
 0x941   :  { %8944 = vmatmul.msk.bf16.vlgmr.msrb.gmra.mxu2 %vm5759_vm3, %v6236_v28  ;;  %8945 = vmatmul.msk.bf16.vlgmr.msrb.gmra.mxu3 %vm5759_vm3, %v6236_v28  ;;  %v9648_v28 = vld [vmem:[%s15493_s5 + $0x454] sm:$0xf] }
 0x942   :  { %9287 = vmatmul.msk.bf16.vlgmr.msra.gmra.mxu1 %vm5759_vm3, %v14790_v43  ;;  %6391 = vmatpush.bf16.msrb.mxu3 %v8979_v56  ;;  %v9390_v56 = vld [vmem:[%s15493_s5 + $0x458] sm:$0xf0] }
 0x943   :  { %6378 = vmatpush.bf16.msrb.mxu2 %v8975_v16  ;;  %7516 = vmatpush.bf16.msra.mxu1 %v9339_v55  ;;  %v6348_v16 = vrot.slane %v14733_v62, 3  ;;  %v9393_v58 = vor.u32 %v9648_v28, %v9390_v56  ;;  %v9563_v62 = vld [vmem:[%s15493_s5 + $0x1a4] sm:$0xf0]  ;;  %v6461_v56 = vrot.slane %v14913_v29, 1 }
 0x944   :  { %v5821_v17 = vpop.f32.mrf.mxu2  ;;  %v5834_v7 = vpop.f32.mrf.mxu3 }
 0x945   :  { %v5822_v0 = vadd.f32 %v5821_v17, %v5772_v13  ;;  %v5835_v53 = vadd.f32 %v5834_v7, %v5785_v59  ;;  %v9007_v17 = vor.u32 %v9562_v24, %v9004_v46  ;;  %v7642_v24 = vrot.slane %v14903_v41, 2  ;;  %v9038_v46 = vld [vmem:[%s15493_s5 + $0x1e0] sm:$0xf] }
 0x946   :  { %6392 = vmatpush.bf16.msrb.mxu3 %v8971_v35  ;;  %v9002_v35 = vld [vmem:[%s15493_s5 + $0x1a0] sm:$0xf] }
 0x947   :  { %6379 = vmatpush.bf16.msrb.mxu2 %v8967_v42  ;;  %7517 = vmatpush.bf16.msra.mxu1 %v9331_v1  ;;  %v9646_v42 = vld [vmem:[%s15493_s5 + $0x444] sm:$0xf]  ;;  %v9382_v1 = vld [vmem:[%s15493_s5 + $0x448] sm:$0xf0]  ;;  %v9003_v7 = vor.u32 %v9563_v62, %v9002_v35 }
 0x94c   :  { %v5823_v20 = vpop.f32.mrf.mxu2  ;;  %v5836_v39 = vpop.f32.mrf.mxu3 }
 0x94d   :  { %v9568_v39 = vld [vmem:[%s15493_s5 + $0x1d4] sm:$0xf] }
 0x94e   :  { %v9033_v57 = vor.u32 %v9568_v39, %v9030_v31  ;;  %v6517_v31 = vrot.slane %v14913_v29, 2 }
 0x94f   :  { %v14825_v40 = vpop.f32.mrf.mxu1 }
 0x951   :  { %8962 = vmatmul.msk.bf16.vlgmr.msra.gmra.mxu2 %vm5759_vm3, %v6292_v22  ;;  %8963 = vmatmul.msk.bf16.vlgmr.msra.gmra.mxu3 %vm5759_vm3, %v6292_v22 }
 0x952   :  { %9322 = vmatmul.msk.bf16.vlgmr.msrb.gmra.mxu1 %vm5759_vm3, %v7417_v50  ;;  %6447 = vmatpush.bf16.msra.mxu3 %v8997_v5  ;;  %v9028_v5 = vld [vmem:[%s15493_s5 + $0x1d0] sm:$0xf] }
 0x953   :  { %6434 = vmatpush.bf16.msra.mxu2 %v8993_v23  ;;  %7616 = vmatpush.bf16.msrb.mxu1 %v9371_v36  ;;  %v9569_v23 = vld [vmem:[%s15493_s5 + $0x1d4] sm:$0xf0] }
 0x954   :  { %v5875_v14 = vpop.f32.mrf.mxu2  ;;  %v5888_v13 = vpop.f32.mrf.mxu3  ;;  %v9029_v25 = vor.u32 %v9569_v23, %v9028_v5  ;;  %v9574_v5 = vld [vmem:[%s15493_s5 + $0x204] sm:$0xf] }
 0x955   :  { %v5892_v59 = vadd.f32 %v5875_v14, %v5822_v0  ;;  %v5893_v12 = vadd.f32 %v5888_v13, %v5835_v53  ;;  %v9385_v0 = vor.u32 %v9646_v42, %v9382_v1 }
 0x956   :  { %6448 = vmatpush.bf16.msra.mxu3 %v8989_v48  ;;  %v9025_v48 = vor.u32 %v9566_v60, %v9022_v19  ;;  %v9575_v60 = vld [vmem:[%s15493_s5 + $0x204] sm:$0xf0] }
 0x957   :  { %v6777_v38 = vpop.f32.mrf.mxu1  ;;  %6435 = vmatpush.bf16.msra.mxu2 %v8985_v6  ;;  %7617 = vmatpush.bf16.msrb.mxu1 %v9363_v34  ;;  %v9021_v6 = vor.u32 %v9567_v61, %v9020_v21 }
 0x958   :  { %v9572_v38 = vld [vmem:[%s15493_s5 + $0x1f4] sm:$0xf] }
 0x959   :  { %v9051_v26 = vor.u32 %v9572_v38, %v9048_v30  ;;  %v9581_v38 = vld [vmem:[%s15493_s5 + $0x234] sm:$0xf0] }
 0x95c   :  { %v5877_v37 = vpop.f32.mrf.mxu2  ;;  %v5890_v11 = vpop.f32.mrf.mxu3 }
 0x95d   :  { %v9046_v37 = vld [vmem:[%s15493_s5 + $0x1f0] sm:$0xf]  ;;  %v9573_v11 = vld [vmem:[%s15493_s5 + $0x1f4] sm:$0xf0] }
 0x95f   :  { %v14870_v55 = vpop.f32.mrf.mxu1 }
 0x961   :  { %8980 = vmatmul.msk.bf16.vlgmr.msrb.gmra.mxu2 %vm5759_vm3, %v6348_v16  ;;  %8981 = vmatmul.msk.bf16.vlgmr.msrb.gmra.mxu3 %vm5759_vm3, %v6348_v16  ;;  %v9047_v16 = vor.u32 %v9573_v11, %v9046_v37 }
 0x962   :  { %9341 = vmatmul.msk.bf16.vlgmr.msra.gmra.mxu1 %vm5759_vm3, %v7473_v9  ;;  %6504 = vmatpush.bf16.msrb.mxu3 %v9015_v45  ;;  %v9570_v45 = vld [vmem:[%s15493_s5 + $0x1e4] sm:$0xf] }
 0x963   :  { %6491 = vmatpush.bf16.msrb.mxu2 %v9011_v10  ;;  %7685 = vmatpush.bf16.msra.mxu1 %v9393_v58  ;;  %v9040_v10 = vld [vmem:[%s15493_s5 + $0x1e8] sm:$0xf0]  ;;  %v9571_v58 = vld [vmem:[%s15493_s5 + $0x1e4] sm:$0xf0] }
 0x964   :  { %v5931_v53 = vpop.f32.mrf.mxu2  ;;  %v5944_v27 = vpop.f32.mrf.mxu3  ;;  %v9043_v35 = vor.u32 %v9570_v45, %v9040_v10  ;;  %v9039_v62 = vor.u32 %v9571_v58, %v9038_v46  ;;  %v9074_v45 = vld [vmem:[%s15493_s5 + $0x220] sm:$0xf] }
 0x965   :  { %v5948_v32 = vadd.f32 %v5931_v53, %v5892_v59  ;;  %v5949_v52 = vadd.f32 %v5944_v27, %v5893_v12  ;;  %v9576_v53 = vld [vmem:[%s15493_s5 + $0x214] sm:$0xf]  ;;  %v9066_v27 = vld [vmem:[%s15493_s5 + $0x218] sm:$0xf0] }
 0x966   :  { %6505 = vmatpush.bf16.msrb.mxu3 %v9007_v17 }
 0x967   :  { %v6846_v20 = vpop.f32.mrf.mxu1  ;;  %6492 = vmatpush.bf16.msrb.mxu2 %v9003_v7  ;;  %7686 = vmatpush.bf16.msra.mxu1 %v9385_v0 }
 0x96c   :  { %v5933_v47 = vpop.f32.mrf.mxu2  ;;  %v5946_v22 = vpop.f32.mrf.mxu3 }
 0x96d   :  { %v9069_v47 = vor.u32 %v9576_v53, %v9066_v27  ;;  %v9102_v53 = vld [vmem:[%s15493_s5 + $0x258] sm:$0xf0] }
 0x96f   :  { %v14915_v36 = vpop.f32.mrf.mxu1 }
 0x971   :  { %8998 = vmatmul.msk.bf16.vlgmr.msra.gmra.mxu2 %vm5759_vm3, %v14913_v29  ;;  %8999 = vmatmul.msk.bf16.vlgmr.msra.gmra.mxu3 %vm5759_vm3, %v14913_v29 }
 0x972   :  { %9376 = vmatmul.msk.bf16.vlgmr.msrb.gmra.mxu1 %vm5759_vm3, %v7586_v18  ;;  %6560 = vmatpush.bf16.msra.mxu3 %v9033_v57  ;;  %v9058_v57 = vld [vmem:[%s15493_s5 + $0x208] sm:$0xf0] }
 0x973   :  { %6547 = vmatpush.bf16.msra.mxu2 %v9029_v25  ;;  %v9056_v25 = vld [vmem:[%s15493_s5 + $0x200] sm:$0xf]  ;;  %v9061_v19 = vor.u32 %v9574_v5, %v9058_v57  ;;  %v9094_v5 = vld [vmem:[%s15493_s5 + $0x248] sm:$0xf0] }
 0x974   :  { %v5987_v34 = vpop.f32.mrf.mxu2  ;;  %v6000_v14 = vpop.f32.mrf.mxu3  ;;  %v9057_v21 = vor.u32 %v9575_v60, %v9056_v25 }
 0x975   :  { %v6004_v13 = vadd.f32 %v5987_v34, %v5948_v32  ;;  %v6005_v59 = vadd.f32 %v6000_v14, %v5949_v52  ;;  %v9064_v32 = vld [vmem:[%s15493_s5 + $0x210] sm:$0xf]  ;;  %v9577_v52 = vld [vmem:[%s15493_s5 + $0x214] sm:$0xf0] }
 0x976   :  { %6561 = vmatpush.bf16.msra.mxu3 %v9025_v48  ;;  %v9065_v22 = vor.u32 %v9577_v52, %v9064_v32 }
 0x977   :  { %v6946_v12 = vpop.f32.mrf.mxu1  ;;  %6548 = vmatpush.bf16.msra.mxu2 %v9021_v6 }
 0x978   :  { %v9082_v12 = vld [vmem:[%s15493_s5 + $0x230] sm:$0xf] }
 0x979   :  { %v9083_v11 = vor.u32 %v9581_v38, %v9082_v12  ;;  %v6686_v38 = vrot.slane %v14424_v51, 1 }
 0x97c   :  { %v5989_v8 = vpop.f32.mrf.mxu2  ;;  %v6002_v33 = vpop.f32.mrf.mxu3 }
 0x97d   :  { %v6573_v33 = vrot.slane %v14913_v29, 3  ;;  %v9579_v29 = vld [vmem:[%s15493_s5 + $0x224] sm:$0xf0] }
 0x97e   :  { %v9075_v46 = vor.u32 %v9579_v29, %v9074_v45 }
 0x97f   :  { %v14949_v28 = vpop.f32.mrf.mxu1 }
 0x981   :  { %9016 = vmatmul.msk.bf16.vlgmr.msrb.gmra.mxu2 %vm5759_vm3, %v6461_v56  ;;  %9017 = vmatmul.msk.bf16.vlgmr.msrb.gmra.mxu3 %vm5759_vm3, %v6461_v56 }
 0x982   :  { %9395 = vmatmul.msk.bf16.vlgmr.msra.gmra.mxu1 %vm5759_vm3, %v7642_v24  ;;  %6616 = vmatpush.bf16.msrb.mxu3 %v9051_v26  ;;  %v9578_v26 = vld [vmem:[%s15493_s5 + $0x224] sm:$0xf] }
 0x983   :  { %6603 = vmatpush.bf16.msrb.mxu2 %v9047_v16  ;;  %v9076_v16 = vld [vmem:[%s15493_s5 + $0x228] sm:$0xf0] }
 0x984   :  { %v6044_v42 = vpop.f32.mrf.mxu2  ;;  %v6057_v1 = vpop.f32.mrf.mxu3  ;;  %v9079_v10 = vor.u32 %v9578_v26, %v9076_v16  ;;  %v9128_v26 = vld [vmem:[%s15493_s5 + $0x280] sm:$0xf]  ;;  %v9591_v16 = vld [vmem:[%s15493_s5 + $0x284] sm:$0xf0] }
 0x985   :  { %v6061_v17 = vadd.f32 %v6044_v42, %v6004_v13  ;;  %v6062_v7 = vadd.f32 %v6057_v1, %v6005_v59  ;;  %v9580_v13 = vld [vmem:[%s15493_s5 + $0x234] sm:$0xf]  ;;  %v9084_v59 = vld [vmem:[%s15493_s5 + $0x238] sm:$0xf0]  ;;  %v9129_v29 = vor.u32 %v9591_v16, %v9128_v26 }
 0x986   :  { %6617 = vmatpush.bf16.msrb.mxu3 %v9043_v35  ;;  %v9087_v37 = vor.u32 %v9580_v13, %v9084_v59  ;;  %v9593_v13 = vld [vmem:[%s15493_s5 + $0x294] sm:$0xf0] }
 0x987   :  { %v7015_v0 = vpop.f32.mrf.mxu1  ;;  %6604 = vmatpush.bf16.msrb.mxu2 %v9039_v62 }
 0x988   :  { %v9584_v0 = vld [vmem:[%s15493_s5 + $0x254] sm:$0xf] }
 0x98c   :  { %v6046_v20 = vpop.f32.mrf.mxu2  ;;  %v6059_v39 = vpop.f32.mrf.mxu3 }
 0x98d   :  { %v9105_v20 = vor.u32 %v9584_v0, %v9102_v53  ;;  %v9110_v39 = vld [vmem:[%s15493_s5 + $0x260] sm:$0xf] }
 0x98f   :  { %v14986_v23 = vpop.f32.mrf.mxu1 }
 0x991   :  { %9034 = vmatmul.msk.bf16.vlgmr.msra.gmra.mxu2 %vm5759_vm3, %v6517_v31  ;;  %9035 = vmatmul.msk.bf16.vlgmr.msra.gmra.mxu3 %vm5759_vm3, %v6517_v31 }
 0x992   :  { %6672 = vmatpush.bf16.msra.mxu3 %v9069_v47  ;;  %6659 = vmatpush.bf16.msra.mxu2 %v9065_v22  ;;  %v9587_v47 = vld [vmem:[%s15493_s5 + $0x264] sm:$0xf0]  ;;  %v9582_v22 = vld [vmem:[%s15493_s5 + $0x244] sm:$0xf] }
 0x993   :  { %v9111_v57 = vor.u32 %v9587_v47, %v9110_v39  ;;  %v9097_v25 = vor.u32 %v9582_v22, %v9094_v5  ;;  %v9599_v39 = vld [vmem:[%s15493_s5 + $0x2c4] sm:$0xf0]  ;;  %v9594_v47 = vld [vmem:[%s15493_s5 + $0x2a4] sm:$0xf]  ;;  %v9148_v22 = vld [vmem:[%s15493_s5 + $0x2a8] sm:$0xf0] }
 0x994   :  { %v6100_v61 = vpop.f32.mrf.mxu2  ;;  %v6113_v48 = vpop.f32.mrf.mxu3 }
 0x995   :  { %v6117_v6 = vadd.f32 %v6100_v61, %v6061_v17  ;;  %v6118_v34 = vadd.f32 %v6113_v48, %v6062_v7  ;;  %v9118_v17 = vld [vmem:[%s15493_s5 + $0x270] sm:$0xf]  ;;  %v9589_v7 = vld [vmem:[%s15493_s5 + $0x274] sm:$0xf0] }
 0x996   :  { %6673 = vmatpush.bf16.msra.mxu3 %v9061_v19  ;;  %6660 = vmatpush.bf16.msra.mxu2 %v9057_v21  ;;  %v9119_v52 = vor.u32 %v9589_v7, %v9118_v17  ;;  %v9596_v17 = vld [vmem:[%s15493_s5 + $0x2b4] sm:$0xf]  ;;  %v9156_v7 = vld [vmem:[%s15493_s5 + $0x2b8] sm:$0xf0] }
 0x997   :  { %v7114_v14 = vpop.f32.mrf.mxu1 }
 0x998   :  { %v9136_v14 = vld [vmem:[%s15493_s5 + $0x290] sm:$0xf] }
 0x99c   :  { %v6102_v30 = vpop.f32.mrf.mxu2  ;;  %v6115_v8 = vpop.f32.mrf.mxu3 }
 0x99d   :  { %v9137_v8 = vor.u32 %v9593_v13, %v9136_v14 }
 0x99f   :  { %v15015_v56 = vpop.f32.mrf.mxu1 }
 0x9a1   :  { %9052 = vmatmul.msk.bf16.vlgmr.msrb.gmra.mxu2 %vm5759_vm3, %v6573_v33  ;;  %9053 = vmatmul.msk.bf16.vlgmr.msrb.gmra.mxu3 %vm5759_vm3, %v6573_v33  ;;  %v9590_v33 = vld [vmem:[%s15493_s5 + $0x284] sm:$0xf] }
 0x9a2   :  { %6729 = vmatpush.bf16.msrb.mxu3 %v9087_v37  ;;  %6716 = vmatpush.bf16.msrb.mxu2 %v9083_v11  ;;  %v9130_v11 = vld [vmem:[%s15493_s5 + $0x288] sm:$0xf0] }
 0x9a3   :  { %v9133_v45 = vor.u32 %v9590_v33, %v9130_v11 }
 0x9a4   :  { %v6156_v58 = vpop.f32.mrf.mxu2  ;;  %v6169_v35 = vpop.f32.mrf.mxu3 }
 0x9a5   :  { %v6173_v62 = vadd.f32 %v6156_v58, %v6117_v6  ;;  %v6174_v42 = vadd.f32 %v6169_v35, %v6118_v34  ;;  %v9592_v6 = vld [vmem:[%s15493_s5 + $0x294] sm:$0xf]  ;;  %v9138_v34 = vld [vmem:[%s15493_s5 + $0x298] sm:$0xf0] }
 0x9a6   :  { %6730 = vmatpush.bf16.msrb.mxu3 %v9079_v10  ;;  %6717 = vmatpush.bf16.msrb.mxu2 %v9075_v46  ;;  %v9141_v30 = vor.u32 %v9592_v6, %v9138_v34 }
 0x9a7   :  { %v7184_v1 = vpop.f32.mrf.mxu1 }
 0x9a8   :  { %v9601_v1 = vld [vmem:[%s15493_s5 + $0x2d4] sm:$0xf0] }
 0x9ac   :  { %v6158_v27 = vpop.f32.mrf.mxu2  ;;  %v6171_v32 = vpop.f32.mrf.mxu3 }
 0x9ad   :  { %v9159_v32 = vor.u32 %v9596_v17, %v9156_v7 }
 0x9af   :  { %v15043_v31 = vpop.f32.mrf.mxu1 }
 0x9b1   :  { %9070 = vmatmul.msk.bf16.vlgmr.msra.gmra.mxu2 %vm5759_vm3, %v14424_v51  ;;  %9071 = vmatmul.msk.bf16.vlgmr.msra.gmra.mxu3 %vm5759_vm3, %v14424_v51  ;;  %v9192_v51 = vld [vmem:[%s15493_s5 + $0x2f8] sm:$0xf0] }
 0x9b2   :  { %6828 = vmatpush.bf16.msra.mxu3 %v9119_v52  ;;  %6785 = vmatpush.bf16.msra.mxu2 %v9105_v20  ;;  %v9164_v52 = vld [vmem:[%s15493_s5 + $0x2c0] sm:$0xf] }
 0x9b3   :  { %v9165_v5 = vor.u32 %v9599_v39, %v9164_v52  ;;  %v9202_v52 = vld [vmem:[%s15493_s5 + $0x308] sm:$0xf0] }
 0x9b4   :  { %v6212_v60 = vpop.f32.mrf.mxu2  ;;  %v6225_v19 = vpop.f32.mrf.mxu3 }
 0x9b5   :  { %v6229_v21 = vadd.f32 %v6212_v60, %v6173_v62  ;;  %v6230_v61 = vadd.f32 %v6225_v19, %v6174_v42  ;;  %v9172_v42 = vld [vmem:[%s15493_s5 + $0x2d0] sm:$0xf] }
 0x9b6   :  { %6829 = vmatpush.bf16.msra.mxu3 %v9111_v57  ;;  %6786 = vmatpush.bf16.msra.mxu2 %v9097_v25  ;;  %v9173_v27 = vor.u32 %v9601_v1, %v9172_v42  ;;  %v9151_v57 = vor.u32 %v9594_v47, %v9148_v22 }
 0x9b7   :  { %v7283_v48 = vpop.f32.mrf.mxu1 }
 0x9b8   :  { %v9604_v48 = vld [vmem:[%s15493_s5 + $0x2f4] sm:$0xf] }
 0x9b9   :  { %v9195_v14 = vor.u32 %v9604_v48, %v9192_v51  ;;  %v7023_v51 = vrot.slane %v14528_v15, 3 }
 0x9bc   :  { %v6214_v59 = vpop.f32.mrf.mxu2  ;;  %v6227_v12 = vpop.f32.mrf.mxu3 }
 0x9bd   :  { %v9602_v59 = vld [vmem:[%s15493_s5 + $0x2e4] sm:$0xf] }
 0x9bf   :  { %v15074_v37 = vpop.f32.mrf.mxu1 }
 0x9c1   :  { %9088 = vmatmul.msk.bf16.vlgmr.msrb.gmra.mxu2 %vm5759_vm3, %v6686_v38  ;;  %9089 = vmatmul.msk.bf16.vlgmr.msrb.gmra.mxu3 %vm5759_vm3, %v6686_v38  ;;  %v9184_v38 = vld [vmem:[%s15493_s5 + $0x2e8] sm:$0xf0] }
 0x9c2   :  { %6897 = vmatpush.bf16.msrb.mxu3 %v9141_v30  ;;  %6884 = vmatpush.bf16.msrb.mxu2 %v9137_v8  ;;  %v9182_v30 = vld [vmem:[%s15493_s5 + $0x2e0] sm:$0xf]  ;;  %v9603_v8 = vld [vmem:[%s15493_s5 + $0x2e4] sm:$0xf0]  ;;  %v9187_v33 = vor.u32 %v9602_v59, %v9184_v38 }
 0x9c3   :  { %v9183_v11 = vor.u32 %v9603_v8, %v9182_v30 }
 0x9c4   :  { %v6269_v10 = vpop.f32.mrf.mxu2  ;;  %v6282_v46 = vpop.f32.mrf.mxu3 }
 0x9c5   :  { %v6286_v58 = vadd.f32 %v6269_v10, %v6229_v21  ;;  %v6287_v35 = vadd.f32 %v6282_v46, %v6230_v61  ;;  %v9226_v46 = vld [vmem:[%s15493_s5 + $0x330] sm:$0xf] }
 0x9c6   :  { %6898 = vmatpush.bf16.msrb.mxu3 %v9133_v45  ;;  %6885 = vmatpush.bf16.msrb.mxu2 %v9129_v29 }
 0x9c7   :  { %v7352_v62 = vpop.f32.mrf.mxu1 }
 0x9c8   :  { %v9210_v62 = vld [vmem:[%s15493_s5 + $0x318] sm:$0xf0] }
 0x9cc   :  { %v6271_v0 = vpop.f32.mrf.mxu2  ;;  %v6284_v53 = vpop.f32.mrf.mxu3 }
 0x9cd   :  { %v9218_v0 = vld [vmem:[%s15493_s5 + $0x320] sm:$0xf] }
 0x9cf   :  { %v15102_v20 = vpop.f32.mrf.mxu1 }
 0x9d1   :  { %9107 = vmatmul.msk.bf16.vlgmr.msra.gmra.mxu2 %vm5759_vm3, %v6742_v63  ;;  %9124 = vmatmul.msk.bf16.vlgmr.msra.gmra.mxu3 %vm5759_vm3, %v6798_v4  ;;  %v9190_v63 = vld [vmem:[%s15493_s5 + $0x2f0] sm:$0xf]  ;;  %v9605_v4 = vld [vmem:[%s15493_s5 + $0x2f4] sm:$0xf0] }
 0x9d2   :  { %6997 = vmatpush.bf16.msra.mxu3 %v9173_v27  ;;  %6954 = vmatpush.bf16.msra.mxu2 %v9159_v32  ;;  %v9191_v13 = vor.u32 %v9605_v4, %v9190_v63  ;;  %v9611_v27 = vld [vmem:[%s15493_s5 + $0x324] sm:$0xf0]  ;;  %v9606_v32 = vld [vmem:[%s15493_s5 + $0x304] sm:$0xf] }
 0x9d3   :  { %v9219_v39 = vor.u32 %v9611_v27, %v9218_v0  ;;  %v9205_v47 = vor.u32 %v9606_v32, %v9202_v52 }
 0x9d4   :  { %v6325_v25 = vpop.f32.mrf.mxu2  ;;  %v6338_v60 = vpop.f32.mrf.mxu3 }
 0x9d5   :  { %v6342_v19 = vadd.f32 %v6325_v25, %v6286_v58  ;;  %v6343_v21 = vadd.f32 %v6338_v60, %v6287_v35  ;;  %v9613_v58 = vld [vmem:[%s15493_s5 + $0x334] sm:$0xf0]  ;;  %v9608_v35 = vld [vmem:[%s15493_s5 + $0x314] sm:$0xf] }
 0x9d6   :  { %6998 = vmatpush.bf16.msra.mxu3 %v9165_v5  ;;  %6955 = vmatpush.bf16.msra.mxu2 %v9151_v57  ;;  %v9227_v17 = vor.u32 %v9613_v58, %v9226_v46  ;;  %v9213_v7 = vor.u32 %v9608_v35, %v9210_v62 }
 0x9d7   :  { %v7452_v61 = vpop.f32.mrf.mxu1 }
 0x9dc   :  { %v6327_v6 = vpop.f32.mrf.mxu2  ;;  %v6340_v34 = vpop.f32.mrf.mxu3 }
 0x9dd   :  { %v9614_v6 = vld [vmem:[%s15493_s5 + $0x344] sm:$0xf] }
 0x9df   :  { %v15134_v12 = vpop.f32.mrf.mxu1 }
 0x9e1   :  { %9142 = vmatmul.msk.bf16.vlgmr.msrb.gmra.mxu2 %vm5759_vm3, %v14528_v15  ;;  %9143 = vmatmul.msk.bf16.vlgmr.msrb.gmra.mxu3 %vm5759_vm3, %v14528_v15  ;;  %v9615_v15 = vld [vmem:[%s15493_s5 + $0x344] sm:$0xf0] }
 0x9e2   :  { %7066 = vmatpush.bf16.msrb.mxu3 %v9195_v14  ;;  %7053 = vmatpush.bf16.msrb.mxu2 %v9191_v13  ;;  %v9238_v14 = vld [vmem:[%s15493_s5 + $0x348] sm:$0xf0]  ;;  %v9236_v13 = vld [vmem:[%s15493_s5 + $0x340] sm:$0xf] }
 0x9e3   :  { %v9241_v59 = vor.u32 %v9614_v6, %v9238_v14  ;;  %v9237_v38 = vor.u32 %v9615_v15, %v9236_v13 }
 0x9e4   :  { %v6381_v26 = vpop.f32.mrf.mxu2  ;;  %v6394_v16 = vpop.f32.mrf.mxu3 }
 0x9e5   :  { %v6398_v45 = vadd.f32 %v6381_v26, %v6342_v19  ;;  %v6399_v29 = vadd.f32 %v6394_v16, %v6343_v21  ;;  %v9616_v19 = vld [vmem:[%s15493_s5 + $0x354] sm:$0xf]  ;;  %v9617_v21 = vld [vmem:[%s15493_s5 + $0x354] sm:$0xf0]  ;;  %v9280_v16 = vld [vmem:[%s15493_s5 + $0x390] sm:$0xf] }
 0x9e6   :  { %7067 = vmatpush.bf16.msrb.mxu3 %v9187_v33  ;;  %7054 = vmatpush.bf16.msrb.mxu2 %v9183_v11 }
 0x9e7   :  { %v7521_v10 = vpop.f32.mrf.mxu1 }
 0x9e8   :  { %v9264_v10 = vld [vmem:[%s15493_s5 + $0x378] sm:$0xf0] }
 0x9ec   :  { %v6383_v42 = vpop.f32.mrf.mxu2  ;;  %v6396_v1 = vpop.f32.mrf.mxu3 }
 0x9ed   :  { %v9272_v42 = vld [vmem:[%s15493_s5 + $0x380] sm:$0xf]  ;;  %v9623_v1 = vld [vmem:[%s15493_s5 + $0x384] sm:$0xf0] }
 0x9ee   :  { %v9273_v0 = vor.u32 %v9623_v1, %v9272_v42 }
 0x9ef   :  { %v15164_v53 = vpop.f32.mrf.mxu1 }
 0x9f1   :  { %9161 = vmatmul.msk.bf16.vlgmr.msra.gmra.mxu2 %vm5759_vm3, %v6911_v44  ;;  %9178 = vmatmul.msk.bf16.vlgmr.msra.gmra.mxu3 %vm5759_vm3, %v6967_v49  ;;  %v9246_v44 = vld [vmem:[%s15493_s5 + $0x358] sm:$0xf0]  ;;  %v9244_v49 = vld [vmem:[%s15493_s5 + $0x350] sm:$0xf] }
 0x9f2   :  { %7166 = vmatpush.bf16.msra.mxu3 %v9227_v17  ;;  %7122 = vmatpush.bf16.msra.mxu2 %v9213_v7  ;;  %v9249_v63 = vor.u32 %v9616_v19, %v9246_v44  ;;  %v9245_v4 = vor.u32 %v9617_v21, %v9244_v49  ;;  %v9618_v17 = vld [vmem:[%s15493_s5 + $0x364] sm:$0xf]  ;;  %v9256_v7 = vld [vmem:[%s15493_s5 + $0x368] sm:$0xf0]  ;;  %v7192_v19 = vrot.slane %v14654_v2, 2 }
 0x9f3   :  { %v9259_v27 = vor.u32 %v9618_v17, %v9256_v7  ;;  %v9626_v21 = vld [vmem:[%s15493_s5 + $0x3a4] sm:$0xf]  ;;  %v9640_v7 = vld [vmem:[%s15493_s5 + $0x414] sm:$0xf] }
 0x9f4   :  { %v6437_v22 = vpop.f32.mrf.mxu2  ;;  %v6450_v5 = vpop.f32.mrf.mxu3 }
 0x9f5   :  { %v6454_v57 = vadd.f32 %v6437_v22, %v6398_v45  ;;  %v6455_v25 = vadd.f32 %v6450_v5, %v6399_v29  ;;  %v9625_v45 = vld [vmem:[%s15493_s5 + $0x394] sm:$0xf0]  ;;  %v9620_v29 = vld [vmem:[%s15493_s5 + $0x374] sm:$0xf]  ;;  %v9300_v5 = vld [vmem:[%s15493_s5 + $0x3b8] sm:$0xf0] }
 0x9f6   :  { %7167 = vmatpush.bf16.msra.mxu3 %v9219_v39  ;;  %7123 = vmatpush.bf16.msra.mxu2 %v9205_v47  ;;  %v9281_v35 = vor.u32 %v9625_v45, %v9280_v16  ;;  %v9267_v62 = vor.u32 %v9620_v29, %v9264_v10  ;;  %v9628_v22 = vld [vmem:[%s15493_s5 + $0x3b4] sm:$0xf]  ;;  %v9326_v45 = vld [vmem:[%s15493_s5 + $0x3e0] sm:$0xf]  ;;  %v9635_v29 = vld [vmem:[%s15493_s5 + $0x3e4] sm:$0xf0] }
 0x9f7   :  { %v7621_v60 = vpop.f32.mrf.mxu1  ;;  %v9303_v44 = vor.u32 %v9628_v22, %v9300_v5  ;;  %v9630_v10 = vld [vmem:[%s15493_s5 + $0x3c4] sm:$0xf]  ;;  %v9346_v5 = vld [vmem:[%s15493_s5 + $0x408] sm:$0xf0] }
 0x9f8   :  { %v9638_v22 = vld [vmem:[%s15493_s5 + $0x404] sm:$0xf] }
 0x9fc   :  { %v6439_v61 = vpop.f32.mrf.mxu2  ;;  %v6452_v48 = vpop.f32.mrf.mxu3 }
 0x9fd   :  { %v9292_v61 = vld [vmem:[%s15493_s5 + $0x3a8] sm:$0xf0]  ;;  %v9290_v48 = vld [vmem:[%s15493_s5 + $0x3a0] sm:$0xf] }
 0x9ff   :  { %v15197_v34 = vpop.f32.mrf.mxu1 }
 0xa01   :  { %9196 = vmatmul.msk.bf16.vlgmr.msrb.gmra.mxu2 %vm5759_vm3, %v7023_v51  ;;  %9197 = vmatmul.msk.bf16.vlgmr.msrb.gmra.mxu3 %vm5759_vm3, %v7023_v51  ;;  %v9627_v51 = vld [vmem:[%s15493_s5 + $0x3a4] sm:$0xf0] }
 0xa02   :  { %7235 = vmatpush.bf16.msrb.mxu3 %v9249_v63  ;;  %7222 = vmatpush.bf16.msrb.mxu2 %v9245_v4  ;;  %v9295_v63 = vor.u32 %v9626_v21, %v9292_v61  ;;  %v9291_v4 = vor.u32 %v9627_v51, %v9290_v48  ;;  %v9388_v61 = vld [vmem:[%s15493_s5 + $0x450] sm:$0xf]  ;;  %v9649_v48 = vld [vmem:[%s15493_s5 + $0x454] sm:$0xf0]  ;;  %v9644_v51 = vld [vmem:[%s15493_s5 + $0x434] sm:$0xf] }
 0xa04   :  { %v6494_v30 = vpop.f32.mrf.mxu2  ;;  %v6507_v8 = vpop.f32.mrf.mxu3 }
 0xa05   :  { %v6511_v33 = vadd.f32 %v6494_v30, %v6454_v57  ;;  %v6512_v11 = vadd.f32 %v6507_v8, %v6455_v25  ;;  %v9629_v57 = vld [vmem:[%s15493_s5 + $0x3b4] sm:$0xf0]  ;;  %v9632_v30 = vld [vmem:[%s15493_s5 + $0x3d4] sm:$0xf]  ;;  %v9318_v8 = vld [vmem:[%s15493_s5 + $0x3d8] sm:$0xf0] }
 0xa06   :  { %7236 = vmatpush.bf16.msrb.mxu3 %v9241_v59  ;;  %7223 = vmatpush.bf16.msrb.mxu2 %v9237_v38  ;;  %v9334_v59 = vld [vmem:[%s15493_s5 + $0x3f0] sm:$0xf]  ;;  %v9637_v38 = vld [vmem:[%s15493_s5 + $0x3f4] sm:$0xf0]  ;;  %v9321_v16 = vor.u32 %v9632_v30, %v9318_v8  ;;  %v9364_v30 = vld [vmem:[%s15493_s5 + $0x428] sm:$0xf0] }
 0xa07   :  { %v7690_v26 = vpop.f32.mrf.mxu1 }
 0xa08   :  { %v9335_v26 = vor.u32 %v9637_v38, %v9334_v59  ;;  %v9647_v59 = vld [vmem:[%s15493_s5 + $0x444] sm:$0xf0]  ;;  %v9642_v38 = vld [vmem:[%s15493_s5 + $0x424] sm:$0xf] }
 0xa0c   :  { %v6496_v46 = vpop.f32.mrf.mxu2  ;;  %v6509_v58 = vpop.f32.mrf.mxu3 }
 0xa0d   :  { %v9310_v46 = vld [vmem:[%s15493_s5 + $0x3c8] sm:$0xf0]  ;;  %v9327_v58 = vor.u32 %v9635_v29, %v9326_v45 }
 0xa11   :  { %9215 = vmatmul.msk.bf16.vlgmr.msra.gmra.mxu2 %vm5759_vm3, %v14654_v2  ;;  %9232 = vmatmul.msk.bf16.vlgmr.msra.gmra.mxu3 %vm5759_vm3, %v7136_v54  ;;  %v9298_v54 = vld [vmem:[%s15493_s5 + $0x3b0] sm:$0xf]  ;;  %v9354_v2 = vld [vmem:[%s15493_s5 + $0x418] sm:$0xf0] }
 0xa12   :  { %7334 = vmatpush.bf16.msra.mxu3 %v9281_v35  ;;  %7291 = vmatpush.bf16.msra.mxu2 %v9267_v62  ;;  %v9299_v49 = vor.u32 %v9629_v57, %v9298_v54  ;;  %v9313_v35 = vor.u32 %v9630_v10, %v9310_v46  ;;  %v9344_v54 = vld [vmem:[%s15493_s5 + $0x400] sm:$0xf]  ;;  %v9639_v57 = vld [vmem:[%s15493_s5 + $0x404] sm:$0xf0] }
 0xa14   :  { %v6550_v32 = vpop.f32.mrf.mxu2  ;;  %v6563_v52 = vpop.f32.mrf.mxu3 }
 0xa15   :  { %v6567_v39 = vadd.f32 %v6550_v32, %v6511_v33  ;;  %v6568_v47 = vadd.f32 %v6563_v52, %v6512_v11  ;;  %v7361_v52 = vrot.slane %v14790_v43, 1 }
 0xa16   :  { %7335 = vmatpush.bf16.msra.mxu3 %v9273_v0  ;;  %7292 = vmatpush.bf16.msra.mxu2 %v9259_v27  ;;  %v9641_v0 = vld [vmem:[%s15493_s5 + $0x414] sm:$0xf0] }
 0xa1c   :  { %v6552_v25 = vpop.f32.mrf.mxu2  ;;  %v6565_v60 = vpop.f32.mrf.mxu3 }
 0xa1d   :  { %v9349_v25 = vor.u32 %v9638_v22, %v9346_v5  ;;  %v9345_v60 = vor.u32 %v9639_v57, %v9344_v54 }
 0xa21   :  { %9250 = vmatmul.msk.bf16.vlgmr.msrb.gmra.mxu2 %vm5759_vm3, %v7192_v19  ;;  %9251 = vmatmul.msk.bf16.vlgmr.msrb.gmra.mxu3 %vm5759_vm3, %v7192_v19 }
 0xa22   :  { %7404 = vmatpush.bf16.msrb.mxu3 %v9303_v44  ;;  %7391 = vmatpush.bf16.msrb.mxu2 %v9299_v49 }
 0xa24   :  { %v6606_v6 = vpop.f32.mrf.mxu2  ;;  %v6619_v14 = vpop.f32.mrf.mxu3 }
 0xa25   :  { %v6623_v13 = vadd.f32 %v6606_v6, %v6567_v39  ;;  %v6624_v15 = vadd.f32 %v6619_v14, %v6568_v47  ;;  %v9357_v39 = vor.u32 %v9640_v7, %v9354_v2  ;;  %v9389_v14 = vor.u32 %v9649_v48, %v9388_v61 }
 0xa26   :  { %7405 = vmatpush.bf16.msrb.mxu3 %v9295_v63  ;;  %7392 = vmatpush.bf16.msrb.mxu2 %v9291_v4  ;;  %v9372_v63 = vld [vmem:[%s15493_s5 + $0x438] sm:$0xf0] }
 0xa2c   :  { %v6608_v33 = vpop.f32.mrf.mxu2  ;;  %v6621_v11 = vpop.f32.mrf.mxu3 }
 0xa2d   :  { %v9367_v33 = vor.u32 %v9642_v38, %v9364_v30 }
 0xa31   :  { %9269 = vmatmul.msk.bf16.vlgmr.msra.gmra.mxu2 %vm5759_vm3, %v7248_v3  ;;  %9286 = vmatmul.msk.bf16.vlgmr.msra.gmra.mxu3 %vm5759_vm3, %v14790_v43  ;;  %v9352_v3 = vld [vmem:[%s15493_s5 + $0x410] sm:$0xf]  ;;  %v9408_v43 = vld [vmem:[%s15493_s5 + $0x478] sm:$0xf0] }
 0xa32   :  { %7503 = vmatpush.bf16.msra.mxu3 %v9335_v26  ;;  %7460 = vmatpush.bf16.msra.mxu2 %v9321_v16  ;;  %v9353_v47 = vor.u32 %v9641_v0, %v9352_v3 }
 0xa34   :  { %v6662_v62 = vpop.f32.mrf.mxu2  ;;  %v6675_v42 = vpop.f32.mrf.mxu3 }
 0xa35   :  { %v6679_v1 = vadd.f32 %v6662_v62, %v6623_v13  ;;  %v6680_v17 = vadd.f32 %v6675_v42, %v6624_v15  ;;  %v9375_v13 = vor.u32 %v9644_v51, %v9372_v63  ;;  %v9380_v15 = vld [vmem:[%s15493_s5 + $0x440] sm:$0xf]  ;;  %v9650_v62 = vld [vmem:[%s15493_s5 + $0x464] sm:$0xf]  ;;  %v9400_v42 = vld [vmem:[%s15493_s5 + $0x468] sm:$0xf0] }
 0xa36   :  { %7504 = vmatpush.bf16.msra.mxu3 %v9327_v58  ;;  %7461 = vmatpush.bf16.msra.mxu2 %v9313_v35  ;;  %v9381_v8 = vor.u32 %v9647_v59, %v9380_v15  ;;  %v9403_v7 = vor.u32 %v9650_v62, %v9400_v42  ;;  %v9659_v62 = vld [vmem:[%s15495_s7 + $0x28] sm:$0xff] }
 0xa37   :  { %v9667_v42 = vld [vmem:[%s15495_s7 + $0x68] sm:$0xff] }
 0xa3c   :  { %v6664_v27 = vpop.f32.mrf.mxu2  ;;  %v6677_v32 = vpop.f32.mrf.mxu3 }
 0xa41   :  { %9304 = vmatmul.msk.bf16.vlgmr.msrb.gmra.mxu2 %vm5759_vm3, %v7361_v52  ;;  %9305 = vmatmul.msk.bf16.vlgmr.msrb.gmra.mxu3 %vm5759_vm3, %v7361_v52 }
 0xa42   :  { %7572 = vmatpush.bf16.msrb.mxu3 %v9357_v39  ;;  %7559 = vmatpush.bf16.msrb.mxu2 %v9353_v47 }
 0xa44   :  { %v6719_v19 = vpop.f32.mrf.mxu2  ;;  %v6732_v44 = vpop.f32.mrf.mxu3 }
 0xa45   :  { %v6736_v49 = vadd.f32 %v6719_v19, %v6679_v1  ;;  %v6737_v21 = vadd.f32 %v6732_v44, %v6680_v17  ;;  %v9398_v1 = vld [vmem:[%s15493_s5 + $0x460] sm:$0xf]  ;;  %v9651_v17 = vld [vmem:[%s15493_s5 + $0x464] sm:$0xf0]  ;;  %v7698_v19 = vrot.slane %v14903_v41, 3 }
 0xa46   :  { %7573 = vmatpush.bf16.msrb.mxu3 %v9349_v25  ;;  %7560 = vmatpush.bf16.msrb.mxu2 %v9345_v60  ;;  %v9399_v2 = vor.u32 %v9651_v17, %v9398_v1  ;;  %v9658_v1 = vld [vmem:[%s15495_s7 + $0x20] sm:$0xff] }
 0xa47   :  { %v6792_v11 = vadd.f32 %v14825_v40, %v6736_v49  ;;  %v9653_v40 = vld [vmem:[%s15493_s5 + $0x474] sm:$0xf0]  ;;  %v9666_v17 = vld [vmem:[%s15495_s7 + $0x60] sm:$0xff] }
 0xa4c   :  { %v6721_v4 = vpop.f32.mrf.mxu2  ;;  %v6734_v6 = vpop.f32.mrf.mxu3 }
 0xa51   :  { %9323 = vmatmul.msk.bf16.vlgmr.msra.gmra.mxu2 %vm5759_vm3, %v7417_v50  ;;  %9340 = vmatmul.msk.bf16.vlgmr.msra.gmra.mxu3 %vm5759_vm3, %v7473_v9  ;;  %v9652_v50 = vld [vmem:[%s15493_s5 + $0x474] sm:$0xf]  ;;  %v9406_v9 = vld [vmem:[%s15493_s5 + $0x470] sm:$0xf] }
 0xa52   :  { %7672 = vmatpush.bf16.msra.mxu3 %v9389_v14  ;;  %7629 = vmatpush.bf16.msra.mxu2 %v9375_v13  ;;  %v9411_v58 = vor.u32 %v9652_v50, %v9408_v43  ;;  %v9407_v35 = vor.u32 %v9653_v40, %v9406_v9 }
 0xa54   :  { %v6788_v26 = vpop.f32.mrf.mxu2  ;;  %v6831_v16 = vpop.f32.mrf.mxu3 }
 0xa55   :  { %v6793_v45 = vadd.f32 %v6788_v26, %v6737_v21  ;;  %v6848_v29 = vadd.f32 %v6831_v16, %v6792_v11 }
 0xa56   :  { %7673 = vmatpush.bf16.msra.mxu3 %v9381_v8  ;;  %7630 = vmatpush.bf16.msra.mxu2 %v9367_v33 }
 0xa57   :  { %v6849_v3 = vadd.f32 %v14870_v55, %v6793_v45 }
 0xa5c   :  { %v6790_v10 = vpop.f32.mrf.mxu2  ;;  %v6833_v46 = vpop.f32.mrf.mxu3 }
 0xa5d   :  { %v9669_v10 = vld [vmem:[%s15495_s7 + $0x78] sm:$0xff]  ;;  %v9668_v46 = vld [vmem:[%s15495_s7 + $0x70] sm:$0xff] }
 0xa61   :  { %9358 = vmatmul.msk.bf16.vlgmr.msrb.gmra.mxu2 %vm5759_vm3, %v14903_v41  ;;  %9359 = vmatmul.msk.bf16.vlgmr.msrb.gmra.mxu3 %vm5759_vm3, %v14903_v41 }
 0xa62   :  { %7741 = vmatpush.bf16.msrb.mxu3 %v9411_v58  ;;  %7728 = vmatpush.bf16.msrb.mxu2 %v9407_v35 }
 0xa64   :  { %v6887_v0 = vpop.f32.mrf.mxu2  ;;  %v6900_v27 = vpop.f32.mrf.mxu3 }
 0xa65   :  { %v6904_v32 = vadd.f32 %v6887_v0, %v6848_v29  ;;  %v6905_v52 = vadd.f32 %v6900_v27, %v6849_v3  ;;  %v9657_v3 = vld [vmem:[%s15495_s7 + $0x18] sm:$0xff]  ;;  %v9656_v27 = vld [vmem:[%s15495_s7 + $0x10] sm:$0xff] }
 0xa66   :  { %7742 = vmatpush.bf16.msrb.mxu3 %v9403_v7  ;;  %7729 = vmatpush.bf16.msrb.mxu2 %v9399_v2  ;;  %v9665_v0 = vld [vmem:[%s15495_s7 + $0x58] sm:$0xff] }
 0xa67   :  { %v6961_v22 = vadd.f32 %v14915_v36, %v6904_v32  ;;  %v9664_v32 = vld [vmem:[%s15495_s7 + $0x50] sm:$0xff] }
 0xa6c   :  { %v6889_v39 = vpop.f32.mrf.mxu2  ;;  %v6902_v47 = vpop.f32.mrf.mxu3 }
 0xa6d   :  { %v9655_v47 = vld [vmem:[%s15495_s7 + $0x8] sm:$0xff] }
 0xa71   :  { %9377 = vmatmul.msk.bf16.vlgmr.msra.gmra.mxu2 %vm5759_vm3, %v7586_v18  ;;  %9394 = vmatmul.msk.bf16.vlgmr.msra.gmra.mxu3 %vm5759_vm3, %v7642_v24 }
 0xa72   :  { %7907 = vmatpush.bf16.msra.mxu2 %v9669_v10  ;;  %v9684_v10 = vld [vmem:[%s15496_s8] ss:$0 sm:$0xff]  ;;  %s9718_s8 = smov [#allocation2]  }
 0xa74   :  { %v6957_v5 = vpop.f32.mrf.mxu2  ;;  %v7000_v55 = vpop.f32.mrf.mxu3 }
 0xa75   :  { %v6962_v54 = vadd.f32 %v6957_v5, %v6905_v52  ;;  %v7017_v57 = vadd.f32 %v7000_v55, %v6961_v22  ;;  %v9663_v22 = vld [vmem:[%s15495_s7 + $0x48] sm:$0xff]  ;;  %v9654_v5 = vld [vmem:[%s15495_s7] sm:$0xff] }
 0xa76   :  { %7908 = vmatpush.bf16.msra.mxu2 %v9668_v46  ;;  %v9662_v55 = vld [vmem:[%s15495_s7 + $0x40] sm:$0xff] }
 0xa77   :  { %v7018_v18 = vadd.f32 %v14949_v28, %v6962_v54 }
 0xa7a   :  { %7909 = vmatpush.bf16.msra.mxu2 %v9667_v42 }
 0xa7c   :  { %v6959_v25 = vpop.f32.mrf.mxu2  ;;  %v7002_v60 = vpop.f32.mrf.mxu3 }
 0xa7d   :  { %v9677_v25 = vld [vmem:[%s15497_s9 + $0x38] sm:$0xff]  ;;  %v9676_v60 = vld [vmem:[%s15497_s9 + $0x30] sm:$0xff] }
 0xa7e   :  { %7910 = vmatpush.bf16.msra.mxu2 %v9666_v17  ;;  %7990 = vmatpush.bf16.msra.mxu3 %v9677_v25  ;;  %v9685_v17 = vld [vmem:[%s15498_s10] ss:$0 sm:$0xff] }
 0xa81   :  { %9412 = vmatmul.msk.bf16.vlgmr.msrb.gmra.mxu2 %vm5759_vm3, %v7698_v19  ;;  %9413 = vmatmul.msk.bf16.vlgmr.msrb.gmra.mxu3 %vm5759_vm3, %v7698_v19 }
 0xa82   :  { %7911 = vmatpush.bf16.msra.mxu2 %v9665_v0  ;;  %7991 = vmatpush.bf16.msra.mxu3 %v9676_v60 }
 0xa84   :  { %v7056_v44 = vpop.f32.mrf.mxu2  ;;  %v7069_v49 = vpop.f32.mrf.mxu3 }
 0xa85   :  { %v7073_v21 = vadd.f32 %v7056_v44, %v7017_v57  ;;  %v7074_v24 = vadd.f32 %v7069_v49, %v7018_v18  ;;  %v9675_v18 = vld [vmem:[%s15497_s9 + $0x28] sm:$0xff] }
 0xa86   :  { %7912 = vmatpush.bf16.msra.mxu2 %v9664_v32  ;;  %7992 = vmatpush.bf16.msra.mxu3 %v9675_v18 }
 0xa87   :  { %v7129_v48 = vadd.f32 %v14986_v23, %v7073_v21 }
 0xa8a   :  { %7913 = vmatpush.bf16.msra.mxu2 %v9663_v22 }
 0xa8c   :  { %v7058_v61 = vpop.f32.mrf.mxu2  ;;  %v7071_v36 = vpop.f32.mrf.mxu3 }
 0xa8d   :  { %v9674_v36 = vld [vmem:[%s15497_s9 + $0x20] sm:$0xff] }
 0xa8e   :  { %7914 = vmatpush.bf16.msra.mxu2 %v9662_v55  ;;  %7993 = vmatpush.bf16.msra.mxu3 %v9674_v36 }
 0xa94   :  { %v7125_v51 = vpop.f32.mrf.mxu2  ;;  %v7169_v63 = vpop.f32.mrf.mxu3 }
 0xa95   :  { %v7130_v4 = vadd.f32 %v7125_v51, %v7074_v24  ;;  %v7186_v6 = vadd.f32 %v7169_v63, %v7129_v48  ;;  %v9673_v63 = vld [vmem:[%s15497_s9 + $0x18] sm:$0xff] }
 0xa96   :  { %7994 = vmatpush.bf16.msra.mxu3 %v9673_v63 }
 0xa97   :  { %v7187_v13 = vadd.f32 %v15015_v56, %v7130_v4  ;;  %v9661_v56 = vld [vmem:[%s15495_s7 + $0x38] sm:$0xff] }
 0xa98   :  { %7894 = vmatpush.bf16.msrb.mxu1 %v9661_v56 }
 0xa9c   :  { %v7127_v14 = vpop.f32.mrf.mxu2  ;;  %v7171_v41 = vpop.f32.mrf.mxu3 }
 0xaa4   :  { %v7225_v15 = vpop.f32.mrf.mxu2  ;;  %v7238_v59 = vpop.f32.mrf.mxu3 }
 0xaa5   :  { %v7242_v38 = vadd.f32 %v7225_v15, %v7186_v6  ;;  %v7243_v28 = vadd.f32 %v7238_v59, %v7187_v13  ;;  %v7750_v15 = vld [vmem:[%s15494_s6] sm:$0x3] }
 0xaa7   :  { %v7298_v33 = vadd.f32 %v15043_v31, %v7242_v38  ;;  %v9660_v31 = vld [vmem:[%s15495_s7 + $0x30] sm:$0xff]  ;;  %v7752_v38 = vperm.slane %v7750_v15, 0 }
 0xaa8   :  { %7895 = vmatpush.bf16.msrb.mxu1 %v9660_v31 }
 0xaac   :  { %v7227_v30 = vpop.f32.mrf.mxu2  ;;  %v7240_v8 = vpop.f32.mrf.mxu3  ;;  %7896 = vmatpush.bf16.msrb.mxu1 %v9659_v62 }
 0xab0   :  { %7897 = vmatpush.bf16.msrb.mxu1 %v9658_v1 }
 0xab4   :  { %v7294_v11 = vpop.f32.mrf.mxu2  ;;  %v7337_v26 = vpop.f32.mrf.mxu3  ;;  %7898 = vmatpush.bf16.msrb.mxu1 %v9657_v3 }
 0xab5   :  { %v7299_v16 = vadd.f32 %v7294_v11, %v7243_v28  ;;  %v7354_v23 = vadd.f32 %v7337_v26, %v7298_v33  ;;  %v7753_v28 = vperm.slane %v7750_v15, 1 }
 0xab7   :  { %v7355_v19 = vadd.f32 %v15074_v37, %v7299_v16 }
 0xab8   :  { %7899 = vmatpush.bf16.msrb.mxu1 %v9656_v27 }
 0xabc   :  { %v7296_v45 = vpop.f32.mrf.mxu2  ;;  %v7339_v29 = vpop.f32.mrf.mxu3  ;;  %7900 = vmatpush.bf16.msrb.mxu1 %v9655_v47 }
 0xac0   :  { %7901 = vmatpush.bf16.msrb.mxu1 %v9654_v5 }
 0xac4   :  { %v7394_v50 = vpop.f32.mrf.mxu2  ;;  %v7407_v43 = vpop.f32.mrf.mxu3 }
 0xac5   :  { %v7411_v21 = vadd.f32 %v7394_v50, %v7354_v23  ;;  %v7412_v24 = vadd.f32 %v7407_v43, %v7355_v19 }
 0xac7   :  { %v7467_v48 = vadd.f32 %v15102_v20, %v7411_v21 }
 0xacc   :  { %v7396_v9 = vpop.f32.mrf.mxu2  ;;  %v7409_v40 = vpop.f32.mrf.mxu3 }
 0xacd   :  { %v9670_v40 = vld [vmem:[%s15497_s9] sm:$0xff] }
 0xad4   :  { %v7463_v58 = vpop.f32.mrf.mxu2  ;;  %v7506_v35 = vpop.f32.mrf.mxu3 }
 0xad5   :  { %v7468_v61 = vadd.f32 %v7463_v58, %v7412_v24  ;;  %v7523_v51 = vadd.f32 %v7506_v35, %v7467_v48 }
 0xad7   :  { %v7524_v37 = vadd.f32 %v15134_v12, %v7468_v61 }
 0xadc   :  { %v7465_v7 = vpop.f32.mrf.mxu2  ;;  %v7508_v2 = vpop.f32.mrf.mxu3 }
 0xae4   :  { %v7562_v52 = vpop.f32.mrf.mxu2  ;;  %v7575_v39 = vpop.f32.mrf.mxu3 }
 0xae5   :  { %v7579_v14 = vadd.f32 %v7562_v52, %v7523_v51  ;;  %v7580_v41 = vadd.f32 %v7575_v39, %v7524_v37 }
 0xae7   :  { %v7636_v20 = vadd.f32 %v15164_v53, %v7579_v14  ;;  %v9672_v53 = vld [vmem:[%s15497_s9 + $0x10] sm:$0xff] }
 0xae8   :  { %7995 = vmatpush.bf16.msra.mxu3 %v9672_v53 }
 0xaec   :  { %v7564_v54 = vpop.f32.mrf.mxu2  ;;  %v7577_v57 = vpop.f32.mrf.mxu3 }
 0xaf4   :  { %v7632_v44 = vpop.f32.mrf.mxu2  ;;  %v7675_v49 = vpop.f32.mrf.mxu3 }
 0xaf5   :  { %v7637_v13 = vadd.f32 %v7632_v44, %v7580_v41  ;;  %v7692_v59 = vadd.f32 %v7675_v49, %v7636_v20 }
 0xaf7   :  { %v7693_v12 = vadd.f32 %v15197_v34, %v7637_v13  ;;  %v9671_v34 = vld [vmem:[%s15497_s9 + $0x8] sm:$0xff]  ;;  %s8034_s9 = sshll.u32 %s9718_s8, 4  ;;  %s8035_s9 = int_to_ptr.vmem [resolvable:$true] %s8034_s9 }
 0xaf8   :  { %7996 = vmatpush.bf16.msra.mxu3 %v9671_v34 }
 0xafc   :  { %v7634_v4 = vpop.f32.mrf.mxu2  ;;  %v7677_v6 = vpop.f32.mrf.mxu3  ;;  %7997 = vmatpush.bf16.msra.mxu3 %v9670_v40 }
 0xb04   :  { %v7731_v30 = vpop.f32.mrf.mxu2  ;;  %v7744_v8 = vpop.f32.mrf.mxu3 }
 0xb05   :  { %v7748_v33 = vadd.f32 %v7731_v30, %v7692_v59  ;;  %v7749_v11 = vadd.f32 %v7744_v8, %v7693_v12 }
 0xb07   :  { %v7756_v26 = vadd.f32 %v7752_v38, %v7748_v33  ;;  %v7757_v16 = vadd.f32 %v7753_v28, %v7749_v11 }
 0xb09   :  { %v7758_v23 = vmax.f32 %v7756_v26, 0.0  ;;  %v7759_v45 = vmax.f32 %v7757_v16, 0.0 }
 0xb0b   :  { %v7760_v29 = vpack.c.bf16 %v7758_v23, %v7758_v23  ;;  %v7761_v50 = vpack.c.bf16 %v7759_v45, %v7759_v45 }
 0xb0c   :  { %v7733_v43 = vpop.f32.mrf.mxu2  ;;  %v7746_v9 = vpop.f32.mrf.mxu3 }
 0xb0d   :  { %7902 = vmatmul.bf16.vlgmr.msrb.gmra.mxu1 %v7760_v29  ;;  %7915 = vmatmul.bf16.vlgmr.msra.gmra.mxu2 %v7761_v50 }
 0xb8a   :  { %v7903_v56 = vpop.f32.mrf.mxu1 }
 0xb8b   :  { %v7904_v31 = vadd.f32 %v9684_v10, %v7903_v56 }
 0xb90   :  { %v7916_v46 = vpop.f32.mrf.mxu2 }
 0xb91   :  { %v7917_v58 = vadd.f32 %v7916_v46, %v7904_v31 }
 0xb92   :  { %v7905_v35 = vpop.f32.mrf.mxu1 }
 0xb93   :  { %v7920_v62 = vmax.f32 %v7917_v58, 0.0 }
 0xb95   :  { %v7921_v42 = vpack.c.bf16 %v7920_v62, %v7920_v62 }
 0xb97   :  { %7998 = vmatmul.bf16.vlgmr.msra.gmra.mxu3 %v7921_v42 }
 0xb98   :  { %v7918_v1 = vpop.f32.mrf.mxu2 }
 0xc1a   :  { %v7999_v7 = vpop.f32.mrf.mxu3 }
 0xc1b   :  { %v8000_v2 = vadd.f32 %v9685_v17, %v7999_v7 }
 0xc1d   :  { %v8004_v3 = vsel %vm8003_vm4, %v8000_v2, -inf }
 0xc1e   :  { %8005 = vmax.xlane.f32.xlu0 %v8004_v3 }
 0xc22   :  { %v8001_v0 = vpop.f32.mrf.mxu3 }
 0xc91   :  { %v8006_v27 = vpop.xlane.xlu0 %8005 }
 0xc92   :  { %v8007_v32 = vsub.f32 %v8000_v2, %v8006_v27 }
 0xc94   :  { %v8008_v52 = vmul.f32 1.442695, %v8007_v32 }
 0xc96   :  { %9686 = vpow2.f32 %v8008_v52 }
 0xc9c   :  { %v9687_v39 = vpop.eup %9686 }
 0xc9d   :  { %v8010_v47 = vsel %vm8003_vm4, %v9687_v39, 0.0 }
 0xc9e   :  { %8011 = vadd.xlane.f32.xlu0 %v8010_v47 }
 0xd11   :  { %v8012_v22 = vpop.xlane.xlu0 %8011 }
 0xd12   :  { %9688 = vrcp.f32 %v8012_v22  ;;  %v8024_v57 = vand.u32 2147483648, %v8012_v22  ;;  %v8022_v60 = vand.u32 2147483647, %v8012_v22  ;;  %vm8018_vm6 = vweird.f32 %v8012_v22 }
 0xd14   :  { %v8025_v18 = vor.u32 1.1754944e-38, %v8024_v57  ;;  %vm8023_vm8 = vcmp.eq.f32.partialorder %v8022_v60, 8.507059e+37 }
 0xd18   :  { %v9689_v5 = vpop.eup %9688 }
 0xd19   :  { %v8014_v55 = vmul.f32 %v9689_v5, %v8012_v22  ;;  %vm8019_vm5 = vweird.f32 %v9689_v5 }
 0xd1a   :  { %vm8020_vm7 = vmor %vm8018_vm6, %vm8019_vm5 }
 0xd1b   :  { %v8015_v54 = vsub.f32 1.0, %v8014_v55 }
 0xd1d   :  { %v8016_v25 = vmul.f32 %v9689_v5, %v8015_v54 }
 0xd1f   :  { %v8017_v19 = vadd.f32 %v9689_v5, %v8016_v25 }
 0xd21   :  { %v8021_v44 = vsel %vm8020_vm7, %v9689_v5, %v8017_v19 }
 0xd22   :  { %v8026_v49 = vsel %vm8023_vm8, %v8025_v18, %v8021_v44 }
 0xd23   :  { %v8027_v21 = vmul.f32 %v9687_v39, %v8026_v49 }
 0xd25   :  { %8028 = vst.msk [vmem:[#allocation2] sm:$0x3] %vm8003_vm4, %v8027_v21 }
 0xd26   :  { %8039 = dma.vmem_to_hbm [thread:$0]  %s8035_s9, 32, %s8037_s16, [#allocation3]  }
 0xd27   :  { %9716 = dma.done.wait [#allocation3], 32  }
 0xd28   :  { %9717 = vsyncadd [#allocation3], 4294967264 }
 0xd29   :  { %8044 = vsyncpa [#allocation3], 1 }

</bundles_post_ra>
